<compile_context>
chip_gen: v7x
topology: tpu7x:2x2x1
jax: 0.10.0
libtpu: 0.0.40
codegen_flags: <defaults>
</compile_context>

<pallas_src>
import functools

import jax
import jax.numpy as jnp
from jax.experimental import pallas as pl
from jax.experimental.pallas import tpu as pltpu

GROWTH = 12      # dense-block growth rate (matches the PyTorch module)
TRAN_CH = 200    # transition conv output channels (fixed by the module)


# ---------------------------------------------------------------------------
# Parameters (synthetic, shape-consistent with the PyTorch module).
# Conv weights stored as (taps, Cin, Cout):
#   spectral (7,1,1) convs  -> (7, Cin, Cout)     tap = depth offset
#   transition (size1,1,1)  -> (size1, 60, 200)   tap = depth
#   spatial   (.,3,3) convs -> (9, Cin, Cout)     tap = dh*3 + dw
# ---------------------------------------------------------------------------
def init_params(key, bands, classes):
    size1 = bands - 6
    kit = iter(jax.random.split(key, 64))

    def nrm(shape, s=0.05):
        return jax.random.normal(next(kit), shape, dtype=jnp.float32) * s

    def bn_params(c):
        return {
            "gamma": 1.0 + nrm((c,), 0.1),
            "beta": nrm((c,), 0.1),
            "mean": nrm((c,), 0.1),
            "var": 1.0 + jnp.abs(nrm((c,), 0.1)),
            "alpha": jnp.full((), 0.25, jnp.float32),   # PReLU default
        }

    p = {"conv1_w": nrm((7, 1, 24)), "conv1_b": nrm((24,))}
    cin = 24
    for i in (1, 2, 3):                                 # spectral dense block
        p[f"spe{i}_bn"] = bn_params(cin)
        p[f"spe{i}_w"] = nrm((7, cin, GROWTH))
        p[f"spe{i}_b"] = nrm((GROWTH,))
        cin += GROWTH
    p["bn1"] = bn_params(cin)                           # 60 channels
    p["tran_w"] = nrm((size1, cin, TRAN_CH))
    p["tran_b"] = nrm((TRAN_CH,))
    p["tran_bn"] = bn_params(TRAN_CH)
    p["conv2_w"] = nrm((9, TRAN_CH, 24))
    p["conv2_b"] = nrm((24,))
    cin = 24
    for i in (1, 2, 3):                                 # spatial dense block
        p[f"spa{i}_bn"] = bn_params(cin)
        p[f"spa{i}_w"] = nrm((9, cin, GROWTH))
        p[f"spa{i}_b"] = nrm((GROWTH,))
        cin += GROWTH
    p["bn2"] = bn_params(cin)                           # 60 channels
    p["fc_w"] = nrm((cin, classes), 0.2)
    p["fc_b"] = nrm((classes,))
    return p


def _fold_bn(bn):
    """Eval-mode BatchNorm -> per-channel (scale, shift), each shaped (1, C)."""
    scale = bn["gamma"] / jnp.sqrt(bn["var"] + 1e-5)
    shift = bn["beta"] - bn["mean"] * scale
    return scale.reshape(1, -1), shift.reshape(1, -1)


# ---------------------------------------------------------------------------
# Fused kernel
# ---------------------------------------------------------------------------
def _make_kernel(bands, H, W, classes, B, HW_pad, HALO):
    size1 = bands - 6
    R = B * HW_pad                      # rows per grid step (batch folded into M)
    bf16 = jnp.bfloat16
    f32 = jnp.float32
    # 3x3 tap row shifts on the flattened H*W grid (wrap/garbage only hits
    # border rows, which are masked downstream).
    SHIFTS = tuple((dh - 1) * W + (dw - 1) for dh in range(3) for dw in range(3))

    def prelu(v, a):
        return jnp.where(v >= 0.0, v, a * v)

    def kernel(x_ref, mask_ref, pool_ref, alpha_ref,
               w1, b1,
               s1sc, s1sh, s1w, s1b,
               s2sc, s2sh, s2w, s2b,
               s3sc, s3sh, s3w, s3b,
               bn1sc, bn1sh, trw, trb,
               tbsc, tbsh,
               c2w, c2b,
               a1sc, a1sh, a1w, a1b,
               a2sc, a2sh, a2w, a2b,
               a3sc, a3sh, a3w, a3b,
               bn2sc, bn2sh,
               fcw, fcb,
               out_ref,
               spe_raw, spa_buf, ypad):

        # Zero the row-halo of the spatial shift buffer (never written again).
        ypad[0:HALO, :] = jnp.zeros((HALO, TRAN_CH), bf16)
        ypad[HALO + R:HALO + R + HALO, :] = jnp.zeros((HALO, TRAN_CH), bf16)

        # ------------------------- spectral stage -------------------------
        # lane layout of spe_raw: lane = channel*size1 + depth  (channel-major)
        # -> dense-block concat is a contiguous lane prefix, and every conv is
        #    one matmul against a block-banded weight matrix.
        x = x_ref[...]                                              # (R, bands) bf16
        feat = jnp.dot(x, w1[...], preferred_element_type=f32) + b1[...]
        spe_raw[:, 0:24 * size1] = feat                             # conv1 raw output

        def spe_layer(cin_ch, sc, sh, alpha, wmat, bias):
            k = cin_ch * size1
            y = prelu(spe_raw[:, 0:k] * sc[...] + sh[...], alpha)   # pre-activation
            out = jnp.dot(y.astype(bf16), wmat[...],
                          preferred_element_type=f32) + bias[...]
            spe_raw[:, k:k + GROWTH * size1] = out                  # single store

        spe_layer(24, s1sc, s1sh, alpha_ref[0], s1w, s1b)
        spe_layer(36, s2sc, s2sh, alpha_ref[1], s2w, s2b)
        spe_layer(48, s3sc, s3sh, alpha_ref[2], s3w, s3b)

        # bn_prelu1 + transition conv (one matmul, K = size1*60) + tran_bn
        y1 = prelu(spe_raw[...] * bn1sc[...] + bn1sh[...], alpha_ref[3])
        tran = jnp.dot(y1.astype(bf16), trw[...],
                       preferred_element_type=f32) + trb[...]       # (R, 200)
        tran = prelu(tran * tbsc[...] + tbsh[...], alpha_ref[4])

        # -------------------------- spatial stage -------------------------
        mask = mask_ref[...]                                        # (R, 1) interior mask

        def conv3x3(cin_ch, wref, bias, cout):
            """9-tap 3x3 conv; taps are full-length slices of the halo'd shift
            buffer, accumulated in registers, MXU f32 accumulation."""
            acc = jnp.broadcast_to(bias[...], (R, cout))
            for t, s in enumerate(SHIFTS):
                lhs = ypad[HALO + s:HALO + s + R, 0:cin_ch]         # bf16
                acc = acc + jnp.dot(lhs, wref[t], preferred_element_type=f32)
            return acc

        # conv2: (200,3,3) valid conv on the real HxW grid of tran.
        ypad[HALO:HALO + R, 0:TRAN_CH] = tran.astype(bf16)          # cast once
        spa_buf[:, 0:24] = conv3x3(TRAN_CH, c2w, c2b, 24)

        def spa_layer(cin_ch, c0, sc, sh, alpha, wref, bias):
            # pre-activation BN+PReLU, then zero the padding border (PyTorch
            # zero-pads *after* the activation) before the 3x3 conv.
            y = prelu(spa_buf[:, 0:cin_ch] * sc[...] + sh[...], alpha) * mask
            ypad[HALO:HALO + R, 0:cin_ch] = y.astype(bf16)
            spa_buf[:, c0:c0 + GROWTH] = conv3x3(cin_ch, wref, bias, GROWTH)

        spa_layer(24, 24, a1sc, a1sh, alpha_ref[5], a1w, a1b)
        spa_layer(36, 36, a2sc, a2sh, alpha_ref[6], a2w, a2b)
        spa_layer(48, 48, a3sc, a3sh, alpha_ref[7], a3w, a3b)

        # -------- bn_prelu2 + pooled-by-matmul + dropout(eval) + FC --------
        x2 = prelu(spa_buf[...] * bn2sc[...] + bn2sh[...], alpha_ref[8])
        # pool matrix has interior-mask/area per sample -> masks border/pad
        # rows and normalizes the average in one MXU op.
        pooled = jnp.dot(pool_ref[...], x2.astype(bf16),
                         preferred_element_type=f32)                # (B, 60)
        dense = jnp.dot(pooled, fcw[...], preferred_element_type=f32) + fcb[...]
        out_ref[0] = dense.astype(out_ref.dtype)

    return kernel


# ---------------------------------------------------------------------------
# Forward pass wrapper
# ---------------------------------------------------------------------------
def fdssc_forward(x_ncdhw, params, samples_per_step=None):
    assert x_ncdhw.shape[1] == 1, "expected a single input channel"
    N, _, bands, H, W = x_ncdhw.shape
    size1 = bands - 6
    HW = H * W
    HW_pad = ((HW + 7) // 8) * 8
    HALO = ((W + 1 + 7) // 8) * 8             # row halo >= max 3x3 shift, 8-aligned
    classes = params["fc_w"].shape[1]
    f32, bf16 = jnp.float32, jnp.bfloat16

    # ---- batching: B samples per grid step, grid kept >= 2 when possible ---
    if samples_per_step is None:
        B = max(1, min(8, N // 2)) if N >= 2 else 1
    else:
        B = int(samples_per_step)
    G = -(-N // B)
    N_pad = G * B
    R = B * HW_pad

    # ---- host-side prep (constant-folded under jit) -------------------------
    # spectral input layout: row = sample*HW_pad + h*W + w, lane = band.
    xr = x_ncdhw.astype(f32).reshape(N, bands, HW).transpose(0, 2, 1)
    xr = jnp.pad(xr, ((0, N_pad - N), (0, HW_pad - HW), (0, 0)))
    x_rows = xr.reshape(N_pad * HW_pad, bands).astype(bf16)

    # interior mask of the HxW grid (1 inside the (H-2)x(W-2) window).
    hh = jnp.arange(H).reshape(H, 1)
    ww = jnp.arange(W).reshape(1, W)
    interior = ((hh >= 1) & (hh <= H - 2) & (ww >= 1) & (ww <= W - 2))
    interior = jnp.pad(interior.astype(f32).reshape(HW), (0, HW_pad - HW))
    mask = jnp.tile(interior, B).reshape(R, 1)
    area = float((H - 2) * (W - 2))
    pool_mat = jnp.kron(jnp.eye(B, dtype=f32),
                        (interior / area).reshape(1, HW_pad)).astype(bf16)   # (B, R)

    # PReLU alphas packed into one SMEM vector.
    alpha_names = ["spe1_bn", "spe2_bn", "spe3_bn", "bn1", "tran_bn",
                   "spa1_bn", "spa2_bn", "spa3_bn", "bn2"]
    alphas = jnp.stack([params[n]["alpha"].reshape(()) for n in alpha_names]
                       ).astype(f32)

    # ---- weight packing: block-banded matrices for the spectral stage ------
    def band_matrix(w, depth_in, depth_out, pad):
        """w: (taps, cin, cout) -> (cin*depth_in, cout*depth_out) with
        M[c*depth_in + di, j*depth_out + do] = w[di - do + pad, c, j]."""
        taps, cin_, cout = w.shape
        i_idx = jnp.arange(depth_in).reshape(1, depth_in, 1)
        o_idx = jnp.arange(depth_out).reshape(1, 1, depth_out)
        k_idx = jnp.arange(taps).reshape(taps, 1, 1)
        band = (i_idx == o_idx + k_idx - pad).astype(f32)
        w4 = jnp.einsum("kcj,kio->cijo", w.astype(f32), band)
        return w4.reshape(cin_ * depth_in, cout * depth_out)

    def rep(v):   # per-channel vector -> channel-major lane vector (c*size1 + d)
        return jnp.repeat(v, size1).reshape(1, -1)

    ops = []
    # conv1: (7,1,1) valid conv -> one (bands, 24*size1) banded matmul.
    ops += [band_matrix(params["conv1_w"], bands, size1, 0).astype(bf16),
            rep(params["conv1_b"])]
    # spectral dense block: each layer is one (cin*size1, 12*size1) matmul.
    for i in (1, 2, 3):
        sc, sh = _fold_bn(params[f"spe{i}_bn"])
        ops += [rep(sc[0]), rep(sh[0]),
                band_matrix(params[f"spe{i}_w"], size1, size1, 3).astype(bf16),
                rep(params[f"spe{i}_b"])]
    # bn_prelu1 + transition conv (full-depth contraction -> one matmul).
    sc, sh = _fold_bn(params["bn1"])
    ops += [rep(sc[0]), rep(sh[0]),
            params["tran_w"].astype(f32).transpose(1, 0, 2)
                .reshape(60 * size1, TRAN_CH).astype(bf16),
            params["tran_b"].reshape(1, -1)]
    sc, sh = _fold_bn(params["tran_bn"])
    ops += [sc, sh]
    # conv2 + spatial dense block (per-tap (cin, cout) matrices).
    ops += [params["conv2_w"].astype(bf16), params["conv2_b"].reshape(1, -1)]
    for i in (1, 2, 3):
        sc, sh = _fold_bn(params[f"spa{i}_bn"])
        ops += [sc, sh, params[f"spa{i}_w"].astype(bf16),
                params[f"spa{i}_b"].reshape(1, -1)]
    sc, sh = _fold_bn(params["bn2"])
    ops += [sc, sh, params["fc_w"].astype(f32), params["fc_b"].reshape(1, -1)]

    # ---- specs --------------------------------------------------------------
    def full_spec(a):
        nd = a.ndim
        return pl.BlockSpec(a.shape, lambda i, nd=nd: (0,) * nd)

    in_specs = [
        pl.BlockSpec((R, bands), lambda i: (i, 0)),                 # x (B samples)
        full_spec(mask),
        full_spec(pool_mat),
        pl.BlockSpec(memory_space=pltpu.MemorySpace.SMEM),          # alphas
    ] + [full_spec(a) for a in ops]

    out_specs = pl.BlockSpec((1, B, classes), lambda i: (i, 0, 0))
    out_shape = jax.ShapeDtypeStruct((G, B, classes), f32)

    scratch = [
        pltpu.VMEM((R, 60 * size1), f32),        # spectral raw features (channel-major)
        pltpu.VMEM((R, 60), f32),                # spatial raw dense-block features
        pltpu.VMEM((R + 2 * HALO, TRAN_CH), bf16),  # activated input + zero row halo
    ]

    # ---- cost estimate (hint for XLA's scheduler) ---------------------------
    mm_cols = (bands * 24 * size1
               + (24 + 36 + 48) * size1 * GROWTH * size1
               + 60 * size1 * TRAN_CH
               + 9 * TRAN_CH * 24
               + 9 * (24 + 36 + 48) * GROWTH)
    flops = int(2 * N_pad * HW_pad * mm_cols)
    bytes_acc = int(x_rows.size) * 2 + int(mask.size) * 4 + int(pool_mat.size) * 2
    bytes_acc += sum(int(o.size) * o.dtype.itemsize for o in ops)
    bytes_acc += N_pad * classes * 4

    out = pl.pallas_call(
        _make_kernel(bands, H, W, classes, B, HW_pad, HALO),
        out_shape=out_shape,
        grid=(G,),
        in_specs=in_specs,
        out_specs=out_specs,
        scratch_shapes=scratch,
        compiler_params=pltpu.CompilerParams(
            dimension_semantics=("parallel",)),
        cost_estimate=pl.CostEstimate(flops=flops, transcendentals=0,
                                      bytes_accessed=int(bytes_acc)),
    )(x_rows, mask, pool_mat, alphas, *ops)
    return out.reshape(G * B, classes)[:N]


# ---------------------------------------------------------------------------
if __name__ == "__main__":
    bands, classes = 16, 9
    N, H, W = 4, 7, 7

    key = jax.random.PRNGKey(0)
    kx, kp = jax.random.split(key)
    x = jax.random.normal(kx, (N, 1, bands, H, W), dtype=jnp.float32)  # NCDHW
    params = init_params(kp, bands, classes)

    fwd = jax.jit(functools.partial(fdssc_forward, params=params))
    out = fwd(x)
    jax.block_until_ready(out)
    assert out.shape == (N, classes), out.shape
    assert bool(jnp.all(jnp.isfinite(out)))
    print("KERNEL_OK")
</pallas_src>

<mosaic_0001>
module attributes {stable_mosaic.version = 11 : i64} {
  func.func @kernel(%arg0: i32, %arg1: memref<112x16xbf16, #tpu.memory_space<vmem>>, %arg2: memref<112x1xf32, #tpu.memory_space<vmem>>, %arg3: memref<2x112xbf16, #tpu.memory_space<vmem>>, %arg4: memref<9xf32, #tpu.memory_space<smem>>, %arg5: memref<16x240xbf16, #tpu.memory_space<vmem>>, %arg6: memref<1x240xf32, #tpu.memory_space<vmem>>, %arg7: memref<1x240xf32, #tpu.memory_space<vmem>>, %arg8: memref<1x240xf32, #tpu.memory_space<vmem>>, %arg9: memref<240x120xbf16, #tpu.memory_space<vmem>>, %arg10: memref<1x120xf32, #tpu.memory_space<vmem>>, %arg11: memref<1x360xf32, #tpu.memory_space<vmem>>, %arg12: memref<1x360xf32, #tpu.memory_space<vmem>>, %arg13: memref<360x120xbf16, #tpu.memory_space<vmem>>, %arg14: memref<1x120xf32, #tpu.memory_space<vmem>>, %arg15: memref<1x480xf32, #tpu.memory_space<vmem>>, %arg16: memref<1x480xf32, #tpu.memory_space<vmem>>, %arg17: memref<480x120xbf16, #tpu.memory_space<vmem>>, %arg18: memref<1x120xf32, #tpu.memory_space<vmem>>, %arg19: memref<1x600xf32, #tpu.memory_space<vmem>>, %arg20: memref<1x600xf32, #tpu.memory_space<vmem>>, %arg21: memref<600x200xbf16, #tpu.memory_space<vmem>>, %arg22: memref<1x200xf32, #tpu.memory_space<vmem>>, %arg23: memref<1x200xf32, #tpu.memory_space<vmem>>, %arg24: memref<1x200xf32, #tpu.memory_space<vmem>>, %arg25: memref<9x200x24xbf16, #tpu.memory_space<vmem>>, %arg26: memref<1x24xf32, #tpu.memory_space<vmem>>, %arg27: memref<1x24xf32, #tpu.memory_space<vmem>>, %arg28: memref<1x24xf32, #tpu.memory_space<vmem>>, %arg29: memref<9x24x12xbf16, #tpu.memory_space<vmem>>, %arg30: memref<1x12xf32, #tpu.memory_space<vmem>>, %arg31: memref<1x36xf32, #tpu.memory_space<vmem>>, %arg32: memref<1x36xf32, #tpu.memory_space<vmem>>, %arg33: memref<9x36x12xbf16, #tpu.memory_space<vmem>>, %arg34: memref<1x12xf32, #tpu.memory_space<vmem>>, %arg35: memref<1x48xf32, #tpu.memory_space<vmem>>, %arg36: memref<1x48xf32, #tpu.memory_space<vmem>>, %arg37: memref<9x48x12xbf16, #tpu.memory_space<vmem>>, %arg38: memref<1x12xf32, #tpu.memory_space<vmem>>, %arg39: memref<1x60xf32, #tpu.memory_space<vmem>>, %arg40: memref<1x60xf32, #tpu.memory_space<vmem>>, %arg41: memref<60x9xf32, #tpu.memory_space<vmem>>, %arg42: memref<1x9xf32, #tpu.memory_space<vmem>>, %arg43: memref<1x2x9xf32, #tpu.memory_space<vmem>>, %arg44: memref<112x600xf32, #tpu.memory_space<vmem>>, %arg45: memref<112x60xf32, #tpu.memory_space<vmem>>, %arg46: memref<128x200xbf16, #tpu.memory_space<vmem>>) attributes {dimension_semantics = [#tpu.dimension_semantics<parallel>], iteration_bounds = array<i64: 2>, scalar_prefetch = 0 : i64, scratch_operands = 3 : i64, tpu.core_type = #tpu.core_type<tc>, window_params = [{transform_indices = @transform_0, window_bounds = array<i64: 112, 16>}, {pipeline_mode = #tpu.pipeline_mode<synchronous>, transform_indices = @transform_1, window_bounds = array<i64: 112, 1>}, {pipeline_mode = #tpu.pipeline_mode<synchronous>, transform_indices = @transform_2, window_bounds = array<i64: 2, 112>}, {transform_indices = @transform_3, window_bounds = array<i64: 9>}, {pipeline_mode = #tpu.pipeline_mode<synchronous>, transform_indices = @transform_4, window_bounds = array<i64: 16, 240>}, {pipeline_mode = #tpu.pipeline_mode<synchronous>, transform_indices = @transform_5, window_bounds = array<i64: 1, 240>}, {pipeline_mode = #tpu.pipeline_mode<synchronous>, transform_indices = @transform_6, window_bounds = array<i64: 1, 240>}, {pipeline_mode = #tpu.pipeline_mode<synchronous>, transform_indices = @transform_7, window_bounds = array<i64: 1, 240>}, {pipeline_mode = #tpu.pipeline_mode<synchronous>, transform_indices = @transform_8, window_bounds = array<i64: 240, 120>}, {pipeline_mode = #tpu.pipeline_mode<synchronous>, transform_indices = @transform_9, window_bounds = array<i64: 1, 120>}, {pipeline_mode = #tpu.pipeline_mode<synchronous>, transform_indices = @transform_10, window_bounds = array<i64: 1, 360>}, {pipeline_mode = #tpu.pipeline_mode<synchronous>, transform_indices = @transform_11, window_bounds = array<i64: 1, 360>}, {pipeline_mode = #tpu.pipeline_mode<synchronous>, transform_indices = @transform_12, window_bounds = array<i64: 360, 120>}, {pipeline_mode = #tpu.pipeline_mode<synchronous>, transform_indices = @transform_13, window_bounds = array<i64: 1, 120>}, {pipeline_mode = #tpu.pipeline_mode<synchronous>, transform_indices = @transform_14, window_bounds = array<i64: 1, 480>}, {pipeline_mode = #tpu.pipeline_mode<synchronous>, transform_indices = @transform_15, window_bounds = array<i64: 1, 480>}, {pipeline_mode = #tpu.pipeline_mode<synchronous>, transform_indices = @transform_16, window_bounds = array<i64: 480, 120>}, {pipeline_mode = #tpu.pipeline_mode<synchronous>, transform_indices = @transform_17, window_bounds = array<i64: 1, 120>}, {pipeline_mode = #tpu.pipeline_mode<synchronous>, transform_indices = @transform_18, window_bounds = array<i64: 1, 600>}, {pipeline_mode = #tpu.pipeline_mode<synchronous>, transform_indices = @transform_19, window_bounds = array<i64: 1, 600>}, {pipeline_mode = #tpu.pipeline_mode<synchronous>, transform_indices = @transform_20, window_bounds = array<i64: 600, 200>}, {pipeline_mode = #tpu.pipeline_mode<synchronous>, transform_indices = @transform_21, window_bounds = array<i64: 1, 200>}, {pipeline_mode = #tpu.pipeline_mode<synchronous>, transform_indices = @transform_22, window_bounds = array<i64: 1, 200>}, {pipeline_mode = #tpu.pipeline_mode<synchronous>, transform_indices = @transform_23, window_bounds = array<i64: 1, 200>}, {pipeline_mode = #tpu.pipeline_mode<synchronous>, transform_indices = @transform_24, window_bounds = array<i64: 9, 200, 24>}, {pipeline_mode = #tpu.pipeline_mode<synchronous>, transform_indices = @transform_25, window_bounds = array<i64: 1, 24>}, {pipeline_mode = #tpu.pipeline_mode<synchronous>, transform_indices = @transform_26, window_bounds = array<i64: 1, 24>}, {pipeline_mode = #tpu.pipeline_mode<synchronous>, transform_indices = @transform_27, window_bounds = array<i64: 1, 24>}, {pipeline_mode = #tpu.pipeline_mode<synchronous>, transform_indices = @transform_28, window_bounds = array<i64: 9, 24, 12>}, {pipeline_mode = #tpu.pipeline_mode<synchronous>, transform_indices = @transform_29, window_bounds = array<i64: 1, 12>}, {pipeline_mode = #tpu.pipeline_mode<synchronous>, transform_indices = @transform_30, window_bounds = array<i64: 1, 36>}, {pipeline_mode = #tpu.pipeline_mode<synchronous>, transform_indices = @transform_31, window_bounds = array<i64: 1, 36>}, {pipeline_mode = #tpu.pipeline_mode<synchronous>, transform_indices = @transform_32, window_bounds = array<i64: 9, 36, 12>}, {pipeline_mode = #tpu.pipeline_mode<synchronous>, transform_indices = @transform_33, window_bounds = array<i64: 1, 12>}, {pipeline_mode = #tpu.pipeline_mode<synchronous>, transform_indices = @transform_34, window_bounds = array<i64: 1, 48>}, {pipeline_mode = #tpu.pipeline_mode<synchronous>, transform_indices = @transform_35, window_bounds = array<i64: 1, 48>}, {pipeline_mode = #tpu.pipeline_mode<synchronous>, transform_indices = @transform_36, window_bounds = array<i64: 9, 48, 12>}, {pipeline_mode = #tpu.pipeline_mode<synchronous>, transform_indices = @transform_37, window_bounds = array<i64: 1, 12>}, {pipeline_mode = #tpu.pipeline_mode<synchronous>, transform_indices = @transform_38, window_bounds = array<i64: 1, 60>}, {pipeline_mode = #tpu.pipeline_mode<synchronous>, transform_indices = @transform_39, window_bounds = array<i64: 1, 60>}, {pipeline_mode = #tpu.pipeline_mode<synchronous>, transform_indices = @transform_40, window_bounds = array<i64: 60, 9>}, {pipeline_mode = #tpu.pipeline_mode<synchronous>, transform_indices = @transform_41, window_bounds = array<i64: 1, 9>}, {transform_indices = @transform_42, window_bounds = array<i64: 1, 2, 9>}]} {
    %cst = arith.constant 0.000000e+00 : bf16
    %0 = vector.broadcast %cst : bf16 to vector<8x200xbf16>
    %c0 = arith.constant 0 : index
    %c0_0 = arith.constant 0 : index
    %1 = vector.load %arg46[%c0, %c0_0] : memref<128x200xbf16, #tpu.memory_space<vmem>>, vector<8x200xbf16>
    tpu.vector_store %arg46[%c0, %c0_0], %0 {strides = array<i32>} : memref<128x200xbf16, #tpu.memory_space<vmem>>, vector<8x200xbf16>,
    %cst_1 = arith.constant 0.000000e+00 : bf16
    %2 = vector.broadcast %cst_1 : bf16 to vector<8x200xbf16>
    %c120 = arith.constant 120 : index
    %c0_2 = arith.constant 0 : index
    %3 = vector.load %arg46[%c120, %c0_2] : memref<128x200xbf16, #tpu.memory_space<vmem>>, vector<8x200xbf16>
    tpu.vector_store %arg46[%c120, %c0_2], %2 {strides = array<i32>} : memref<128x200xbf16, #tpu.memory_space<vmem>>, vector<8x200xbf16>,
    %c0_3 = arith.constant 0 : index
    %c0_4 = arith.constant 0 : index
    %4 = vector.load %arg1[%c0_3, %c0_4] : memref<112x16xbf16, #tpu.memory_space<vmem>>, vector<112x16xbf16>
    %c0_5 = arith.constant 0 : index
    %c0_6 = arith.constant 0 : index
    %5 = vector.load %arg5[%c0_5, %c0_6] : memref<16x240xbf16, #tpu.memory_space<vmem>>, vector<16x240xbf16>
    %cst_7 = arith.constant dense<0.000000e+00> : vector<112x240xf32>
    %6 = tpu.matmul %4, %5, %cst_7 {dimension_numbers = #tpu.dot_dimension_numbers<[1], [0], [0], [1], [0, 0, 1, 1], [], []>} : vector<112x16xbf16>, vector<16x240xbf16>, vector<112x240xf32> -> vector<112x240xf32>
    %c0_8 = arith.constant 0 : index
    %c0_9 = arith.constant 0 : index
    %7 = vector.load %arg6[%c0_8, %c0_9] : memref<1x240xf32, #tpu.memory_space<vmem>>, vector<1x240xf32>
    %8 = vector.broadcast %7 : vector<1x240xf32> to vector<112x240xf32>
    %9 = arith.addf %6, %8 : vector<112x240xf32>
    %c0_10 = arith.constant 0 : index
    %c0_11 = arith.constant 0 : index
    %10 = vector.load %arg44[%c0_10, %c0_11] : memref<112x600xf32, #tpu.memory_space<vmem>>, vector<112x240xf32>
    tpu.vector_store %arg44[%c0_10, %c0_11], %9 {strides = array<i32>} : memref<112x600xf32, #tpu.memory_space<vmem>>, vector<112x240xf32>,
    %c0_12 = arith.constant 0 : index
    %11 = memref.load %arg4[%c0_12] : memref<9xf32, #tpu.memory_space<smem>>
    %c0_13 = arith.constant 0 : index
    %c0_14 = arith.constant 0 : index
    %12 = vector.load %arg44[%c0_13, %c0_14] : memref<112x600xf32, #tpu.memory_space<vmem>>, vector<112x240xf32>
    %c0_15 = arith.constant 0 : index
    %c0_16 = arith.constant 0 : index
    %13 = vector.load %arg7[%c0_15, %c0_16] : memref<1x240xf32, #tpu.memory_space<vmem>>, vector<1x240xf32>
    %14 = vector.broadcast %13 : vector<1x240xf32> to vector<112x240xf32>
    %15 = arith.mulf %12, %14 : vector<112x240xf32>
    %c0_17 = arith.constant 0 : index
    %c0_18 = arith.constant 0 : index
    %16 = vector.load %arg8[%c0_17, %c0_18] : memref<1x240xf32, #tpu.memory_space<vmem>>, vector<1x240xf32>
    %17 = vector.broadcast %16 : vector<1x240xf32> to vector<112x240xf32>
    %18 = arith.addf %15, %17 : vector<112x240xf32>
    %cst_19 = arith.constant 0.000000e+00 : f32
    %19 = vector.broadcast %cst_19 : f32 to vector<112x240xf32>
    %20 = arith.cmpf oge, %18, %19 : vector<112x240xf32>
    %21 = vector.broadcast %11 : f32 to vector<112x240xf32>
    %22 = arith.mulf %21, %18 : vector<112x240xf32>
    %23 = arith.select %20, %18, %22 : vector<112x240xi1>, vector<112x240xf32>
    %24 = arith.truncf %23 : vector<112x240xf32> to vector<112x240xbf16>
    %c0_20 = arith.constant 0 : index
    %c0_21 = arith.constant 0 : index
    %25 = vector.load %arg9[%c0_20, %c0_21] : memref<240x120xbf16, #tpu.memory_space<vmem>>, vector<240x120xbf16>
    %cst_22 = arith.constant dense<0.000000e+00> : vector<112x120xf32>
    %26 = tpu.matmul %24, %25, %cst_22 {dimension_numbers = #tpu.dot_dimension_numbers<[1], [0], [0], [1], [0, 0, 1, 1], [], []>} : vector<112x240xbf16>, vector<240x120xbf16>, vector<112x120xf32> -> vector<112x120xf32>
    %c0_23 = arith.constant 0 : index
    %c0_24 = arith.constant 0 : index
    %27 = vector.load %arg10[%c0_23, %c0_24] : memref<1x120xf32, #tpu.memory_space<vmem>>, vector<1x120xf32>
    %28 = vector.broadcast %27 : vector<1x120xf32> to vector<112x120xf32>
    %29 = arith.addf %26, %28 : vector<112x120xf32>
    %c0_25 = arith.constant 0 : index
    %c240 = arith.constant 240 : index
    %30 = vector.load %arg44[%c0_25, %c240] : memref<112x600xf32, #tpu.memory_space<vmem>>, vector<112x120xf32>
    tpu.vector_store %arg44[%c0_25, %c240], %29 {strides = array<i32>} : memref<112x600xf32, #tpu.memory_space<vmem>>, vector<112x120xf32>,
    %c1 = arith.constant 1 : index
    %31 = memref.load %arg4[%c1] : memref<9xf32, #tpu.memory_space<smem>>
    %c0_26 = arith.constant 0 : index
    %c0_27 = arith.constant 0 : index
    %32 = vector.load %arg44[%c0_26, %c0_27] : memref<112x600xf32, #tpu.memory_space<vmem>>, vector<112x360xf32>
    %c0_28 = arith.constant 0 : index
    %c0_29 = arith.constant 0 : index
    %33 = vector.load %arg11[%c0_28, %c0_29] : memref<1x360xf32, #tpu.memory_space<vmem>>, vector<1x360xf32>
    %34 = vector.broadcast %33 : vector<1x360xf32> to vector<112x360xf32>
    %35 = arith.mulf %32, %34 : vector<112x360xf32>
    %c0_30 = arith.constant 0 : index
    %c0_31 = arith.constant 0 : index
    %36 = vector.load %arg12[%c0_30, %c0_31] : memref<1x360xf32, #tpu.memory_space<vmem>>, vector<1x360xf32>
    %37 = vector.broadcast %36 : vector<1x360xf32> to vector<112x360xf32>
    %38 = arith.addf %35, %37 : vector<112x360xf32>
    %cst_32 = arith.constant 0.000000e+00 : f32
    %39 = vector.broadcast %cst_32 : f32 to vector<112x360xf32>
    %40 = arith.cmpf oge, %38, %39 : vector<112x360xf32>
    %41 = vector.broadcast %31 : f32 to vector<112x360xf32>
    %42 = arith.mulf %41, %38 : vector<112x360xf32>
    %43 = arith.select %40, %38, %42 : vector<112x360xi1>, vector<112x360xf32>
    %44 = arith.truncf %43 : vector<112x360xf32> to vector<112x360xbf16>
    %c0_33 = arith.constant 0 : index
    %c0_34 = arith.constant 0 : index
    %45 = vector.load %arg13[%c0_33, %c0_34] : memref<360x120xbf16, #tpu.memory_space<vmem>>, vector<360x120xbf16>
    %cst_35 = arith.constant dense<0.000000e+00> : vector<112x120xf32>
    %46 = tpu.matmul %44, %45, %cst_35 {dimension_numbers = #tpu.dot_dimension_numbers<[1], [0], [0], [1], [0, 0, 1, 1], [], []>} : vector<112x360xbf16>, vector<360x120xbf16>, vector<112x120xf32> -> vector<112x120xf32>
    %c0_36 = arith.constant 0 : index
    %c0_37 = arith.constant 0 : index
    %47 = vector.load %arg14[%c0_36, %c0_37] : memref<1x120xf32, #tpu.memory_space<vmem>>, vector<1x120xf32>
    %48 = vector.broadcast %47 : vector<1x120xf32> to vector<112x120xf32>
    %49 = arith.addf %46, %48 : vector<112x120xf32>
    %c0_38 = arith.constant 0 : index
    %c360 = arith.constant 360 : index
    %50 = vector.load %arg44[%c0_38, %c360] : memref<112x600xf32, #tpu.memory_space<vmem>>, vector<112x120xf32>
    tpu.vector_store %arg44[%c0_38, %c360], %49 {strides = array<i32>} : memref<112x600xf32, #tpu.memory_space<vmem>>, vector<112x120xf32>,
    %c2 = arith.constant 2 : index
    %51 = memref.load %arg4[%c2] : memref<9xf32, #tpu.memory_space<smem>>
    %c0_39 = arith.constant 0 : index
    %c0_40 = arith.constant 0 : index
    %52 = vector.load %arg44[%c0_39, %c0_40] : memref<112x600xf32, #tpu.memory_space<vmem>>, vector<112x480xf32>
    %c0_41 = arith.constant 0 : index
    %c0_42 = arith.constant 0 : index
    %53 = vector.load %arg15[%c0_41, %c0_42] : memref<1x480xf32, #tpu.memory_space<vmem>>, vector<1x480xf32>
    %54 = vector.broadcast %53 : vector<1x480xf32> to vector<112x480xf32>
    %55 = arith.mulf %52, %54 : vector<112x480xf32>
    %c0_43 = arith.constant 0 : index
    %c0_44 = arith.constant 0 : index
    %56 = vector.load %arg16[%c0_43, %c0_44] : memref<1x480xf32, #tpu.memory_space<vmem>>, vector<1x480xf32>
    %57 = vector.broadcast %56 : vector<1x480xf32> to vector<112x480xf32>
    %58 = arith.addf %55, %57 : vector<112x480xf32>
    %cst_45 = arith.constant 0.000000e+00 : f32
    %59 = vector.broadcast %cst_45 : f32 to vector<112x480xf32>
    %60 = arith.cmpf oge, %58, %59 : vector<112x480xf32>
    %61 = vector.broadcast %51 : f32 to vector<112x480xf32>
    %62 = arith.mulf %61, %58 : vector<112x480xf32>
    %63 = arith.select %60, %58, %62 : vector<112x480xi1>, vector<112x480xf32>
    %64 = arith.truncf %63 : vector<112x480xf32> to vector<112x480xbf16>
    %c0_46 = arith.constant 0 : index
    %c0_47 = arith.constant 0 : index
    %65 = vector.load %arg17[%c0_46, %c0_47] : memref<480x120xbf16, #tpu.memory_space<vmem>>, vector<480x120xbf16>
    %cst_48 = arith.constant dense<0.000000e+00> : vector<112x120xf32>
    %66 = tpu.matmul %64, %65, %cst_48 {dimension_numbers = #tpu.dot_dimension_numbers<[1], [0], [0], [1], [0, 0, 1, 1], [], []>} : vector<112x480xbf16>, vector<480x120xbf16>, vector<112x120xf32> -> vector<112x120xf32>
    %c0_49 = arith.constant 0 : index
    %c0_50 = arith.constant 0 : index
    %67 = vector.load %arg18[%c0_49, %c0_50] : memref<1x120xf32, #tpu.memory_space<vmem>>, vector<1x120xf32>
    %68 = vector.broadcast %67 : vector<1x120xf32> to vector<112x120xf32>
    %69 = arith.addf %66, %68 : vector<112x120xf32>
    %c0_51 = arith.constant 0 : index
    %c480 = arith.constant 480 : index
    %70 = vector.load %arg44[%c0_51, %c480] : memref<112x600xf32, #tpu.memory_space<vmem>>, vector<112x120xf32>
    tpu.vector_store %arg44[%c0_51, %c480], %69 {strides = array<i32>} : memref<112x600xf32, #tpu.memory_space<vmem>>, vector<112x120xf32>,
    %c0_52 = arith.constant 0 : index
    %c0_53 = arith.constant 0 : index
    %71 = vector.load %arg44[%c0_52, %c0_53] : memref<112x600xf32, #tpu.memory_space<vmem>>, vector<112x600xf32>
    %c0_54 = arith.constant 0 : index
    %c0_55 = arith.constant 0 : index
    %72 = vector.load %arg19[%c0_54, %c0_55] : memref<1x600xf32, #tpu.memory_space<vmem>>, vector<1x600xf32>
    %73 = vector.broadcast %72 : vector<1x600xf32> to vector<112x600xf32>
    %74 = arith.mulf %71, %73 : vector<112x600xf32>
    %c0_56 = arith.constant 0 : index
    %c0_57 = arith.constant 0 : index
    %75 = vector.load %arg20[%c0_56, %c0_57] : memref<1x600xf32, #tpu.memory_space<vmem>>, vector<1x600xf32>
    %76 = vector.broadcast %75 : vector<1x600xf32> to vector<112x600xf32>
    %77 = arith.addf %74, %76 : vector<112x600xf32>
    %c3 = arith.constant 3 : index
    %78 = memref.load %arg4[%c3] : memref<9xf32, #tpu.memory_space<smem>>
    %cst_58 = arith.constant 0.000000e+00 : f32
    %79 = vector.broadcast %cst_58 : f32 to vector<112x600xf32>
    %80 = arith.cmpf oge, %77, %79 : vector<112x600xf32>
    %81 = vector.broadcast %78 : f32 to vector<112x600xf32>
    %82 = arith.mulf %81, %77 : vector<112x600xf32>
    %83 = arith.select %80, %77, %82 : vector<112x600xi1>, vector<112x600xf32>
    %84 = arith.truncf %83 : vector<112x600xf32> to vector<112x600xbf16>
    %c0_59 = arith.constant 0 : index
    %c0_60 = arith.constant 0 : index
    %85 = vector.load %arg21[%c0_59, %c0_60] : memref<600x200xbf16, #tpu.memory_space<vmem>>, vector<600x200xbf16>
    %cst_61 = arith.constant dense<0.000000e+00> : vector<112x200xf32>
    %86 = tpu.matmul %84, %85, %cst_61 {dimension_numbers = #tpu.dot_dimension_numbers<[1], [0], [0], [1], [0, 0, 1, 1], [], []>} : vector<112x600xbf16>, vector<600x200xbf16>, vector<112x200xf32> -> vector<112x200xf32>
    %c0_62 = arith.constant 0 : index
    %c0_63 = arith.constant 0 : index
    %87 = vector.load %arg22[%c0_62, %c0_63] : memref<1x200xf32, #tpu.memory_space<vmem>>, vector<1x200xf32>
    %88 = vector.broadcast %87 : vector<1x200xf32> to vector<112x200xf32>
    %89 = arith.addf %86, %88 : vector<112x200xf32>
    %c0_64 = arith.constant 0 : index
    %c0_65 = arith.constant 0 : index
    %90 = vector.load %arg23[%c0_64, %c0_65] : memref<1x200xf32, #tpu.memory_space<vmem>>, vector<1x200xf32>
    %91 = vector.broadcast %90 : vector<1x200xf32> to vector<112x200xf32>
    %92 = arith.mulf %89, %91 : vector<112x200xf32>
    %c0_66 = arith.constant 0 : index
    %c0_67 = arith.constant 0 : index
    %93 = vector.load %arg24[%c0_66, %c0_67] : memref<1x200xf32, #tpu.memory_space<vmem>>, vector<1x200xf32>
    %94 = vector.broadcast %93 : vector<1x200xf32> to vector<112x200xf32>
    %95 = arith.addf %92, %94 : vector<112x200xf32>
    %c4 = arith.constant 4 : index
    %96 = memref.load %arg4[%c4] : memref<9xf32, #tpu.memory_space<smem>>
    %cst_68 = arith.constant 0.000000e+00 : f32
    %97 = vector.broadcast %cst_68 : f32 to vector<112x200xf32>
    %98 = arith.cmpf oge, %95, %97 : vector<112x200xf32>
    %99 = vector.broadcast %96 : f32 to vector<112x200xf32>
    %100 = arith.mulf %99, %95 : vector<112x200xf32>
    %101 = arith.select %98, %95, %100 : vector<112x200xi1>, vector<112x200xf32>
    %c0_69 = arith.constant 0 : index
    %c0_70 = arith.constant 0 : index
    %102 = vector.load %arg2[%c0_69, %c0_70] : memref<112x1xf32, #tpu.memory_space<vmem>>, vector<112x1xf32>
    %103 = arith.truncf %101 : vector<112x200xf32> to vector<112x200xbf16>
    %c8 = arith.constant 8 : index
    %c0_71 = arith.constant 0 : index
    %104 = vector.load %arg46[%c8, %c0_71] : memref<128x200xbf16, #tpu.memory_space<vmem>>, vector<112x200xbf16>
    tpu.vector_store %arg46[%c8, %c0_71], %103 {strides = array<i32>} : memref<128x200xbf16, #tpu.memory_space<vmem>>, vector<112x200xbf16>,
    %c0_72 = arith.constant 0 : index
    %c0_73 = arith.constant 0 : index
    %105 = vector.load %arg26[%c0_72, %c0_73] : memref<1x24xf32, #tpu.memory_space<vmem>>, vector<1x24xf32>
    %106 = vector.shape_cast %105 : vector<1x24xf32> to vector<1x24xf32>
    %107 = vector.broadcast %106 : vector<1x24xf32> to vector<112x24xf32>
    %c0_74 = arith.constant 0 : index
    %c0_75 = arith.constant 0 : index
    %108 = vector.load %arg46[%c0_74, %c0_75] : memref<128x200xbf16, #tpu.memory_space<vmem>>, vector<112x200xbf16>
    %c0_76 = arith.constant 0 : index
    %c0_77 = arith.constant 0 : index
    %c0_78 = arith.constant 0 : index
    %109 = vector.load %arg25[%c0_76, %c0_77, %c0_78] : memref<9x200x24xbf16, #tpu.memory_space<vmem>>, vector<1x200x24xbf16>
    %110 = vector.shape_cast %109 : vector<1x200x24xbf16> to vector<200x24xbf16>
    %cst_79 = arith.constant dense<0.000000e+00> : vector<112x24xf32>
    %111 = tpu.matmul %108, %110, %cst_79 {dimension_numbers = #tpu.dot_dimension_numbers<[1], [0], [0], [1], [0, 0, 1, 1], [], []>} : vector<112x200xbf16>, vector<200x24xbf16>, vector<112x24xf32> -> vector<112x24xf32>
    %112 = arith.addf %107, %111 : vector<112x24xf32>
    %c1_80 = arith.constant 1 : index
    %c0_81 = arith.constant 0 : index
    %113 = vector.load %arg46[%c1_80, %c0_81] : memref<128x200xbf16, #tpu.memory_space<vmem>>, vector<112x200xbf16>
    %c1_82 = arith.constant 1 : index
    %c0_83 = arith.constant 0 : index
    %c0_84 = arith.constant 0 : index
    %114 = vector.load %arg25[%c1_82, %c0_83, %c0_84] : memref<9x200x24xbf16, #tpu.memory_space<vmem>>, vector<1x200x24xbf16>
    %115 = vector.shape_cast %114 : vector<1x200x24xbf16> to vector<200x24xbf16>
    %cst_85 = arith.constant dense<0.000000e+00> : vector<112x24xf32>
    %116 = tpu.matmul %113, %115, %cst_85 {dimension_numbers = #tpu.dot_dimension_numbers<[1], [0], [0], [1], [0, 0, 1, 1], [], []>} : vector<112x200xbf16>, vector<200x24xbf16>, vector<112x24xf32> -> vector<112x24xf32>
    %117 = arith.addf %112, %116 : vector<112x24xf32>
    %c2_86 = arith.constant 2 : index
    %c0_87 = arith.constant 0 : index
    %118 = vector.load %arg46[%c2_86, %c0_87] : memref<128x200xbf16, #tpu.memory_space<vmem>>, vector<112x200xbf16>
    %c2_88 = arith.constant 2 : index
    %c0_89 = arith.constant 0 : index
    %c0_90 = arith.constant 0 : index
    %119 = vector.load %arg25[%c2_88, %c0_89, %c0_90] : memref<9x200x24xbf16, #tpu.memory_space<vmem>>, vector<1x200x24xbf16>
    %120 = vector.shape_cast %119 : vector<1x200x24xbf16> to vector<200x24xbf16>
    %cst_91 = arith.constant dense<0.000000e+00> : vector<112x24xf32>
    %121 = tpu.matmul %118, %120, %cst_91 {dimension_numbers = #tpu.dot_dimension_numbers<[1], [0], [0], [1], [0, 0, 1, 1], [], []>} : vector<112x200xbf16>, vector<200x24xbf16>, vector<112x24xf32> -> vector<112x24xf32>
    %122 = arith.addf %117, %121 : vector<112x24xf32>
    %c7 = arith.constant 7 : index
    %c0_92 = arith.constant 0 : index
    %123 = vector.load %arg46[%c7, %c0_92] : memref<128x200xbf16, #tpu.memory_space<vmem>>, vector<112x200xbf16>
    %c3_93 = arith.constant 3 : index
    %c0_94 = arith.constant 0 : index
    %c0_95 = arith.constant 0 : index
    %124 = vector.load %arg25[%c3_93, %c0_94, %c0_95] : memref<9x200x24xbf16, #tpu.memory_space<vmem>>, vector<1x200x24xbf16>
    %125 = vector.shape_cast %124 : vector<1x200x24xbf16> to vector<200x24xbf16>
    %cst_96 = arith.constant dense<0.000000e+00> : vector<112x24xf32>
    %126 = tpu.matmul %123, %125, %cst_96 {dimension_numbers = #tpu.dot_dimension_numbers<[1], [0], [0], [1], [0, 0, 1, 1], [], []>} : vector<112x200xbf16>, vector<200x24xbf16>, vector<112x24xf32> -> vector<112x24xf32>
    %127 = arith.addf %122, %126 : vector<112x24xf32>
    %c8_97 = arith.constant 8 : index
    %c0_98 = arith.constant 0 : index
    %128 = vector.load %arg46[%c8_97, %c0_98] : memref<128x200xbf16, #tpu.memory_space<vmem>>, vector<112x200xbf16>
    %c4_99 = arith.constant 4 : index
    %c0_100 = arith.constant 0 : index
    %c0_101 = arith.constant 0 : index
    %129 = vector.load %arg25[%c4_99, %c0_100, %c0_101] : memref<9x200x24xbf16, #tpu.memory_space<vmem>>, vector<1x200x24xbf16>
    %130 = vector.shape_cast %129 : vector<1x200x24xbf16> to vector<200x24xbf16>
    %cst_102 = arith.constant dense<0.000000e+00> : vector<112x24xf32>
    %131 = tpu.matmul %128, %130, %cst_102 {dimension_numbers = #tpu.dot_dimension_numbers<[1], [0], [0], [1], [0, 0, 1, 1], [], []>} : vector<112x200xbf16>, vector<200x24xbf16>, vector<112x24xf32> -> vector<112x24xf32>
    %132 = arith.addf %127, %131 : vector<112x24xf32>
    %c9 = arith.constant 9 : index
    %c0_103 = arith.constant 0 : index
    %133 = vector.load %arg46[%c9, %c0_103] : memref<128x200xbf16, #tpu.memory_space<vmem>>, vector<112x200xbf16>
    %c5 = arith.constant 5 : index
    %c0_104 = arith.constant 0 : index
    %c0_105 = arith.constant 0 : index
    %134 = vector.load %arg25[%c5, %c0_104, %c0_105] : memref<9x200x24xbf16, #tpu.memory_space<vmem>>, vector<1x200x24xbf16>
    %135 = vector.shape_cast %134 : vector<1x200x24xbf16> to vector<200x24xbf16>
    %cst_106 = arith.constant dense<0.000000e+00> : vector<112x24xf32>
    %136 = tpu.matmul %133, %135, %cst_106 {dimension_numbers = #tpu.dot_dimension_numbers<[1], [0], [0], [1], [0, 0, 1, 1], [], []>} : vector<112x200xbf16>, vector<200x24xbf16>, vector<112x24xf32> -> vector<112x24xf32>
    %137 = arith.addf %132, %136 : vector<112x24xf32>
    %c14 = arith.constant 14 : index
    %c0_107 = arith.constant 0 : index
    %138 = vector.load %arg46[%c14, %c0_107] : memref<128x200xbf16, #tpu.memory_space<vmem>>, vector<112x200xbf16>
    %c6 = arith.constant 6 : index
    %c0_108 = arith.constant 0 : index
    %c0_109 = arith.constant 0 : index
    %139 = vector.load %arg25[%c6, %c0_108, %c0_109] : memref<9x200x24xbf16, #tpu.memory_space<vmem>>, vector<1x200x24xbf16>
    %140 = vector.shape_cast %139 : vector<1x200x24xbf16> to vector<200x24xbf16>
    %cst_110 = arith.constant dense<0.000000e+00> : vector<112x24xf32>
    %141 = tpu.matmul %138, %140, %cst_110 {dimension_numbers = #tpu.dot_dimension_numbers<[1], [0], [0], [1], [0, 0, 1, 1], [], []>} : vector<112x200xbf16>, vector<200x24xbf16>, vector<112x24xf32> -> vector<112x24xf32>
    %142 = arith.addf %137, %141 : vector<112x24xf32>
    %c15 = arith.constant 15 : index
    %c0_111 = arith.constant 0 : index
    %143 = vector.load %arg46[%c15, %c0_111] : memref<128x200xbf16, #tpu.memory_space<vmem>>, vector<112x200xbf16>
    %c7_112 = arith.constant 7 : index
    %c0_113 = arith.constant 0 : index
    %c0_114 = arith.constant 0 : index
    %144 = vector.load %arg25[%c7_112, %c0_113, %c0_114] : memref<9x200x24xbf16, #tpu.memory_space<vmem>>, vector<1x200x24xbf16>
    %145 = vector.shape_cast %144 : vector<1x200x24xbf16> to vector<200x24xbf16>
    %cst_115 = arith.constant dense<0.000000e+00> : vector<112x24xf32>
    %146 = tpu.matmul %143, %145, %cst_115 {dimension_numbers = #tpu.dot_dimension_numbers<[1], [0], [0], [1], [0, 0, 1, 1], [], []>} : vector<112x200xbf16>, vector<200x24xbf16>, vector<112x24xf32> -> vector<112x24xf32>
    %147 = arith.addf %142, %146 : vector<112x24xf32>
    %c16 = arith.constant 16 : index
    %c0_116 = arith.constant 0 : index
    %148 = vector.load %arg46[%c16, %c0_116] : memref<128x200xbf16, #tpu.memory_space<vmem>>, vector<112x200xbf16>
    %c8_117 = arith.constant 8 : index
    %c0_118 = arith.constant 0 : index
    %c0_119 = arith.constant 0 : index
    %149 = vector.load %arg25[%c8_117, %c0_118, %c0_119] : memref<9x200x24xbf16, #tpu.memory_space<vmem>>, vector<1x200x24xbf16>
    %150 = vector.shape_cast %149 : vector<1x200x24xbf16> to vector<200x24xbf16>
    %cst_120 = arith.constant dense<0.000000e+00> : vector<112x24xf32>
    %151 = tpu.matmul %148, %150, %cst_120 {dimension_numbers = #tpu.dot_dimension_numbers<[1], [0], [0], [1], [0, 0, 1, 1], [], []>} : vector<112x200xbf16>, vector<200x24xbf16>, vector<112x24xf32> -> vector<112x24xf32>
    %152 = arith.addf %147, %151 : vector<112x24xf32>
    %c0_121 = arith.constant 0 : index
    %c0_122 = arith.constant 0 : index
    %153 = vector.load %arg45[%c0_121, %c0_122] : memref<112x60xf32, #tpu.memory_space<vmem>>, vector<112x24xf32>
    tpu.vector_store %arg45[%c0_121, %c0_122], %152 {strides = array<i32>} : memref<112x60xf32, #tpu.memory_space<vmem>>, vector<112x24xf32>,
    %c5_123 = arith.constant 5 : index
    %154 = memref.load %arg4[%c5_123] : memref<9xf32, #tpu.memory_space<smem>>
    %c0_124 = arith.constant 0 : index
    %c0_125 = arith.constant 0 : index
    %155 = vector.load %arg45[%c0_124, %c0_125] : memref<112x60xf32, #tpu.memory_space<vmem>>, vector<112x24xf32>
    %c0_126 = arith.constant 0 : index
    %c0_127 = arith.constant 0 : index
    %156 = vector.load %arg27[%c0_126, %c0_127] : memref<1x24xf32, #tpu.memory_space<vmem>>, vector<1x24xf32>
    %157 = vector.broadcast %156 : vector<1x24xf32> to vector<112x24xf32>
    %158 = arith.mulf %155, %157 : vector<112x24xf32>
    %c0_128 = arith.constant 0 : index
    %c0_129 = arith.constant 0 : index
    %159 = vector.load %arg28[%c0_128, %c0_129] : memref<1x24xf32, #tpu.memory_space<vmem>>, vector<1x24xf32>
    %160 = vector.broadcast %159 : vector<1x24xf32> to vector<112x24xf32>
    %161 = arith.addf %158, %160 : vector<112x24xf32>
    %cst_130 = arith.constant 0.000000e+00 : f32
    %162 = vector.broadcast %cst_130 : f32 to vector<112x24xf32>
    %163 = arith.cmpf oge, %161, %162 : vector<112x24xf32>
    %164 = vector.broadcast %154 : f32 to vector<112x24xf32>
    %165 = arith.mulf %164, %161 : vector<112x24xf32>
    %166 = arith.select %163, %161, %165 : vector<112x24xi1>, vector<112x24xf32>
    %167 = vector.broadcast %102 : vector<112x1xf32> to vector<112x24xf32>
    %168 = arith.mulf %166, %167 : vector<112x24xf32>
    %169 = arith.truncf %168 : vector<112x24xf32> to vector<112x24xbf16>
    %c8_131 = arith.constant 8 : index
    %c0_132 = arith.constant 0 : index
    %170 = vector.load %arg46[%c8_131, %c0_132] : memref<128x200xbf16, #tpu.memory_space<vmem>>, vector<112x24xbf16>
    tpu.vector_store %arg46[%c8_131, %c0_132], %169 {strides = array<i32>} : memref<128x200xbf16, #tpu.memory_space<vmem>>, vector<112x24xbf16>,
    %c0_133 = arith.constant 0 : index
    %c0_134 = arith.constant 0 : index
    %171 = vector.load %arg30[%c0_133, %c0_134] : memref<1x12xf32, #tpu.memory_space<vmem>>, vector<1x12xf32>
    %172 = vector.shape_cast %171 : vector<1x12xf32> to vector<1x12xf32>
    %173 = vector.broadcast %172 : vector<1x12xf32> to vector<112x12xf32>
    %c0_135 = arith.constant 0 : index
    %c0_136 = arith.constant 0 : index
    %174 = vector.load %arg46[%c0_135, %c0_136] : memref<128x200xbf16, #tpu.memory_space<vmem>>, vector<112x24xbf16>
    %c0_137 = arith.constant 0 : index
    %c0_138 = arith.constant 0 : index
    %c0_139 = arith.constant 0 : index
    %175 = vector.load %arg29[%c0_137, %c0_138, %c0_139] : memref<9x24x12xbf16, #tpu.memory_space<vmem>>, vector<1x24x12xbf16>
    %176 = vector.shape_cast %175 : vector<1x24x12xbf16> to vector<24x12xbf16>
    %cst_140 = arith.constant dense<0.000000e+00> : vector<112x12xf32>
    %177 = tpu.matmul %174, %176, %cst_140 {dimension_numbers = #tpu.dot_dimension_numbers<[1], [0], [0], [1], [0, 0, 1, 1], [], []>} : vector<112x24xbf16>, vector<24x12xbf16>, vector<112x12xf32> -> vector<112x12xf32>
    %178 = arith.addf %173, %177 : vector<112x12xf32>
    %c1_141 = arith.constant 1 : index
    %c0_142 = arith.constant 0 : index
    %179 = vector.load %arg46[%c1_141, %c0_142] : memref<128x200xbf16, #tpu.memory_space<vmem>>, vector<112x24xbf16>
    %c1_143 = arith.constant 1 : index
    %c0_144 = arith.constant 0 : index
    %c0_145 = arith.constant 0 : index
    %180 = vector.load %arg29[%c1_143, %c0_144, %c0_145] : memref<9x24x12xbf16, #tpu.memory_space<vmem>>, vector<1x24x12xbf16>
    %181 = vector.shape_cast %180 : vector<1x24x12xbf16> to vector<24x12xbf16>
    %cst_146 = arith.constant dense<0.000000e+00> : vector<112x12xf32>
    %182 = tpu.matmul %179, %181, %cst_146 {dimension_numbers = #tpu.dot_dimension_numbers<[1], [0], [0], [1], [0, 0, 1, 1], [], []>} : vector<112x24xbf16>, vector<24x12xbf16>, vector<112x12xf32> -> vector<112x12xf32>
    %183 = arith.addf %178, %182 : vector<112x12xf32>
    %c2_147 = arith.constant 2 : index
    %c0_148 = arith.constant 0 : index
    %184 = vector.load %arg46[%c2_147, %c0_148] : memref<128x200xbf16, #tpu.memory_space<vmem>>, vector<112x24xbf16>
    %c2_149 = arith.constant 2 : index
    %c0_150 = arith.constant 0 : index
    %c0_151 = arith.constant 0 : index
    %185 = vector.load %arg29[%c2_149, %c0_150, %c0_151] : memref<9x24x12xbf16, #tpu.memory_space<vmem>>, vector<1x24x12xbf16>
    %186 = vector.shape_cast %185 : vector<1x24x12xbf16> to vector<24x12xbf16>
    %cst_152 = arith.constant dense<0.000000e+00> : vector<112x12xf32>
    %187 = tpu.matmul %184, %186, %cst_152 {dimension_numbers = #tpu.dot_dimension_numbers<[1], [0], [0], [1], [0, 0, 1, 1], [], []>} : vector<112x24xbf16>, vector<24x12xbf16>, vector<112x12xf32> -> vector<112x12xf32>
    %188 = arith.addf %183, %187 : vector<112x12xf32>
    %c7_153 = arith.constant 7 : index
    %c0_154 = arith.constant 0 : index
    %189 = vector.load %arg46[%c7_153, %c0_154] : memref<128x200xbf16, #tpu.memory_space<vmem>>, vector<112x24xbf16>
    %c3_155 = arith.constant 3 : index
    %c0_156 = arith.constant 0 : index
    %c0_157 = arith.constant 0 : index
    %190 = vector.load %arg29[%c3_155, %c0_156, %c0_157] : memref<9x24x12xbf16, #tpu.memory_space<vmem>>, vector<1x24x12xbf16>
    %191 = vector.shape_cast %190 : vector<1x24x12xbf16> to vector<24x12xbf16>
    %cst_158 = arith.constant dense<0.000000e+00> : vector<112x12xf32>
    %192 = tpu.matmul %189, %191, %cst_158 {dimension_numbers = #tpu.dot_dimension_numbers<[1], [0], [0], [1], [0, 0, 1, 1], [], []>} : vector<112x24xbf16>, vector<24x12xbf16>, vector<112x12xf32> -> vector<112x12xf32>
    %193 = arith.addf %188, %192 : vector<112x12xf32>
    %c8_159 = arith.constant 8 : index
    %c0_160 = arith.constant 0 : index
    %194 = vector.load %arg46[%c8_159, %c0_160] : memref<128x200xbf16, #tpu.memory_space<vmem>>, vector<112x24xbf16>
    %c4_161 = arith.constant 4 : index
    %c0_162 = arith.constant 0 : index
    %c0_163 = arith.constant 0 : index
    %195 = vector.load %arg29[%c4_161, %c0_162, %c0_163] : memref<9x24x12xbf16, #tpu.memory_space<vmem>>, vector<1x24x12xbf16>
    %196 = vector.shape_cast %195 : vector<1x24x12xbf16> to vector<24x12xbf16>
    %cst_164 = arith.constant dense<0.000000e+00> : vector<112x12xf32>
    %197 = tpu.matmul %194, %196, %cst_164 {dimension_numbers = #tpu.dot_dimension_numbers<[1], [0], [0], [1], [0, 0, 1, 1], [], []>} : vector<112x24xbf16>, vector<24x12xbf16>, vector<112x12xf32> -> vector<112x12xf32>
    %198 = arith.addf %193, %197 : vector<112x12xf32>
    %c9_165 = arith.constant 9 : index
    %c0_166 = arith.constant 0 : index
    %199 = vector.load %arg46[%c9_165, %c0_166] : memref<128x200xbf16, #tpu.memory_space<vmem>>, vector<112x24xbf16>
    %c5_167 = arith.constant 5 : index
    %c0_168 = arith.constant 0 : index
    %c0_169 = arith.constant 0 : index
    %200 = vector.load %arg29[%c5_167, %c0_168, %c0_169] : memref<9x24x12xbf16, #tpu.memory_space<vmem>>, vector<1x24x12xbf16>
    %201 = vector.shape_cast %200 : vector<1x24x12xbf16> to vector<24x12xbf16>
    %cst_170 = arith.constant dense<0.000000e+00> : vector<112x12xf32>
    %202 = tpu.matmul %199, %201, %cst_170 {dimension_numbers = #tpu.dot_dimension_numbers<[1], [0], [0], [1], [0, 0, 1, 1], [], []>} : vector<112x24xbf16>, vector<24x12xbf16>, vector<112x12xf32> -> vector<112x12xf32>
    %203 = arith.addf %198, %202 : vector<112x12xf32>
    %c14_171 = arith.constant 14 : index
    %c0_172 = arith.constant 0 : index
    %204 = vector.load %arg46[%c14_171, %c0_172] : memref<128x200xbf16, #tpu.memory_space<vmem>>, vector<112x24xbf16>
    %c6_173 = arith.constant 6 : index
    %c0_174 = arith.constant 0 : index
    %c0_175 = arith.constant 0 : index
    %205 = vector.load %arg29[%c6_173, %c0_174, %c0_175] : memref<9x24x12xbf16, #tpu.memory_space<vmem>>, vector<1x24x12xbf16>
    %206 = vector.shape_cast %205 : vector<1x24x12xbf16> to vector<24x12xbf16>
    %cst_176 = arith.constant dense<0.000000e+00> : vector<112x12xf32>
    %207 = tpu.matmul %204, %206, %cst_176 {dimension_numbers = #tpu.dot_dimension_numbers<[1], [0], [0], [1], [0, 0, 1, 1], [], []>} : vector<112x24xbf16>, vector<24x12xbf16>, vector<112x12xf32> -> vector<112x12xf32>
    %208 = arith.addf %203, %207 : vector<112x12xf32>
    %c15_177 = arith.constant 15 : index
    %c0_178 = arith.constant 0 : index
    %209 = vector.load %arg46[%c15_177, %c0_178] : memref<128x200xbf16, #tpu.memory_space<vmem>>, vector<112x24xbf16>
    %c7_179 = arith.constant 7 : index
    %c0_180 = arith.constant 0 : index
    %c0_181 = arith.constant 0 : index
    %210 = vector.load %arg29[%c7_179, %c0_180, %c0_181] : memref<9x24x12xbf16, #tpu.memory_space<vmem>>, vector<1x24x12xbf16>
    %211 = vector.shape_cast %210 : vector<1x24x12xbf16> to vector<24x12xbf16>
    %cst_182 = arith.constant dense<0.000000e+00> : vector<112x12xf32>
    %212 = tpu.matmul %209, %211, %cst_182 {dimension_numbers = #tpu.dot_dimension_numbers<[1], [0], [0], [1], [0, 0, 1, 1], [], []>} : vector<112x24xbf16>, vector<24x12xbf16>, vector<112x12xf32> -> vector<112x12xf32>
    %213 = arith.addf %208, %212 : vector<112x12xf32>
    %c16_183 = arith.constant 16 : index
    %c0_184 = arith.constant 0 : index
    %214 = vector.load %arg46[%c16_183, %c0_184] : memref<128x200xbf16, #tpu.memory_space<vmem>>, vector<112x24xbf16>
    %c8_185 = arith.constant 8 : index
    %c0_186 = arith.constant 0 : index
    %c0_187 = arith.constant 0 : index
    %215 = vector.load %arg29[%c8_185, %c0_186, %c0_187] : memref<9x24x12xbf16, #tpu.memory_space<vmem>>, vector<1x24x12xbf16>
    %216 = vector.shape_cast %215 : vector<1x24x12xbf16> to vector<24x12xbf16>
    %cst_188 = arith.constant dense<0.000000e+00> : vector<112x12xf32>
    %217 = tpu.matmul %214, %216, %cst_188 {dimension_numbers = #tpu.dot_dimension_numbers<[1], [0], [0], [1], [0, 0, 1, 1], [], []>} : vector<112x24xbf16>, vector<24x12xbf16>, vector<112x12xf32> -> vector<112x12xf32>
    %218 = arith.addf %213, %217 : vector<112x12xf32>
    %c0_189 = arith.constant 0 : index
    %c24 = arith.constant 24 : index
    %219 = vector.load %arg45[%c0_189, %c24] : memref<112x60xf32, #tpu.memory_space<vmem>>, vector<112x12xf32>
    tpu.vector_store %arg45[%c0_189, %c24], %218 {strides = array<i32>} : memref<112x60xf32, #tpu.memory_space<vmem>>, vector<112x12xf32>,
    %c6_190 = arith.constant 6 : index
    %220 = memref.load %arg4[%c6_190] : memref<9xf32, #tpu.memory_space<smem>>
    %c0_191 = arith.constant 0 : index
    %c0_192 = arith.constant 0 : index
    %221 = vector.load %arg45[%c0_191, %c0_192] : memref<112x60xf32, #tpu.memory_space<vmem>>, vector<112x36xf32>
    %c0_193 = arith.constant 0 : index
    %c0_194 = arith.constant 0 : index
    %222 = vector.load %arg31[%c0_193, %c0_194] : memref<1x36xf32, #tpu.memory_space<vmem>>, vector<1x36xf32>
    %223 = vector.broadcast %222 : vector<1x36xf32> to vector<112x36xf32>
    %224 = arith.mulf %221, %223 : vector<112x36xf32>
    %c0_195 = arith.constant 0 : index
    %c0_196 = arith.constant 0 : index
    %225 = vector.load %arg32[%c0_195, %c0_196] : memref<1x36xf32, #tpu.memory_space<vmem>>, vector<1x36xf32>
    %226 = vector.broadcast %225 : vector<1x36xf32> to vector<112x36xf32>
    %227 = arith.addf %224, %226 : vector<112x36xf32>
    %cst_197 = arith.constant 0.000000e+00 : f32
    %228 = vector.broadcast %cst_197 : f32 to vector<112x36xf32>
    %229 = arith.cmpf oge, %227, %228 : vector<112x36xf32>
    %230 = vector.broadcast %220 : f32 to vector<112x36xf32>
    %231 = arith.mulf %230, %227 : vector<112x36xf32>
    %232 = arith.select %229, %227, %231 : vector<112x36xi1>, vector<112x36xf32>
    %233 = vector.broadcast %102 : vector<112x1xf32> to vector<112x36xf32>
    %234 = arith.mulf %232, %233 : vector<112x36xf32>
    %235 = arith.truncf %234 : vector<112x36xf32> to vector<112x36xbf16>
    %c8_198 = arith.constant 8 : index
    %c0_199 = arith.constant 0 : index
    %236 = vector.load %arg46[%c8_198, %c0_199] : memref<128x200xbf16, #tpu.memory_space<vmem>>, vector<112x36xbf16>
    tpu.vector_store %arg46[%c8_198, %c0_199], %235 {strides = array<i32>} : memref<128x200xbf16, #tpu.memory_space<vmem>>, vector<112x36xbf16>,
    %c0_200 = arith.constant 0 : index
    %c0_201 = arith.constant 0 : index
    %237 = vector.load %arg34[%c0_200, %c0_201] : memref<1x12xf32, #tpu.memory_space<vmem>>, vector<1x12xf32>
    %238 = vector.shape_cast %237 : vector<1x12xf32> to vector<1x12xf32>
    %239 = vector.broadcast %238 : vector<1x12xf32> to vector<112x12xf32>
    %c0_202 = arith.constant 0 : index
    %c0_203 = arith.constant 0 : index
    %240 = vector.load %arg46[%c0_202, %c0_203] : memref<128x200xbf16, #tpu.memory_space<vmem>>, vector<112x36xbf16>
    %c0_204 = arith.constant 0 : index
    %c0_205 = arith.constant 0 : index
    %c0_206 = arith.constant 0 : index
    %241 = vector.load %arg33[%c0_204, %c0_205, %c0_206] : memref<9x36x12xbf16, #tpu.memory_space<vmem>>, vector<1x36x12xbf16>
    %242 = vector.shape_cast %241 : vector<1x36x12xbf16> to vector<36x12xbf16>
    %cst_207 = arith.constant dense<0.000000e+00> : vector<112x12xf32>
    %243 = tpu.matmul %240, %242, %cst_207 {dimension_numbers = #tpu.dot_dimension_numbers<[1], [0], [0], [1], [0, 0, 1, 1], [], []>} : vector<112x36xbf16>, vector<36x12xbf16>, vector<112x12xf32> -> vector<112x12xf32>
    %244 = arith.addf %239, %243 : vector<112x12xf32>
    %c1_208 = arith.constant 1 : index
    %c0_209 = arith.constant 0 : index
    %245 = vector.load %arg46[%c1_208, %c0_209] : memref<128x200xbf16, #tpu.memory_space<vmem>>, vector<112x36xbf16>
    %c1_210 = arith.constant 1 : index
    %c0_211 = arith.constant 0 : index
    %c0_212 = arith.constant 0 : index
    %246 = vector.load %arg33[%c1_210, %c0_211, %c0_212] : memref<9x36x12xbf16, #tpu.memory_space<vmem>>, vector<1x36x12xbf16>
    %247 = vector.shape_cast %246 : vector<1x36x12xbf16> to vector<36x12xbf16>
    %cst_213 = arith.constant dense<0.000000e+00> : vector<112x12xf32>
    %248 = tpu.matmul %245, %247, %cst_213 {dimension_numbers = #tpu.dot_dimension_numbers<[1], [0], [0], [1], [0, 0, 1, 1], [], []>} : vector<112x36xbf16>, vector<36x12xbf16>, vector<112x12xf32> -> vector<112x12xf32>
    %249 = arith.addf %244, %248 : vector<112x12xf32>
    %c2_214 = arith.constant 2 : index
    %c0_215 = arith.constant 0 : index
    %250 = vector.load %arg46[%c2_214, %c0_215] : memref<128x200xbf16, #tpu.memory_space<vmem>>, vector<112x36xbf16>
    %c2_216 = arith.constant 2 : index
    %c0_217 = arith.constant 0 : index
    %c0_218 = arith.constant 0 : index
    %251 = vector.load %arg33[%c2_216, %c0_217, %c0_218] : memref<9x36x12xbf16, #tpu.memory_space<vmem>>, vector<1x36x12xbf16>
    %252 = vector.shape_cast %251 : vector<1x36x12xbf16> to vector<36x12xbf16>
    %cst_219 = arith.constant dense<0.000000e+00> : vector<112x12xf32>
    %253 = tpu.matmul %250, %252, %cst_219 {dimension_numbers = #tpu.dot_dimension_numbers<[1], [0], [0], [1], [0, 0, 1, 1], [], []>} : vector<112x36xbf16>, vector<36x12xbf16>, vector<112x12xf32> -> vector<112x12xf32>
    %254 = arith.addf %249, %253 : vector<112x12xf32>
    %c7_220 = arith.constant 7 : index
    %c0_221 = arith.constant 0 : index
    %255 = vector.load %arg46[%c7_220, %c0_221] : memref<128x200xbf16, #tpu.memory_space<vmem>>, vector<112x36xbf16>
    %c3_222 = arith.constant 3 : index
    %c0_223 = arith.constant 0 : index
    %c0_224 = arith.constant 0 : index
    %256 = vector.load %arg33[%c3_222, %c0_223, %c0_224] : memref<9x36x12xbf16, #tpu.memory_space<vmem>>, vector<1x36x12xbf16>
    %257 = vector.shape_cast %256 : vector<1x36x12xbf16> to vector<36x12xbf16>
    %cst_225 = arith.constant dense<0.000000e+00> : vector<112x12xf32>
    %258 = tpu.matmul %255, %257, %cst_225 {dimension_numbers = #tpu.dot_dimension_numbers<[1], [0], [0], [1], [0, 0, 1, 1], [], []>} : vector<112x36xbf16>, vector<36x12xbf16>, vector<112x12xf32> -> vector<112x12xf32>
    %259 = arith.addf %254, %258 : vector<112x12xf32>
    %c8_226 = arith.constant 8 : index
    %c0_227 = arith.constant 0 : index
    %260 = vector.load %arg46[%c8_226, %c0_227] : memref<128x200xbf16, #tpu.memory_space<vmem>>, vector<112x36xbf16>
    %c4_228 = arith.constant 4 : index
    %c0_229 = arith.constant 0 : index
    %c0_230 = arith.constant 0 : index
    %261 = vector.load %arg33[%c4_228, %c0_229, %c0_230] : memref<9x36x12xbf16, #tpu.memory_space<vmem>>, vector<1x36x12xbf16>
    %262 = vector.shape_cast %261 : vector<1x36x12xbf16> to vector<36x12xbf16>
    %cst_231 = arith.constant dense<0.000000e+00> : vector<112x12xf32>
    %263 = tpu.matmul %260, %262, %cst_231 {dimension_numbers = #tpu.dot_dimension_numbers<[1], [0], [0], [1], [0, 0, 1, 1], [], []>} : vector<112x36xbf16>, vector<36x12xbf16>, vector<112x12xf32> -> vector<112x12xf32>
    %264 = arith.addf %259, %263 : vector<112x12xf32>
    %c9_232 = arith.constant 9 : index
    %c0_233 = arith.constant 0 : index
    %265 = vector.load %arg46[%c9_232, %c0_233] : memref<128x200xbf16, #tpu.memory_space<vmem>>, vector<112x36xbf16>
    %c5_234 = arith.constant 5 : index
    %c0_235 = arith.constant 0 : index
    %c0_236 = arith.constant 0 : index
    %266 = vector.load %arg33[%c5_234, %c0_235, %c0_236] : memref<9x36x12xbf16, #tpu.memory_space<vmem>>, vector<1x36x12xbf16>
    %267 = vector.shape_cast %266 : vector<1x36x12xbf16> to vector<36x12xbf16>
    %cst_237 = arith.constant dense<0.000000e+00> : vector<112x12xf32>
    %268 = tpu.matmul %265, %267, %cst_237 {dimension_numbers = #tpu.dot_dimension_numbers<[1], [0], [0], [1], [0, 0, 1, 1], [], []>} : vector<112x36xbf16>, vector<36x12xbf16>, vector<112x12xf32> -> vector<112x12xf32>
    %269 = arith.addf %264, %268 : vector<112x12xf32>
    %c14_238 = arith.constant 14 : index
    %c0_239 = arith.constant 0 : index
    %270 = vector.load %arg46[%c14_238, %c0_239] : memref<128x200xbf16, #tpu.memory_space<vmem>>, vector<112x36xbf16>
    %c6_240 = arith.constant 6 : index
    %c0_241 = arith.constant 0 : index
    %c0_242 = arith.constant 0 : index
    %271 = vector.load %arg33[%c6_240, %c0_241, %c0_242] : memref<9x36x12xbf16, #tpu.memory_space<vmem>>, vector<1x36x12xbf16>
    %272 = vector.shape_cast %271 : vector<1x36x12xbf16> to vector<36x12xbf16>
    %cst_243 = arith.constant dense<0.000000e+00> : vector<112x12xf32>
    %273 = tpu.matmul %270, %272, %cst_243 {dimension_numbers = #tpu.dot_dimension_numbers<[1], [0], [0], [1], [0, 0, 1, 1], [], []>} : vector<112x36xbf16>, vector<36x12xbf16>, vector<112x12xf32> -> vector<112x12xf32>
    %274 = arith.addf %269, %273 : vector<112x12xf32>
    %c15_244 = arith.constant 15 : index
    %c0_245 = arith.constant 0 : index
    %275 = vector.load %arg46[%c15_244, %c0_245] : memref<128x200xbf16, #tpu.memory_space<vmem>>, vector<112x36xbf16>
    %c7_246 = arith.constant 7 : index
    %c0_247 = arith.constant 0 : index
    %c0_248 = arith.constant 0 : index
    %276 = vector.load %arg33[%c7_246, %c0_247, %c0_248] : memref<9x36x12xbf16, #tpu.memory_space<vmem>>, vector<1x36x12xbf16>
    %277 = vector.shape_cast %276 : vector<1x36x12xbf16> to vector<36x12xbf16>
    %cst_249 = arith.constant dense<0.000000e+00> : vector<112x12xf32>
    %278 = tpu.matmul %275, %277, %cst_249 {dimension_numbers = #tpu.dot_dimension_numbers<[1], [0], [0], [1], [0, 0, 1, 1], [], []>} : vector<112x36xbf16>, vector<36x12xbf16>, vector<112x12xf32> -> vector<112x12xf32>
    %279 = arith.addf %274, %278 : vector<112x12xf32>
    %c16_250 = arith.constant 16 : index
    %c0_251 = arith.constant 0 : index
    %280 = vector.load %arg46[%c16_250, %c0_251] : memref<128x200xbf16, #tpu.memory_space<vmem>>, vector<112x36xbf16>
    %c8_252 = arith.constant 8 : index
    %c0_253 = arith.constant 0 : index
    %c0_254 = arith.constant 0 : index
    %281 = vector.load %arg33[%c8_252, %c0_253, %c0_254] : memref<9x36x12xbf16, #tpu.memory_space<vmem>>, vector<1x36x12xbf16>
    %282 = vector.shape_cast %281 : vector<1x36x12xbf16> to vector<36x12xbf16>
    %cst_255 = arith.constant dense<0.000000e+00> : vector<112x12xf32>
    %283 = tpu.matmul %280, %282, %cst_255 {dimension_numbers = #tpu.dot_dimension_numbers<[1], [0], [0], [1], [0, 0, 1, 1], [], []>} : vector<112x36xbf16>, vector<36x12xbf16>, vector<112x12xf32> -> vector<112x12xf32>
    %284 = arith.addf %279, %283 : vector<112x12xf32>
    %c0_256 = arith.constant 0 : index
    %c36 = arith.constant 36 : index
    %285 = vector.load %arg45[%c0_256, %c36] : memref<112x60xf32, #tpu.memory_space<vmem>>, vector<112x12xf32>
    tpu.vector_store %arg45[%c0_256, %c36], %284 {strides = array<i32>} : memref<112x60xf32, #tpu.memory_space<vmem>>, vector<112x12xf32>,
    %c7_257 = arith.constant 7 : index
    %286 = memref.load %arg4[%c7_257] : memref<9xf32, #tpu.memory_space<smem>>
    %c0_258 = arith.constant 0 : index
    %c0_259 = arith.constant 0 : index
    %287 = vector.load %arg45[%c0_258, %c0_259] : memref<112x60xf32, #tpu.memory_space<vmem>>, vector<112x48xf32>
    %c0_260 = arith.constant 0 : index
    %c0_261 = arith.constant 0 : index
    %288 = vector.load %arg35[%c0_260, %c0_261] : memref<1x48xf32, #tpu.memory_space<vmem>>, vector<1x48xf32>
    %289 = vector.broadcast %288 : vector<1x48xf32> to vector<112x48xf32>
    %290 = arith.mulf %287, %289 : vector<112x48xf32>
    %c0_262 = arith.constant 0 : index
    %c0_263 = arith.constant 0 : index
    %291 = vector.load %arg36[%c0_262, %c0_263] : memref<1x48xf32, #tpu.memory_space<vmem>>, vector<1x48xf32>
    %292 = vector.broadcast %291 : vector<1x48xf32> to vector<112x48xf32>
    %293 = arith.addf %290, %292 : vector<112x48xf32>
    %cst_264 = arith.constant 0.000000e+00 : f32
    %294 = vector.broadcast %cst_264 : f32 to vector<112x48xf32>
    %295 = arith.cmpf oge, %293, %294 : vector<112x48xf32>
    %296 = vector.broadcast %286 : f32 to vector<112x48xf32>
    %297 = arith.mulf %296, %293 : vector<112x48xf32>
    %298 = arith.select %295, %293, %297 : vector<112x48xi1>, vector<112x48xf32>
    %299 = vector.broadcast %102 : vector<112x1xf32> to vector<112x48xf32>
    %300 = arith.mulf %298, %299 : vector<112x48xf32>
    %301 = arith.truncf %300 : vector<112x48xf32> to vector<112x48xbf16>
    %c8_265 = arith.constant 8 : index
    %c0_266 = arith.constant 0 : index
    %302 = vector.load %arg46[%c8_265, %c0_266] : memref<128x200xbf16, #tpu.memory_space<vmem>>, vector<112x48xbf16>
    tpu.vector_store %arg46[%c8_265, %c0_266], %301 {strides = array<i32>} : memref<128x200xbf16, #tpu.memory_space<vmem>>, vector<112x48xbf16>,
    %c0_267 = arith.constant 0 : index
    %c0_268 = arith.constant 0 : index
    %303 = vector.load %arg38[%c0_267, %c0_268] : memref<1x12xf32, #tpu.memory_space<vmem>>, vector<1x12xf32>
    %304 = vector.shape_cast %303 : vector<1x12xf32> to vector<1x12xf32>
    %305 = vector.broadcast %304 : vector<1x12xf32> to vector<112x12xf32>
    %c0_269 = arith.constant 0 : index
    %c0_270 = arith.constant 0 : index
    %306 = vector.load %arg46[%c0_269, %c0_270] : memref<128x200xbf16, #tpu.memory_space<vmem>>, vector<112x48xbf16>
    %c0_271 = arith.constant 0 : index
    %c0_272 = arith.constant 0 : index
    %c0_273 = arith.constant 0 : index
    %307 = vector.load %arg37[%c0_271, %c0_272, %c0_273] : memref<9x48x12xbf16, #tpu.memory_space<vmem>>, vector<1x48x12xbf16>
    %308 = vector.shape_cast %307 : vector<1x48x12xbf16> to vector<48x12xbf16>
    %cst_274 = arith.constant dense<0.000000e+00> : vector<112x12xf32>
    %309 = tpu.matmul %306, %308, %cst_274 {dimension_numbers = #tpu.dot_dimension_numbers<[1], [0], [0], [1], [0, 0, 1, 1], [], []>} : vector<112x48xbf16>, vector<48x12xbf16>, vector<112x12xf32> -> vector<112x12xf32>
    %310 = arith.addf %305, %309 : vector<112x12xf32>
    %c1_275 = arith.constant 1 : index
    %c0_276 = arith.constant 0 : index
    %311 = vector.load %arg46[%c1_275, %c0_276] : memref<128x200xbf16, #tpu.memory_space<vmem>>, vector<112x48xbf16>
    %c1_277 = arith.constant 1 : index
    %c0_278 = arith.constant 0 : index
    %c0_279 = arith.constant 0 : index
    %312 = vector.load %arg37[%c1_277, %c0_278, %c0_279] : memref<9x48x12xbf16, #tpu.memory_space<vmem>>, vector<1x48x12xbf16>
    %313 = vector.shape_cast %312 : vector<1x48x12xbf16> to vector<48x12xbf16>
    %cst_280 = arith.constant dense<0.000000e+00> : vector<112x12xf32>
    %314 = tpu.matmul %311, %313, %cst_280 {dimension_numbers = #tpu.dot_dimension_numbers<[1], [0], [0], [1], [0, 0, 1, 1], [], []>} : vector<112x48xbf16>, vector<48x12xbf16>, vector<112x12xf32> -> vector<112x12xf32>
    %315 = arith.addf %310, %314 : vector<112x12xf32>
    %c2_281 = arith.constant 2 : index
    %c0_282 = arith.constant 0 : index
    %316 = vector.load %arg46[%c2_281, %c0_282] : memref<128x200xbf16, #tpu.memory_space<vmem>>, vector<112x48xbf16>
    %c2_283 = arith.constant 2 : index
    %c0_284 = arith.constant 0 : index
    %c0_285 = arith.constant 0 : index
    %317 = vector.load %arg37[%c2_283, %c0_284, %c0_285] : memref<9x48x12xbf16, #tpu.memory_space<vmem>>, vector<1x48x12xbf16>
    %318 = vector.shape_cast %317 : vector<1x48x12xbf16> to vector<48x12xbf16>
    %cst_286 = arith.constant dense<0.000000e+00> : vector<112x12xf32>
    %319 = tpu.matmul %316, %318, %cst_286 {dimension_numbers = #tpu.dot_dimension_numbers<[1], [0], [0], [1], [0, 0, 1, 1], [], []>} : vector<112x48xbf16>, vector<48x12xbf16>, vector<112x12xf32> -> vector<112x12xf32>
    %320 = arith.addf %315, %319 : vector<112x12xf32>
    %c7_287 = arith.constant 7 : index
    %c0_288 = arith.constant 0 : index
    %321 = vector.load %arg46[%c7_287, %c0_288] : memref<128x200xbf16, #tpu.memory_space<vmem>>, vector<112x48xbf16>
    %c3_289 = arith.constant 3 : index
    %c0_290 = arith.constant 0 : index
    %c0_291 = arith.constant 0 : index
    %322 = vector.load %arg37[%c3_289, %c0_290, %c0_291] : memref<9x48x12xbf16, #tpu.memory_space<vmem>>, vector<1x48x12xbf16>
    %323 = vector.shape_cast %322 : vector<1x48x12xbf16> to vector<48x12xbf16>
    %cst_292 = arith.constant dense<0.000000e+00> : vector<112x12xf32>
    %324 = tpu.matmul %321, %323, %cst_292 {dimension_numbers = #tpu.dot_dimension_numbers<[1], [0], [0], [1], [0, 0, 1, 1], [], []>} : vector<112x48xbf16>, vector<48x12xbf16>, vector<112x12xf32> -> vector<112x12xf32>
    %325 = arith.addf %320, %324 : vector<112x12xf32>
    %c8_293 = arith.constant 8 : index
    %c0_294 = arith.constant 0 : index
    %326 = vector.load %arg46[%c8_293, %c0_294] : memref<128x200xbf16, #tpu.memory_space<vmem>>, vector<112x48xbf16>
    %c4_295 = arith.constant 4 : index
    %c0_296 = arith.constant 0 : index
    %c0_297 = arith.constant 0 : index
    %327 = vector.load %arg37[%c4_295, %c0_296, %c0_297] : memref<9x48x12xbf16, #tpu.memory_space<vmem>>, vector<1x48x12xbf16>
    %328 = vector.shape_cast %327 : vector<1x48x12xbf16> to vector<48x12xbf16>
    %cst_298 = arith.constant dense<0.000000e+00> : vector<112x12xf32>
    %329 = tpu.matmul %326, %328, %cst_298 {dimension_numbers = #tpu.dot_dimension_numbers<[1], [0], [0], [1], [0, 0, 1, 1], [], []>} : vector<112x48xbf16>, vector<48x12xbf16>, vector<112x12xf32> -> vector<112x12xf32>
    %330 = arith.addf %325, %329 : vector<112x12xf32>
    %c9_299 = arith.constant 9 : index
    %c0_300 = arith.constant 0 : index
    %331 = vector.load %arg46[%c9_299, %c0_300] : memref<128x200xbf16, #tpu.memory_space<vmem>>, vector<112x48xbf16>
    %c5_301 = arith.constant 5 : index
    %c0_302 = arith.constant 0 : index
    %c0_303 = arith.constant 0 : index
    %332 = vector.load %arg37[%c5_301, %c0_302, %c0_303] : memref<9x48x12xbf16, #tpu.memory_space<vmem>>, vector<1x48x12xbf16>
    %333 = vector.shape_cast %332 : vector<1x48x12xbf16> to vector<48x12xbf16>
    %cst_304 = arith.constant dense<0.000000e+00> : vector<112x12xf32>
    %334 = tpu.matmul %331, %333, %cst_304 {dimension_numbers = #tpu.dot_dimension_numbers<[1], [0], [0], [1], [0, 0, 1, 1], [], []>} : vector<112x48xbf16>, vector<48x12xbf16>, vector<112x12xf32> -> vector<112x12xf32>
    %335 = arith.addf %330, %334 : vector<112x12xf32>
    %c14_305 = arith.constant 14 : index
    %c0_306 = arith.constant 0 : index
    %336 = vector.load %arg46[%c14_305, %c0_306] : memref<128x200xbf16, #tpu.memory_space<vmem>>, vector<112x48xbf16>
    %c6_307 = arith.constant 6 : index
    %c0_308 = arith.constant 0 : index
    %c0_309 = arith.constant 0 : index
    %337 = vector.load %arg37[%c6_307, %c0_308, %c0_309] : memref<9x48x12xbf16, #tpu.memory_space<vmem>>, vector<1x48x12xbf16>
    %338 = vector.shape_cast %337 : vector<1x48x12xbf16> to vector<48x12xbf16>
    %cst_310 = arith.constant dense<0.000000e+00> : vector<112x12xf32>
    %339 = tpu.matmul %336, %338, %cst_310 {dimension_numbers = #tpu.dot_dimension_numbers<[1], [0], [0], [1], [0, 0, 1, 1], [], []>} : vector<112x48xbf16>, vector<48x12xbf16>, vector<112x12xf32> -> vector<112x12xf32>
    %340 = arith.addf %335, %339 : vector<112x12xf32>
    %c15_311 = arith.constant 15 : index
    %c0_312 = arith.constant 0 : index
    %341 = vector.load %arg46[%c15_311, %c0_312] : memref<128x200xbf16, #tpu.memory_space<vmem>>, vector<112x48xbf16>
    %c7_313 = arith.constant 7 : index
    %c0_314 = arith.constant 0 : index
    %c0_315 = arith.constant 0 : index
    %342 = vector.load %arg37[%c7_313, %c0_314, %c0_315] : memref<9x48x12xbf16, #tpu.memory_space<vmem>>, vector<1x48x12xbf16>
    %343 = vector.shape_cast %342 : vector<1x48x12xbf16> to vector<48x12xbf16>
    %cst_316 = arith.constant dense<0.000000e+00> : vector<112x12xf32>
    %344 = tpu.matmul %341, %343, %cst_316 {dimension_numbers = #tpu.dot_dimension_numbers<[1], [0], [0], [1], [0, 0, 1, 1], [], []>} : vector<112x48xbf16>, vector<48x12xbf16>, vector<112x12xf32> -> vector<112x12xf32>
    %345 = arith.addf %340, %344 : vector<112x12xf32>
    %c16_317 = arith.constant 16 : index
    %c0_318 = arith.constant 0 : index
    %346 = vector.load %arg46[%c16_317, %c0_318] : memref<128x200xbf16, #tpu.memory_space<vmem>>, vector<112x48xbf16>
    %c8_319 = arith.constant 8 : index
    %c0_320 = arith.constant 0 : index
    %c0_321 = arith.constant 0 : index
    %347 = vector.load %arg37[%c8_319, %c0_320, %c0_321] : memref<9x48x12xbf16, #tpu.memory_space<vmem>>, vector<1x48x12xbf16>
    %348 = vector.shape_cast %347 : vector<1x48x12xbf16> to vector<48x12xbf16>
    %cst_322 = arith.constant dense<0.000000e+00> : vector<112x12xf32>
    %349 = tpu.matmul %346, %348, %cst_322 {dimension_numbers = #tpu.dot_dimension_numbers<[1], [0], [0], [1], [0, 0, 1, 1], [], []>} : vector<112x48xbf16>, vector<48x12xbf16>, vector<112x12xf32> -> vector<112x12xf32>
    %350 = arith.addf %345, %349 : vector<112x12xf32>
    %c0_323 = arith.constant 0 : index
    %c48 = arith.constant 48 : index
    %351 = vector.load %arg45[%c0_323, %c48] : memref<112x60xf32, #tpu.memory_space<vmem>>, vector<112x12xf32>
    tpu.vector_store %arg45[%c0_323, %c48], %350 {strides = array<i32>} : memref<112x60xf32, #tpu.memory_space<vmem>>, vector<112x12xf32>,
    %c0_324 = arith.constant 0 : index
    %c0_325 = arith.constant 0 : index
    %352 = vector.load %arg45[%c0_324, %c0_325] : memref<112x60xf32, #tpu.memory_space<vmem>>, vector<112x60xf32>
    %c0_326 = arith.constant 0 : index
    %c0_327 = arith.constant 0 : index
    %353 = vector.load %arg39[%c0_326, %c0_327] : memref<1x60xf32, #tpu.memory_space<vmem>>, vector<1x60xf32>
    %354 = vector.broadcast %353 : vector<1x60xf32> to vector<112x60xf32>
    %355 = arith.mulf %352, %354 : vector<112x60xf32>
    %c0_328 = arith.constant 0 : index
    %c0_329 = arith.constant 0 : index
    %356 = vector.load %arg40[%c0_328, %c0_329] : memref<1x60xf32, #tpu.memory_space<vmem>>, vector<1x60xf32>
    %357 = vector.broadcast %356 : vector<1x60xf32> to vector<112x60xf32>
    %358 = arith.addf %355, %357 : vector<112x60xf32>
    %c8_330 = arith.constant 8 : index
    %359 = memref.load %arg4[%c8_330] : memref<9xf32, #tpu.memory_space<smem>>
    %cst_331 = arith.constant 0.000000e+00 : f32
    %360 = vector.broadcast %cst_331 : f32 to vector<112x60xf32>
    %361 = arith.cmpf oge, %358, %360 : vector<112x60xf32>
    %362 = vector.broadcast %359 : f32 to vector<112x60xf32>
    %363 = arith.mulf %362, %358 : vector<112x60xf32>
    %364 = arith.select %361, %358, %363 : vector<112x60xi1>, vector<112x60xf32>
    %c0_332 = arith.constant 0 : index
    %c0_333 = arith.constant 0 : index
    %365 = vector.load %arg3[%c0_332, %c0_333] : memref<2x112xbf16, #tpu.memory_space<vmem>>, vector<2x112xbf16>
    %366 = arith.truncf %364 : vector<112x60xf32> to vector<112x60xbf16>
    %cst_334 = arith.constant dense<0.000000e+00> : vector<2x60xf32>
    %367 = tpu.matmul %365, %366, %cst_334 {dimension_numbers = #tpu.dot_dimension_numbers<[1], [0], [0], [1], [0, 0, 1, 1], [], []>} : vector<2x112xbf16>, vector<112x60xbf16>, vector<2x60xf32> -> vector<2x60xf32>
    %c0_335 = arith.constant 0 : index
    %c0_336 = arith.constant 0 : index
    %368 = vector.load %arg41[%c0_335, %c0_336] : memref<60x9xf32, #tpu.memory_space<vmem>>, vector<60x9xf32>
    %cst_337 = arith.constant dense<0.000000e+00> : vector<2x9xf32>
    %369 = tpu.matmul %367, %368, %cst_337 {dimension_numbers = #tpu.dot_dimension_numbers<[1], [0], [0], [1], [0, 0, 1, 1], [], []>} : vector<2x60xf32>, vector<60x9xf32>, vector<2x9xf32> -> vector<2x9xf32>
    %c0_338 = arith.constant 0 : index
    %c0_339 = arith.constant 0 : index
    %370 = vector.load %arg42[%c0_338, %c0_339] : memref<1x9xf32, #tpu.memory_space<vmem>>, vector<1x9xf32>
    %371 = vector.broadcast %370 : vector<1x9xf32> to vector<2x9xf32>
    %372 = arith.addf %369, %371 : vector<2x9xf32>
    %c0_340 = arith.constant 0 : index
    %c0_341 = arith.constant 0 : index
    %c0_342 = arith.constant 0 : index
    %373 = vector.load %arg43[%c0_340, %c0_341, %c0_342] : memref<1x2x9xf32, #tpu.memory_space<vmem>>, vector<1x2x9xf32>
    %374 = vector.shape_cast %373 : vector<1x2x9xf32> to vector<2x9xf32>
    %375 = vector.shape_cast %372 : vector<2x9xf32> to vector<1x2x9xf32>
    tpu.vector_store %arg43[%c0_340, %c0_341, %c0_342], %375 {strides = array<i32>} : memref<1x2x9xf32, #tpu.memory_space<vmem>>, vector<1x2x9xf32>,
    return
  }
  func.func @transform_0(%arg0: i32) -> (i32, i32) {
    %c0_i32 = arith.constant 0 : i32
    %c0_i32_0 = arith.constant 0 : i32
    return %arg0, %c0_i32 : i32, i32
  }
  func.func @transform_1(%arg0: i32) -> (i32, i32) {
    %c0_i32 = arith.constant 0 : i32
    %c0_i32_0 = arith.constant 0 : i32
    %c0_i32_1 = arith.constant 0 : i32
    return %c0_i32, %c0_i32_0 : i32, i32
  }
  func.func @transform_2(%arg0: i32) -> (i32, i32) {
    %c0_i32 = arith.constant 0 : i32
    %c0_i32_0 = arith.constant 0 : i32
    %c0_i32_1 = arith.constant 0 : i32
    return %c0_i32, %c0_i32_0 : i32, i32
  }
  func.func @transform_3(%arg0: i32) -> i32 {
    %c0_i32 = arith.constant 0 : i32
    %c0_i32_0 = arith.constant 0 : i32
    return %c0_i32 : i32
  }
  func.func @transform_4(%arg0: i32) -> (i32, i32) {
    %c0_i32 = arith.constant 0 : i32
    %c0_i32_0 = arith.constant 0 : i32
    %c0_i32_1 = arith.constant 0 : i32
    return %c0_i32, %c0_i32_0 : i32, i32
  }
  func.func @transform_5(%arg0: i32) -> (i32, i32) {
    %c0_i32 = arith.constant 0 : i32
    %c0_i32_0 = arith.constant 0 : i32
    %c0_i32_1 = arith.constant 0 : i32
    return %c0_i32, %c0_i32_0 : i32, i32
  }
  func.func @transform_6(%arg0: i32) -> (i32, i32) {
    %c0_i32 = arith.constant 0 : i32
    %c0_i32_0 = arith.constant 0 : i32
    %c0_i32_1 = arith.constant 0 : i32
    return %c0_i32, %c0_i32_0 : i32, i32
  }
  func.func @transform_7(%arg0: i32) -> (i32, i32) {
    %c0_i32 = arith.constant 0 : i32
    %c0_i32_0 = arith.constant 0 : i32
    %c0_i32_1 = arith.constant 0 : i32
    return %c0_i32, %c0_i32_0 : i32, i32
  }
  func.func @transform_8(%arg0: i32) -> (i32, i32) {
    %c0_i32 = arith.constant 0 : i32
    %c0_i32_0 = arith.constant 0 : i32
    %c0_i32_1 = arith.constant 0 : i32
    return %c0_i32, %c0_i32_0 : i32, i32
  }
  func.func @transform_9(%arg0: i32) -> (i32, i32) {
    %c0_i32 = arith.constant 0 : i32
    %c0_i32_0 = arith.constant 0 : i32
    %c0_i32_1 = arith.constant 0 : i32
    return %c0_i32, %c0_i32_0 : i32, i32
  }
  func.func @transform_10(%arg0: i32) -> (i32, i32) {
    %c0_i32 = arith.constant 0 : i32
    %c0_i32_0 = arith.constant 0 : i32
    %c0_i32_1 = arith.constant 0 : i32
    return %c0_i32, %c0_i32_0 : i32, i32
  }
  func.func @transform_11(%arg0: i32) -> (i32, i32) {
    %c0_i32 = arith.constant 0 : i32
    %c0_i32_0 = arith.constant 0 : i32
    %c0_i32_1 = arith.constant 0 : i32
    return %c0_i32, %c0_i32_0 : i32, i32
  }
  func.func @transform_12(%arg0: i32) -> (i32, i32) {
    %c0_i32 = arith.constant 0 : i32
    %c0_i32_0 = arith.constant 0 : i32
    %c0_i32_1 = arith.constant 0 : i32
    return %c0_i32, %c0_i32_0 : i32, i32
  }
  func.func @transform_13(%arg0: i32) -> (i32, i32) {
    %c0_i32 = arith.constant 0 : i32
    %c0_i32_0 = arith.constant 0 : i32
    %c0_i32_1 = arith.constant 0 : i32
    return %c0_i32, %c0_i32_0 : i32, i32
  }
  func.func @transform_14(%arg0: i32) -> (i32, i32) {
    %c0_i32 = arith.constant 0 : i32
    %c0_i32_0 = arith.constant 0 : i32
    %c0_i32_1 = arith.constant 0 : i32
    return %c0_i32, %c0_i32_0 : i32, i32
  }
  func.func @transform_15(%arg0: i32) -> (i32, i32) {
    %c0_i32 = arith.constant 0 : i32
    %c0_i32_0 = arith.constant 0 : i32
    %c0_i32_1 = arith.constant 0 : i32
    return %c0_i32, %c0_i32_0 : i32, i32
  }
  func.func @transform_16(%arg0: i32) -> (i32, i32) {
    %c0_i32 = arith.constant 0 : i32
    %c0_i32_0 = arith.constant 0 : i32
    %c0_i32_1 = arith.constant 0 : i32
    return %c0_i32, %c0_i32_0 : i32, i32
  }
  func.func @transform_17(%arg0: i32) -> (i32, i32) {
    %c0_i32 = arith.constant 0 : i32
    %c0_i32_0 = arith.constant 0 : i32
    %c0_i32_1 = arith.constant 0 : i32
    return %c0_i32, %c0_i32_0 : i32, i32
  }
  func.func @transform_18(%arg0: i32) -> (i32, i32) {
    %c0_i32 = arith.constant 0 : i32
    %c0_i32_0 = arith.constant 0 : i32
    %c0_i32_1 = arith.constant 0 : i32
    return %c0_i32, %c0_i32_0 : i32, i32
  }
  func.func @transform_19(%arg0: i32) -> (i32, i32) {
    %c0_i32 = arith.constant 0 : i32
    %c0_i32_0 = arith.constant 0 : i32
    %c0_i32_1 = arith.constant 0 : i32
    return %c0_i32, %c0_i32_0 : i32, i32
  }
  func.func @transform_20(%arg0: i32) -> (i32, i32) {
    %c0_i32 = arith.constant 0 : i32
    %c0_i32_0 = arith.constant 0 : i32
    %c0_i32_1 = arith.constant 0 : i32
    return %c0_i32, %c0_i32_0 : i32, i32
  }
  func.func @transform_21(%arg0: i32) -> (i32, i32) {
    %c0_i32 = arith.constant 0 : i32
    %c0_i32_0 = arith.constant 0 : i32
    %c0_i32_1 = arith.constant 0 : i32
    return %c0_i32, %c0_i32_0 : i32, i32
  }
  func.func @transform_22(%arg0: i32) -> (i32, i32) {
    %c0_i32 = arith.constant 0 : i32
    %c0_i32_0 = arith.constant 0 : i32
    %c0_i32_1 = arith.constant 0 : i32
    return %c0_i32, %c0_i32_0 : i32, i32
  }
  func.func @transform_23(%arg0: i32) -> (i32, i32) {
    %c0_i32 = arith.constant 0 : i32
    %c0_i32_0 = arith.constant 0 : i32
    %c0_i32_1 = arith.constant 0 : i32
    return %c0_i32, %c0_i32_0 : i32, i32
  }
  func.func @transform_24(%arg0: i32) -> (i32, i32, i32) {
    %c0_i32 = arith.constant 0 : i32
    %c0_i32_0 = arith.constant 0 : i32
    %c0_i32_1 = arith.constant 0 : i32
    %c0_i32_2 = arith.constant 0 : i32
    return %c0_i32, %c0_i32_0, %c0_i32_1 : i32, i32, i32
  }
  func.func @transform_25(%arg0: i32) -> (i32, i32) {
    %c0_i32 = arith.constant 0 : i32
    %c0_i32_0 = arith.constant 0 : i32
    %c0_i32_1 = arith.constant 0 : i32
    return %c0_i32, %c0_i32_0 : i32, i32
  }
  func.func @transform_26(%arg0: i32) -> (i32, i32) {
    %c0_i32 = arith.constant 0 : i32
    %c0_i32_0 = arith.constant 0 : i32
    %c0_i32_1 = arith.constant 0 : i32
    return %c0_i32, %c0_i32_0 : i32, i32
  }
  func.func @transform_27(%arg0: i32) -> (i32, i32) {
    %c0_i32 = arith.constant 0 : i32
    %c0_i32_0 = arith.constant 0 : i32
    %c0_i32_1 = arith.constant 0 : i32
    return %c0_i32, %c0_i32_0 : i32, i32
  }
  func.func @transform_28(%arg0: i32) -> (i32, i32, i32) {
    %c0_i32 = arith.constant 0 : i32
    %c0_i32_0 = arith.constant 0 : i32
    %c0_i32_1 = arith.constant 0 : i32
    %c0_i32_2 = arith.constant 0 : i32
    return %c0_i32, %c0_i32_0, %c0_i32_1 : i32, i32, i32
  }
  func.func @transform_29(%arg0: i32) -> (i32, i32) {
    %c0_i32 = arith.constant 0 : i32
    %c0_i32_0 = arith.constant 0 : i32
    %c0_i32_1 = arith.constant 0 : i32
    return %c0_i32, %c0_i32_0 : i32, i32
  }
  func.func @transform_30(%arg0: i32) -> (i32, i32) {
    %c0_i32 = arith.constant 0 : i32
    %c0_i32_0 = arith.constant 0 : i32
    %c0_i32_1 = arith.constant 0 : i32
    return %c0_i32, %c0_i32_0 : i32, i32
  }
  func.func @transform_31(%arg0: i32) -> (i32, i32) {
    %c0_i32 = arith.constant 0 : i32
    %c0_i32_0 = arith.constant 0 : i32
    %c0_i32_1 = arith.constant 0 : i32
    return %c0_i32, %c0_i32_0 : i32, i32
  }
  func.func @transform_32(%arg0: i32) -> (i32, i32, i32) {
    %c0_i32 = arith.constant 0 : i32
    %c0_i32_0 = arith.constant 0 : i32
    %c0_i32_1 = arith.constant 0 : i32
    %c0_i32_2 = arith.constant 0 : i32
    return %c0_i32, %c0_i32_0, %c0_i32_1 : i32, i32, i32
  }
  func.func @transform_33(%arg0: i32) -> (i32, i32) {
    %c0_i32 = arith.constant 0 : i32
    %c0_i32_0 = arith.constant 0 : i32
    %c0_i32_1 = arith.constant 0 : i32
    return %c0_i32, %c0_i32_0 : i32, i32
  }
  func.func @transform_34(%arg0: i32) -> (i32, i32) {
    %c0_i32 = arith.constant 0 : i32
    %c0_i32_0 = arith.constant 0 : i32
    %c0_i32_1 = arith.constant 0 : i32
    return %c0_i32, %c0_i32_0 : i32, i32
  }
  func.func @transform_35(%arg0: i32) -> (i32, i32) {
    %c0_i32 = arith.constant 0 : i32
    %c0_i32_0 = arith.constant 0 : i32
    %c0_i32_1 = arith.constant 0 : i32
    return %c0_i32, %c0_i32_0 : i32, i32
  }
  func.func @transform_36(%arg0: i32) -> (i32, i32, i32) {
    %c0_i32 = arith.constant 0 : i32
    %c0_i32_0 = arith.constant 0 : i32
    %c0_i32_1 = arith.constant 0 : i32
    %c0_i32_2 = arith.constant 0 : i32
    return %c0_i32, %c0_i32_0, %c0_i32_1 : i32, i32, i32
  }
  func.func @transform_37(%arg0: i32) -> (i32, i32) {
    %c0_i32 = arith.constant 0 : i32
    %c0_i32_0 = arith.constant 0 : i32
    %c0_i32_1 = arith.constant 0 : i32
    return %c0_i32, %c0_i32_0 : i32, i32
  }
  func.func @transform_38(%arg0: i32) -> (i32, i32) {
    %c0_i32 = arith.constant 0 : i32
    %c0_i32_0 = arith.constant 0 : i32
    %c0_i32_1 = arith.constant 0 : i32
    return %c0_i32, %c0_i32_0 : i32, i32
  }
  func.func @transform_39(%arg0: i32) -> (i32, i32) {
    %c0_i32 = arith.constant 0 : i32
    %c0_i32_0 = arith.constant 0 : i32
    %c0_i32_1 = arith.constant 0 : i32
    return %c0_i32, %c0_i32_0 : i32, i32
  }
  func.func @transform_40(%arg0: i32) -> (i32, i32) {
    %c0_i32 = arith.constant 0 : i32
    %c0_i32_0 = arith.constant 0 : i32
    %c0_i32_1 = arith.constant 0 : i32
    return %c0_i32, %c0_i32_0 : i32, i32
  }
  func.func @transform_41(%arg0: i32) -> (i32, i32) {
    %c0_i32 = arith.constant 0 : i32
    %c0_i32_0 = arith.constant 0 : i32
    %c0_i32_1 = arith.constant 0 : i32
    return %c0_i32, %c0_i32_0 : i32, i32
  }
  func.func @transform_42(%arg0: i32) -> (i32, i32, i32) {
    %c0_i32 = arith.constant 0 : i32
    %c0_i32_0 = arith.constant 0 : i32
    %c0_i32_1 = arith.constant 0 : i32
    return %arg0, %c0_i32, %c0_i32_0 : i32, i32, i32
  }
}

</mosaic_0001>

<bundles_post_ra>
// kernel: tile.8
= control target key start
LH: loop header
LB: loop body
LE: loop exit
PB: predicated region body
PF: predicated region fallthrough
CT: control target
= control target key end

     0   :  { %s22_s0 = inlined_call_operand.vmem [shape: f32[56], index: 0, kind: input, shape index: {}]   ;;  %s23_s1 = inlined_call_operand.vmem [shape: f32[2,56], index: 1, kind: output, shape index: {}]  }
   0x1   :  { %v4_v0 = vld [vmem:[%s22_s0] ss:$0 sm:$0xff] }
   0x2   :  { %5 = vst [vmem:[%s23_s1] sm:$0x3] %v4_v0 }

// kernel: tile.0
= control target key start
LH: loop header
LB: loop body
LE: loop exit
PB: predicated region body
PF: predicated region fallthrough
CT: control target
= control target key end

     0   :  { %s530_s8 = smov 125   ;;  %s531_s9 = smov 126   ;;  %vm7_vm0 = vcmask 7168   ;;  %s821_s0 = inlined_call_operand.vmem [shape: f32[2,56], index: 0, kind: input, shape index: {}]   ;;  %s822_s1 = inlined_call_operand.vmem [shape: f32[112,1], index: 1, kind: output, shape index: {}]  }
   0x1   :  { %v4_v0 = vld [vmem:[%s821_s0] sm:$0x3]  ;;  %s529_s0 = smov 127   ;;  %s532_s10 = smov 124  }
   0x2   :  { %5 = vst [vmem:[#allocation0] sm:$0x3] %v4_v0  ;;  %s52_s11 = smov 3  ;;  %s533_s12 = smov 123  }
   0x3   :  { %s534_s13 = smov 122   ;;  %s60_s14 = smov 3 }
   0x4   :  { %s68_s15 = smov 3  ;;  %s535_s16 = smov 121  }
   0x5   :  { %s536_s17 = smov 120   ;;  %s76_s18 = smov 3 }
   0x6   :  { %s84_s19 = smov 3  ;;  %s537_s20 = smov 119  }
   0x7   :  { %s538_s21 = smov 118   ;;  %s92_s22 = smov 3 }
   0x8   :  { %s100_s23 = smov 3  ;;  %s539_s24 = smov 117  }
   0x9   :  { %v9_v1 = vld [vmem:[#allocation0] sm:$0x3]   ;;  %s540_s25 = smov 116   ;;  %s108_s26 = smov 3 }
   0xa   :  { %v21_v2 = vld [vmem:[#allocation0] sm:$0x3]   ;;  %10 = vrot.lane.b32.xlu0 %v9_v1, %s529_s0  ;;  %s116_s27 = smov 3  ;;  %s541_s28 = smov 115  }
   0xb   :  { %22 = vrot.lane.b32.xlu1 %v21_v2, %s530_s8  ;;  %v15_v3 = vld [vmem:[#allocation0] sm:$0x3]   ;;  %s542_s29 = smov 114   ;;  %s124_s30 = smov 3 }
   0xc   :  { %v27_v4 = vld [vmem:[#allocation0] sm:$0x3]   ;;  %s132_s2 = smov 3  ;;  %s543_s3 = smov 113  }
   0xd   :  { %v33_v5 = vld [vmem:[#allocation0] sm:$0x3]   ;;  %s544_s4 = smov 112   ;;  %s140_s5 = smov 3 }
   0xe   :  { %16 = vrot.lane.b32.xlu0 %v15_v3, %s531_s9  ;;  %v39_v6 = vld [vmem:[#allocation0] sm:$0x3]   ;;  %s148_s6 = smov 3  ;;  %s545_s7 = smov 111  }
   0xf   :  { %28 = vrot.lane.b32.xlu1 %v27_v4, %s532_s10  ;;  %v45_v7 = vld [vmem:[#allocation0] sm:$0x3]   ;;  %s546_s0 = smov 110   ;;  %s156_s8 = smov 3 }
  0x10   :  { %v53_v8 = vld [vmem:[#allocation0 + $0x1] ss:$-1 sm:%s52_s11]   ;;  %s164_s9 = smov 3  ;;  %s547_s10 = smov 109  }
  0x11   :  { %v61_v9 = vld [vmem:[#allocation0 + $0x1] ss:$-1 sm:%s60_s14]   ;;  %s548_s11 = smov 108   ;;  %s549_s14 = smov 107  }
  0x12   :  { %34 = vrot.lane.b32.xlu0 %v33_v5, %s533_s12  ;;  %v69_v10 = vld [vmem:[#allocation0 + $0x1] ss:$-1 sm:%s68_s15]   ;;  %s172_s12 = smov 3  ;;  %s550_s15 = smov 106  }
  0x13   :  { %40 = vrot.lane.b32.xlu1 %v39_v6, %s534_s13  ;;  %v77_v11 = vld [vmem:[#allocation0 + $0x1] ss:$-1 sm:%s76_s18]   ;;  %s180_s13 = smov 3  ;;  %s551_s18 = smov 105  }
  0x14   :  { %v85_v12 = vld [vmem:[#allocation0 + $0x1] ss:$-1 sm:%s84_s19]   ;;  %s552_s19 = smov 104  }
  0x15   :  { %v93_v13 = vld [vmem:[#allocation0 + $0x1] ss:$-1 sm:%s92_s22]   ;;  %s553_s22 = smov 103  }
  0x16   :  { %46 = vrot.lane.b32.xlu0 %v45_v7, %s535_s16  ;;  %v101_v14 = vld [vmem:[#allocation0 + $0x1] ss:$-1 sm:%s100_s23]   ;;  %s188_s16 = smov 3  ;;  %s554_s23 = smov 102  }
  0x17   :  { %54 = vrot.lane.b32.xlu1 %v53_v8, %s536_s17  ;;  %v109_v15 = vld [vmem:[#allocation0 + $0x1] ss:$-1 sm:%s108_s26]   ;;  %s196_s17 = smov 3  ;;  %s555_s26 = smov 101  }
  0x18   :  { %v117_v16 = vld [vmem:[#allocation0 + $0x1] ss:$-1 sm:%s116_s27]   ;;  %s556_s27 = smov 100  }
  0x19   :  { %v125_v17 = vld [vmem:[#allocation0 + $0x1] ss:$-1 sm:%s124_s30]   ;;  %s558_s30 = smov 98  }
  0x1a   :  { %62 = vrot.lane.b32.xlu0 %v61_v9, %s537_s20  ;;  %v133_v18 = vld [vmem:[#allocation0 + $0x1] ss:$-1 sm:%s132_s2]   ;;  %s204_s20 = smov 3  ;;  %s559_s2 = smov 97  }
  0x1b   :  { %70 = vrot.lane.b32.xlu1 %v69_v10, %s538_s21  ;;  %v141_v19 = vld [vmem:[#allocation0 + $0x1] ss:$-1 sm:%s140_s5]   ;;  %s212_s21 = smov 3  ;;  %s562_s5 = smov 94  }
  0x1c   :  { %v149_v20 = vld [vmem:[#allocation0 + $0x1] ss:$-1 sm:%s148_s6]   ;;  %s563_s6 = smov 93  }
  0x1d   :  { %v157_v21 = vld [vmem:[#allocation0 + $0x1] ss:$-1 sm:%s156_s8]   ;;  %s565_s8 = smov 91  }
  0x1e   :  { %78 = vrot.lane.b32.xlu0 %v77_v11, %s539_s24  ;;  %v165_v22 = vld [vmem:[#allocation0 + $0x1] ss:$-1 sm:%s164_s9]   ;;  %s220_s24 = smov 3  ;;  %s566_s9 = smov 90  }
  0x1f   :  { %86 = vrot.lane.b32.xlu1 %v85_v12, %s540_s25  ;;  %v173_v23 = vld [vmem:[#allocation0 + $0x1] ss:$-1 sm:%s172_s12]   ;;  %s228_s25 = smov 3  ;;  %s567_s12 = smov 89  }
  0x20   :  { %v181_v24 = vld [vmem:[#allocation0 + $0x1] ss:$-1 sm:%s180_s13]   ;;  %s568_s13 = smov 88  }
  0x21   :  { %v189_v25 = vld [vmem:[#allocation0 + $0x1] ss:$-1 sm:%s188_s16]   ;;  %s569_s16 = smov 87  }
  0x22   :  { %94 = vrot.lane.b32.xlu0 %v93_v13, %s541_s28  ;;  %v197_v26 = vld [vmem:[#allocation0 + $0x1] ss:$-1 sm:%s196_s17]   ;;  %s236_s28 = smov 3  ;;  %s570_s17 = smov 86  }
  0x23   :  { %102 = vrot.lane.b32.xlu1 %v101_v14, %s542_s29  ;;  %v205_v27 = vld [vmem:[#allocation0 + $0x1] ss:$-1 sm:%s204_s20]   ;;  %s557_s29 = smov 99   ;;  %s571_s20 = smov 85  }
  0x24   :  { %v213_v28 = vld [vmem:[#allocation0 + $0x1] ss:$-1 sm:%s212_s21]   ;;  %s572_s21 = smov 84  }
  0x25   :  { %v221_v29 = vld [vmem:[#allocation0 + $0x1] ss:$-1 sm:%s220_s24]   ;;  %s573_s24 = smov 83  }
  0x26   :  { %110 = vrot.lane.b32.xlu0 %v109_v15, %s543_s3  ;;  %v229_v30 = vld [vmem:[#allocation0 + $0x1] ss:$-1 sm:%s228_s25]   ;;  %s560_s3 = smov 96   ;;  %s574_s25 = smov 82  }
  0x27   :  { %118 = vrot.lane.b32.xlu1 %v117_v16, %s544_s4  ;;  %v237_v31 = vld [vmem:[#allocation0 + $0x1] ss:$-1 sm:%s236_s28]   ;;  %s561_s4 = smov 95   ;;  %s575_s28 = smov 81  }
  0x28   :  { %v243_v32 = vld [vmem:[#allocation0] sm:$0x3]  }
  0x29   :  { %v249_v33 = vld [vmem:[#allocation0] sm:$0x3]  }
  0x2a   :  { %126 = vrot.lane.b32.xlu0 %v125_v17, %s545_s7  ;;  %v255_v34 = vld [vmem:[#allocation0] sm:$0x3]   ;;  %s564_s7 = smov 92  }
  0x2b   :  { %134 = vrot.lane.b32.xlu1 %v133_v18, %s546_s0  ;;  %v261_v35 = vld [vmem:[#allocation0] sm:$0x3]   ;;  %s292_s0 = smov 3 }
  0x2c   :  { %v267_v36 = vld [vmem:[#allocation0] sm:$0x3]  }
  0x2d   :  { %v273_v37 = vld [vmem:[#allocation0] sm:$0x3]  }
  0x2e   :  { %142 = vrot.lane.b32.xlu0 %v141_v19, %s547_s10  ;;  %v279_v38 = vld [vmem:[#allocation0] sm:$0x3]   ;;  %s300_s10 = smov 3 }
  0x2f   :  { %150 = vrot.lane.b32.xlu1 %v149_v20, %s548_s11  ;;  %v285_v39 = vld [vmem:[#allocation0] sm:$0x3]   ;;  %s308_s11 = smov 3 }
  0x30   :  { %v293_v40 = vld [vmem:[#allocation0 + $0x1] ss:$-1 sm:%s292_s0]   ;;  %s404_s0 = smov 3 }
  0x31   :  { %v301_v41 = vld [vmem:[#allocation0 + $0x1] ss:$-1 sm:%s300_s10]   ;;  %s412_s10 = smov 3 }
  0x32   :  { %158 = vrot.lane.b32.xlu0 %v157_v21, %s549_s14  ;;  %v309_v42 = vld [vmem:[#allocation0 + $0x1] ss:$-1 sm:%s308_s11]   ;;  %s316_s14 = smov 3  ;;  %s581_s11 = smov 75  }
  0x33   :  { %166 = vrot.lane.b32.xlu1 %v165_v22, %s550_s15  ;;  %s324_s15 = smov 3  ;;  %v317_v43 = vld [vmem:[#allocation0 + $0x1] ss:$-1 sm:%s316_s14]  }
  0x34   :  { %v325_v44 = vld [vmem:[#allocation0 + $0x1] ss:$-1 sm:%s324_s15]  }
  0x35   :  { %v6_v51 = vld [vmem:[#allocation0] sm:$0x3]  }
  0x36   :  { %174 = vrot.lane.b32.xlu0 %v173_v23, %s551_s18  ;;  %s332_s18 = smov 3  ;;  %8 = vst.msk [vmem:[%s822_s1] ss:$56 sm:$0x3] %vm7_vm0, %v6_v51   ;;  %v405_v55 = vld [vmem:[#allocation0 + $0x1] ss:$-1 sm:%s404_s0]  }
  0x37   :  { %182 = vrot.lane.b32.xlu1 %v181_v24, %s552_s19  ;;  %s340_s19 = smov 3  ;;  %v333_v45 = vld [vmem:[#allocation0 + $0x1] ss:$-1 sm:%s332_s18]  }
  0x38   :  { %v341_v46 = vld [vmem:[#allocation0 + $0x1] ss:$-1 sm:%s340_s19]  }
  0x39   :  { %v413_v56 = vld [vmem:[#allocation0 + $0x1] ss:$-1 sm:%s412_s10]  }
  0x3a   :  { %190 = vrot.lane.b32.xlu0 %v189_v25, %s553_s22  ;;  %s348_s22 = smov 3 }
  0x3b   :  { %198 = vrot.lane.b32.xlu1 %v197_v26, %s554_s23  ;;  %s356_s23 = smov 3  ;;  %v349_v47 = vld [vmem:[#allocation0 + $0x1] ss:$-1 sm:%s348_s22]  }
  0x3c   :  { %v357_v48 = vld [vmem:[#allocation0 + $0x1] ss:$-1 sm:%s356_s23]  }
  0x3e   :  { %206 = vrot.lane.b32.xlu0 %v205_v27, %s555_s26  ;;  %s364_s26 = smov 3 }
  0x3f   :  { %214 = vrot.lane.b32.xlu1 %v213_v28, %s556_s27  ;;  %s372_s27 = smov 3  ;;  %v365_v49 = vld [vmem:[#allocation0 + $0x1] ss:$-1 sm:%s364_s26]  }
  0x40   :  { %v373_v50 = vld [vmem:[#allocation0 + $0x1] ss:$-1 sm:%s372_s27]  }
  0x42   :  { %222 = vrot.lane.b32.xlu0 %v221_v29, %s557_s29  ;;  %s576_s29 = smov 80  }
  0x43   :  { %230 = vrot.lane.b32.xlu1 %v229_v30, %s558_s30  ;;  %s380_s30 = smov 3 }
  0x44   :  { %v381_v52 = vld [vmem:[#allocation0 + $0x1] ss:$-1 sm:%s380_s30]  }
  0x46   :  { %238 = vrot.lane.b32.xlu0 %v237_v31, %s559_s2  ;;  %s388_s2 = smov 3 }
  0x47   :  { %244 = vrot.lane.b32.xlu1 %v243_v32, %s560_s3  ;;  %v389_v53 = vld [vmem:[#allocation0 + $0x1] ss:$-1 sm:%s388_s2]  }
  0x4a   :  { %250 = vrot.lane.b32.xlu0 %v249_v33, %s561_s4 }
  0x4b   :  { %256 = vrot.lane.b32.xlu1 %v255_v34, %s562_s5  ;;  %s577_s5 = smov 79  }
  0x4e   :  { %262 = vrot.lane.b32.xlu0 %v261_v35, %s563_s6  ;;  %s578_s6 = smov 78  }
  0x4f   :  { %268 = vrot.lane.b32.xlu1 %v267_v36, %s564_s7  ;;  %s396_s7 = smov 3 }
  0x50   :  { %v397_v54 = vld [vmem:[#allocation0 + $0x1] ss:$-1 sm:%s396_s7]  }
  0x52   :  { %274 = vrot.lane.b32.xlu0 %v273_v37, %s565_s8  ;;  %s579_s8 = smov 77  }
  0x53   :  { %280 = vrot.lane.b32.xlu1 %v279_v38, %s566_s9  ;;  %s580_s9 = smov 76  }
  0x56   :  { %286 = vrot.lane.b32.xlu0 %v285_v39, %s567_s12  ;;  %s582_s12 = smov 74  }
  0x57   :  { %294 = vrot.lane.b32.xlu1 %v293_v40, %s568_s13  ;;  %s583_s13 = smov 73  }
  0x5a   :  { %302 = vrot.lane.b32.xlu0 %v301_v41, %s569_s16 }
  0x5b   :  { %310 = vrot.lane.b32.xlu1 %v309_v42, %s570_s17 }
  0x5e   :  { %318 = vrot.lane.b32.xlu0 %v317_v43, %s571_s20 }
  0x5f   :  { %326 = vrot.lane.b32.xlu1 %v325_v44, %s572_s21 }
  0x62   :  { %334 = vrot.lane.b32.xlu0 %v333_v45, %s573_s24 }
  0x63   :  { %342 = vrot.lane.b32.xlu1 %v341_v46, %s574_s25 }
  0x66   :  { %350 = vrot.lane.b32.xlu0 %v349_v47, %s575_s28 }
  0x67   :  { %358 = vrot.lane.b32.xlu1 %v357_v48, %s576_s29 }
  0x6a   :  { %366 = vrot.lane.b32.xlu0 %v365_v49, %s577_s5 }
  0x6b   :  { %374 = vrot.lane.b32.xlu1 %v373_v50, %s578_s6 }
  0x6e   :  { %382 = vrot.lane.b32.xlu0 %v381_v52, %s579_s8 }
  0x6f   :  { %390 = vrot.lane.b32.xlu1 %v389_v53, %s580_s9 }
  0x72   :  { %398 = vrot.lane.b32.xlu0 %v397_v54, %s581_s11 }
  0x73   :  { %406 = vrot.lane.b32.xlu1 %v405_v55, %s582_s12 }
  0x76   :  { %414 = vrot.lane.b32.xlu0 %v413_v56, %s583_s13 }
  0x7c   :  { %v11_v57 = vpop.permute.xlu0 %10  }
  0x7d   :  { %v23_v58 = vpop.permute.xlu1 %22   ;;  %419 = vst.msk [vmem:[%s822_s1 + $0x1] ss:$56 sm:$0x3] %vm7_vm0, %v11_v57  }
  0x7e   :  { %421 = vst.msk [vmem:[%s822_s1 + $0x3] ss:$56 sm:$0x3] %vm7_vm0, %v23_v58  }
  0x80   :  { %v17_v59 = vpop.permute.xlu0 %16  }
  0x81   :  { %v29_v60 = vpop.permute.xlu1 %28   ;;  %420 = vst.msk [vmem:[%s822_s1 + $0x2] ss:$56 sm:$0x3] %vm7_vm0, %v17_v59  }
  0x82   :  { %422 = vst.msk [vmem:[%s822_s1 + $0x4] ss:$56 sm:$0x3] %vm7_vm0, %v29_v60  }
  0x84   :  { %v35_v61 = vpop.permute.xlu0 %34  }
  0x85   :  { %v41_v62 = vpop.permute.xlu1 %40   ;;  %423 = vst.msk [vmem:[%s822_s1 + $0x5] ss:$56 sm:$0x3] %vm7_vm0, %v35_v61  }
  0x86   :  { %424 = vst.msk [vmem:[%s822_s1 + $0x6] ss:$56 sm:$0x3] %vm7_vm0, %v41_v62  }
  0x88   :  { %v47_v63 = vpop.permute.xlu0 %46  }
  0x89   :  { %v55_v0 = vpop.permute.xlu1 %54   ;;  %425 = vst.msk [vmem:[%s822_s1 + $0x7] ss:$56 sm:$0x3] %vm7_vm0, %v47_v63  }
  0x8a   :  { %426 = vst.msk [vmem:[%s822_s1 + $0x40] ss:$-56 sm:$0x3] %vm7_vm0, %v55_v0  }
  0x8c   :  { %v63_v1 = vpop.permute.xlu0 %62  }
  0x8d   :  { %v71_v2 = vpop.permute.xlu1 %70   ;;  %427 = vst.msk [vmem:[%s822_s1 + $0x41] ss:$-56 sm:$0x3] %vm7_vm0, %v63_v1  }
  0x8e   :  { %428 = vst.msk [vmem:[%s822_s1 + $0x42] ss:$-56 sm:$0x3] %vm7_vm0, %v71_v2  }
  0x90   :  { %v79_v3 = vpop.permute.xlu0 %78  }
  0x91   :  { %v87_v4 = vpop.permute.xlu1 %86   ;;  %429 = vst.msk [vmem:[%s822_s1 + $0x43] ss:$-56 sm:$0x3] %vm7_vm0, %v79_v3  }
  0x92   :  { %430 = vst.msk [vmem:[%s822_s1 + $0x44] ss:$-56 sm:$0x3] %vm7_vm0, %v87_v4  }
  0x94   :  { %v95_v5 = vpop.permute.xlu0 %94  }
  0x95   :  { %v103_v6 = vpop.permute.xlu1 %102   ;;  %431 = vst.msk [vmem:[%s822_s1 + $0x45] ss:$-56 sm:$0x3] %vm7_vm0, %v95_v5  }
  0x96   :  { %432 = vst.msk [vmem:[%s822_s1 + $0x46] ss:$-56 sm:$0x3] %vm7_vm0, %v103_v6  }
  0x98   :  { %v111_v7 = vpop.permute.xlu0 %110  }
  0x99   :  { %v119_v8 = vpop.permute.xlu1 %118   ;;  %433 = vst.msk [vmem:[%s822_s1 + $0x47] ss:$-56 sm:$0x3] %vm7_vm0, %v111_v7  }
  0x9a   :  { %434 = vst.msk [vmem:[%s822_s1 + $0x48] ss:$-56 sm:$0x3] %vm7_vm0, %v119_v8  }
  0x9c   :  { %v127_v9 = vpop.permute.xlu0 %126  }
  0x9d   :  { %v135_v10 = vpop.permute.xlu1 %134   ;;  %435 = vst.msk [vmem:[%s822_s1 + $0x49] ss:$-56 sm:$0x3] %vm7_vm0, %v127_v9  }
  0x9e   :  { %436 = vst.msk [vmem:[%s822_s1 + $0x4a] ss:$-56 sm:$0x3] %vm7_vm0, %v135_v10  }
  0xa0   :  { %v143_v11 = vpop.permute.xlu0 %142  }
  0xa1   :  { %v151_v12 = vpop.permute.xlu1 %150   ;;  %437 = vst.msk [vmem:[%s822_s1 + $0x4b] ss:$-56 sm:$0x3] %vm7_vm0, %v143_v11  }
  0xa2   :  { %438 = vst.msk [vmem:[%s822_s1 + $0x4c] ss:$-56 sm:$0x3] %vm7_vm0, %v151_v12  }
  0xa4   :  { %v159_v13 = vpop.permute.xlu0 %158  }
  0xa5   :  { %v167_v14 = vpop.permute.xlu1 %166   ;;  %439 = vst.msk [vmem:[%s822_s1 + $0x4d] ss:$-56 sm:$0x3] %vm7_vm0, %v159_v13  }
  0xa6   :  { %440 = vst.msk [vmem:[%s822_s1 + $0x4e] ss:$-56 sm:$0x3] %vm7_vm0, %v167_v14  }
  0xa8   :  { %v175_v15 = vpop.permute.xlu0 %174  }
  0xa9   :  { %v183_v16 = vpop.permute.xlu1 %182   ;;  %441 = vst.msk [vmem:[%s822_s1 + $0x4f] ss:$-56 sm:$0x3] %vm7_vm0, %v175_v15  }
  0xaa   :  { %442 = vst.msk [vmem:[%s822_s1 + $0x50] ss:$-56 sm:$0x3] %vm7_vm0, %v183_v16  }
  0xac   :  { %v191_v17 = vpop.permute.xlu0 %190  }
  0xad   :  { %v199_v18 = vpop.permute.xlu1 %198   ;;  %443 = vst.msk [vmem:[%s822_s1 + $0x51] ss:$-56 sm:$0x3] %vm7_vm0, %v191_v17  }
  0xae   :  { %444 = vst.msk [vmem:[%s822_s1 + $0x52] ss:$-56 sm:$0x3] %vm7_vm0, %v199_v18  }
  0xb0   :  { %v207_v19 = vpop.permute.xlu0 %206  }
  0xb1   :  { %v215_v20 = vpop.permute.xlu1 %214   ;;  %445 = vst.msk [vmem:[%s822_s1 + $0x53] ss:$-56 sm:$0x3] %vm7_vm0, %v207_v19  }
  0xb2   :  { %446 = vst.msk [vmem:[%s822_s1 + $0x54] ss:$-56 sm:$0x3] %vm7_vm0, %v215_v20  }
  0xb4   :  { %v223_v21 = vpop.permute.xlu0 %222  }
  0xb5   :  { %v231_v22 = vpop.permute.xlu1 %230   ;;  %447 = vst.msk [vmem:[%s822_s1 + $0x55] ss:$-56 sm:$0x3] %vm7_vm0, %v223_v21  }
  0xb6   :  { %448 = vst.msk [vmem:[%s822_s1 + $0x56] ss:$-56 sm:$0x3] %vm7_vm0, %v231_v22  }
  0xb8   :  { %v239_v23 = vpop.permute.xlu0 %238  }
  0xb9   :  { %v245_v24 = vpop.permute.xlu1 %244   ;;  %449 = vst.msk [vmem:[%s822_s1 + $0x57] ss:$-56 sm:$0x3] %vm7_vm0, %v239_v23  }
  0xba   :  { %450 = vst.msk [vmem:[%s822_s1 + $0x20] ss:$56 sm:$0x3] %vm7_vm0, %v245_v24  }
  0xbc   :  { %v251_v25 = vpop.permute.xlu0 %250  }
  0xbd   :  { %v257_v26 = vpop.permute.xlu1 %256   ;;  %451 = vst.msk [vmem:[%s822_s1 + $0x21] ss:$56 sm:$0x3] %vm7_vm0, %v251_v25  }
  0xbe   :  { %452 = vst.msk [vmem:[%s822_s1 + $0x22] ss:$56 sm:$0x3] %vm7_vm0, %v257_v26  }
  0xc0   :  { %v263_v27 = vpop.permute.xlu0 %262  }
  0xc1   :  { %v269_v28 = vpop.permute.xlu1 %268   ;;  %453 = vst.msk [vmem:[%s822_s1 + $0x23] ss:$56 sm:$0x3] %vm7_vm0, %v263_v27  }
  0xc2   :  { %454 = vst.msk [vmem:[%s822_s1 + $0x24] ss:$56 sm:$0x3] %vm7_vm0, %v269_v28  }
  0xc4   :  { %v275_v29 = vpop.permute.xlu0 %274  }
  0xc5   :  { %v281_v30 = vpop.permute.xlu1 %280   ;;  %455 = vst.msk [vmem:[%s822_s1 + $0x25] ss:$56 sm:$0x3] %vm7_vm0, %v275_v29  }
  0xc6   :  { %456 = vst.msk [vmem:[%s822_s1 + $0x26] ss:$56 sm:$0x3] %vm7_vm0, %v281_v30  }
  0xc8   :  { %v287_v31 = vpop.permute.xlu0 %286  }
  0xc9   :  { %v295_v32 = vpop.permute.xlu1 %294   ;;  %457 = vst.msk [vmem:[%s822_s1 + $0x27] ss:$56 sm:$0x3] %vm7_vm0, %v287_v31  }
  0xca   :  { %458 = vst.msk [vmem:[%s822_s1 + $0x60] ss:$-56 sm:$0x3] %vm7_vm0, %v295_v32  }
  0xcc   :  { %v303_v33 = vpop.permute.xlu0 %302  }
  0xcd   :  { %v311_v34 = vpop.permute.xlu1 %310   ;;  %459 = vst.msk [vmem:[%s822_s1 + $0x61] ss:$-56 sm:$0x3] %vm7_vm0, %v303_v33  }
  0xce   :  { %460 = vst.msk [vmem:[%s822_s1 + $0x62] ss:$-56 sm:$0x3] %vm7_vm0, %v311_v34  }
  0xd0   :  { %v319_v35 = vpop.permute.xlu0 %318  }
  0xd1   :  { %v327_v36 = vpop.permute.xlu1 %326   ;;  %461 = vst.msk [vmem:[%s822_s1 + $0x63] ss:$-56 sm:$0x3] %vm7_vm0, %v319_v35  }
  0xd2   :  { %462 = vst.msk [vmem:[%s822_s1 + $0x64] ss:$-56 sm:$0x3] %vm7_vm0, %v327_v36  }
  0xd4   :  { %v335_v37 = vpop.permute.xlu0 %334  }
  0xd5   :  { %v343_v38 = vpop.permute.xlu1 %342   ;;  %463 = vst.msk [vmem:[%s822_s1 + $0x65] ss:$-56 sm:$0x3] %vm7_vm0, %v335_v37  }
  0xd6   :  { %464 = vst.msk [vmem:[%s822_s1 + $0x66] ss:$-56 sm:$0x3] %vm7_vm0, %v343_v38  }
  0xd8   :  { %v351_v39 = vpop.permute.xlu0 %350  }
  0xd9   :  { %v359_v40 = vpop.permute.xlu1 %358   ;;  %465 = vst.msk [vmem:[%s822_s1 + $0x67] ss:$-56 sm:$0x3] %vm7_vm0, %v351_v39  }
  0xda   :  { %466 = vst.msk [vmem:[%s822_s1 + $0x68] ss:$-56 sm:$0x3] %vm7_vm0, %v359_v40  }
  0xdc   :  { %v367_v41 = vpop.permute.xlu0 %366  }
  0xdd   :  { %v375_v42 = vpop.permute.xlu1 %374   ;;  %467 = vst.msk [vmem:[%s822_s1 + $0x69] ss:$-56 sm:$0x3] %vm7_vm0, %v367_v41  }
  0xde   :  { %468 = vst.msk [vmem:[%s822_s1 + $0x6a] ss:$-56 sm:$0x3] %vm7_vm0, %v375_v42  }
  0xe0   :  { %v383_v43 = vpop.permute.xlu0 %382  }
  0xe1   :  { %v391_v44 = vpop.permute.xlu1 %390   ;;  %469 = vst.msk [vmem:[%s822_s1 + $0x6b] ss:$-56 sm:$0x3] %vm7_vm0, %v383_v43  }
  0xe2   :  { %470 = vst.msk [vmem:[%s822_s1 + $0x6c] ss:$-56 sm:$0x3] %vm7_vm0, %v391_v44  }
  0xe4   :  { %v399_v45 = vpop.permute.xlu0 %398  }
  0xe5   :  { %v407_v46 = vpop.permute.xlu1 %406   ;;  %471 = vst.msk [vmem:[%s822_s1 + $0x6d] ss:$-56 sm:$0x3] %vm7_vm0, %v399_v45  }
  0xe6   :  { %472 = vst.msk [vmem:[%s822_s1 + $0x6e] ss:$-56 sm:$0x3] %vm7_vm0, %v407_v46  }
  0xe8   :  { %v415_v47 = vpop.permute.xlu0 %414  }
  0xe9   :  { %473 = vst.msk [vmem:[%s822_s1 + $0x6f] ss:$-56 sm:$0x3] %vm7_vm0, %v415_v47  }

// kernel: fdssc_forward.1
= control target key start
LH: loop header
LB: loop body
LE: loop exit
PB: predicated region body
PF: predicated region fallthrough
CT: control target
= control target key end

     0   :  { %s17801_s6 = smov 1   ;;  %s17802_s10 = smov 2   ;;  %s22737_s0 = inlined_call_operand.smem [shape: u32[43], index: -1, kind: input, shape index: {}] }
   0x1   :  { %s17864_s5 = sld [smem:[%s22737_s0]]   ;;  %s17803_s14 = smov 3  }
   0x2   :  { %s17869_s9 = sld [smem:[%s22737_s0 + %s17801_s6]]   ;;  %s17804_s18 = smov 4  }
   0x3   :  { %s17874_s13 = sld [smem:[%s22737_s0 + %s17802_s10]]   ;;  %s17805_s22 = smov 5  }
   0x4   :  { %s17879_s17 = sld [smem:[%s22737_s0 + %s17803_s14]]   ;;  %s17806_s26 = smov 6  }
   0x5   :  { %s17884_s21 = sld [smem:[%s22737_s0 + %s17804_s18]]   ;;  %s17807_s30 = smov 7  }
   0x6   :  { %s17889_s25 = sld [smem:[%s22737_s0 + %s17805_s22]]   ;;  %s17808_s4 = smov 8  }
   0x7   :  { %22773 = sst [smem:[#allocation11_spill]] %s17864_s5  ;;  %s17809_s10 = smov 9  }
   0x8   :  { %22774 = sst [smem:[#allocation12_spill]] %s17869_s9  ;;  %s17810_s15 = smov 10  }
   0x9   :  { %22775 = sst [smem:[#allocation13_spill]] %s17874_s13  ;;  %s17811_s20 = smov 11  }
   0xa   :  { %s17894_s29 = sld [smem:[%s22737_s0 + %s17806_s26]]   ;;  %s17812_s26 = smov 12  }
   0xb   :  { %s17899_s3 = sld [smem:[%s22737_s0 + %s17807_s30]]   ;;  %s17813_s1 = smov 13  }
   0xc   :  { %s17904_s8 = sld [smem:[%s22737_s0 + %s17808_s4]]   ;;  %s17814_s7 = smov 14  }
   0xd   :  { %s17909_s14 = sld [smem:[%s22737_s0 + %s17809_s10]]   ;;  %s17816_s22 = smov 16  }
   0xe   :  { %s17914_s19 = sld [smem:[%s22737_s0 + %s17810_s15]]   ;;  %s17815_s15 = smov 15  }
   0xf   :  { %s17919_s24 = sld [smem:[%s22737_s0 + %s17811_s20]]   ;;  %s17817_s28 = smov 17  }
  0x10   :  { %s17924_s30 = sld [smem:[%s22737_s0 + %s17812_s26]]  }
  0x11   :  { %22776 = sst [smem:[#allocation14_spill]] %s17899_s3 }
  0x12   :  { %22777 = sst [smem:[#allocation15_spill]] %s17904_s8 }
  0x13   :  { %s17929_s6 = sld [smem:[%s22737_s0 + %s17813_s1]]  }
  0x14   :  { %s17934_s12 = sld [smem:[%s22737_s0 + %s17814_s7]]   ;;  %s17818_s7 = smov 18  }
  0x15   :  { %s17939_s20 = sld [smem:[%s22737_s0 + %s17815_s15]]   ;;  %s17819_s15 = smov 19  }
  0x16   :  { %s17944_s27 = sld [smem:[%s22737_s0 + %s17816_s22]]   ;;  %s17820_s22 = smov 20  }
  0x17   :  { %s17949_s4 = sld [smem:[%s22737_s0 + %s17817_s28]]   ;;  %s17821_s28 = smov 21  }
  0x18   :  { %s17954_s13 = sld [smem:[%s22737_s0 + %s17818_s7]]   ;;  %s17822_s7 = smov 22  }
  0x19   :  { %22778 = sst [smem:[#allocation16_spill]] %s17929_s6 }
  0x1a   :  { %22779 = sst [smem:[#allocation17_spill]] %s17934_s12 }
  0x1b   :  { %s17959_s9 = sld [smem:[%s22737_s0 + %s17819_s15]]   ;;  %s17823_s15 = smov 23  }
  0x1c   :  { %22780 = sst [smem:[#allocation18_spill]] %s17944_s27 }
  0x1d   :  { %22781 = sst [smem:[#allocation19_spill]] %s17949_s4 }
  0x1e   :  { %22782 = sst [smem:[#allocation20_spill]] %s17954_s13 }
  0x1f   :  { %s17964_s6 = sld [smem:[%s22737_s0 + %s17820_s22]]   ;;  %s17824_s22 = smov 24  }
  0x20   :  { %s17969_s4 = sld [smem:[%s22737_s0 + %s17821_s28]]   ;;  %s17825_s28 = smov 25  }
  0x21   :  { %22783 = sst [smem:[#allocation21_spill]] %s17959_s9 }
  0x22   :  { %s17974_s27 = sld [smem:[%s22737_s0 + %s17822_s7]]   ;;  %s17826_s7 = smov 26  }
  0x23   :  { %s17979_s9 = sld [smem:[%s22737_s0 + %s17823_s15]]   ;;  %s17827_s15 = smov 27  }
  0x24   :  { %s17984_s13 = sld [smem:[%s22737_s0 + %s17824_s22]]   ;;  %s17828_s22 = smov 28  }
  0x25   :  { %22784 = sst [smem:[#allocation22_spill]] %s17964_s6 }
  0x26   :  { %22785 = sst [smem:[#allocation23_spill]] %s17969_s4 }
  0x27   :  { %s17989_s4 = sld [smem:[%s22737_s0 + %s17825_s28]]   ;;  %s17829_s28 = smov 29  }
  0x28   :  { %22786 = sst [smem:[#allocation24_spill]] %s17974_s27 }
  0x29   :  { %22787 = sst [smem:[#allocation25_spill]] %s17979_s9 }
  0x2a   :  { %22788 = sst [smem:[#allocation26_spill]] %s17984_s13 }
  0x2b   :  { %s17994_s27 = sld [smem:[%s22737_s0 + %s17826_s7]]   ;;  %s17830_s7 = smov 30  }
  0x2c   :  { %s17999_s9 = sld [smem:[%s22737_s0 + %s17827_s15]]   ;;  %s17831_s15 = smov 31  }
  0x2d   :  { %22789 = sst [smem:[#allocation27_spill]] %s17989_s4 }
  0x2e   :  { %s18004_s13 = sld [smem:[%s22737_s0 + %s17828_s22]]   ;;  %s17832_s22 = smov 32  }
  0x2f   :  { %s18009_s4 = sld [smem:[%s22737_s0 + %s17829_s28]]   ;;  %s17833_s28 = smov 33  }
  0x31   :  { %22790 = sst [smem:[#allocation28_spill]] %s17994_s27 }
  0x32   :  { %22791 = sst [smem:[#allocation29_spill]] %s17999_s9 }
  0x33   :  { %s18014_s27 = sld [smem:[%s22737_s0 + %s17830_s7]]   ;;  %s17834_s7 = smov 34  }
  0x34   :  { %22792 = sst [smem:[#allocation30_spill]] %s18004_s13 }
  0x35   :  { %22793 = sst [smem:[#allocation31_spill]] %s18009_s4 }
  0x36   :  { %s18019_s9 = sld [smem:[%s22737_s0 + %s17831_s15]]   ;;  %s17835_s15 = smov 35  }
  0x37   :  { %s18024_s13 = sld [smem:[%s22737_s0 + %s17832_s22]]   ;;  %s17836_s22 = smov 36  }
  0x38   :  { %s18029_s4 = sld [smem:[%s22737_s0 + %s17833_s28]]   ;;  %s17837_s28 = smov 37  }
  0x39   :  { %22794 = sst [smem:[#allocation32_spill]] %s18014_s27 }
  0x3a   :  { %s18034_s27 = sld [smem:[%s22737_s0 + %s17834_s7]]   ;;  %s17838_s7 = smov 38  }
  0x3c   :  { %22795 = sst [smem:[#allocation33_spill]] %s18019_s9 }
  0x3d   :  { %22796 = sst [smem:[#allocation34_spill]] %s18024_s13 }
  0x3e   :  { %22797 = sst [smem:[#allocation35_spill]] %s18029_s4 }
  0x3f   :  { %s18039_s9 = sld [smem:[%s22737_s0 + %s17835_s15]]   ;;  %s17839_s15 = smov 39  }
  0x40   :  { %22798 = sst [smem:[#allocation36_spill]] %s18034_s27 }
  0x41   :  { %s18044_s13 = sld [smem:[%s22737_s0 + %s17836_s22]]   ;;  %s17840_s22 = smov 40  }
  0x42   :  { %s18049_s4 = sld [smem:[%s22737_s0 + %s17837_s28]]   ;;  %s17841_s28 = smov 41  }
  0x43   :  { %s18054_s27 = sld [smem:[%s22737_s0 + %s17838_s7]]   ;;  %s17842_s7 = smov 42  }
  0x45   :  { %22799 = sst [smem:[#allocation37_spill]] %s18039_s9 }
  0x46   :  { %s18059_s9 = sld [smem:[%s22737_s0 + %s17839_s15]]  }
  0x47   :  { %22800 = sst [smem:[#allocation38_spill]] %s18044_s13 }
  0x48   :  { %22801 = sst [smem:[#allocation39_spill]] %s18049_s4 }
  0x49   :  { %22802 = sst [smem:[#allocation40_spill]] %s18054_s27 }
  0x4a   :  { %s18064_s13 = sld [smem:[%s22737_s0 + %s17840_s22]]  }
  0x4b   :  { %s18069_s4 = sld [smem:[%s22737_s0 + %s17841_s28]]  }
  0x4c   :  { %22803 = sst [smem:[#allocation41_spill]] %s18059_s9 }
  0x4d   :  { %s18074_s27 = sld [smem:[%s22737_s0 + %s17842_s7]]  }
  0x51   :  { %22804 = sst [smem:[#allocation42_spill]] %s18069_s4 }
  0x52   :  { %90 = vsyncpa [#allocation7], 0 }
  0x53   :  { %91 = vsyncpa [#allocation6], 0 }
  0x54   :  { %93 = vsyncpa [#allocation6 + $0x1], 0  ;;  %s18076_s15 = smov 0   ;;  %s18078_s16 = smov 0  }
  0x55   :  { %s18080_s18 = smov 0   ;;  %s18082_s22 = smov 0  }
  0x56 LB: > { %s22805_s12 = sld [smem:[#allocation17_spill]]  ;;  %s22806_s8 = sld [smem:[#allocation15_spill]]  ;;  %s17795_s18 = sphi %s18080_s18, %s22885_s18   ;;  %s17791_s16 = sphi %s18078_s16, %s22884_s16   ;;  %s17787_s15 = sphi %s18076_s15, %s22883_s15   ;;  %s17799_s22 = sphi %s18082_s22, %s22886_s22  }
  0x57   : > { %s22807_s6 = sld [smem:[#allocation22_spill]]  ;;  %s18097_s0 = sadd.s32 4294967295, %s17799_s22  }
  0x58   : > { %s13796_s23 = sadd.s32 4294967294, %s17799_s22   ;;  %s18101_s26 = sadd.s32 1, %s17799_s22  }
  0x59   : > { %s993_s28 = sadd.s32 1, %s17795_s18  ;;  %s990_s1 = ssub.s32 %s17799_s22, %s18101_s26 }
  0x5a   : > { %p1003_p0 = scmp.ne.s32.totalorder %s17795_s18, %s17791_s16  ;;  %p991_p1 = scmp.eq.s32.totalorder %s990_s1, 0 }
  0x5b   : > { %p1004_p2 = scmp.eq.s32.totalorder %s18097_s0, 1  ;;  %p1009_p3 = scmp.ne.s32.totalorder %s17791_s16, %s17787_s15 }
  0x5c   : > { %p1010_p4 = scmp.eq.s32.totalorder %s13796_s23, 1  ;;  %p13797_p7 = scmp.ge.s32.totalorder %s17799_s22, 1 }
  0x5d   : > { %s18112_s2 = scalar_select %p991_p1, %s17795_s18, %s993_s28  }
  0x5e   : > { %p18114_p5 = por %p1004_p2, %p1003_p0  ;;  %p18118_p6 = por %p1010_p4, %p1009_p3 }
  0x5f   : > { %p1017_p8 = scmp.lt.s32.totalorder %s17799_s22, 3  ;;  %p17227_p9 = scmp.eq.s32.totalorder %s18097_s0, 0 }
  0x60   : > { %s22808_s7 = scalar_select %p18114_p5, 1, 0 }
  0x61   : > { %s22809_s10 = scalar_select %p18118_p6, 1, 0 }
  0x62   : > { %p18125_p10 = pnand %p13797_p7, %p1017_p8  ;;  %s1036_s1 = sshll.u32 %s17879_s17, 4  ;;  %s1037_s1 = int_to_ptr.vmem [resolvable:$true] %s1036_s1 }
  0x63   : > { %s17718_s23 = scalar_lea.vmem %s1037_s1, 16  ;;  %p17726_p3 = scmp.lt.s32.totalorder %s1037_s1, %s1037_s1 }
  0x64   : > { %p17219_p11 = pneg %p18125_p10  ;;  %p17719_p13 = scmp.ne.s32.totalorder %s1037_s1, %s17718_s23 }
  0x65   : > { %p17727_p4 = scmp.lt.s32.totalorder %s17718_s23, %s17718_s23 }
  0x66   : > { %p17220_p12 = pnand %p17227_p9, %p17219_p11 }
  0x67   : > { %p17728_p6 = por %p17727_p4, %p17726_p3 }
  0x68   : > { %p17720_p0 = pneg %p17220_p12 }
  0x6a   : > { %p17721_p1 = pnand %p17720_p0, %p17719_p13 }
  0x6c   : > { %p17722_p2 = pneg %p17721_p1 }
  0x6e   : > { %p17729_p5 = pnand %p17728_p6, %p17722_p2 }
  0x70   : > { %17732 = shalt.err (!%p17729_p5)
}
  0x71   : > { %s17843_s28 = smov [#allocation5]   ;;  %1172 = sbr.rel (%p18125_p10) target bundleno = 5373 (0x14fd), region = 188 }
  0x72   : > { %17222 = dma.vmem_to_smem (!%p17220_p12), %s1037_s1, 16, %s17843_s28, [#allocation7]  }
  0x78   : > { %17778 = dma.done.wait (%p17227_p9), [#allocation7], 16  }
  0x79   : > { %17780 = vsyncadd (%p17227_p9), [#allocation7], 4294967280 }
  0x7a   : > { %1178 = sfence }
  0x7b   : > { %v17318_v0 = vld [vmem:[%s17884_s21 + $0x4] ss:$8 sps:$4 sm:$0xff]   ;;  %s1275_s23 = smul.u32 14, %s18097_s0  ;;  %v17320_v1 = vld [vmem:[%s17884_s21] ss:$8 sps:$4 sm:$0xff]   ;;  %v22747_v2 = vmov 0   ;;  %v1306_v25 = vlaneseq }
  0x7c   : > { %s22811_s5 = sld [smem:[#allocation11_spill]]  ;;  %1415 = vmatprep.mubr.bf16.mxu0 %v22747_v2  ;;  %1282 = vst [vmem:[#allocation4] sm:$0xf] %v22747_v2  ;;  %1285 = vst [vmem:[#allocation4 + $0x70] sm:$0xf0] %v22747_v2  ;;  %1871 = vmatprep.subr.bf16.mxu1 %v22747_v2  ;;  %v17328_v3 = vld [vmem:[%s22806_s8] sm:$0xff]  }
  0x7d   : > { %1383 = vmatprep.subr.bf16.mxu0 %v17318_v0  ;;  %p1276_p5 = scmp.lt.s32.totalorder %s1275_s23, 27  ;;  %v17329_v4 = vld [vmem:[%s22806_s8 + $0x8] sm:$0xff]   ;;  %17317 = vset.pattern.permute.xlu1 %v22747_v2  ;;  %vm1361_vm0 = vcmask 130048   ;;  %v17330_v5 = vld [vmem:[%s22806_s8 + $0x10] sm:$0xff]   ;;  %v17331_v7 = vld [vmem:[%s22806_s8 + $0x18] sm:$0xff]   ;;  %s22812_s3 = sld [smem:[#allocation14_spill]] }
  0x7e   : > { %1384 = vmatpush1.bf16.msra.mxu0 %v17320_v1  ;;  %1872 = vmatpush1.bf16.msra.mxu1 %v17328_v3  ;;  %v17332_v9 = vld [vmem:[%s22806_s8 + $0x20] sm:$0xff]   ;;  %v17333_v10 = vld [vmem:[%s22806_s8 + $0x28] sm:$0xff]   ;;  %v17334_v12 = vld [vmem:[%s22806_s8 + $0x30] sm:$0xff]   ;;  %v18201_v26 = vshrl.u32 %v1306_v25, 7  ;;  %s1515_s28 = sld [smem:[#allocation5]]  ;;  %vm1487_vm1 = vcmask 916480  }
  0x7f   : > { %s22888_s23 = smov (!%p1276_p5, %s1275_s23), 27  ;;  %1873 = vmatprep.subr.bf16.mxu1 %v22747_v2  ;;  %17316 = vset.pattern.permute.xlu0 %v22747_v2  ;;  %v17335_v13 = vld [vmem:[%s22806_s8 + $0x38] sm:$0xff]   ;;  %v17336_v15 = vld [vmem:[%s22806_s8 + $0x40] sm:$0xff]   ;;  %v17337_v19 = vld [vmem:[%s22806_s8 + $0x48] sm:$0xff]   ;;  %s22878_s9 = sld [smem:[#allocation41_spill]] }
  0x80   : > { %s13803_s11 = sshll.u32 %s22888_s23, 2  ;;  %v17338_v20 = vld [vmem:[%s22806_s8 + $0x50] sm:$0xff]   ;;  %v17339_v21 = vld [vmem:[%s22806_s8 + $0x58] sm:$0xff]   ;;  %v17340_v22 = vld [vmem:[%s22806_s8 + $0x60] sm:$0xff]   ;;  %v18204_v27 = vsub.s32 0, %v18201_v26  ;;  %v18208_v29 = vsub.s32 1, %v18201_v26 }
  0x81   : > { %v17341_v23 = vld [vmem:[%s22806_s8 + $0x68] sm:$0xff]   ;;  %v17342_v24 = vld [vmem:[%s22806_s8 + $0x70] sm:$0xff]   ;;  %v1304_v28 = vld [vmem:[%s17889_s25] sm:$0x3]  ;;  %s13875_s23 = sld [smem:[#allocation5 + $0x2]]  ;;  %s22880_s4 = sld [smem:[#allocation42_spill]] }
  0x82   : > { %s18153_s1 = scalar_lea.vmem %s22811_s5, %s13803_s11  ;;  %1874 = vmatpush1.bf16.msra.mxu1 %v17329_v4  ;;  %22813 = vst [vmem:[#allocation43_spill] sm:$0xff] %v18204_v27  ;;  %v1544_v30 = vld [vmem:[%s17894_s29] sm:$0x3]  ;;  %v18212_v31 = vrot.slane %v1304_v28, %v18204_v27  ;;  %v18215_v32 = vrot.slane %v1304_v28, %v18208_v29  ;;  %s17845_s11 = smov 112  }
  0x83   : > { %v17321_v6 = vld [vmem:[%s18153_s1] sm:$0xff]   ;;  %1875 = vmatprep.subr.bf16.mxu1 %v22747_v2  ;;  %v17322_v8 = vld [vmem:[%s18153_s1 + $0x8] sm:$0xff]   ;;  %v17323_v11 = vld [vmem:[%s18153_s1 + $0x10] sm:$0xff]   ;;  %v18219_v34 = vrot.slane %v1544_v30, %v18204_v27  ;;  %v18238_v51 = vrot.slane %v1544_v30, %v18208_v29  ;;  %s22859_s5 = sld [smem:[#allocation25_spill]]  ;;  %p22881_p7 = scmp.ne.s32.totalorder %s22808_s7, 0 }
  0x84   : > { %13813 = vmatmul.mubr.msk.bf16.vlgmr.msra.gmra.mrb[0].mxu0 %vm1361_vm0, %v17321_v6  ;;  %v17324_v14 = vld [vmem:[%s18153_s1 + $0x18] sm:$0xff]   ;;  %v17325_v16 = vld [vmem:[%s18153_s1 + $0x20] sm:$0xff]   ;;  %v17326_v17 = vld [vmem:[%s18153_s1 + $0x28] sm:$0xff]   ;;  %v18230_v45 = vstv %s1515_s28  ;;  %s22824_s28 = sld [smem:[#allocation21_spill]] }
  0x85   : > { %1425 = vmatprep.mubr.bf16.mxu0 %v22747_v2  ;;  %v17327_v18 = vld [vmem:[%s18153_s1 + $0x30] sm:$0xff]   ;;  %v1584_v33 = vld [vmem:[%s22812_s3] sm:$0x3]  ;;  %s22823_s1 = sld [smem:[#allocation20_spill]]  ;;  %s22851_s3 = sld [smem:[#allocation26_spill]] }
  0x86   : > { %1876 = vmatpush1.bf16.msra.mxu1 %v17330_v5  ;;  %v18223_v38 = vrot.slane %v1584_v33, %v18204_v27  ;;  %v18244_v57 = vrot.slane %v1584_v33, %v18208_v29 }
  0x87   : > { %1877 = vmatprep.subr.bf16.mxu1 %v22747_v2 }
  0x8a   : > { %1878 = vmatpush1.bf16.msra.mxu1 %v17331_v7 }
  0x8b   : > { %1879 = vmatprep.subr.bf16.mxu1 %v22747_v2 }
  0x8c   : > { %13814 = vmatmul.mubr.msk.bf16.gmra.mrb[4].mxu0 %vm1361_vm0, %v17322_v8 }
  0x8d   : > { %1435 = vmatprep.mubr.bf16.mxu0 %v22747_v2 }
  0x8e   : > { %1880 = vmatpush1.bf16.msra.mxu1 %v17332_v9 }
  0x8f   : > { %1881 = vmatprep.subr.bf16.mxu1 %v22747_v2 }
  0x92   : > { %1882 = vmatpush1.bf16.msra.mxu1 %v17333_v10 }
  0x93   : > { %1883 = vmatprep.subr.bf16.mxu1 %v22747_v2 }
  0x94   : > { %13815 = vmatmul.mubr.msk.bf16.gmra.mrb[8].mxu0 %vm1361_vm0, %v17323_v11 }
  0x95   : > { %1445 = vmatprep.mubr.bf16.mxu0 %v22747_v2 }
  0x96   : > { %1884 = vmatpush1.bf16.msra.mxu1 %v17334_v12 }
  0x97   : > { %1885 = vmatprep.subr.bf16.mxu1 %v22747_v2 }
  0x9a   : > { %1886 = vmatpush1.bf16.msra.mxu1 %v17335_v13 }
  0x9b   : > { %1887 = vmatprep.subr.bf16.mxu1 %v22747_v2 }
  0x9c   : > { %13816 = vmatmul.mubr.msk.bf16.gmra.mrb[12].mxu0 %vm1361_vm0, %v17324_v14 }
  0x9d   : > { %1455 = vmatprep.mubr.bf16.mxu0 %v22747_v2 }
  0x9e   : > { %1888 = vmatpush1.bf16.msra.mxu1 %v17336_v15 }
  0x9f   : > { %1889 = vmatprep.subr.bf16.mxu1 %v22747_v2 }
  0xa2   : > { %1890 = vmatpush1.bf16.msra.mxu1 %v17337_v19 }
  0xa3   : > { %1891 = vmatprep.subr.bf16.mxu1 %v22747_v2 }
  0xa4   : > { %13817 = vmatmul.mubr.msk.bf16.gmra.mrb[16].mxu0 %vm1361_vm0, %v17325_v16 }
  0xa5   : > { %1465 = vmatprep.mubr.bf16.mxu0 %v22747_v2 }
  0xa6   : > { %1892 = vmatpush1.bf16.msra.mxu1 %v17338_v20 }
  0xa7   : > { %1893 = vmatprep.subr.bf16.mxu1 %v22747_v2 }
  0xaa   : > { %1894 = vmatpush1.bf16.msra.mxu1 %v17339_v21 }
  0xab   : > { %1895 = vmatprep.subr.bf16.mxu1 %v22747_v2 }
  0xac   : > { %13818 = vmatmul.mubr.msk.bf16.gmra.mrb[20].mxu0 %vm1361_vm0, %v17326_v17 }
  0xad   : > { %1475 = vmatprep.mubr.bf16.mxu0 %v22747_v2 }
  0xae   : > { %1896 = vmatpush1.bf16.msra.mxu1 %v17340_v22 }
  0xaf   : > { %1897 = vmatprep.subr.bf16.mxu1 %v22747_v2 }
  0xb2   : > { %1898 = vmatpush1.bf16.msra.mxu1 %v17341_v23 }
  0xb3   : > { %1899 = vmatprep.subr.bf16.mxu1 %v22747_v2 }
  0xb4   : > { %13819 = vmatmul.mubr.msk.bf16.gmra.mrb[24].mxu0 %vm1361_vm0, %v17327_v18 }
  0xb6   : > { %1900 = vmatpush1.bf16.msra.mxu1 %v17342_v24 }
 0x157   : > { %v1417_v35 = vpop.f32.mrb[0].mxu0 }
 0x158   : > { %v1418_v36 = vadd.f32 %v1417_v35, %v18212_v31  ;;  %v1419_v37 = vpop.f32.mrb[1].mxu0 }
 0x159   : > { %v1420_v39 = vadd.f32 %v1419_v37, %v18215_v32  ;;  %v1421_v40 = vpop.f32.mrb[2].mxu0 }
 0x15a   : > { %1486 = vst [vmem:[#allocation2] sm:$0xff] %v1418_v36  ;;  %v1422_v41 = vadd.f32 %v1421_v40, %v18212_v31  ;;  %v1423_v42 = vpop.f32.mrb[3].mxu0  ;;  %v1556_v43 = vmul.f32 %v18219_v34, %v1418_v36 }
 0x15b   : > { %1488 = vst.msk [vmem:[#allocation2 + $0x8] sm:$0xff] %vm1487_vm1, %v1420_v39  ;;  %v1424_v44 = vadd.f32 %v1423_v42, %v18215_v32 }
 0x15c   : > { %1489 = vst [vmem:[#allocation2 + $0x28] sm:$0xff] %v1422_v41  ;;  %v1558_v46 = vmul.f32 %v18219_v34, %v1422_v41  ;;  %v1596_v47 = vadd.f32 %v18223_v38, %v1556_v43 }
 0x15d   : > { %1490 = vst.msk [vmem:[#allocation2 + $0x30] sm:$0xff] %vm1487_vm1, %v1424_v44 }
 0x15e   : > { %v1598_v48 = vadd.f32 %v18223_v38, %v1558_v46  ;;  %v1653_v49 = vmul.f32 %v18230_v45, %v1596_v47  ;;  %vm1624_vm2 = vcmp.ge.f32.partialorder %v1596_v47, 0.0 }
 0x15f   : > { %v1427_v50 = vpop.f32.mrb[4].mxu0 }
 0x160   : > { %v1428_v52 = vadd.f32 %v1427_v50, %v18212_v31  ;;  %v1429_v53 = vpop.f32.mrb[5].mxu0  ;;  %vm1626_vm3 = vcmp.ge.f32.partialorder %v1598_v48, 0.0  ;;  %v1655_v54 = vmul.f32 %v18230_v45, %v1598_v48  ;;  %v1681_v61 = vsel %vm1624_vm2, %v1596_v47, %v1653_v49 }
 0x161   : > { %v1430_v55 = vadd.f32 %v1429_v53, %v18215_v32  ;;  %v1431_v56 = vpop.f32.mrb[6].mxu0 }
 0x162   : > { %1491 = vst [vmem:[#allocation2 + $0x50] sm:$0xff] %v1428_v52  ;;  %v1432_v58 = vadd.f32 %v1431_v56, %v18212_v31  ;;  %v1433_v59 = vpop.f32.mrb[7].mxu0  ;;  %v1517_v60 = vld [vmem:[#allocation2 + $0x8] sm:$0xff]  ;;  %v1683_v62 = vsel %vm1626_vm3, %v1598_v48, %v1655_v54  ;;  %v1560_v63 = vmul.f32 %v18219_v34, %v1428_v52 }
 0x163   : > { %1492 = vst.msk [vmem:[#allocation2 + $0x58] sm:$0xff] %vm1487_vm1, %v1430_v55  ;;  %v1434_v0 = vadd.f32 %v1433_v59, %v18215_v32  ;;  %v1557_v1 = vmul.f32 %v18238_v51, %v1517_v60  ;;  %v1709_v3 = vpack.c.bf16 %v1683_v62, %v1681_v61 }
 0x164   : > { %1493 = vst [vmem:[#allocation2 + $0x78] sm:$0xff] %v1432_v58  ;;  %v1519_v4 = vld [vmem:[#allocation2 + $0x30] sm:$0xff]  ;;  %v1562_v5 = vmul.f32 %v18219_v34, %v1432_v58  ;;  %v1600_v6 = vadd.f32 %v18223_v38, %v1560_v63 }
 0x165   : > { %1494 = vst.msk [vmem:[#allocation2 + $0x80] sm:$0xff] %vm1487_vm1, %v1434_v0  ;;  %v1559_v7 = vmul.f32 %v18238_v51, %v1519_v4  ;;  %v1597_v8 = vadd.f32 %v18244_v57, %v1557_v1 }
 0x166   : > { %v1602_v9 = vadd.f32 %v18223_v38, %v1562_v5  ;;  %vm1628_vm4 = vcmp.ge.f32.partialorder %v1600_v6, 0.0  ;;  %v1657_v10 = vmul.f32 %v18230_v45, %v1600_v6 }
 0x167   : > { %v1437_v11 = vpop.f32.mrb[8].mxu0  ;;  %v1599_v12 = vadd.f32 %v18244_v57, %v1559_v7  ;;  %vm1625_vm5 = vcmp.ge.f32.partialorder %v1597_v8, 0.0  ;;  %v1654_v13 = vmul.f32 %v18230_v45, %v1597_v8 }
 0x168   : > { %v1438_v14 = vadd.f32 %v1437_v11, %v18212_v31  ;;  %v1439_v15 = vpop.f32.mrb[9].mxu0  ;;  %vm1630_vm6 = vcmp.ge.f32.partialorder %v1602_v9, 0.0  ;;  %v1659_v16 = vmul.f32 %v18230_v45, %v1602_v9  ;;  %v18264_v20 = vsel %vm1628_vm4, %v1600_v6, %v1657_v10 }
 0x169   : > { %v1440_v17 = vadd.f32 %v1439_v15, %v18215_v32  ;;  %v1441_v18 = vpop.f32.mrb[10].mxu0  ;;  %vm1627_vm7 = vcmp.ge.f32.partialorder %v1599_v12, 0.0  ;;  %v1656_v19 = vmul.f32 %v18230_v45, %v1599_v12  ;;  %v1682_v23 = vsel %vm1625_vm5, %v1597_v8, %v1654_v13 }
 0x16a   : > { %1495 = vst [vmem:[#allocation2 + $0xa0] sm:$0xff] %v1438_v14  ;;  %v1442_v21 = vadd.f32 %v1441_v18, %v18212_v31  ;;  %v1443_v22 = vpop.f32.mrb[11].mxu0  ;;  %v1521_v24 = vld [vmem:[#allocation2 + $0x58] sm:$0xff]  ;;  %v1687_v25 = vsel %vm1630_vm6, %v1602_v9, %v1659_v16  ;;  %v1564_v28 = vmul.f32 %v18219_v34, %v1438_v14 }
 0x16b   : > { %1496 = vst.msk [vmem:[#allocation2 + $0xa8] sm:$0xff] %vm1487_vm1, %v1440_v17  ;;  %v1444_v30 = vadd.f32 %v1443_v22, %v18215_v32  ;;  %v1684_v33 = vsel %vm1627_vm7, %v1599_v12, %v1656_v19  ;;  %v1561_v35 = vmul.f32 %v18238_v51, %v1521_v24  ;;  %v1711_v36 = vpack.c.bf16 %v1687_v25, %v18264_v20 }
 0x16c   : > { %1497 = vst [vmem:[#allocation2 + $0xc8] sm:$0xff] %v1442_v21  ;;  %v1710_v37 = vpack.c.bf16 %v1684_v33, %v1682_v23  ;;  %v1523_v39 = vld [vmem:[#allocation2 + $0x80] sm:$0xff]  ;;  %v1566_v40 = vmul.f32 %v18219_v34, %v1442_v21  ;;  %v1604_v41 = vadd.f32 %v18223_v38, %v1564_v28 }
 0x16d   : > { %1498 = vst.msk [vmem:[#allocation2 + $0xd0] sm:$0xff] %vm1487_vm1, %v1444_v30  ;;  %v1563_v42 = vmul.f32 %v18238_v51, %v1523_v39  ;;  %v1601_v43 = vadd.f32 %v18244_v57, %v1561_v35 }
 0x16e   : > { %13836 = vmatprep.mubr.msk.bf16.mxu1 %vm1487_vm1, %v1710_v37  ;;  %v1606_v44 = vadd.f32 %v18223_v38, %v1566_v40  ;;  %vm1632_vm8 = vcmp.ge.f32.partialorder %v1604_v41, 0.0  ;;  %v1661_v46 = vmul.f32 %v18230_v45, %v1604_v41 }
 0x16f   : > { %v1447_v47 = vpop.f32.mrb[12].mxu0  ;;  %1904 = vmatmul.mubr.bf16.vlgmr.msra.gmra.mrb[0].mxu1 %v1709_v3  ;;  %v1603_v48 = vadd.f32 %v18244_v57, %v1563_v42  ;;  %vm1629_vm9 = vcmp.ge.f32.partialorder %v1601_v43, 0.0  ;;  %v1658_v49 = vmul.f32 %v18230_v45, %v1601_v43 }
 0x170   : > { %v1448_v50 = vadd.f32 %v1447_v47, %v18212_v31  ;;  %v1449_v52 = vpop.f32.mrb[13].mxu0  ;;  %vm1634_vm10 = vcmp.ge.f32.partialorder %v1606_v44, 0.0  ;;  %v1663_v53 = vmul.f32 %v18230_v45, %v1606_v44  ;;  %v18286_v58 = vsel %vm1632_vm8, %v1604_v41, %v1661_v46 }
 0x171   : > { %v1450_v54 = vadd.f32 %v1449_v52, %v18215_v32  ;;  %v1451_v55 = vpop.f32.mrb[14].mxu0  ;;  %vm1631_vm11 = vcmp.ge.f32.partialorder %v1603_v48, 0.0  ;;  %v1660_v56 = vmul.f32 %v18230_v45, %v1603_v48  ;;  %v1686_v61 = vsel %vm1629_vm9, %v1601_v43, %v1658_v49 }
 0x172   : > { %1499 = vst [vmem:[#allocation2 + $0xf0] sm:$0xff] %v1448_v50  ;;  %v1452_v59 = vadd.f32 %v1451_v55, %v18212_v31  ;;  %v1453_v60 = vpop.f32.mrb[15].mxu0  ;;  %v1525_v62 = vld [vmem:[#allocation2 + $0xa8] sm:$0xff]  ;;  %v1691_v63 = vsel %vm1634_vm10, %v1606_v44, %v1663_v53  ;;  %v1568_v0 = vmul.f32 %v18219_v34, %v1448_v50 }
 0x173   : > { %1500 = vst.msk [vmem:[#allocation2 + $0xf8] sm:$0xff] %vm1487_vm1, %v1450_v54  ;;  %v1454_v1 = vadd.f32 %v1453_v60, %v18215_v32  ;;  %v1688_v3 = vsel %vm1631_vm11, %v1603_v48, %v1660_v56  ;;  %v1565_v4 = vmul.f32 %v18238_v51, %v1525_v62  ;;  %v1713_v5 = vpack.c.bf16 %v1691_v63, %v18286_v58 }
 0x174   : > { %1501 = vst [vmem:[#allocation2 + $0x118] sm:$0xff] %v1452_v59  ;;  %v1712_v6 = vpack.c.bf16 %v1688_v3, %v1686_v61  ;;  %v1527_v7 = vld [vmem:[#allocation2 + $0xd0] sm:$0xff]  ;;  %v1570_v8 = vmul.f32 %v18219_v34, %v1452_v59  ;;  %v1608_v9 = vadd.f32 %v18223_v38, %v1568_v0 }
 0x175   : > { %1502 = vst.msk [vmem:[#allocation2 + $0x120] sm:$0xff] %vm1487_vm1, %v1454_v1  ;;  %v1567_v10 = vmul.f32 %v18238_v51, %v1527_v7  ;;  %v1605_v11 = vadd.f32 %v18244_v57, %v1565_v4 }
 0x176   : > { %13837 = vmatprep.mubr.msk.bf16.mxu1 %vm1487_vm1, %v1712_v6  ;;  %v1610_v12 = vadd.f32 %v18223_v38, %v1570_v8  ;;  %vm1636_vm12 = vcmp.ge.f32.partialorder %v1608_v9, 0.0  ;;  %v1665_v13 = vmul.f32 %v18230_v45, %v1608_v9 }
 0x177   : > { %v1457_v14 = vpop.f32.mrb[16].mxu0  ;;  %1912 = vmatmul.mubr.bf16.gmra.mrb[4].mxu1 %v1711_v36  ;;  %v1607_v15 = vadd.f32 %v18244_v57, %v1567_v10  ;;  %vm1633_vm13 = vcmp.ge.f32.partialorder %v1605_v11, 0.0  ;;  %v1662_v16 = vmul.f32 %v18230_v45, %v1605_v11 }
 0x178   : > { %v1458_v17 = vadd.f32 %v1457_v14, %v18212_v31  ;;  %v1459_v18 = vpop.f32.mrb[17].mxu0  ;;  %vm1638_vm14 = vcmp.ge.f32.partialorder %v1610_v12, 0.0  ;;  %v1667_v19 = vmul.f32 %v18230_v45, %v1610_v12  ;;  %v18308_v23 = vsel %vm1636_vm12, %v1608_v9, %v1665_v13 }
 0x179   : > { %v1460_v20 = vadd.f32 %v1459_v18, %v18215_v32  ;;  %v1461_v21 = vpop.f32.mrb[18].mxu0  ;;  %vm1635_vm15 = vcmp.ge.f32.partialorder %v1607_v15, 0.0  ;;  %v1664_v22 = vmul.f32 %v18230_v45, %v1607_v15  ;;  %v1690_v28 = vsel %vm1633_vm13, %v1605_v11, %v1662_v16 }
 0x17a   : > { %1503 = vst [vmem:[#allocation2 + $0x140] sm:$0xff] %v1458_v17  ;;  %v1462_v24 = vadd.f32 %v1461_v21, %v18212_v31  ;;  %v1463_v25 = vpop.f32.mrb[19].mxu0  ;;  %v1529_v30 = vld [vmem:[#allocation2 + $0xf8] sm:$0xff]  ;;  %v1695_v33 = vsel %vm1638_vm14, %v1610_v12, %v1667_v19  ;;  %v1572_v35 = vmul.f32 %v18219_v34, %v1458_v17 }
 0x17b   : > { %1504 = vst.msk [vmem:[#allocation2 + $0x148] sm:$0xff] %vm1487_vm1, %v1460_v20  ;;  %v1464_v36 = vadd.f32 %v1463_v25, %v18215_v32  ;;  %v1692_v37 = vsel %vm1635_vm15, %v1607_v15, %v1664_v22  ;;  %v1569_v39 = vmul.f32 %v18238_v51, %v1529_v30  ;;  %v1715_v40 = vpack.c.bf16 %v1695_v33, %v18308_v23 }
 0x17c   : > { %1505 = vst [vmem:[#allocation2 + $0x168] sm:$0xff] %v1462_v24  ;;  %v1714_v41 = vpack.c.bf16 %v1692_v37, %v1690_v28  ;;  %v1531_v42 = vld [vmem:[#allocation2 + $0x120] sm:$0xff]  ;;  %v1574_v43 = vmul.f32 %v18219_v34, %v1462_v24  ;;  %v1612_v44 = vadd.f32 %v18223_v38, %v1572_v35 }
 0x17d   : > { %1506 = vst.msk [vmem:[#allocation2 + $0x170] sm:$0xff] %vm1487_vm1, %v1464_v36  ;;  %v1571_v46 = vmul.f32 %v18238_v51, %v1531_v42  ;;  %v1609_v47 = vadd.f32 %v18244_v57, %v1569_v39 }
 0x17e   : > { %13838 = vmatprep.mubr.msk.bf16.mxu1 %vm1487_vm1, %v1714_v41  ;;  %v1614_v48 = vadd.f32 %v18223_v38, %v1574_v43  ;;  %vm1640_vm0 = vcmp.ge.f32.partialorder %v1612_v44, 0.0  ;;  %v1669_v49 = vmul.f32 %v18230_v45, %v1612_v44 }
 0x17f   : > { %v1467_v50 = vpop.f32.mrb[20].mxu0  ;;  %1920 = vmatmul.mubr.bf16.gmra.mrb[8].mxu1 %v1713_v5  ;;  %v1611_v52 = vadd.f32 %v18244_v57, %v1571_v46  ;;  %vm1637_vm2 = vcmp.ge.f32.partialorder %v1609_v47, 0.0  ;;  %v1666_v53 = vmul.f32 %v18230_v45, %v1609_v47 }
 0x180   : > { %v1468_v54 = vadd.f32 %v1467_v50, %v18212_v31  ;;  %v1469_v55 = vpop.f32.mrb[21].mxu0  ;;  %vm1642_vm3 = vcmp.ge.f32.partialorder %v1614_v48, 0.0  ;;  %v1671_v56 = vmul.f32 %v18230_v45, %v1614_v48  ;;  %v1697_v61 = vsel %vm1640_vm0, %v1612_v44, %v1669_v49 }
 0x181   : > { %v1470_v58 = vadd.f32 %v1469_v55, %v18215_v32  ;;  %v1471_v59 = vpop.f32.mrb[22].mxu0  ;;  %vm1639_vm4 = vcmp.ge.f32.partialorder %v1611_v52, 0.0  ;;  %v1668_v60 = vmul.f32 %v18230_v45, %v1611_v52  ;;  %v1694_v0 = vsel %vm1637_vm2, %v1609_v47, %v1666_v53 }
 0x182   : > { %1507 = vst [vmem:[#allocation2 + $0x190] sm:$0xff] %v1468_v54  ;;  %v1472_v62 = vadd.f32 %v1471_v59, %v18212_v31  ;;  %v1473_v63 = vpop.f32.mrb[23].mxu0  ;;  %v1533_v1 = vld [vmem:[#allocation2 + $0x148] sm:$0xff]  ;;  %v1699_v3 = vsel %vm1642_vm3, %v1614_v48, %v1671_v56  ;;  %v1576_v4 = vmul.f32 %v18219_v34, %v1468_v54 }
 0x183   : > { %1508 = vst.msk [vmem:[#allocation2 + $0x198] sm:$0xff] %vm1487_vm1, %v1470_v58  ;;  %v1474_v5 = vadd.f32 %v1473_v63, %v18215_v32  ;;  %v1696_v6 = vsel %vm1639_vm4, %v1611_v52, %v1668_v60  ;;  %v1573_v7 = vmul.f32 %v18238_v51, %v1533_v1  ;;  %v1717_v8 = vpack.c.bf16 %v1699_v3, %v1697_v61 }
 0x184   : > { %1509 = vst [vmem:[#allocation2 + $0x1b8] sm:$0xff] %v1472_v62  ;;  %v1716_v9 = vpack.c.bf16 %v1696_v6, %v1694_v0  ;;  %v1535_v10 = vld [vmem:[#allocation2 + $0x170] sm:$0xff]  ;;  %v1578_v11 = vmul.f32 %v18219_v34, %v1472_v62  ;;  %v1616_v12 = vadd.f32 %v18223_v38, %v1576_v4 }
 0x185   : > { %1510 = vst.msk [vmem:[#allocation2 + $0x1c0] sm:$0xff] %vm1487_vm1, %v1474_v5  ;;  %v1575_v13 = vmul.f32 %v18238_v51, %v1535_v10  ;;  %v1613_v14 = vadd.f32 %v18244_v57, %v1573_v7  ;;  %v2966_v10 = vld [vmem:[%s17939_s20] sm:$0xf] }
 0x186   : > { %13839 = vmatprep.mubr.msk.bf16.mxu1 %vm1487_vm1, %v1716_v9  ;;  %v1618_v15 = vadd.f32 %v18223_v38, %v1578_v11  ;;  %vm1644_vm5 = vcmp.ge.f32.partialorder %v1616_v12, 0.0  ;;  %v1673_v16 = vmul.f32 %v18230_v45, %v1616_v12  ;;  %v18375_v9 = vld [vmem:[#allocation2 + $0xf0] sm:$0xff] }
 0x187   : > { %v1477_v17 = vpop.f32.mrb[24].mxu0  ;;  %1928 = vmatmul.mubr.bf16.gmra.mrb[12].mxu1 %v1715_v40  ;;  %v1615_v18 = vadd.f32 %v18244_v57, %v1575_v13  ;;  %vm1641_vm6 = vcmp.ge.f32.partialorder %v1613_v14, 0.0  ;;  %v1670_v19 = vmul.f32 %v18230_v45, %v1613_v14 }
 0x188   : > { %v1478_v20 = vadd.f32 %v1477_v17, %v18212_v31  ;;  %v1479_v21 = vpop.f32.mrb[25].mxu0  ;;  %vm1646_vm7 = vcmp.ge.f32.partialorder %v1618_v15, 0.0  ;;  %v1675_v22 = vmul.f32 %v18230_v45, %v1618_v15  ;;  %v1701_v28 = vsel %vm1644_vm5, %v1616_v12, %v1673_v16  ;;  %v18383_v12 = vld [vmem:[#allocation2 + $0x140] sm:$0xff] }
 0x189   : > { %v1480_v23 = vadd.f32 %v1479_v21, %v18215_v32  ;;  %v1481_v24 = vpop.f32.mrb[26].mxu0  ;;  %vm1643_vm8 = vcmp.ge.f32.partialorder %v1615_v18, 0.0  ;;  %v1672_v25 = vmul.f32 %v18230_v45, %v1615_v18  ;;  %v1698_v35 = vsel %vm1641_vm6, %v1613_v14, %v1670_v19  ;;  %v18390_v14 = vld [vmem:[#allocation2 + $0x168] sm:$0xff] }
 0x18a   : > { %1511 = vst [vmem:[#allocation2 + $0x1e0] sm:$0xff] %v1478_v20  ;;  %v1482_v30 = vadd.f32 %v1481_v24, %v18212_v31  ;;  %v1483_v33 = vpop.f32.mrb[27].mxu0  ;;  %v1537_v36 = vld [vmem:[#allocation2 + $0x198] sm:$0xff]  ;;  %v1703_v37 = vsel %vm1646_vm7, %v1618_v15, %v1675_v22  ;;  %v1580_v39 = vmul.f32 %v18219_v34, %v1478_v20  ;;  %v18399_v19 = vstv %s13875_s23  ;;  %s13843_s23 = sld [smem:[#allocation5 + $0x1]] }
 0x18b   : > { %1512 = vst.msk [vmem:[#allocation2 + $0x1e8] sm:$0xff] %vm1487_vm1, %v1480_v23  ;;  %v1484_v40 = vadd.f32 %v1483_v33, %v18215_v32  ;;  %v1700_v41 = vsel %vm1643_vm8, %v1615_v18, %v1672_v25  ;;  %v1577_v42 = vmul.f32 %v18238_v51, %v1537_v36  ;;  %v1719_v43 = vpack.c.bf16 %v1703_v37, %v1701_v28  ;;  %v18397_v18 = vld [vmem:[#allocation2 + $0x190] sm:$0xff]  ;;  %v18402_v21 = vld [vmem:[#allocation2 + $0x1b8] sm:$0xff] }
 0x18c   : > { %1513 = vst [vmem:[#allocation2 + $0x208] sm:$0xff] %v1482_v30  ;;  %v1718_v44 = vpack.c.bf16 %v1700_v41, %v1698_v35  ;;  %v1539_v46 = vld [vmem:[#allocation2 + $0x1c0] sm:$0xff]  ;;  %v1582_v47 = vmul.f32 %v18219_v34, %v1482_v30  ;;  %v1620_v31 = vadd.f32 %v18223_v38, %v1580_v39 }
 0x18d   : > { %1514 = vst.msk [vmem:[#allocation2 + $0x210] sm:$0xff] %vm1487_vm1, %v1484_v40  ;;  %v1579_v48 = vmul.f32 %v18238_v51, %v1539_v46  ;;  %v1617_v49 = vadd.f32 %v18244_v57, %v1577_v42 }
 0x18e   : > { %13840 = vmatprep.mubr.msk.bf16.mxu1 %vm1487_vm1, %v1718_v44  ;;  %v1622_v32 = vadd.f32 %v18223_v38, %v1582_v47  ;;  %v1677_v50 = vmul.f32 %v18230_v45, %v1620_v31  ;;  %vm1648_vm9 = vcmp.ge.f32.partialorder %v1620_v31, 0.0 }
 0x18f   : > { %1936 = vmatmul.mubr.bf16.gmra.mrb[16].mxu1 %v1717_v8  ;;  %v1619_v52 = vadd.f32 %v18244_v57, %v1579_v48  ;;  %v1674_v53 = vmul.f32 %v18230_v45, %v1617_v49  ;;  %vm1645_vm10 = vcmp.ge.f32.partialorder %v1617_v49, 0.0 }
 0x190   : > { %vm1650_vm11 = vcmp.ge.f32.partialorder %v1622_v32, 0.0  ;;  %v1679_v34 = vmul.f32 %v18230_v45, %v1622_v32  ;;  %v1705_v56 = vsel %vm1648_vm9, %v1620_v31, %v1677_v50 }
 0x191   : > { %vm1647_vm12 = vcmp.ge.f32.partialorder %v1619_v52, 0.0  ;;  %v1676_v54 = vmul.f32 %v18230_v45, %v1619_v52  ;;  %v1702_v59 = vsel %vm1645_vm10, %v1617_v49, %v1674_v53  ;;  %v18409_v28 = vld [vmem:[#allocation2 + $0x1e0] sm:$0xff] }
 0x192   : > { %v1541_v55 = vld [vmem:[#allocation2 + $0x1e8] sm:$0xff]  ;;  %v1707_v58 = vsel %vm1650_vm11, %v1622_v32, %v1679_v34 }
 0x193   : > { %v1704_v38 = vsel %vm1647_vm12, %v1619_v52, %v1676_v54  ;;  %v1581_v60 = vmul.f32 %v18238_v51, %v1541_v55  ;;  %v1721_v61 = vpack.c.bf16 %v1707_v58, %v1705_v56  ;;  %v2086_v30 = vld [vmem:[#allocation2 + $0x208] sm:$0xff] }
 0x194   : > { %v1720_v62 = vpack.c.bf16 %v1704_v38, %v1702_v59  ;;  %v1543_v63 = vld [vmem:[#allocation2 + $0x210] sm:$0xff] }
 0x195   : > { %v1583_v0 = vmul.f32 %v18238_v51, %v1543_v63  ;;  %v1621_v1 = vadd.f32 %v18244_v57, %v1581_v60  ;;  %v2888_v51 = vld [vmem:[%s22805_s12] sm:$0xf]  ;;  %v17348_v63 = vld [vmem:[%s22807_s6 + $0x14] ss:$8 sps:$4 sm:$0xff]  }
 0x196   : > { %13841 = vmatprep.mubr.msk.bf16.mxu1 %vm1487_vm1, %v1720_v62  ;;  %v18379_v11 = vrot.slane %v2888_v51, %v18204_v27  ;;  %v17345_v62 = vld [vmem:[%s22807_s6 + $0x4] ss:$8 sps:$4 sm:$0xff]   ;;  %v17355_v51 = vld [vmem:[%s22807_s6 + $0x34] ss:$8 sps:$4 sm:$0xff]  }
 0x197   : > { %1944 = vmatmul.mubr.bf16.gmra.mrb[20].mxu1 %v1719_v43  ;;  %v1623_v3 = vadd.f32 %v18244_v57, %v1583_v0  ;;  %v1678_v4 = vmul.f32 %v18230_v45, %v1621_v1  ;;  %vm1649_vm13 = vcmp.ge.f32.partialorder %v1621_v1, 0.0  ;;  %v18381_v57 = vld [vmem:[#allocation2 + $0x118] sm:$0xff]  ;;  %4773 = vmatprep.subr.bf16.mxu1 %v17345_v62  ;;  %v17352_v0 = vld [vmem:[%s17924_s30 + $0x40] sm:$0xff]  }
 0x198   : > { %v2934_v13 = vmul.f32 %v18379_v11, %v18375_v9  ;;  %v2938_v15 = vmul.f32 %v18379_v11, %v18381_v57  ;;  %v2942_v17 = vmul.f32 %v18379_v11, %v18383_v12  ;;  %v2946_v23 = vmul.f32 %v18379_v11, %v18390_v14  ;;  %14777 = vmatprep.subr.bf16.mxu0 %v17352_v0  ;;  %v17394_v62 = vld [vmem:[%s22807_s6 + $0xd0] ss:$8 sps:$4 sm:$0xff]  }
 0x199   : > { %vm1651_vm14 = vcmp.ge.f32.partialorder %v1623_v3, 0.0  ;;  %v1680_v5 = vmul.f32 %v18230_v45, %v1623_v3  ;;  %v1706_v6 = vsel %vm1649_vm13, %v1621_v1, %v1678_v4  ;;  %v18386_v45 = vrot.slane %v2966_v10, %v18204_v27  ;;  %v17346_v1 = vld [vmem:[%s22807_s6 + $0x10] ss:$8 sps:$4 sm:$0xff]   ;;  %v17351_v4 = vld [vmem:[%s22807_s6 + $0x24] ss:$8 sps:$4 sm:$0xff]  }
 0x19a   : > { %v2950_v36 = vmul.f32 %v18379_v11, %v18397_v18  ;;  %v2954_v40 = vmul.f32 %v18379_v11, %v18402_v21  ;;  %v2958_v46 = vmul.f32 %v18379_v11, %v18409_v28  ;;  %v2962_v47 = vmul.f32 %v18379_v11, %v2086_v30  ;;  %v17369_v10 = vld [vmem:[%s17924_s30 + $0x10] sm:$0xff]   ;;  %v17367_v30 = vld [vmem:[%s22807_s6 + $0x64] ss:$8 sps:$4 sm:$0xff]  }
 0x19b   : > { %v1708_v7 = vsel %vm1651_vm14, %v1623_v3, %v1680_v5  ;;  %22814 = vst [vmem:[#allocation44_spill] sm:$0xff] %v18386_v45  ;;  %v3012_v16 = vadd.f32 %v18386_v45, %v2934_v13  ;;  %v3016_v20 = vadd.f32 %v18386_v45, %v2938_v15  ;;  %v3020_v25 = vadd.f32 %v18386_v45, %v2942_v17  ;;  %v17356_v3 = vld [vmem:[%s17924_s30] sm:$0xff]   ;;  %v17360_v5 = vld [vmem:[%s17924_s30 + $0x48] sm:$0xff]   ;;  %v17376_v13 = vld [vmem:[%s17924_s30 + $0x58] sm:$0xff]  }
 0x19c   : > { %v1722_v8 = vpack.c.bf16 %v1708_v7, %v1706_v6  ;;  %v3024_v35 = vadd.f32 %v18386_v45, %v2946_v23  ;;  %v3028_v43 = vadd.f32 %v18386_v45, %v2950_v36  ;;  %v3032_v44 = vadd.f32 %v18386_v45, %v2954_v40  ;;  %14778 = vmatpush3.bf16.msra.mxu0 %v17356_v3  ;;  %v17361_v6 = vld [vmem:[%s17924_s30 + $0x8] sm:$0xff]   ;;  %v17368_v7 = vld [vmem:[%s17924_s30 + $0x50] sm:$0xff]   ;;  %v17377_v17 = vld [vmem:[%s17924_s30 + $0x18] sm:$0xff]  }
 0x19d   : > { %vm3068_vm15 = vcmp.ge.f32.partialorder %v3012_v16, 0.0  ;;  %v3125_v22 = vmul.f32 %v18399_v19, %v3012_v16  ;;  %vm3072_vm0 = vcmp.ge.f32.partialorder %v3016_v20, 0.0  ;;  %v3129_v24 = vmul.f32 %v18399_v19, %v3016_v20  ;;  %14779 = vmatprep.subr.bf16.mxu0 %v17360_v5  ;;  %v17353_v15 = vld [vmem:[%s22807_s6 + $0x30] ss:$8 sps:$4 sm:$0xff]   ;;  %v17364_v23 = vld [vmem:[%s22807_s6 + $0x54] ss:$8 sps:$4 sm:$0xff]  }
 0x19e   : > { %13842 = vmatprep.mubr.msk.bf16.mxu1 %vm1487_vm1, %v1722_v8  ;;  %vm3076_vm2 = vcmp.ge.f32.partialorder %v3020_v25, 0.0  ;;  %v3133_v39 = vmul.f32 %v18399_v19, %v3020_v25  ;;  %vm3080_vm3 = vcmp.ge.f32.partialorder %v3024_v35, 0.0  ;;  %v3137_v42 = vmul.f32 %v18399_v19, %v3024_v35  ;;  %v17349_v8 = vld [vmem:[%s22807_s6 + $0x20] ss:$8 sps:$4 sm:$0xff]   ;;  %v17372_v36 = vld [vmem:[%s22807_s6 + $0x74] ss:$8 sps:$4 sm:$0xff]  }
 0x19f   : > { %1952 = vmatmul.mubr.bf16.gmra.mrb[24].mxu1 %v1721_v61  ;;  %v18411_v33 = vsel %vm3068_vm15, %v3012_v16, %v3125_v22  ;;  %v18416_v37 = vsel %vm3072_vm0, %v3016_v20, %v3129_v24  ;;  %vm3084_vm4 = vcmp.ge.f32.partialorder %v3028_v43, 0.0  ;;  %v3141_v49 = vmul.f32 %v18399_v19, %v3028_v43  ;;  %v17343_v61 = vld [vmem:[%s22807_s6] ss:$8 sps:$4 sm:$0xff]   ;;  %v17359_v16 = vld [vmem:[%s22807_s6 + $0x44] ss:$8 sps:$4 sm:$0xff]   ;;  %v17397_v5 = vld [vmem:[%s17924_s30 + $0x70] sm:$0xff]  }
 0x1a0   : > { %22815 = vst [vmem:[#allocation45_spill] sm:$0xff] %v18411_v33  ;;  %22816 = vst [vmem:[#allocation46_spill] sm:$0xff] %v18416_v37  ;;  %v18429_v31 = vsel %vm3076_vm2, %v3020_v25, %v3133_v39  ;;  %v18431_v48 = vsel %vm3080_vm3, %v3024_v35, %v3137_v42  ;;  %vm3088_vm5 = vcmp.ge.f32.partialorder %v3032_v44, 0.0  ;;  %v3145_v50 = vmul.f32 %v18399_v19, %v3032_v44  ;;  %v17381_v20 = vld [vmem:[%s17924_s30 + $0x60] sm:$0xff]   ;;  %v17362_v25 = vld [vmem:[%s22807_s6 + $0x50] ss:$8 sps:$4 sm:$0xff]  }
 0x1a1   : > { %22817 = vst [vmem:[#allocation47_spill] sm:$0xff] %v18429_v31  ;;  %22818 = vst [vmem:[#allocation48_spill] sm:$0xff] %v18431_v48  ;;  %v3036_v52 = vadd.f32 %v18386_v45, %v2958_v46  ;;  %v3040_v53 = vadd.f32 %v18386_v45, %v2962_v47  ;;  %v18439_v34 = vsel %vm3084_vm4, %v3028_v43, %v3141_v49  ;;  %4774 = vmatpush1.bf16.msra.mxu1 %v17343_v61  ;;  %v17357_v22 = vld [vmem:[%s22807_s6 + $0x40] ss:$8 sps:$4 sm:$0xff]   ;;  %v17370_v39 = vld [vmem:[%s22807_s6 + $0x70] ss:$8 sps:$4 sm:$0xff]  }
 0x1a2   : > { %22819 = vst [vmem:[#allocation49_spill] sm:$0xff] %v18439_v34  ;;  %v18441_v54 = vsel %vm3088_vm5, %v3032_v44, %v3145_v50  ;;  %4775 = vmatprep.subr.bf16.mxu1 %v17348_v63  ;;  %14780 = vmatpush3.bf16.msra.mxu0 %v17361_v6  ;;  %v17385_v24 = vld [vmem:[%s17924_s30 + $0x20] sm:$0xff]   ;;  %v17380_v43 = vld [vmem:[%s22807_s6 + $0x94] ss:$8 sps:$4 sm:$0xff]   ;;  %v17378_v44 = vld [vmem:[%s22807_s6 + $0x90] ss:$8 sps:$4 sm:$0xff]  }
 0x1a3   : > { %22820 = vst [vmem:[#allocation50_spill] sm:$0xff] %v18441_v54  ;;  %vm3092_vm6 = vcmp.ge.f32.partialorder %v3036_v52, 0.0  ;;  %v3149_v55 = vmul.f32 %v18399_v19, %v3036_v52  ;;  %vm3096_vm7 = vcmp.ge.f32.partialorder %v3040_v53, 0.0  ;;  %v3153_v58 = vmul.f32 %v18399_v19, %v3040_v53  ;;  %14781 = vmatprep.subr.bf16.mxu0 %v17368_v7  ;;  %v17365_v35 = vld [vmem:[%s22807_s6 + $0x60] ss:$8 sps:$4 sm:$0xff]   ;;  %v17398_v6 = vld [vmem:[%s17924_s30 + $0x30] sm:$0xff]  }
 0x1a4   : > { %v17375_v40 = vld [vmem:[%s22807_s6 + $0x84] ss:$8 sps:$4 sm:$0xff]   ;;  %v17373_v42 = vld [vmem:[%s22807_s6 + $0x80] ss:$8 sps:$4 sm:$0xff]   ;;  %v17386_v49 = vld [vmem:[%s22807_s6 + $0xb0] ss:$8 sps:$4 sm:$0xff]  }
 0x1a5   : > { %v18447_v59 = vsel %vm3092_vm6, %v3036_v52, %v3149_v55  ;;  %v18449_v38 = vsel %vm3096_vm7, %v3040_v53, %v3153_v58  ;;  %4776 = vmatpush1.bf16.msra.mxu1 %v17346_v1  ;;  %v17384_v46 = vld [vmem:[%s22807_s6 + $0xa4] ss:$8 sps:$4 sm:$0xff]   ;;  %v17382_v47 = vld [vmem:[%s22807_s6 + $0xa0] ss:$8 sps:$4 sm:$0xff]   ;;  %v17388_v50 = vld [vmem:[%s22807_s6 + $0xb4] ss:$8 sps:$4 sm:$0xff]  }
 0x1a6   : > { %22821 = vst [vmem:[#allocation51_spill] sm:$0xff] %v18447_v59  ;;  %22822 = vst [vmem:[#allocation52_spill] sm:$0xff] %v18449_v38  ;;  %4777 = vmatprep.subr.bf16.mxu1 %v17351_v4  ;;  %14782 = vmatpush3.bf16.msra.mxu0 %v17369_v10  ;;  %v17389_v52 = vld [vmem:[%s17924_s30 + $0x68] sm:$0xff]   ;;  %v18492_v61 = vld [vmem:[%s17909_s14] ss:$0 sm:$0xff]  ;;  %vm2016_vm15 = vcmask 1048448  }
 0x1a7   : > { %14783 = vmatprep.subr.bf16.mxu0 %v17376_v13  ;;  %v17390_v53 = vld [vmem:[%s17924_s30 + $0x28] sm:$0xff]   ;;  %v17396_v63 = vld [vmem:[%s22807_s6 + $0xd4] ss:$8 sps:$4 sm:$0xff]   ;;  %vm2018_vm0 = vcmask 850944   ;;  %v17407_v33 = vld [vmem:[%s17924_s30 + $0x80] sm:$0xff]  }
 0x1a8   : > { %v17391_v55 = vld [vmem:[%s22807_s6 + $0xc0] ss:$8 sps:$4 sm:$0xff]   ;;  %v17393_v58 = vld [vmem:[%s22807_s6 + $0xc4] ss:$8 sps:$4 sm:$0xff]   ;;  %v17402_v13 = vld [vmem:[%s17924_s30 + $0x78] sm:$0xff]  }
 0x1a9   : > { %4778 = vmatpush1.bf16.msra.mxu1 %v17349_v8  ;;  %v17399_v7 = vld [vmem:[%s22807_s6 + $0xe0] ss:$8 sps:$4 sm:$0xff]  }
 0x1aa   : > { %4779 = vmatprep.subr.bf16.mxu1 %v17355_v51  ;;  %14784 = vmatpush3.bf16.msra.mxu0 %v17377_v17  ;;  %v17401_v51 = vld [vmem:[%s22807_s6 + $0xe4] ss:$8 sps:$4 sm:$0xff]   ;;  %v17406_v17 = vld [vmem:[%s17924_s30 + $0x38] sm:$0xff]  }
 0x1ab   : > { %14785 = vmatprep.subr.bf16.mxu0 %v17381_v20 }
 0x1ad   : > { %4780 = vmatpush1.bf16.msra.mxu1 %v17353_v15  ;;  %v17405_v15 = vld [vmem:[%s22807_s6 + $0xf4] ss:$8 sps:$4 sm:$0xff]  }
 0x1ae   : > { %4781 = vmatprep.subr.bf16.mxu1 %v17359_v16  ;;  %14786 = vmatpush3.bf16.msra.mxu0 %v17385_v24  ;;  %v17403_v16 = vld [vmem:[%s22807_s6 + $0xf0] ss:$8 sps:$4 sm:$0xff]  }
 0x1af   : > { %14787 = vmatprep.subr.bf16.mxu0 %v17389_v52 }
 0x1b1   : > { %4782 = vmatpush1.bf16.msra.mxu1 %v17357_v22 }
 0x1b2   : > { %4783 = vmatprep.subr.bf16.mxu1 %v17364_v23  ;;  %14788 = vmatpush3.bf16.msra.mxu0 %v17390_v53 }
 0x1b3   : > { %14789 = vmatprep.subr.bf16.mxu0 %v17397_v5 }
 0x1b5   : > { %4784 = vmatpush1.bf16.msra.mxu1 %v17362_v25 }
 0x1b6   : > { %4785 = vmatprep.subr.bf16.mxu1 %v17367_v30  ;;  %14790 = vmatpush3.bf16.msra.mxu0 %v17398_v6 }
 0x1b7   : > { %14791 = vmatprep.subr.bf16.mxu0 %v17402_v13 }
 0x1b9   : > { %4786 = vmatpush1.bf16.msra.mxu1 %v17365_v35 }
 0x1ba   : > { %4787 = vmatprep.subr.bf16.mxu1 %v17372_v36  ;;  %14792 = vmatpush3.bf16.msra.mxu0 %v17406_v17 }
 0x1bd   : > { %4788 = vmatpush1.bf16.msra.mxu1 %v17370_v39 }
 0x1be   : > { %4789 = vmatprep.subr.bf16.mxu1 %v17375_v40  ;;  %v22749_v40 = vmov 0.0  }
 0x1bf   : > { %15185 = vmatprep.subr.bf16.mxu0 %v22749_v40 }
 0x1c1   : > { %4790 = vmatpush1.bf16.msra.mxu1 %v17373_v42 }
 0x1c2   : > { %4791 = vmatprep.subr.bf16.mxu1 %v17380_v43 }
 0x1c5   : > { %4792 = vmatpush1.bf16.msra.mxu1 %v17378_v44 }
 0x1c6   : > { %4793 = vmatprep.subr.bf16.mxu1 %v17384_v46 }
 0x1c9   : > { %4794 = vmatpush1.bf16.msra.mxu1 %v17382_v47 }
 0x1ca   : > { %4795 = vmatprep.subr.bf16.mxu1 %v17388_v50 }
 0x1cd   : > { %4796 = vmatpush1.bf16.msra.mxu1 %v17386_v49 }
 0x1ce   : > { %4797 = vmatprep.subr.bf16.mxu1 %v17393_v58 }
 0x1d1   : > { %4798 = vmatpush1.bf16.msra.mxu1 %v17391_v55 }
 0x1d2   : > { %4799 = vmatprep.subr.bf16.mxu1 %v17396_v63 }
 0x1d5   : > { %4800 = vmatpush1.bf16.msra.mxu1 %v17394_v62 }
 0x1d6   : > { %4801 = vmatprep.subr.bf16.mxu1 %v17401_v51 }
 0x1d9   : > { %4802 = vmatpush1.bf16.msra.mxu1 %v17399_v7 }
 0x1da   : > { %4803 = vmatprep.subr.bf16.mxu1 %v17405_v15 }
 0x1dd   : > { %4804 = vmatpush1.bf16.msra.mxu1 %v17403_v16 }
 0x242   : > { %v1905_v0 = vpop.f32.mrb[0].mxu1 }
 0x243   : > { %v1906_v1 = vadd.f32 %v18492_v61, %v1905_v0  ;;  %v1907_v3 = vpop.f32.mrb[1].mxu1 }
 0x244   : > { %v1908_v4 = vpop.f32.mrb[2].mxu1 }
 0x245   : > { %v1910_v8 = vpop.f32.mrb[3].mxu1  ;;  %1974 = vrot.lane.b32.xlu0 %v1906_v1, %s17845_s11  ;;  %v1909_v10 = vadd.f32 %v18492_v61, %v1908_v4 }
 0x249   : > { %1976 = vrot.lane.b32.xlu0 %v1909_v10, %s17845_s11 }
 0x24a   : > { %v1913_v20 = vpop.f32.mrb[4].mxu1 }
 0x24b   : > { %v1914_v22 = vadd.f32 %v18492_v61, %v1913_v20  ;;  %v1915_v23 = vpop.f32.mrb[5].mxu1  ;;  %v18534_v20 = vld [vmem:[%s17914_s19] sm:$0x7] }
 0x24c   : > { %v1916_v24 = vpop.f32.mrb[6].mxu1  ;;  %v18538_v23 = vrot.slane %v18534_v20, %v18204_v27 }
 0x24d   : > { %v1918_v25 = vpop.f32.mrb[7].mxu1  ;;  %1978 = vrot.lane.b32.xlu1 %v1914_v22, %s17845_s11  ;;  %v1917_v30 = vadd.f32 %v18492_v61, %v1916_v24  ;;  %v2050_v22 = vld [vmem:[#allocation2 + $0x28] sm:$0xff]  ;;  %v18541_v24 = vld [vmem:[%s17919_s24] sm:$0x7] }
 0x24e   : > { %v2047_v25 = vld [vmem:[#allocation2] sm:$0xff] }
 0x251   : > { %1980 = vrot.lane.b32.xlu1 %v1917_v30, %s17845_s11  ;;  %v18544_v30 = vld [vmem:[%s22823_s1] sm:$0x1f] }
 0x252   : > { %v1921_v35 = vpop.f32.mrb[8].mxu1 }
 0x253   : > { %v1922_v36 = vadd.f32 %v18492_v61, %v1921_v35  ;;  %v1923_v39 = vpop.f32.mrb[9].mxu1  ;;  %v18549_v35 = vrot.slane %v18541_v24, %v18204_v27 }
 0x254   : > { %v1924_v42 = vpop.f32.mrb[10].mxu1  ;;  %v18554_v39 = vrot.slane %v18544_v30, %v18204_v27 }
 0x255   : > { %v1925_v43 = vadd.f32 %v18492_v61, %v1924_v42  ;;  %v1926_v44 = vpop.f32.mrb[11].mxu1  ;;  %1982 = vrot.lane.b32.xlu0 %v1922_v36, %s17845_s11  ;;  %v2106_v36 = vmul.f32 %v18538_v23, %v2047_v25  ;;  %v18557_v42 = vld [vmem:[%s22824_s28] sm:$0x1f] }
 0x256   : > { %v2056_v44 = vld [vmem:[#allocation2 + $0x78] sm:$0xff] }
 0x257   : > { %1984 = vrot.lane.b32.xlu1 %v1925_v43, %s17845_s11 }
 0x25a   : > { %v1929_v46 = vpop.f32.mrb[12].mxu1 }
 0x25b   : > { %v1930_v47 = vadd.f32 %v18492_v61, %v1929_v46  ;;  %v1931_v49 = vpop.f32.mrb[13].mxu1  ;;  %v2165_v46 = vadd.f32 %v18549_v35, %v2106_v36 }
 0x25c   : > { %v1932_v50 = vpop.f32.mrb[14].mxu1  ;;  %v18562_v49 = vstv %s13843_s23  ;;  %s22832_s23 = sld [smem:[#allocation18_spill]] }
 0x25d   : > { %v1933_v52 = vadd.f32 %v18492_v61, %v1932_v50  ;;  %v1934_v53 = vpop.f32.mrb[15].mxu1  ;;  %1986 = vrot.lane.b32.xlu0 %v1930_v47, %s17845_s11  ;;  %v3875_v47 = vmul.f32 %v18554_v39, %v2050_v22  ;;  %v3870_v50 = vmul.f32 %v18554_v39, %v2047_v25  ;;  %vm2207_vm9 = vcmp.ge.f32.partialorder %v2165_v46, 0.0 }
 0x25e   : > { %v2053_v53 = vld [vmem:[#allocation2 + $0x50] sm:$0xff] }
 0x25f   : > { %1988 = vrot.lane.b32.xlu1 %v1933_v52, %s17845_s11  ;;  %v18567_v52 = vrot.slane %v18557_v42, %v18204_v27 }
 0x262   : > { %v1937_v55 = vpop.f32.mrb[16].mxu1 }
 0x263   : > { %v1938_v58 = vadd.f32 %v18492_v61, %v1937_v55  ;;  %v1939_v62 = vpop.f32.mrb[17].mxu1 }
 0x264   : > { %v1940_v63 = vpop.f32.mrb[18].mxu1  ;;  %v3885_v62 = vmul.f32 %v18554_v39, %v2056_v44 }
 0x265   : > { %v1941_v0 = vadd.f32 %v18492_v61, %v1940_v63  ;;  %v1942_v1 = vpop.f32.mrb[19].mxu1  ;;  %1990 = vrot.lane.b32.xlu0 %v1938_v58, %s17845_s11  ;;  %v2115_v58 = vmul.f32 %v18538_v23, %v2056_v44  ;;  %v2250_v63 = vmul.f32 %v18562_v49, %v2165_v46 }
 0x266   : > { %v2112_v1 = vmul.f32 %v18538_v23, %v2053_v53 }
 0x267   : > { %1992 = vrot.lane.b32.xlu1 %v1941_v0, %s17845_s11  ;;  %v3972_v0 = vadd.f32 %v18567_v52, %v3875_v47 }
 0x269   : > { %vm4043_vm11 = vcmp.ge.f32.partialorder %v3972_v0, 0.0 }
 0x26a   : > { %v1945_v3 = vpop.f32.mrb[20].mxu1 }
 0x26b   : > { %v1946_v4 = vadd.f32 %v18492_v61, %v1945_v3  ;;  %v1947_v5 = vpop.f32.mrb[21].mxu1  ;;  %v2059_v3 = vld [vmem:[#allocation2 + $0xa0] sm:$0xff] }
 0x26c   : > { %v1948_v6 = vpop.f32.mrb[22].mxu1  ;;  %v3967_v5 = vadd.f32 %v18567_v52, %v3870_v50  ;;  %v3890_v50 = vmul.f32 %v18554_v39, %v2059_v3 }
 0x26d   : > { %v1949_v7 = vadd.f32 %v18492_v61, %v1948_v6  ;;  %v1950_v8 = vpop.f32.mrb[23].mxu1  ;;  %1994 = vrot.lane.b32.xlu0 %v1946_v4, %s17845_s11  ;;  %v2062_v4 = vld [vmem:[#allocation2 + $0xc8] sm:$0xff]  ;;  %v3880_v6 = vmul.f32 %v18554_v39, %v2053_v53 }
 0x26e   : > { %v2174_v8 = vadd.f32 %v18549_v35, %v2115_v58  ;;  %vm4038_vm10 = vcmp.ge.f32.partialorder %v3967_v5, 0.0  ;;  %v3895_v58 = vmul.f32 %v18554_v39, %v2062_v4 }
 0x26f   : > { %1996 = vrot.lane.b32.xlu1 %v1949_v7, %s17845_s11 }
 0x270   : > { %vm2216_vm12 = vcmp.ge.f32.partialorder %v2174_v8, 0.0 }
 0x272   : > { %v1953_v51 = vpop.f32.mrb[24].mxu1 }
 0x273   : > { %v1954_v10 = vadd.f32 %v18492_v61, %v1953_v51  ;;  %v1955_v13 = vpop.f32.mrb[25].mxu1  ;;  %v3982_v51 = vadd.f32 %v18567_v52, %v3885_v62 }
 0x274   : > { %v1956_v15 = vpop.f32.mrb[26].mxu1  ;;  %v2118_v13 = vmul.f32 %v18538_v23, %v2059_v3 }
 0x275   : > { %v1957_v16 = vadd.f32 %v18492_v61, %v1956_v15  ;;  %v1958_v17 = vpop.f32.mrb[27].mxu1  ;;  %1998 = vrot.lane.b32.xlu0 %v1954_v10, %s17845_s11  ;;  %v2109_v61 = vmul.f32 %v18538_v23, %v2050_v22  ;;  %v2121_v15 = vmul.f32 %v18538_v23, %v2062_v4  ;;  %v2171_v22 = vadd.f32 %v18549_v35, %v2112_v1 }
 0x276   : > { %vm4053_vm13 = vcmp.ge.f32.partialorder %v3982_v51, 0.0 }
 0x277   : > { %2000 = vrot.lane.b32.xlu1 %v1957_v16, %s17845_s11  ;;  %v2168_v43 = vadd.f32 %v18549_v35, %v2109_v61  ;;  %s13914_s11 = sld [smem:[#allocation5 + $0x3]]  ;;  %v18585_v16 = vsel %vm2207_vm9, %v2165_v46, %v2250_v63  ;;  %v3977_v61 = vadd.f32 %v18567_v52, %v3880_v6  ;;  %v2177_v46 = vadd.f32 %v18549_v35, %v2118_v13 }
 0x278   : > { %v2180_v47 = vadd.f32 %v18549_v35, %v2121_v15  ;;  %vm2213_vm14 = vcmp.ge.f32.partialorder %v2171_v22, 0.0  ;;  %v2127_v63 = vmul.f32 %v18538_v23, %v18381_v57  ;;  %v3987_v15 = vadd.f32 %v18567_v52, %v3890_v50 }
 0x279   : > { %v2253_v55 = vmul.f32 %v18562_v49, %v2168_v43  ;;  %vm2210_vm8 = vcmp.ge.f32.partialorder %v2168_v43, 0.0  ;;  %vm4048_vm2 = vcmp.ge.f32.partialorder %v3977_v61, 0.0  ;;  %v2262_v13 = vmul.f32 %v18562_v49, %v2177_v46 }
 0x27a   : > { %v2265_v4 = vmul.f32 %v18562_v49, %v2180_v47  ;;  %vm2219_vm3 = vcmp.ge.f32.partialorder %v2177_v46, 0.0  ;;  %vm2222_vm4 = vcmp.ge.f32.partialorder %v2180_v47, 0.0  ;;  %v2186_v50 = vadd.f32 %v18549_v35, %v2127_v63 }
 0x27b   : > { %v18577_v7 = vsel %vm2210_vm8, %v2168_v43, %v2253_v55  ;;  %v2259_v43 = vmul.f32 %v18562_v49, %v2174_v8  ;;  %v2256_v55 = vmul.f32 %v18562_v49, %v2171_v22  ;;  %v18638_v60 = vsel %vm2219_vm3, %v2177_v46, %v2262_v13 }
 0x27c   : > { %v18652_v63 = vrot.slane %v18544_v30, %v18208_v29  ;;  %v2130_v13 = vmul.f32 %v18538_v23, %v18383_v12  ;;  %v18667_v30 = vrot.slane %v18557_v42, %v18208_v29  ;;  %vm2228_vm6 = vcmp.ge.f32.partialorder %v2186_v50, 0.0 }
 0x27d   : > { %v18581_v10 = vstv %s13914_s11  ;;  %v18605_v1 = vsel %vm2216_vm12, %v2174_v8, %v2259_v43  ;;  %v3992_v8 = vadd.f32 %v18567_v52, %v3895_v58  ;;  %v18625_v43 = vsel %vm2213_vm14, %v2171_v22, %v2256_v55  ;;  %s22849_s11 = sld [smem:[#allocation16_spill]] }
 0x27e   : > { %v4114_v17 = vmul.f32 %v18581_v10, %v3972_v0  ;;  %v4109_v36 = vmul.f32 %v18581_v10, %v3967_v5  ;;  %v4124_v44 = vmul.f32 %v18581_v10, %v3982_v51  ;;  %v4119_v62 = vmul.f32 %v18581_v10, %v3977_v61 }
 0x27f   : > { %v18640_v22 = vsel %vm2222_vm4, %v2180_v47, %v2265_v4  ;;  %v4134_v46 = vmul.f32 %v18581_v10, %v3992_v8  ;;  %vm4063_vm5 = vcmp.ge.f32.partialorder %v3992_v8, 0.0  ;;  %v2133_v4 = vmul.f32 %v18538_v23, %v18390_v14 }
 0x280   : > { %v18598_v53 = vsel %vm4043_vm11, %v3972_v0, %v4114_v17  ;;  %v18607_v6 = vsel %vm4053_vm13, %v3982_v51, %v4124_v44  ;;  %v3905_v0 = vmul.f32 %v18554_v39, %v18381_v57  ;;  %v2124_v17 = vmul.f32 %v18538_v23, %v18375_v9 }
 0x281   : > { %v3900_v57 = vmul.f32 %v18554_v39, %v18375_v9  ;;  %v18622_v51 = vsel %vm4038_vm10, %v3967_v5, %v4109_v36  ;;  %v18628_v44 = vsel %vm4048_vm2, %v3977_v61, %v4119_v62  ;;  %v4129_v61 = vmul.f32 %v18581_v10, %v3987_v15 }
 0x282   : > { %v4002_v5 = vadd.f32 %v18567_v52, %v3905_v0  ;;  %v2183_v55 = vadd.f32 %v18549_v35, %v2124_v17  ;;  %v18648_v62 = vrot.slane %v18534_v20, %v18208_v29  ;;  %v2271_v0 = vmul.f32 %v18562_v49, %v2186_v50 }
 0x283   : > { %v3997_v47 = vadd.f32 %v18567_v52, %v3900_v57  ;;  %v18663_v17 = vrot.slane %v18541_v24, %v18208_v29  ;;  %vm4058_vm7 = vcmp.ge.f32.partialorder %v3987_v15, 0.0  ;;  %v18676_v42 = vsel %vm4063_vm5, %v3992_v8, %v4134_v46 }
 0x284   : > { %v4144_v57 = vmul.f32 %v18581_v10, %v4002_v5  ;;  %vm2225_vm8 = vcmp.ge.f32.partialorder %v2183_v55, 0.0  ;;  %v2268_v32 = vmul.f32 %v18562_v49, %v2183_v55  ;;  %vm4073_vm9 = vcmp.ge.f32.partialorder %v4002_v5, 0.0 }
 0x285   : > { %v4139_v9 = vmul.f32 %v18581_v10, %v3997_v47  ;;  %v18679_v58 = vsel %vm2228_vm6, %v2186_v50, %v2271_v0  ;;  %vm4068_vm10 = vcmp.ge.f32.partialorder %v3997_v47, 0.0  ;;  %v2189_v40 = vadd.f32 %v18549_v35, %v2130_v13 }
 0x286   : > { %v18688_v27 = vsel %vm4058_vm7, %v3987_v15, %v4129_v61  ;;  %v18697_v13 = vsel %vm2225_vm8, %v2183_v55, %v2268_v32 }
 0x287   : > { %v18708_v61 = vsel %vm4068_vm10, %v3997_v47, %v4139_v9  ;;  %vm2231_vm11 = vcmp.ge.f32.partialorder %v2189_v40, 0.0  ;;  %v2274_v47 = vmul.f32 %v18562_v49, %v2189_v40 }
 0x2b7   : > { %v1975_v3 = vpop.permute.xlu0 %1974 }
 0x2b8   : > { %2017 = vst.msk [vmem:[#allocation2 + $0x8] sm:$0xff] %vm2016_vm15, %v1975_v3 }
 0x2b9   : > { %2019 = vst.msk [vmem:[#allocation2 + $0x10] sm:$0xff] %vm2018_vm0, %v1975_v3  ;;  %v18683_v3 = vadd.f32 %v18549_v35, %v2133_v4 }
 0x2bb   : > { %v1977_v36 = vpop.permute.xlu0 %1976  ;;  %vm2234_vm12 = vcmp.ge.f32.partialorder %v18683_v3, 0.0  ;;  %v2277_v32 = vmul.f32 %v18562_v49, %v18683_v3 }
 0x2bc   : > { %2020 = vst.msk [vmem:[#allocation2 + $0x30] sm:$0xff] %vm2016_vm15, %v1977_v36 }
 0x2bd   : > { %2021 = vst.msk [vmem:[#allocation2 + $0x38] sm:$0xff] %vm2018_vm0, %v1977_v36 }
 0x2bf   : > { %v1979_v36 = vpop.permute.xlu1 %1978  ;;  %v2048_v56 = vld [vmem:[#allocation2 + $0x8] sm:$0xff] }
 0x2c0   : > { %2022 = vst.msk [vmem:[#allocation2 + $0x58] sm:$0xff] %vm2016_vm15, %v1979_v36  ;;  %v2107_v41 = vmul.f32 %v18648_v62, %v2048_v56  ;;  %v3871_v2 = vmul.f32 %v18652_v63, %v2048_v56  ;;  %v18690_v56 = vsel %vm4073_vm9, %v4002_v5, %v4144_v57 }
 0x2c1   : > { %2023 = vst.msk [vmem:[#allocation2 + $0x60] sm:$0xff] %vm2018_vm0, %v1979_v36 }
 0x2c2   : > { %v2166_v25 = vadd.f32 %v18663_v17, %v2107_v41  ;;  %v3968_v36 = vadd.f32 %v18667_v30, %v3871_v2  ;;  %v3910_v41 = vmul.f32 %v18554_v39, %v18383_v12  ;;  %v3915_v12 = vmul.f32 %v18554_v39, %v18390_v14 }
 0x2c3   : > { %v1981_v8 = vpop.permute.xlu1 %1980  ;;  %v2051_v46 = vld [vmem:[#allocation2 + $0x30] sm:$0xff] }
 0x2c4   : > { %2024 = vst.msk [vmem:[#allocation2 + $0x80] sm:$0xff] %vm2016_vm15, %v1981_v8  ;;  %v2110_v2 = vmul.f32 %v18648_v62, %v2051_v46  ;;  %v3876_v15 = vmul.f32 %v18652_v63, %v2051_v46  ;;  %v2251_v4 = vmul.f32 %v18562_v49, %v2166_v25  ;;  %vm2208_vm13 = vcmp.ge.f32.partialorder %v2166_v25, 0.0 }
 0x2c5   : > { %2025 = vst.msk [vmem:[#allocation2 + $0x88] sm:$0xff] %vm2018_vm0, %v1981_v8  ;;  %v4110_v8 = vmul.f32 %v18581_v10, %v3968_v36  ;;  %vm4039_vm14 = vcmp.ge.f32.partialorder %v3968_v36, 0.0  ;;  %v18729_v50 = vadd.f32 %v18567_v52, %v3910_v41  ;;  %v18732_v59 = vadd.f32 %v18567_v52, %v3915_v12 }
 0x2c6   : > { %v2169_v55 = vadd.f32 %v18663_v17, %v2110_v2  ;;  %v3973_v57 = vadd.f32 %v18667_v30, %v3876_v15 }
 0x2c7   : > { %v1983_v46 = vpop.permute.xlu0 %1982  ;;  %v2054_v9 = vld [vmem:[#allocation2 + $0x58] sm:$0xff]  ;;  %v4180_v34 = vsel %vm4039_vm14, %v3968_v36, %v4110_v8  ;;  %v22825_v36 = vpack.c.bf16 %v18577_v7, %v18585_v16  ;;  %vm4078_vm6 = vcmp.ge.f32.partialorder %v18729_v50, 0.0  ;;  %v18773_v7 = vmul.f32 %v18554_v39, %v18397_v18 }
 0x2c8   : > { %2026 = vst.msk [vmem:[#allocation2 + $0xa8] sm:$0xff] %vm2016_vm15, %v1983_v46  ;;  %vm2211_vm2 = vcmp.ge.f32.partialorder %v2169_v55, 0.0  ;;  %v2254_v14 = vmul.f32 %v18562_v49, %v2169_v55  ;;  %vm4044_vm3 = vcmp.ge.f32.partialorder %v3973_v57, 0.0  ;;  %v4115_v2 = vmul.f32 %v18581_v10, %v3973_v57 }
 0x2c9   : > { %2027 = vst.msk [vmem:[#allocation2 + $0xb0] sm:$0xff] %vm2018_vm0, %v1983_v46  ;;  %v1985_v15 = vpop.permute.xlu1 %1984  ;;  %v2113_v5 = vmul.f32 %v18648_v62, %v2054_v9  ;;  %v3881_v0 = vmul.f32 %v18652_v63, %v2054_v9  ;;  %v2293_v46 = vsel %vm2208_vm13, %v2166_v25, %v2251_v4  ;;  %v18748_v25 = vmul.f32 %v18538_v23, %v18397_v18 }
 0x2ca   : > { %2028 = vst.msk [vmem:[#allocation2 + $0xd0] sm:$0xff] %vm2016_vm15, %v1985_v15  ;;  %v2296_v38 = vsel %vm2211_vm2, %v2169_v55, %v2254_v14  ;;  %v4185_v54 = vsel %vm4044_vm3, %v3973_v57, %v4115_v2  ;;  %v17408_v55 = vld [vmem:[%s17924_s30 + $0x88] sm:$0xff]   ;;  %v18768_v4 = vsel %vm2234_vm12, %v18683_v3, %v2277_v32  ;;  %v18777_v16 = vmul.f32 %v18554_v39, %v18402_v21 }
 0x2cb   : > { %2029 = vst.msk [vmem:[#allocation2 + $0xd8] sm:$0xff] %vm2018_vm0, %v1985_v15  ;;  %v2335_v31 = vpack.c.bf16 %v2296_v38, %v2293_v46  ;;  %v4250_v48 = vpack.c.bf16 %v4185_v54, %v4180_v34  ;;  %v2057_v9 = vld [vmem:[#allocation2 + $0x80] sm:$0xff]  ;;  %v2172_v41 = vadd.f32 %v18663_v17, %v2113_v5  ;;  %v3978_v37 = vadd.f32 %v18667_v30, %v3881_v0 }
 0x2cc   : > { %v2116_v12 = vmul.f32 %v18648_v62, %v2057_v9  ;;  %v3886_v45 = vmul.f32 %v18652_v63, %v2057_v9  ;;  %v18744_v15 = vsel %vm2231_vm11, %v2189_v40, %v2274_v47  ;;  %v18754_v38 = vmul.f32 %v18538_v23, %v18402_v21 }
 0x2cd   : > { %2599 = vmatprep.mubr.bf16.mxu0 %v2335_v31  ;;  %4805 = vmatprep.mubr.bf16.mxu1 %v4250_v48  ;;  %v2257_v34 = vmul.f32 %v18562_v49, %v2172_v41  ;;  %v4120_v54 = vmul.f32 %v18581_v10, %v3978_v37  ;;  %v22826_v40 = vpack.c.bf16 %v18598_v53, %v18622_v51  ;;  %vm2214_vm4 = vcmp.ge.f32.partialorder %v2172_v41, 0.0 }
 0x2ce   : > { %2600 = vmatmul.mubr.bf16.vlgmr.msra.gmra.mrb[28].mxu0 %v22825_v36  ;;  %v2175_v0 = vadd.f32 %v18663_v17, %v2116_v12  ;;  %v3983_v31 = vadd.f32 %v18667_v30, %v3886_v45  ;;  %vm4049_vm5 = vcmp.ge.f32.partialorder %v3978_v37, 0.0  ;;  %v22827_v53 = vmov 0.0   ;;  %v17409_v12 = vld [vmem:[%s17924_s30 + $0x90] sm:$0xff]  }
 0x2cf   : > { %4806 = vmatmul.mubr.bf16.vlgmr.msra.gmra.mrb[28].mxu1 %v22826_v40  ;;  %v1987_v48 = vpop.permute.xlu0 %1986  ;;  %15186 = vmatpush3.bf16.msra.mxu0 %v17407_v33  ;;  %v2060_v5 = vld [vmem:[#allocation2 + $0xa8] sm:$0xff]  ;;  %v2299_v18 = vsel %vm2214_vm4, %v2172_v41, %v2257_v34  ;;  %v4190_v3 = vsel %vm4049_vm5, %v3978_v37, %v4120_v54  ;;  %vm4083_vm9 = vcmp.ge.f32.partialorder %v18732_v59, 0.0  ;;  %v2346_v36 = vpack.c.bf16 %v18768_v4, %v18744_v15 }
 0x2d0   : > { %2030 = vst.msk [vmem:[#allocation2 + $0xf8] sm:$0xff] %vm2016_vm15, %v1987_v48  ;;  %vm2217_vm7 = vcmp.ge.f32.partialorder %v2175_v0, 0.0  ;;  %v2260_v45 = vmul.f32 %v18562_v49, %v2175_v0  ;;  %vm4054_vm8 = vcmp.ge.f32.partialorder %v3983_v31, 0.0  ;;  %v4125_v33 = vmul.f32 %v18581_v10, %v3983_v31  ;;  %15187 = vmatprep.subr.bf16.mxu0 %v22827_v53 }
 0x2d1   : > { %2031 = vst.msk [vmem:[#allocation2 + $0x100] sm:$0xff] %vm2018_vm0, %v1987_v48  ;;  %v1989_v51 = vpop.permute.xlu1 %1988  ;;  %v2063_v21 = vld [vmem:[#allocation2 + $0xd0] sm:$0xff]  ;;  %v2119_v32 = vmul.f32 %v18648_v62, %v2060_v5  ;;  %v3891_v57 = vmul.f32 %v18652_v63, %v2060_v5  ;;  %v4149_v40 = vmul.f32 %v18581_v10, %v18729_v50  ;;  %v22828_v48 = vpack.c.bf16 %v18605_v1, %v18625_v43 }
 0x2d2   : > { %2032 = vst.msk [vmem:[#allocation2 + $0x120] sm:$0xff] %vm2016_vm15, %v1989_v51  ;;  %v2302_v8 = vsel %vm2217_vm7, %v2175_v0, %v2260_v45  ;;  %v4195_v47 = vsel %vm4054_vm8, %v3983_v31, %v4125_v33  ;;  %v2122_v14 = vmul.f32 %v18648_v62, %v2063_v21  ;;  %v3896_v2 = vmul.f32 %v18652_v63, %v2063_v21 }
 0x2d3   : > { %2033 = vst.msk [vmem:[#allocation2 + $0x128] sm:$0xff] %vm2018_vm0, %v1989_v51  ;;  %v2338_v46 = vpack.c.bf16 %v2302_v8, %v2299_v18  ;;  %v4255_v37 = vpack.c.bf16 %v4195_v47, %v4190_v3  ;;  %v2178_v9 = vadd.f32 %v18663_v17, %v2119_v32  ;;  %15188 = vmatpush3.bf16.msra.mxu0 %v17408_v55  ;;  %vm2563_vm8 = vcmask 1043456  }
 0x2d4   : > { %v3988_v41 = vadd.f32 %v18667_v30, %v3891_v57  ;;  %v2181_v34 = vadd.f32 %v18663_v17, %v2122_v14  ;;  %v3993_v54 = vadd.f32 %v18667_v30, %v3896_v2  ;;  %15189 = vmatprep.subr.bf16.mxu0 %v22827_v53  ;;  %v22829_v5 = vpack.c.bf16 %v18607_v6, %v18628_v44  ;;  %v17410_v57 = vld [vmem:[%s17924_s30 + $0x98] sm:$0xff]  }
 0x2d5   : > { %2607 = vmatprep.mubr.bf16.mxu0 %v2338_v46  ;;  %4815 = vmatprep.mubr.bf16.mxu1 %v4255_v37  ;;  %vm2220_vm10 = vcmp.ge.f32.partialorder %v2178_v9, 0.0  ;;  %v2263_v0 = vmul.f32 %v18562_v49, %v2178_v9  ;;  %v4154_v1 = vmul.f32 %v18581_v10, %v18732_v59  ;;  %v18817_v43 = vadd.f32 %v18549_v35, %v18748_v25 }
 0x2d6   : > { %vm4059_vm11 = vcmp.ge.f32.partialorder %v3988_v41, 0.0  ;;  %v4130_v31 = vmul.f32 %v18581_v10, %v3988_v41  ;;  %2608 = vmatmul.mubr.bf16.gmra.mrb[32].mxu0 %v22828_v48  ;;  %vm2223_vm12 = vcmp.ge.f32.partialorder %v2181_v34, 0.0  ;;  %v2266_v55 = vmul.f32 %v18562_v49, %v2181_v34 }
 0x2d7   : > { %4816 = vmatmul.mubr.bf16.gmra.mrb[32].mxu1 %v22829_v5  ;;  %vm4064_vm13 = vcmp.ge.f32.partialorder %v3993_v54, 0.0  ;;  %v4135_v45 = vmul.f32 %v18581_v10, %v3993_v54  ;;  %v1991_v33 = vpop.permute.xlu0 %1990  ;;  %v2305_v51 = vsel %vm2220_vm10, %v2178_v9, %v2263_v0  ;;  %v2066_v3 = vld [vmem:[#allocation2 + $0xf8] sm:$0xff]  ;;  %15190 = vmatpush3.bf16.msra.mxu0 %v17409_v12  ;;  %v18828_v25 = vsel %vm4078_vm6, %v18729_v50, %v4149_v40 }
 0x2d8   : > { %v4200_v18 = vsel %vm4059_vm11, %v3988_v41, %v4130_v31  ;;  %2034 = vst.msk [vmem:[#allocation2 + $0x148] sm:$0xff] %vm2016_vm15, %v1991_v33  ;;  %v2308_v6 = vsel %vm2223_vm12, %v2181_v34, %v2266_v55  ;;  %v2125_v21 = vmul.f32 %v18648_v62, %v2066_v3  ;;  %v3901_v32 = vmul.f32 %v18652_v63, %v2066_v3  ;;  %v17411_v31 = vld [vmem:[%s17924_s30 + $0xa0] sm:$0xff]   ;;  %v17412_v3 = vld [vmem:[%s17924_s30 + $0xa8] sm:$0xff]  }
 0x2d9   : > { %2035 = vst.msk [vmem:[#allocation2 + $0x150] sm:$0xff] %vm2018_vm0, %v1991_v33  ;;  %v4205_v44 = vsel %vm4064_vm13, %v3993_v54, %v4135_v45  ;;  %15191 = vmatprep.subr.bf16.mxu0 %v22827_v53  ;;  %v1993_v8 = vpop.permute.xlu1 %1992  ;;  %v2341_v47 = vpack.c.bf16 %v2308_v6, %v2305_v51  ;;  %v2069_v2 = vld [vmem:[#allocation2 + $0x120] sm:$0xff]  ;;  %v18832_v46 = vadd.f32 %v18549_v35, %v18754_v38  ;;  %vm2237_vm2 = vcmp.ge.f32.partialorder %v18817_v43, 0.0 }
 0x2da   : > { %v4260_v14 = vpack.c.bf16 %v4205_v44, %v4200_v18  ;;  %2036 = vst.msk [vmem:[#allocation2 + $0x170] sm:$0xff] %vm2016_vm15, %v1993_v8  ;;  %v2128_v37 = vmul.f32 %v18648_v62, %v2069_v2  ;;  %v2184_v9 = vadd.f32 %v18663_v17, %v2125_v21  ;;  %v3906_v41 = vmul.f32 %v18652_v63, %v2069_v2 }
 0x2db   : > { %2037 = vst.msk [vmem:[#allocation2 + $0x178] sm:$0xff] %vm2018_vm0, %v1993_v8  ;;  %v3998_v12 = vadd.f32 %v18667_v30, %v3901_v32  ;;  %2615 = vmatprep.mubr.bf16.mxu0 %v2341_v47  ;;  %v18842_v50 = vadd.f32 %v18567_v52, %v18773_v7  ;;  %v18846_v38 = vadd.f32 %v18567_v52, %v18777_v16  ;;  %vm2240_vm3 = vcmp.ge.f32.partialorder %v18832_v46, 0.0 }
 0x2dc   : > { %4825 = vmatprep.mubr.bf16.mxu1 %v4260_v14  ;;  %v18850_v34 = vmul.f32 %v18538_v23, %v18409_v28  ;;  %v2187_v54 = vadd.f32 %v18663_v17, %v2128_v37  ;;  %v2269_v40 = vmul.f32 %v18562_v49, %v2184_v9  ;;  %v4003_v0 = vadd.f32 %v18667_v30, %v3906_v41 }
 0x2dd   : > { %15192 = vmatpush3.bf16.msra.mxu0 %v17410_v57  ;;  %v18858_v7 = vsel %vm4083_vm9, %v18732_v59, %v4154_v1  ;;  %vm2226_vm14 = vcmp.ge.f32.partialorder %v2184_v9, 0.0  ;;  %v4140_v16 = vmul.f32 %v18581_v10, %v3998_v12  ;;  %v22830_v28 = vpack.c.bf16 %v18640_v22, %v18638_v60  ;;  %v17413_v57 = vld [vmem:[%s17924_s30 + $0xb0] ss:$0 sps:$4 sm:$0xff]  }
 0x2de   : > { %15193 = vmatprep.subr.bf16.mxu0 %v22827_v53  ;;  %v22831_v48 = vpack.c.bf16 %v18676_v42, %v18688_v27  ;;  %vm2229_vm4 = vcmp.ge.f32.partialorder %v2187_v54, 0.0  ;;  %v2272_v59 = vmul.f32 %v18562_v49, %v2187_v54  ;;  %vm4069_vm5 = vcmp.ge.f32.partialorder %v3998_v12, 0.0 }
 0x2df   : > { %2616 = vmatmul.mubr.bf16.gmra.mrb[36].mxu0 %v22830_v28  ;;  %vm4074_vm6 = vcmp.ge.f32.partialorder %v4003_v0, 0.0  ;;  %v1995_v5 = vpop.permute.xlu0 %1994  ;;  %v4145_v55 = vmul.f32 %v18581_v10, %v4003_v0  ;;  %v18873_v45 = vld [vmem:[#allocation2 + $0x148] sm:$0xff]  ;;  %v4269_v33 = vpack.c.bf16 %v18858_v7, %v18828_v25  ;;  %v2280_v60 = vmul.f32 %v18562_v49, %v18817_v43 }
 0x2e0   : > { %4826 = vmatmul.mubr.bf16.gmra.mrb[36].mxu1 %v22831_v48  ;;  %v2283_v27 = vmul.f32 %v18562_v49, %v18832_v46  ;;  %2038 = vst.msk [vmem:[#allocation2 + $0x198] sm:$0xff] %vm2016_vm15, %v1995_v5  ;;  %v2311_v22 = vsel %vm2226_vm14, %v2184_v9, %v2269_v40  ;;  %v2314_v42 = vsel %vm2229_vm4, %v2187_v54, %v2272_v59  ;;  %vm4088_vm7 = vcmp.ge.f32.partialorder %v18842_v50, 0.0  ;;  %v17414_v48 = vld [vmem:[%s22832_s23 + $0x40] sm:$0xff]  }
 0x2e1   : > { %2039 = vst.msk [vmem:[#allocation2 + $0x1a0] sm:$0xff] %vm2018_vm0, %v1995_v5  ;;  %v2131_v51 = vmul.f32 %v18648_v62, %v18873_v45  ;;  %v3911_v18 = vmul.f32 %v18652_v63, %v18873_v45  ;;  %15194 = vmatpush3.bf16.msra.mxu0 %v17411_v31  ;;  %v1997_v1 = vpop.permute.xlu1 %1996  ;;  %v2344_v6 = vpack.c.bf16 %v2314_v42, %v2311_v22  ;;  %v18892_v32 = vld [vmem:[#allocation2 + $0x170] sm:$0xff]  ;;  %vm4093_vm9 = vcmp.ge.f32.partialorder %v18846_v38, 0.0  ;;  %v17698_v31 = vld [vmem:[#allocation2 + $0x208] sm:$0xff] }
 0x2e2   : > { %v4210_v44 = vsel %vm4069_vm5, %v3998_v12, %v4140_v16  ;;  %v4215_v21 = vsel %vm4074_vm6, %v4003_v0, %v4145_v55  ;;  %15195 = vmatprep.subr.bf16.mxu0 %v22827_v53  ;;  %2040 = vst.msk [vmem:[#allocation2 + $0x1c0] sm:$0xff] %vm2016_vm15, %v1997_v1  ;;  %v2134_v47 = vmul.f32 %v18648_v62, %v18892_v32  ;;  %v2565_v28 = vsel %vm2563_vm8, %v17413_v57, 0 }
 0x2e3   : > { %2041 = vst.msk [vmem:[#allocation2 + $0x1c8] sm:$0xff] %vm2018_vm0, %v1997_v1  ;;  %v4265_v8 = vpack.c.bf16 %v4215_v21, %v4210_v44  ;;  %v2190_v14 = vadd.f32 %v18663_v17, %v2131_v51  ;;  %v3916_v2 = vmul.f32 %v18652_v63, %v18892_v32  ;;  %2623 = vmatprep.mubr.bf16.mxu0 %v2344_v6 }
 0x2e4   : > { %v4008_v37 = vadd.f32 %v18667_v30, %v3911_v18  ;;  %v18907_v9 = vsel %vm2237_vm2, %v18817_v43, %v2280_v60  ;;  %v4159_v41 = vmul.f32 %v18581_v10, %v18842_v50  ;;  %v4164_v12 = vmul.f32 %v18581_v10, %v18846_v38 }
 0x2e5   : > { %4835 = vmatprep.mubr.bf16.mxu1 %v4265_v8  ;;  %v2193_v54 = vadd.f32 %v18663_v17, %v2134_v47  ;;  %v2275_v40 = vmul.f32 %v18562_v49, %v2190_v14  ;;  %v4013_v0 = vadd.f32 %v18667_v30, %v3916_v2  ;;  %15196 = vmatpush3.bf16.msra.mxu0 %v17412_v3  ;;  %vm2232_vm10 = vcmp.ge.f32.partialorder %v2190_v14, 0.0 }
 0x2e6   : > { %v4150_v43 = vmul.f32 %v18581_v10, %v4008_v37  ;;  %v2145_v16 = vmul.f32 %v17698_v31, %v18538_v23  ;;  %15197 = vmatprep.subr.bf16.mxu0 %v22827_v53  ;;  %v22833_v59 = vpack.c.bf16 %v18679_v58, %v18697_v13  ;;  %v22834_v5 = vpack.c.bf16 %v18690_v56, %v18708_v61  ;;  %v17699_v56 = vld [vmem:[#allocation2 + $0x1e0] sm:$0xff] }
 0x2e7   : > { %vm2235_vm11 = vcmp.ge.f32.partialorder %v2193_v54, 0.0  ;;  %v2278_v55 = vmul.f32 %v18562_v49, %v2193_v54  ;;  %vm4079_vm12 = vcmp.ge.f32.partialorder %v4008_v37, 0.0  ;;  %vm4084_vm13 = vcmp.ge.f32.partialorder %v4013_v0, 0.0  ;;  %v1999_v60 = vpop.permute.xlu0 %1998  ;;  %v18930_v22 = vld [vmem:[#allocation2 + $0x198] sm:$0xff] }
 0x2e8   : > { %2624 = vmatmul.mubr.bf16.gmra.mrb[40].mxu0 %v22833_v59  ;;  %4836 = vmatmul.mubr.bf16.gmra.mrb[40].mxu1 %v22834_v5  ;;  %v4155_v23 = vmul.f32 %v18581_v10, %v4013_v0  ;;  %v18935_v42 = vsel %vm2240_vm3, %v18832_v46, %v2283_v27  ;;  %v18939_v58 = vadd.f32 %v18549_v35, %v18850_v34 }
 0x2e9   : > { %v3930_v13 = vmul.f32 %v17699_v56, %v18554_v39  ;;  %2042 = vst.msk [vmem:[#allocation2 + $0x1e8] sm:$0xff] %vm2016_vm15, %v1999_v60  ;;  %v2317_v61 = vsel %vm2232_vm10, %v2190_v14, %v2275_v40  ;;  %v2320_v51 = vsel %vm2235_vm11, %v2193_v54, %v2278_v55  ;;  %v2137_v18 = vmul.f32 %v18648_v62, %v18930_v22  ;;  %v2001_v27 = vpop.permute.xlu1 %2000  ;;  %v18951_v6 = vld [vmem:[#allocation2 + $0x1c0] sm:$0xff] }
 0x2ea   : > { %2043 = vst.msk [vmem:[#allocation2 + $0x1f0] sm:$0xff] %vm2018_vm0, %v1999_v60  ;;  %v3921_v46 = vmul.f32 %v18652_v63, %v18930_v22  ;;  %15198 = vmatpush3.bf16.msra.mxu0 %v2565_v28  ;;  %v2347_v34 = vpack.c.bf16 %v2320_v51, %v2317_v61  ;;  %v4220_v3 = vsel %vm4079_vm12, %v4008_v37, %v4150_v43  ;;  %2045 = vst.msk [vmem:[#allocation2 + $0x218] sm:$0xff] %vm2018_vm0, %v2001_v27 }
 0x2eb   : > { %v4225_v1 = vsel %vm4084_vm13, %v4013_v0, %v4155_v23  ;;  %v18956_v44 = vsel %vm4093_vm9, %v18846_v38, %v4164_v12  ;;  %14849 = vmatprep.subr.bf16.mxu0 %v17414_v48  ;;  %2044 = vst.msk [vmem:[#allocation2 + $0x210] sm:$0xff] %vm2016_vm15, %v2001_v27  ;;  %v2140_v57 = vmul.f32 %v18648_v62, %v18951_v6  ;;  %vm2243_vm4 = vcmp.ge.f32.partialorder %v18939_v58, 0.0  ;;  %v2052_v23 = vld [vmem:[#allocation2 + $0x38] sm:$0xff] }
 0x2ec   : > { %v4270_v21 = vpack.c.bf16 %v4225_v1, %v4220_v3  ;;  %v2196_v8 = vadd.f32 %v18663_v17, %v2137_v18  ;;  %v3926_v47 = vmul.f32 %v18652_v63, %v18951_v6  ;;  %2631 = vmatprep.mubr.bf16.mxu0 %v2347_v34  ;;  %v4018_v14 = vadd.f32 %v18667_v30, %v3921_v46  ;;  %v2049_v18 = vld [vmem:[#allocation2 + $0x10] sm:$0xff]  ;;  %v2058_v1 = vld [vmem:[#allocation2 + $0x88] sm:$0xff] }
 0x2ed   : > { %v2349_v38 = vpack.c.bf16 %v18935_v42, %v18907_v9  ;;  %v4229_v2 = vsel %vm4088_vm7, %v18842_v50, %v4159_v41  ;;  %v3935_v37 = vmul.f32 %v17698_v31, %v18554_v39  ;;  %v2199_v12 = vadd.f32 %v18663_v17, %v2140_v57 }
 0x2ee   : > { %4845 = vmatprep.mubr.bf16.mxu1 %v4270_v21  ;;  %v2281_v54 = vmul.f32 %v18562_v49, %v2196_v8  ;;  %v4023_v40 = vadd.f32 %v18667_v30, %v3926_v47  ;;  %v2204_v0 = vadd.f32 %v18549_v35, %v2145_v16  ;;  %vm2238_vm15 = vcmp.ge.f32.partialorder %v2196_v8, 0.0  ;;  %v2055_v47 = vld [vmem:[#allocation2 + $0x60] sm:$0xff] }
 0x2ef   : > { %v4160_v43 = vmul.f32 %v18581_v10, %v4018_v14  ;;  %v4274_v9 = vpack.c.bf16 %v18956_v44, %v4229_v2  ;;  %v18980_v28 = vmul.f32 %v18562_v49, %v18939_v58  ;;  %vm2241_vm14 = vcmp.ge.f32.partialorder %v2199_v12, 0.0 }
 0x2f0   : > { %2632 = vmatmul.mubr.bf16.gmra.mrb[44].mxu0 %v2346_v36  ;;  %4846 = vmatmul.mubr.bf16.gmra.mrb[44].mxu1 %v4269_v33  ;;  %v2284_v35 = vmul.f32 %v18562_v49, %v2199_v12  ;;  %vm4089_vm2 = vcmp.ge.f32.partialorder %v4018_v14, 0.0  ;;  %vm4094_vm3 = vcmp.ge.f32.partialorder %v4023_v40, 0.0  ;;  %v18990_v39 = vsub.s32 2, %v18201_v26  ;;  %v18993_v41 = vld [vmem:[#allocation2 + $0x1e8] sm:$0xff] }
 0x2f1   : > { %v4165_v50 = vmul.f32 %v18581_v10, %v4023_v40  ;;  %v4027_v31 = vadd.f32 %v18567_v52, %v3930_v13  ;;  %v4032_v15 = vadd.f32 %v18567_v52, %v3935_v37  ;;  %v2323_v4 = vsel %vm2238_vm15, %v2196_v8, %v2281_v54 }
 0x2f2   : > { %v2326_v36 = vsel %vm2241_vm14, %v2199_v12, %v2284_v35  ;;  %v2143_v25 = vmul.f32 %v18648_v62, %v18993_v41  ;;  %v3931_v7 = vmul.f32 %v18652_v63, %v18993_v41  ;;  %v4230_v16 = vsel %vm4089_vm2, %v4018_v14, %v4160_v43  ;;  %v19002_v59 = vld [vmem:[#allocation2 + $0x210] sm:$0xff] }
 0x2f3   : > { %v2350_v33 = vpack.c.bf16 %v2326_v36, %v2323_v4  ;;  %v4235_v48 = vsel %vm4094_vm3, %v4023_v40, %v4165_v50  ;;  %vm2246_vm5 = vcmp.ge.f32.partialorder %v2204_v0, 0.0  ;;  %v2146_v52 = vmul.f32 %v18648_v62, %v19002_v59  ;;  %v19047_v4 = vld [vmem:[%s22805_s12] sm:$0xf] }
 0x2f4   : > { %v4275_v5 = vpack.c.bf16 %v4235_v48, %v4230_v16  ;;  %v2202_v55 = vadd.f32 %v18663_v17, %v2143_v25  ;;  %v3936_v60 = vmul.f32 %v18652_v63, %v19002_v59  ;;  %v19011_v42 = vrot.slane %v18534_v20, %v18990_v39 }
 0x2f5   : > { %2639 = vmatprep.mubr.bf16.mxu0 %v2350_v33  ;;  %v4028_v56 = vadd.f32 %v18667_v30, %v3931_v7  ;;  %v2289_v13 = vmul.f32 %v18562_v49, %v2204_v0  ;;  %vm4098_vm6 = vcmp.ge.f32.partialorder %v4027_v31, 0.0  ;;  %v2205_v61 = vadd.f32 %v18663_v17, %v2146_v52  ;;  %v2061_v52 = vld [vmem:[#allocation2 + $0xb0] sm:$0xff] }
 0x2f6   : > { %4855 = vmatprep.mubr.bf16.mxu1 %v4275_v5  ;;  %v2287_v62 = vmul.f32 %v18562_v49, %v2202_v55  ;;  %v4033_v51 = vadd.f32 %v18667_v30, %v3936_v60  ;;  %v4174_v63 = vmul.f32 %v18581_v10, %v4032_v15  ;;  %vm2244_vm7 = vcmp.ge.f32.partialorder %v2202_v55, 0.0  ;;  %v19060_v60 = vld [vmem:[%s17939_s20] sm:$0xf] }
 0x2f7   : > { %v4170_v20 = vmul.f32 %v18581_v10, %v4028_v56  ;;  %vm4103_vm9 = vcmp.ge.f32.partialorder %v4032_v15, 0.0  ;;  %v2111_v46 = vmul.f32 %v19011_v42, %v2052_v23  ;;  %vm2247_vm10 = vcmp.ge.f32.partialorder %v2205_v61, 0.0 }
 0x2f8   : > { %2640 = vmatmul.mubr.bf16.gmra.mrb[48].mxu0 %v2349_v38  ;;  %4856 = vmatmul.mubr.bf16.gmra.mrb[48].mxu1 %v4274_v9  ;;  %v2290_v27 = vmul.f32 %v18562_v49, %v2205_v61  ;;  %vm4099_vm11 = vcmp.ge.f32.partialorder %v4028_v56, 0.0  ;;  %vm4104_vm12 = vcmp.ge.f32.partialorder %v4033_v51, 0.0  ;;  %v19024_v17 = vrot.slane %v18541_v24, %v18990_v39 }
 0x2f9   : > { %v4175_v30 = vmul.f32 %v18581_v10, %v4033_v51  ;;  %v4169_v34 = vmul.f32 %v18581_v10, %v4027_v31  ;;  %v2108_v3 = vmul.f32 %v19011_v42, %v2049_v18  ;;  %v2329_v44 = vsel %vm2244_vm7, %v2202_v55, %v2287_v62  ;;  %v17415_v55 = vld [vmem:[%s22832_s23] sm:$0xff]  }
 0x2fa   : > { %v2332_v21 = vsel %vm2247_vm10, %v2205_v61, %v2290_v27  ;;  %v2331_v57 = vsel %vm2246_vm5, %v2204_v0, %v2289_v13  ;;  %v4244_v8 = vsel %vm4103_vm9, %v4032_v15, %v4174_v63  ;;  %v4240_v38 = vsel %vm4099_vm11, %v4028_v56, %v4170_v20  ;;  %v17416_v13 = vld [vmem:[%s22832_s23 + $0x48] sm:$0xff]   ;;  %v17418_v27 = vld [vmem:[%s22832_s23 + $0x50] sm:$0xff]  }
 0x2fb   : > { %v2353_v14 = vpack.c.bf16 %v2332_v21, %v2329_v44  ;;  %v4245_v2 = vsel %vm4104_vm12, %v4033_v51, %v4175_v30  ;;  %v2170_v24 = vadd.f32 %v19024_v17, %v2111_v46  ;;  %v2117_v12 = vmul.f32 %v19011_v42, %v2058_v1  ;;  %v17417_v20 = vld [vmem:[%s22832_s23 + $0x8] sm:$0xff]  }
 0x2fc   : > { %v4280_v37 = vpack.c.bf16 %v4245_v2, %v4240_v38  ;;  %v2328_v54 = vsel %vm2243_vm4, %v18939_v58, %v18980_v28  ;;  %v4239_v40 = vsel %vm4098_vm6, %v4027_v31, %v4169_v34  ;;  %v2167_v0 = vadd.f32 %v19024_v17, %v2108_v3  ;;  %v2064_v31 = vld [vmem:[#allocation2 + $0xd8] sm:$0xff] }
 0x2fd   : > { %2647 = vmatprep.mubr.bf16.mxu0 %v2353_v14  ;;  %v2114_v43 = vmul.f32 %v19011_v42, %v2055_v47  ;;  %v2352_v9 = vpack.c.bf16 %v2331_v57, %v2328_v54  ;;  %v4279_v35 = vpack.c.bf16 %v4244_v8, %v4239_v40  ;;  %v2255_v50 = vmul.f32 %v18562_v49, %v2170_v24  ;;  %v2070_v8 = vld [vmem:[#allocation2 + $0x128] sm:$0xff]  ;;  %v2067_v14 = vld [vmem:[#allocation2 + $0x100] sm:$0xff] }
 0x2fe   : > { %4865 = vmatprep.mubr.bf16.mxu1 %v4280_v37  ;;  %vm2212_vm13 = vcmp.ge.f32.partialorder %v2170_v24, 0.0  ;;  %v2176_v15 = vadd.f32 %v19024_v17, %v2117_v12  ;;  %vm17847_vm15 = vmmov 0   ;;  %v2252_v58 = vmul.f32 %v18562_v49, %v2167_v0  ;;  %v17420_v37 = vld [vmem:[%s22832_s23 + $0x58] sm:$0xff]  }
 0x2ff   : > { %v2173_v28 = vadd.f32 %v19024_v17, %v2114_v43  ;;  %vm2209_vm14 = vcmp.ge.f32.partialorder %v2167_v0, 0.0  ;;  %v19051_v36 = vrot.slane %v19047_v4, %v18208_v29  ;;  %v2297_v25 = vsel %vm2212_vm13, %v2170_v24, %v2255_v50  ;;  %v17421_v50 = vld [vmem:[%s22832_s23 + $0x18] sm:$0xff]  }
 0x300   : > { %2648 = vmatmul.mubr.bf16.gmra.mrb[52].mxu0 %v2352_v9  ;;  %4866 = vmatmul.mubr.bf16.gmra.mrb[52].mxu1 %v4279_v35  ;;  %v2261_v7 = vmul.f32 %v18562_v49, %v2176_v15  ;;  %v2123_v33 = vmul.f32 %v19011_v42, %v2064_v31  ;;  %v2294_v48 = vsel %vm2209_vm14, %v2167_v0, %v2252_v58  ;;  %vm2218_vm2 = vcmp.ge.f32.partialorder %v2176_v15, 0.0  ;;  %v17422_v31 = vld [vmem:[%s22832_s23 + $0x60] sm:$0xff]  }
 0x301   : > { %15199 = vmatprep.mubr.msk.bf16.mxu0 %vm17847_vm15, %v22827_v53  ;;  %v2943_v16 = vmul.f32 %v19051_v36, %v18873_v45  ;;  %v2258_v5 = vmul.f32 %v18562_v49, %v2173_v28  ;;  %v19064_v23 = vrot.slane %v19060_v60, %v18208_v29  ;;  %v2336_v56 = vpack.c.bf16 %v2297_v25, %v2294_v48 }
 0x302   : > { %vm2215_vm3 = vcmp.ge.f32.partialorder %v2173_v28, 0.0  ;;  %v2947_v45 = vmul.f32 %v19051_v36, %v18892_v32  ;;  %v2303_v62 = vsel %vm2218_vm2, %v2176_v15, %v2261_v7  ;;  %v2120_v51 = vmul.f32 %v19011_v42, %v2061_v52 }
 0x303   : > { %v3021_v61 = vadd.f32 %v19064_v23, %v2943_v16  ;;  %v2182_v63 = vadd.f32 %v19024_v17, %v2123_v33  ;;  %v2300_v18 = vsel %vm2215_vm3, %v2173_v28, %v2258_v5  ;;  %v2951_v30 = vmul.f32 %v19051_v36, %v18930_v22  ;;  %v2076_v5 = vld [vmem:[#allocation2 + $0x178] sm:$0xff] }
 0x304   : > { %v3025_v46 = vadd.f32 %v19064_v23, %v2947_v45  ;;  %v2955_v34 = vmul.f32 %v19051_v36, %v18951_v6  ;;  %v2339_v3 = vpack.c.bf16 %v2303_v62, %v2300_v18  ;;  %v2959_v44 = vmul.f32 %v19051_v36, %v18993_v41  ;;  %v17419_v6 = vld [vmem:[%s22832_s23 + $0x10] sm:$0xff]   ;;  %v17424_v62 = vld [vmem:[%s22832_s23 + $0x68] sm:$0xff]  }
 0x305   : > { %vm3077_vm4 = vcmp.ge.f32.partialorder %v3021_v61, 0.0  ;;  %v3134_v32 = vmul.f32 %v18399_v19, %v3021_v61  ;;  %v2179_v21 = vadd.f32 %v19024_v17, %v2120_v51  ;;  %v2267_v57 = vmul.f32 %v18562_v49, %v2182_v63 }
 0x306   : > { %vm3081_vm5 = vcmp.ge.f32.partialorder %v3025_v46, 0.0  ;;  %v3138_v1 = vmul.f32 %v18399_v19, %v3025_v46  ;;  %v3029_v47 = vadd.f32 %v19064_v23, %v2951_v30  ;;  %v3033_v22 = vadd.f32 %v19064_v23, %v2955_v34  ;;  %v2082_v34 = vld [vmem:[#allocation2 + $0x1c8] sm:$0xff] }
 0x307   : > { %v19092_v38 = vsel %vm3077_vm4, %v3021_v61, %v3134_v32  ;;  %v2963_v41 = vmul.f32 %v19051_v36, %v19002_v59  ;;  %v3037_v24 = vadd.f32 %v19064_v23, %v2959_v44  ;;  %v2129_v40 = vmul.f32 %v19011_v42, %v2070_v8  ;;  %v2073_v61 = vld [vmem:[#allocation2 + $0x150] sm:$0xff]  ;;  %v17428_v8 = vld [vmem:[%s22832_s23 + $0x78] sm:$0xff]  }
 0x308   : > { %15200 = vmatmul.mubr.msk.bf16.vlgmr.msra.gmra.mrb[56].mxu0 %vm2018_vm0, %v2336_v56  ;;  %v19094_v2 = vsel %vm3081_vm5, %v3025_v46, %v3138_v1  ;;  %vm3085_vm6 = vcmp.ge.f32.partialorder %v3029_v47, 0.0  ;;  %vm3089_vm7 = vcmp.ge.f32.partialorder %v3033_v22, 0.0  ;;  %v3142_v54 = vmul.f32 %v18399_v19, %v3029_v47  ;;  %v17425_v46 = vld [vmem:[%s22832_s23 + $0x28] sm:$0xff]   ;;  %v17427_v44 = vld [vmem:[%s22832_s23 + $0x30] sm:$0xff]  }
 0x309   : > { %15203 = vmatprep.mubr.msk.bf16.mxu0 %vm17847_vm15, %v22827_v53  ;;  %14850 = vmatpush3.bf16.msra.mxu0 %v17415_v55  ;;  %v3230_v12 = vpack.c.bf16 %v19094_v2, %v19092_v38  ;;  %v3146_v0 = vmul.f32 %v18399_v19, %v3033_v22  ;;  %v3041_v43 = vadd.f32 %v19064_v23, %v2963_v41  ;;  %vm2224_vm9 = vcmp.ge.f32.partialorder %v2182_v63, 0.0  ;;  %v17429_v41 = vld [vmem:[%s22832_s23 + $0x38] sm:$0xff]   ;;  %v22847_v38 = vld [vmem:[#allocation51_spill] sm:$0xff] }
 0x30a   : > { %14851 = vmatprep.subr.bf16.mxu0 %v17416_v13  ;;  %v3150_v59 = vmul.f32 %v18399_v19, %v3037_v24  ;;  %v2264_v9 = vmul.f32 %v18562_v49, %v2179_v21  ;;  %v2126_v35 = vmul.f32 %v19011_v42, %v2067_v14  ;;  %vm3093_vm10 = vcmp.ge.f32.partialorder %v3037_v24, 0.0  ;;  %v17423_v13 = vld [vmem:[%s22832_s23 + $0x20] sm:$0xff]  }
 0x30b   : > { %v19113_v15 = vsel %vm3085_vm6, %v3029_v47, %v3142_v54  ;;  %v19115_v58 = vsel %vm3089_vm7, %v3033_v22, %v3146_v0  ;;  %vm3097_vm11 = vcmp.ge.f32.partialorder %v3041_v43, 0.0  ;;  %v3154_v28 = vmul.f32 %v18399_v19, %v3041_v43  ;;  %v2088_v54 = vld [vmem:[#allocation2 + $0x218] sm:$0xff] }
 0x30c   : > { %vm2221_vm12 = vcmp.ge.f32.partialorder %v2179_v21, 0.0  ;;  %v3234_v25 = vpack.c.bf16 %v19115_v58, %v19113_v15  ;;  %v2309_v7 = vsel %vm2224_vm9, %v2182_v63, %v2267_v57  ;;  %v2188_v33 = vadd.f32 %v19024_v17, %v2129_v40  ;;  %v2079_v57 = vld [vmem:[#allocation2 + $0x1a0] sm:$0xff] }
 0x30d   : > { %14852 = vmatpush3.bf16.msra.mxu0 %v17417_v20  ;;  %v19122_v16 = vsel %vm3093_vm10, %v3037_v24, %v3150_v59  ;;  %v19124_v48 = vsel %vm3097_vm11, %v3041_v43, %v3154_v28  ;;  %v2306_v55 = vsel %vm2221_vm12, %v2179_v21, %v2264_v9  ;;  %v2185_v56 = vadd.f32 %v19024_v17, %v2126_v35  ;;  %v2837_v43 = vld [vmem:[#allocation2 + $0x30] sm:$0xff] }
 0x30e   : > { %14853 = vmatprep.subr.bf16.mxu0 %v17418_v27  ;;  %v3238_v52 = vpack.c.bf16 %v19124_v48, %v19122_v16  ;;  %v2342_v45 = vpack.c.bf16 %v2309_v7, %v2306_v55  ;;  %v2273_v51 = vmul.f32 %v18562_v49, %v2188_v33  ;;  %v2135_v63 = vmul.f32 %v19011_v42, %v2076_v5  ;;  %v17426_v27 = vld [vmem:[%s22832_s23 + $0x70] sm:$0xff]  }
 0x30f   : > { %vm2230_vm13 = vcmp.ge.f32.partialorder %v2188_v33, 0.0  ;;  %v2270_v18 = vmul.f32 %v18562_v49, %v2185_v56  ;;  %v2132_v20 = vmul.f32 %v19011_v42, %v2073_v61  ;;  %vm2227_vm14 = vcmp.ge.f32.partialorder %v2185_v56, 0.0  ;;  %v2085_v9 = vld [vmem:[#allocation2 + $0x1f0] sm:$0xff]  ;;  %v2836_v61 = vld [vmem:[#allocation2 + $0x28] sm:$0xff] }
 0x310   : > { %15204 = vmatmul.mubr.msk.bf16.gmra.mrb[60].mxu0 %vm2018_vm0, %v2339_v3  ;;  %v2315_v32 = vsel %vm2230_vm13, %v2188_v33, %v2273_v51  ;;  %v2194_v30 = vadd.f32 %v19024_v17, %v2135_v63  ;;  %v2141_v22 = vmul.f32 %v19011_v42, %v2082_v34  ;;  %v22835_v35 = vmov 0   ;;  %v2845_v63 = vld [vmem:[#allocation2 + $0x80] sm:$0xff] }
 0x311   : > { %15207 = vmatprep.mubr.msk.bf16.mxu0 %vm17847_vm15, %v22827_v53  ;;  %14854 = vmatpush3.bf16.msra.mxu0 %v17419_v6  ;;  %v2312_v3 = vsel %vm2227_vm14, %v2185_v56, %v2270_v18  ;;  %v2191_v1 = vadd.f32 %v19024_v17, %v2132_v20  ;;  %v2138_v6 = vmul.f32 %v19011_v42, %v2079_v57  ;;  %v22836_v57 = vld [vmem:[#allocation44_spill] sm:$0xff] }
 0x312   : > { %14855 = vmatprep.subr.bf16.mxu0 %v17420_v37  ;;  %v2345_v21 = vpack.c.bf16 %v2315_v32, %v2312_v3  ;;  %v2279_v47 = vmul.f32 %v18562_v49, %v2194_v30  ;;  %vm2236_vm2 = vcmp.ge.f32.partialorder %v2194_v30, 0.0  ;;  %v2200_v37 = vadd.f32 %v19024_v17, %v2141_v22  ;;  %v2841_v32 = vld [vmem:[#allocation2 + $0x58] sm:$0xff] }
 0x313   : > { %v2276_v14 = vmul.f32 %v18562_v49, %v2191_v1  ;;  %vm2233_vm3 = vcmp.ge.f32.partialorder %v2191_v1, 0.0  ;;  %v2197_v0 = vadd.f32 %v19024_v17, %v2138_v6  ;;  %v2147_v28 = vmul.f32 %v19011_v42, %v2088_v54 }
 0x314   : > { %v2321_v24 = vsel %vm2236_vm2, %v2194_v30, %v2279_v47  ;;  %vm2242_vm4 = vcmp.ge.f32.partialorder %v2200_v37, 0.0  ;;  %v2915_v7 = vmul.f32 %v19051_v36, %v2837_v43  ;;  %v2144_v5 = vmul.f32 %v19011_v42, %v2085_v9  ;;  %v2849_v9 = vld [vmem:[#allocation2 + $0xa8] sm:$0xff] }
 0x315   : > { %14856 = vmatpush3.bf16.msra.mxu0 %v17421_v50  ;;  %v2318_v40 = vsel %vm2233_vm3, %v2191_v1, %v2276_v14  ;;  %v2285_v50 = vmul.f32 %v18562_v49, %v2200_v37  ;;  %v2282_v33 = vmul.f32 %v18562_v49, %v2197_v0  ;;  %vm2239_vm5 = vcmp.ge.f32.partialorder %v2197_v0, 0.0  ;;  %v2844_v14 = vld [vmem:[#allocation2 + $0x78] sm:$0xff] }
 0x316   : > { %14857 = vmatprep.subr.bf16.mxu0 %v17422_v31  ;;  %v2348_v59 = vpack.c.bf16 %v2321_v24, %v2318_v40  ;;  %v2833_v31 = vld [vmem:[#allocation2 + $0x8] sm:$0xff]  ;;  %v2203_v51 = vadd.f32 %v19024_v17, %v2144_v5  ;;  %v2914_v42 = vmul.f32 %v18379_v11, %v2836_v61  ;;  %v2923_v34 = vmul.f32 %v19051_v36, %v2845_v63  ;;  %v2840_v40 = vld [vmem:[#allocation2 + $0x50] sm:$0xff]  ;;  %v2861_v63 = vld [vmem:[#allocation2 + $0x120] sm:$0xff] }
 0x317   : > { %v2911_v55 = vmul.f32 %v19051_v36, %v2833_v31  ;;  %v2327_v56 = vsel %vm2242_vm4, %v2200_v37, %v2285_v50  ;;  %v2927_v5 = vmul.f32 %v19051_v36, %v2849_v9  ;;  %v2852_v61 = vld [vmem:[#allocation2 + $0xc8] sm:$0xff] }
 0x318   : > { %15208 = vmatmul.mubr.msk.bf16.gmra.mrb[64].mxu0 %vm2018_vm0, %v2342_v45  ;;  %v2993_v45 = vadd.f32 %v19064_v23, %v2915_v7  ;;  %vm2245_vm9 = vcmp.ge.f32.partialorder %v2203_v51, 0.0  ;;  %v3001_v22 = vadd.f32 %v19064_v23, %v2923_v34  ;;  %v2918_v7 = vmul.f32 %v18379_v11, %v2840_v40  ;;  %v2857_v34 = vld [vmem:[#allocation2 + $0xf8] sm:$0xff] }
 0x319   : > { %15211 = vmatprep.mubr.msk.bf16.mxu0 %vm17847_vm15, %v22827_v53  ;;  %14858 = vmatpush3.bf16.msra.mxu0 %v17423_v13  ;;  %v2206_v13 = vadd.f32 %v19024_v17, %v2147_v28  ;;  %v2989_v20 = vadd.f32 %v19064_v23, %v2911_v55  ;;  %v2288_v17 = vmul.f32 %v18562_v49, %v2203_v51 }
 0x31a   : > { %14859 = vmatprep.subr.bf16.mxu0 %v17424_v62  ;;  %v2324_v62 = vsel %vm2239_vm5, %v2197_v0, %v2282_v33  ;;  %v3106_v30 = vmul.f32 %v18399_v19, %v2993_v45  ;;  %vm3049_vm7 = vcmp.ge.f32.partialorder %v2993_v45, 0.0  ;;  %v3114_v50 = vmul.f32 %v18399_v19, %v3001_v22 }
 0x31b   : > { %v2351_v18 = vpack.c.bf16 %v2327_v56, %v2324_v62  ;;  %vm2248_vm6 = vcmp.ge.f32.partialorder %v2206_v13, 0.0  ;;  %v3102_v1 = vmul.f32 %v18399_v19, %v2989_v20  ;;  %vm3045_vm10 = vcmp.ge.f32.partialorder %v2989_v20, 0.0 }
 0x31c   : > { %v3162_v47 = vsel %vm3049_vm7, %v2993_v45, %v3106_v30  ;;  %v2330_v6 = vsel %vm2245_vm9, %v2203_v51, %v2288_v17  ;;  %vm3057_vm12 = vcmp.ge.f32.partialorder %v3001_v22, 0.0  ;;  %v2996_v51 = vadd.f32 %v22836_v57, %v2918_v7  ;;  %v22838_v7 = vld [vmem:[#allocation45_spill] sm:$0xff] }
 0x31d   : > { %14860 = vmatpush3.bf16.msra.mxu0 %v17425_v46  ;;  %v2832_v46 = vld [vmem:[#allocation2] sm:$0xff]  ;;  %v3158_v37 = vsel %vm3045_vm10, %v2989_v20, %v3102_v1  ;;  %v2930_v30 = vmul.f32 %v18379_v11, %v2852_v61  ;;  %vm2801_vm10 = vcmask 1048384  }
 0x31e   : > { %14861 = vmatprep.subr.bf16.mxu0 %v17426_v27  ;;  %v2291_v27 = vmul.f32 %v18562_v49, %v2206_v13  ;;  %v2910_v3 = vmul.f32 %v18379_v11, %v2832_v46  ;;  %v2853_v49 = vld [vmem:[#allocation2 + $0xd0] sm:$0xff]  ;;  %v3214_v0 = vpack.c.bf16 %v3162_v47, %v3158_v37  ;;  %v3005_v46 = vadd.f32 %v19064_v23, %v2927_v5 }
 0x31f   : > { %v2931_v28 = vmul.f32 %v19051_v36, %v2853_v49  ;;  %v3109_v1 = vmul.f32 %v18399_v19, %v2996_v51  ;;  %vm3052_vm3 = vcmp.ge.f32.partialorder %v2996_v51, 0.0  ;;  %v22840_v5 = vld [vmem:[#allocation48_spill] sm:$0xff] }
 0x320   : > { %15212 = vmatmul.mubr.msk.bf16.gmra.mrb[68].mxu0 %vm2018_vm0, %v2345_v21  ;;  %v2333_v21 = vsel %vm2248_vm6, %v2206_v13, %v2291_v27  ;;  %v3170_v13 = vsel %vm3057_vm12, %v3001_v22, %v3114_v50  ;;  %v2848_v27 = vld [vmem:[#allocation2 + $0xa0] sm:$0xff]  ;;  %vm3061_vm4 = vcmp.ge.f32.partialorder %v3005_v46, 0.0  ;;  %v3008_v22 = vadd.f32 %v22836_v57, %v2930_v30 }
 0x321   : > { %15215 = vmatprep.mubr.msk.bf16.mxu0 %vm17847_vm15, %v22827_v53  ;;  %14862 = vmatpush3.bf16.msra.mxu0 %v17427_v44  ;;  %v2919_v44 = vmul.f32 %v19051_v36, %v2841_v32  ;;  %v2354_v24 = vpack.c.bf16 %v2333_v21, %v2330_v6  ;;  %v3009_v45 = vadd.f32 %v19064_v23, %v2931_v28 }
 0x322   : > { %14863 = vmatprep.subr.bf16.mxu0 %v17428_v8  ;;  %v2992_v8 = vadd.f32 %v22836_v57, %v2914_v42  ;;  %v3118_v21 = vmul.f32 %v18399_v19, %v3005_v46  ;;  %v3121_v40 = vmul.f32 %v18399_v19, %v3008_v22  ;;  %vm3064_vm5 = vcmp.ge.f32.partialorder %v3008_v22, 0.0 }
 0x323   : > { %v2997_v54 = vadd.f32 %v19064_v23, %v2919_v44  ;;  %v3122_v17 = vmul.f32 %v18399_v19, %v3009_v45  ;;  %vm3065_vm2 = vcmp.ge.f32.partialorder %v3009_v45, 0.0  ;;  %v2926_v44 = vmul.f32 %v18379_v11, %v2848_v27  ;;  %v17430_v27 = vld [vmem:[%s22832_s23 + $0x80] sm:$0xff]  }
 0x324   : > { %v3105_v43 = vmul.f32 %v18399_v19, %v2992_v8  ;;  %vm3048_vm11 = vcmp.ge.f32.partialorder %v2992_v8, 0.0  ;;  %v3174_v37 = vsel %vm3061_vm4, %v3005_v46, %v3118_v21  ;;  %v17433_v21 = vld [vmem:[%s22832_s23 + $0x98] sm:$0xff]  }
 0x325   : > { %14864 = vmatpush3.bf16.msra.mxu0 %v17429_v41  ;;  %v2988_v41 = vadd.f32 %v22836_v57, %v2910_v3  ;;  %v3110_v33 = vmul.f32 %v18399_v19, %v2997_v54  ;;  %vm3053_vm14 = vcmp.ge.f32.partialorder %v2997_v54, 0.0  ;;  %v2939_v3 = vmul.f32 %v19051_v36, %v2861_v63 }
 0x326   : > { %3598 = vmatprep.subr.bf16.mxu0 %v22835_v35  ;;  %v3161_v55 = vsel %vm3048_vm11, %v2992_v8, %v3105_v43  ;;  %v2935_v8 = vmul.f32 %v19051_v36, %v2857_v34  ;;  %v3004_v49 = vadd.f32 %v22836_v57, %v2926_v44  ;;  %v17432_v44 = vld [vmem:[%s22832_s23 + $0x90] sm:$0xff]   ;;  %vm2803_vm11 = vcmask 785408  }
 0x327   : > { %v3101_v31 = vmul.f32 %v18399_v19, %v2988_v41  ;;  %vm3044_vm13 = vcmp.ge.f32.partialorder %v2988_v41, 0.0  ;;  %v3166_v20 = vsel %vm3053_vm14, %v2997_v54, %v3110_v33  ;;  %v3017_v6 = vadd.f32 %v19064_v23, %v2939_v3 }
 0x328   : > { %15216 = vmatmul.mubr.msk.bf16.gmra.mrb[72].mxu0 %vm2018_vm0, %v2348_v59  ;;  %v2922_v59 = vmul.f32 %v18379_v11, %v2844_v14  ;;  %v3218_v42 = vpack.c.bf16 %v3170_v13, %v3166_v20  ;;  %v3178_v14 = vsel %vm3065_vm2, %v3009_v45, %v3122_v17  ;;  %v3013_v54 = vadd.f32 %v19064_v23, %v2935_v8  ;;  %v22843_v13 = vld [vmem:[#allocation50_spill] sm:$0xff]  ;;  %v22844_v45 = vld [vmem:[#allocation49_spill] sm:$0xff] }
 0x329   : > { %15219 = vmatprep.mubr.msk.bf16.mxu0 %vm17847_vm15, %v22827_v53  ;;  %v3157_v62 = vsel %vm3044_vm13, %v2988_v41, %v3101_v31  ;;  %v3165_v41 = vsel %vm3052_vm3, %v2996_v51, %v3109_v1  ;;  %v3222_v11 = vpack.c.bf16 %v3178_v14, %v3174_v37  ;;  %v3130_v36 = vmul.f32 %v18399_v19, %v3017_v6  ;;  %v22837_v31 = vld [vmem:[#allocation46_spill] sm:$0xff] }
 0x32a   : > { %v3000_v56 = vadd.f32 %v22836_v57, %v2922_v59  ;;  %vm3073_vm6 = vcmp.ge.f32.partialorder %v3017_v6, 0.0  ;;  %vm3060_vm7 = vcmp.ge.f32.partialorder %v3004_v49, 0.0  ;;  %v3126_v43 = vmul.f32 %v18399_v19, %v3013_v54 }
 0x32b   : > { %v3177_v59 = vsel %vm3064_vm5, %v3008_v22, %v3121_v40  ;;  %vm3069_vm9 = vcmp.ge.f32.partialorder %v3013_v54, 0.0  ;;  %v3186_v57 = vsel %vm3073_vm6, %v3017_v6, %v3130_v36  ;;  %v22839_v33 = vpack.c.bf16 %v22837_v31, %v22838_v7 }
 0x32c   : > { %v3113_v32 = vmul.f32 %v18399_v19, %v3000_v56  ;;  %v3182_v23 = vsel %vm3069_vm9, %v3013_v54, %v3126_v43  ;;  %v22845_v61 = vpack.c.bf16 %v22843_v13, %v22844_v45  ;;  %v17436_v43 = vld [vmem:[%s22832_s23 + $0xb0] sm:$0xff]  }
 0x32d   : > { %v3226_v28 = vpack.c.bf16 %v3186_v57, %v3182_v23  ;;  %v17440_v45 = vld [vmem:[%s22832_s23 + $0xd0] sm:$0xff]  }
 0x330   : > { %15220 = vmatmul.mubr.msk.bf16.gmra.mrb[76].mxu0 %vm2018_vm0, %v2351_v18  ;;  %v3213_v18 = vpack.c.bf16 %v3161_v55, %v3157_v62  ;;  %v22841_v55 = vld [vmem:[#allocation47_spill] sm:$0xff]  ;;  %v22846_v62 = vld [vmem:[#allocation52_spill] sm:$0xff] }
 0x331   : > { %15223 = vmatprep.mubr.msk.bf16.mxu0 %vm17847_vm15, %v22827_v53  ;;  %v22848_v2 = vpack.c.bf16 %v22846_v62, %v22847_v38  ;;  %v19283_v38 = vld [vmem:[%s22849_s11] ss:$0 sm:$0xff]  ;;  %s17848_s11 = smov 104  }
 0x338   : > { %15224 = vmatmul.mubr.msk.bf16.gmra.mrb[80].mxu0 %vm2018_vm0, %v2354_v24  ;;  %vm3056_vm0 = vcmp.ge.f32.partialorder %v3000_v56, 0.0 }
 0x339   : > { %3541 = vmatprep.mubr.bf16.mxu0 %v3214_v0  ;;  %v3169_v47 = vsel %vm3056_vm0, %v3000_v56, %v3113_v32  ;;  %v3117_v0 = vmul.f32 %v18399_v19, %v3004_v49  ;;  %v22842_v56 = vpack.c.bf16 %v22840_v5, %v22841_v55 }
 0x33a   : > { %v3217_v24 = vpack.c.bf16 %v3169_v47, %v3165_v41 }
 0x33b   : > { %v3173_v9 = vsel %vm3060_vm7, %v3004_v49, %v3117_v0  ;;  %v17434_v49 = vld [vmem:[%s22832_s23 + $0xa0] sm:$0xff]  }
 0x33c   : > { %v3221_v50 = vpack.c.bf16 %v3177_v59, %v3173_v9  ;;  %v17437_v59 = vld [vmem:[%s22832_s23 + $0xb8] sm:$0xff]  }
 0x340   : > { %3542 = vmatmul.mubr.bf16.vlgmr.msra.gmra.mrb[84].mxu0 %v3213_v18 }
 0x341   : > { %3549 = vmatprep.mubr.bf16.mxu0 %v3218_v42  ;;  %3599 = vmatpush1.bf16.msra.mxu0 %v17430_v27  ;;  %v17431_v42 = vld [vmem:[%s22832_s23 + $0x88] sm:$0xff]  }
 0x342   : > { %3600 = vmatprep.subr.bf16.mxu0 %v22835_v35 }
 0x345   : > { %3601 = vmatpush1.bf16.msra.mxu0 %v17431_v42 }
 0x346   : > { %3602 = vmatprep.subr.bf16.mxu0 %v22835_v35 }
 0x348   : > { %3550 = vmatmul.mubr.bf16.gmra.mrb[88].mxu0 %v3217_v24  ;;  %v17435_v24 = vld [vmem:[%s22832_s23 + $0xa8] sm:$0xff]  }
 0x349   : > { %3557 = vmatprep.mubr.bf16.mxu0 %v3222_v11  ;;  %3603 = vmatpush1.bf16.msra.mxu0 %v17432_v44 }
 0x34a   : > { %3604 = vmatprep.subr.bf16.mxu0 %v22835_v35 }
 0x34d   : > { %3605 = vmatpush1.bf16.msra.mxu0 %v17433_v21 }
 0x34e   : > { %3606 = vmatprep.subr.bf16.mxu0 %v22835_v35 }
 0x350   : > { %3558 = vmatmul.mubr.bf16.gmra.mrb[92].mxu0 %v3221_v50 }
 0x351   : > { %3565 = vmatprep.mubr.bf16.mxu0 %v3226_v28  ;;  %3607 = vmatpush1.bf16.msra.mxu0 %v17434_v49  ;;  %v17438_v28 = vld [vmem:[%s22832_s23 + $0xc0] sm:$0xff]  }
 0x352   : > { %3608 = vmatprep.subr.bf16.mxu0 %v22835_v35 }
 0x355   : > { %3609 = vmatpush1.bf16.msra.mxu0 %v17435_v24 }
 0x356   : > { %3610 = vmatprep.subr.bf16.mxu0 %v22835_v35 }
 0x358   : > { %3566 = vmatmul.mubr.bf16.gmra.mrb[96].mxu0 %v22839_v33  ;;  %v17439_v33 = vld [vmem:[%s22832_s23 + $0xc8] sm:$0xff]  }
 0x359   : > { %3573 = vmatprep.mubr.bf16.mxu0 %v3230_v12  ;;  %3611 = vmatpush1.bf16.msra.mxu0 %v17436_v43 }
 0x35a   : > { %3612 = vmatprep.subr.bf16.mxu0 %v22835_v35 }
 0x35d   : > { %3613 = vmatpush1.bf16.msra.mxu0 %v17437_v59 }
 0x35e   : > { %3614 = vmatprep.subr.bf16.mxu0 %v22835_v35 }
 0x360   : > { %3574 = vmatmul.mubr.bf16.gmra.mrb[100].mxu0 %v22842_v56 }
 0x361   : > { %3581 = vmatprep.mubr.bf16.mxu0 %v3234_v25  ;;  %3615 = vmatpush1.bf16.msra.mxu0 %v17438_v28 }
 0x362   : > { %3616 = vmatprep.subr.bf16.mxu0 %v22835_v35 }
 0x365   : > { %3617 = vmatpush1.bf16.msra.mxu0 %v17439_v33 }
 0x366   : > { %3618 = vmatprep.subr.bf16.mxu0 %v22835_v35 }
 0x368   : > { %3582 = vmatmul.mubr.bf16.gmra.mrb[104].mxu0 %v22845_v61 }
 0x369   : > { %3589 = vmatprep.mubr.bf16.mxu0 %v3238_v52  ;;  %3619 = vmatpush1.bf16.msra.mxu0 %v17440_v45 }
 0x36a   : > { %3620 = vmatprep.subr.bf16.mxu0 %v22835_v35 }
 0x370   : > { %3590 = vmatmul.mubr.bf16.gmra.mrb[108].mxu0 %v22848_v2  ;;  %v17441_v2 = vld [vmem:[%s22832_s23 + $0xd8] sm:$0xff]  }
 0x371   : > { %3621 = vmatpush1.bf16.msra.mxu0 %v17441_v2 }
 0x372   : > { %3622 = vmatprep.subr.bf16.mxu0 %v22835_v35 }
 0x3a1   : > { %v14793_v12 = vpop.f32.mrb[28].mxu0 }
 0x3a2   : > { %v14794_v51 = vpop.f32.mrb[29].mxu0 }
 0x3a3   : > { %v19233_v63 = vadd.f32 %v14794_v51, %v14793_v12  ;;  %v14796_v15 = vpop.f32.mrb[30].mxu0 }
 0x3a4   : > { %v14797_v58 = vpop.f32.mrb[31].mxu0 }
 0x3a5   : > { %v19235_v25 = vadd.f32 %v14797_v58, %v14796_v15  ;;  %v2602_v12 = vadd.f32 %v19233_v63, %v19283_v38  ;;  %v17443_v63 = vld [vmem:[%s22832_s23 + $0xe8] sm:$0xff]  }
 0x3a9   : > { %v14799_v18 = vpop.f32.mrb[32].mxu0 }
 0x3aa   : > { %v14800_v20 = vpop.f32.mrb[33].mxu0 }
 0x3ab   : > { %v19237_v46 = vadd.f32 %v14800_v20, %v14799_v18  ;;  %v14802_v16 = vpop.f32.mrb[34].mxu0  ;;  %v2605_v18 = vadd.f32 %v19235_v25, %v19283_v38 }
 0x3ac   : > { %v14803_v48 = vpop.f32.mrb[35].mxu0 }
 0x3ad   : > { %v19239_v52 = vadd.f32 %v14803_v48, %v14802_v16  ;;  %v17442_v16 = vld [vmem:[%s22832_s23 + $0xe0] sm:$0xff]   ;;  %v2610_v42 = vadd.f32 %v19237_v46, %v19283_v38 }
 0x3ae   : > { %3623 = vmatpush1.bf16.msra.mxu0 %v17442_v16 }
 0x3af   : > { %3624 = vmatprep.subr.bf16.mxu0 %v22835_v35 }
 0x3b2   : > { %v14805_v32 = vpop.f32.mrb[36].mxu0  ;;  %3625 = vmatpush1.bf16.msra.mxu0 %v17443_v63 }
 0x3b3   : > { %v14806_v30 = vpop.f32.mrb[37].mxu0  ;;  %5495 = vmatprep.subr.bf16.mxu0 %v22835_v35 }
 0x3b4   : > { %v19244_v34 = vadd.f32 %v14806_v30, %v14805_v32  ;;  %v14808_v17 = vpop.f32.mrb[38].mxu0 }
 0x3b5   : > { %v14809_v3 = vpop.f32.mrb[39].mxu0 }
 0x3b6   : > { %v19247_v1 = vadd.f32 %v14809_v3, %v14808_v17  ;;  %v2613_v17 = vadd.f32 %v19239_v52, %v19283_v38  ;;  %v2618_v46 = vadd.f32 %v19244_v34, %v19283_v38 }
 0x3bb   : > { %v14811_v8 = vpop.f32.mrb[40].mxu0 }
 0x3bc   : > { %v14812_v47 = vpop.f32.mrb[41].mxu0 }
 0x3bd   : > { %v19252_v22 = vadd.f32 %v14812_v47, %v14811_v8  ;;  %v14814_v14 = vpop.f32.mrb[42].mxu0 }
 0x3be   : > { %v14815_v6 = vpop.f32.mrb[43].mxu0 }
 0x3bf   : > { %v19255_v41 = vadd.f32 %v14815_v6, %v14814_v14  ;;  %v2621_v6 = vadd.f32 %v19247_v1, %v19283_v38 }
 0x3c1   : > { %v2629_v34 = vadd.f32 %v19255_v41, %v19283_v38 }
 0x3c3   : > { %v14817_v37 = vpop.f32.mrb[44].mxu0 }
 0x3c4   : > { %v14818_v54 = vpop.f32.mrb[45].mxu0 }
 0x3c5   : > { %v19260_v11 = vadd.f32 %v14818_v54, %v14817_v37  ;;  %v14820_v40 = vpop.f32.mrb[46].mxu0  ;;  %v2626_v37 = vadd.f32 %v19252_v22, %v19283_v38 }
 0x3c6   : > { %v14821_v36 = vpop.f32.mrb[47].mxu0 }
 0x3c7   : > { %v19263_v0 = vadd.f32 %v14821_v36, %v14820_v40 }
 0x3c9   : > { %v2637_v22 = vadd.f32 %v19263_v0, %v19283_v38 }
 0x3cb   : > { %v14823_v57 = vpop.f32.mrb[48].mxu0 }
 0x3cc   : > { %v14824_v9 = vpop.f32.mrb[49].mxu0 }
 0x3cd   : > { %v19268_v50 = vadd.f32 %v14824_v9, %v14823_v57  ;;  %v14826_v23 = vpop.f32.mrb[50].mxu0  ;;  %v2634_v57 = vadd.f32 %v19260_v11, %v19283_v38 }
 0x3ce   : > { %v14827_v31 = vpop.f32.mrb[51].mxu0 }
 0x3cf   : > { %v19272_v7 = vadd.f32 %v14827_v31, %v14826_v23 }
 0x3d1   : > { %v2645_v11 = vadd.f32 %v19272_v7, %v19283_v38 }
 0x3d3   : > { %v14829_v5 = vpop.f32.mrb[52].mxu0 }
 0x3d4   : > { %v14830_v55 = vpop.f32.mrb[53].mxu0 }
 0x3d5   : > { %v19276_v56 = vadd.f32 %v14830_v55, %v14829_v5  ;;  %v14832_v13 = vpop.f32.mrb[54].mxu0  ;;  %v2642_v5 = vadd.f32 %v19268_v50, %v19283_v38 }
 0x3d6   : > { %v14833_v61 = vpop.f32.mrb[55].mxu0 }
 0x3d7   : > { %v19280_v62 = vadd.f32 %v14833_v61, %v14832_v13 }
 0x3d9   : > { %v2653_v50 = vadd.f32 %v19280_v62, %v19283_v38 }
 0x3db   : > { %v2690_v51 = vpop.f32.mrb[56].mxu0 }
 0x3dc   : > { %v2691_v15 = vadd.f32 %v2690_v51, %v2602_v12  ;;  %v15201_v58 = vpop.f32.mrb[57].mxu0  ;;  %v2650_v12 = vadd.f32 %v19276_v56, %v19283_v38 }
 0x3dd   : > { %v2693_v20 = vpop.f32.mrb[58].mxu0 }
 0x3de   : > { %v2694_v48 = vadd.f32 %v2693_v20, %v2605_v18  ;;  %2759 = vrot.lane.b32.xlu0 %v2691_v15, %s17848_s11  ;;  %v15202_v27 = vpop.f32.mrb[59].mxu0 }
 0x3e0   : > { %2761 = vrot.lane.b32.xlu1 %v2694_v48, %s17848_s11 }
 0x3e3   : > { %v2698_v25 = vpop.f32.mrb[60].mxu0 }
 0x3e4   : > { %v2699_v32 = vadd.f32 %v2698_v25, %v2610_v42  ;;  %v15205_v30 = vpop.f32.mrb[61].mxu0 }
 0x3e5   : > { %v2701_v3 = vpop.f32.mrb[62].mxu0 }
 0x3e6   : > { %v2702_v44 = vadd.f32 %v2701_v3, %v2613_v17  ;;  %2763 = vrot.lane.b32.xlu0 %v2699_v32, %s17848_s11  ;;  %v15206_v21 = vpop.f32.mrb[63].mxu0 }
 0x3e8   : > { %2765 = vrot.lane.b32.xlu1 %v2702_v44, %s17848_s11 }
 0x3eb   : > { %v2706_v8 = vpop.f32.mrb[64].mxu0 }
 0x3ec   : > { %v2707_v47 = vadd.f32 %v2706_v8, %v2618_v46  ;;  %v15209_v14 = vpop.f32.mrb[65].mxu0 }
 0x3ed   : > { %v2709_v52 = vpop.f32.mrb[66].mxu0 }
 0x3ee   : > { %v2710_v49 = vadd.f32 %v2709_v52, %v2621_v6  ;;  %2767 = vrot.lane.b32.xlu0 %v2707_v47, %s17848_s11  ;;  %v15210_v24 = vpop.f32.mrb[67].mxu0 }
 0x3f0   : > { %2769 = vrot.lane.b32.xlu1 %v2710_v49, %s17848_s11 }
 0x3f3   : > { %v2714_v54 = vpop.f32.mrb[68].mxu0 }
 0x3f4   : > { %v2715_v40 = vadd.f32 %v2714_v54, %v2626_v37  ;;  %v15213_v36 = vpop.f32.mrb[69].mxu0 }
 0x3f5   : > { %v2717_v43 = vpop.f32.mrb[70].mxu0 }
 0x3f6   : > { %v2718_v59 = vadd.f32 %v2717_v43, %v2629_v34  ;;  %2771 = vrot.lane.b32.xlu0 %v2715_v40, %s17848_s11  ;;  %v15214_v1 = vpop.f32.mrb[71].mxu0 }
 0x3f8   : > { %2773 = vrot.lane.b32.xlu1 %v2718_v59, %s17848_s11 }
 0x3fb   : > { %v2722_v9 = vpop.f32.mrb[72].mxu0 }
 0x3fc   : > { %v2723_v23 = vadd.f32 %v2722_v9, %v2634_v57  ;;  %v15217_v28 = vpop.f32.mrb[73].mxu0 }
 0x3fd   : > { %v2725_v31 = vpop.f32.mrb[74].mxu0 }
 0x3fe   : > { %v2726_v33 = vadd.f32 %v2725_v31, %v2637_v22  ;;  %2775 = vrot.lane.b32.xlu0 %v2723_v23, %s17848_s11  ;;  %v15218_v41 = vpop.f32.mrb[75].mxu0 }
 0x400   : > { %2777 = vrot.lane.b32.xlu1 %v2726_v33, %s17848_s11 }
 0x403   : > { %v2730_v55 = vpop.f32.mrb[76].mxu0 }
 0x404   : > { %v2731_v13 = vadd.f32 %v2730_v55, %v2642_v5  ;;  %v15221_v45 = vpop.f32.mrb[77].mxu0 }
 0x405   : > { %v2733_v61 = vpop.f32.mrb[78].mxu0 }
 0x406   : > { %v2734_v2 = vadd.f32 %v2733_v61, %v2645_v11  ;;  %2779 = vrot.lane.b32.xlu0 %v2731_v13, %s17848_s11  ;;  %v15222_v0 = vpop.f32.mrb[79].mxu0  ;;  %v19365_v11 = vsub.s32 3, %v18201_v26 }
 0x407   : > { %v19375_v0 = vrot.slane %v19047_v4, %v18990_v39 }
 0x408   : > { %2781 = vrot.lane.b32.xlu1 %v2734_v2, %s17848_s11  ;;  %v19371_v2 = vrot.slane %v19047_v4, %v19365_v11 }
 0x40b   : > { %v2738_v51 = vpop.f32.mrb[80].mxu0 }
 0x40c   : > { %v2739_v15 = vadd.f32 %v2738_v51, %v2650_v12  ;;  %v15225_v58 = vpop.f32.mrb[81].mxu0  ;;  %v19378_v12 = vld [vmem:[%s22823_s1] sm:$0x1f] }
 0x40d   : > { %v2741_v18 = vpop.f32.mrb[82].mxu0  ;;  %v19382_v51 = vrot.slane %v19378_v12, %v18990_v39  ;;  %v19390_v58 = vrot.slane %v19060_v60, %v18990_v39 }
 0x40e   : > { %v2742_v20 = vadd.f32 %v2741_v18, %v2653_v50  ;;  %v15226_v16 = vpop.f32.mrb[83].mxu0  ;;  %2783 = vrot.lane.b32.xlu0 %v2739_v15, %s17848_s11  ;;  %v19386_v15 = vrot.slane %v19060_v60, %v19365_v11 }
 0x40f   : > { %v19393_v16 = vld [vmem:[%s22824_s28] sm:$0x1f] }
 0x410   : > { %2785 = vrot.lane.b32.xlu1 %v2742_v20, %s17848_s11  ;;  %v19397_v4 = vrot.slane %v19393_v16, %v18990_v39  ;;  %s22850_s11 = sld [smem:[#allocation19_spill]] }
 0x413   : > { %v14865_v7 = vpop.f32.mrb[84].mxu0 }
 0x414   : > { %v14866_v48 = vpop.f32.mrb[85].mxu0 }
 0x415   : > { %v19334_v27 = vadd.f32 %v14866_v48, %v14865_v7  ;;  %v14868_v63 = vpop.f32.mrb[86].mxu0 }
 0x416   : > { %v14869_v42 = vpop.f32.mrb[87].mxu0 }
 0x417   : > { %v19336_v56 = vadd.f32 %v14869_v42, %v14868_v63 }
 0x41b   : > { %v14871_v25 = vpop.f32.mrb[88].mxu0 }
 0x41c   : > { %v14872_v32 = vpop.f32.mrb[89].mxu0 }
 0x41d   : > { %v19338_v30 = vadd.f32 %v14872_v32, %v14871_v25  ;;  %v14874_v62 = vpop.f32.mrb[90].mxu0 }
 0x41e   : > { %v14875_v38 = vpop.f32.mrb[91].mxu0 }
 0x41f   : > { %v19340_v17 = vadd.f32 %v14875_v38, %v14874_v62 }
 0x423   : > { %v14877_v3 = vpop.f32.mrb[92].mxu0 }
 0x424   : > { %v14878_v44 = vpop.f32.mrb[93].mxu0 }
 0x425   : > { %v19342_v21 = vadd.f32 %v14878_v44, %v14877_v3  ;;  %v14880_v46 = vpop.f32.mrb[94].mxu0 }
 0x426   : > { %v14881_v8 = vpop.f32.mrb[95].mxu0 }
 0x427   : > { %v19344_v47 = vadd.f32 %v14881_v8, %v14880_v46 }
 0x42b   : > { %v14883_v14 = vpop.f32.mrb[96].mxu0 }
 0x42c   : > { %v14884_v6 = vpop.f32.mrb[97].mxu0 }
 0x42d   : > { %v19346_v52 = vadd.f32 %v14884_v6, %v14883_v14  ;;  %v14886_v49 = vpop.f32.mrb[98].mxu0 }
 0x42e   : > { %v14887_v24 = vpop.f32.mrb[99].mxu0 }
 0x42f   : > { %v19348_v37 = vadd.f32 %v14887_v24, %v14886_v49 }
 0x433   : > { %v14889_v54 = vpop.f32.mrb[100].mxu0 }
 0x434   : > { %v14890_v40 = vpop.f32.mrb[101].mxu0 }
 0x435   : > { %v19350_v36 = vadd.f32 %v14890_v40, %v14889_v54  ;;  %v14892_v34 = vpop.f32.mrb[102].mxu0 }
 0x436   : > { %v14893_v43 = vpop.f32.mrb[103].mxu0 }
 0x437   : > { %v19352_v59 = vadd.f32 %v14893_v43, %v14892_v34 }
 0x43b   : > { %v14895_v1 = vpop.f32.mrb[104].mxu0 }
 0x43c   : > { %v14896_v57 = vpop.f32.mrb[105].mxu0 }
 0x43d   : > { %v19354_v9 = vadd.f32 %v14896_v57, %v14895_v1  ;;  %v14898_v23 = vpop.f32.mrb[106].mxu0 }
 0x43e   : > { %v14899_v28 = vpop.f32.mrb[107].mxu0 }
 0x43f   : > { %v19356_v22 = vadd.f32 %v14899_v28, %v14898_v23 }
 0x443   : > { %v14901_v31 = vpop.f32.mrb[108].mxu0 }
 0x444   : > { %v14902_v33 = vpop.f32.mrb[109].mxu0 }
 0x445   : > { %v19358_v41 = vadd.f32 %v14902_v33, %v14901_v31  ;;  %v14904_v5 = vpop.f32.mrb[110].mxu0 }
 0x446   : > { %v14905_v55 = vpop.f32.mrb[111].mxu0 }
 0x447   : > { %v19360_v13 = vadd.f32 %v14905_v55, %v14904_v5 }
 0x450   : > { %v2760_v45 = vpop.permute.xlu0 %2759 }
 0x451   : > { %2802 = vst.msk [vmem:[#allocation2 + $0x10] sm:$0xff] %vm2801_vm10, %v2760_v45 }
 0x452   : > { %2804 = vst.msk [vmem:[#allocation2 + $0x18] sm:$0xff] %vm2803_vm11, %v2760_v45  ;;  %v2762_v61 = vpop.permute.xlu1 %2761 }
 0x453   : > { %2805 = vst.msk [vmem:[#allocation2 + $0x38] sm:$0xff] %vm2801_vm10, %v2762_v61 }
 0x454   : > { %2806 = vst.msk [vmem:[#allocation2 + $0x40] sm:$0xff] %vm2803_vm11, %v2762_v61 }
 0x458   : > { %v2764_v50 = vpop.permute.xlu0 %2763  ;;  %v2834_v20 = vld [vmem:[#allocation2 + $0x10] sm:$0xff] }
 0x459   : > { %v2835_v18 = vld [vmem:[#allocation2 + $0x18] sm:$0xff]  ;;  %2807 = vst.msk [vmem:[#allocation2 + $0x60] sm:$0xff] %vm2801_vm10, %v2764_v50  ;;  %v2912_v48 = vmul.f32 %v19375_v0, %v2834_v20  ;;  %v3872_v60 = vmul.f32 %v19382_v51, %v2834_v20 }
 0x45a   : > { %2808 = vst.msk [vmem:[#allocation2 + $0x68] sm:$0xff] %vm2803_vm11, %v2764_v50  ;;  %v2913_v7 = vmul.f32 %v19371_v2, %v2835_v18  ;;  %v2766_v63 = vpop.permute.xlu1 %2765  ;;  %v2838_v25 = vld [vmem:[#allocation2 + $0x38] sm:$0xff] }
 0x45b   : > { %v2839_v42 = vld [vmem:[#allocation2 + $0x40] sm:$0xff]  ;;  %2809 = vst.msk [vmem:[#allocation2 + $0x88] sm:$0xff] %vm2801_vm10, %v2766_v63  ;;  %v2916_v62 = vmul.f32 %v19375_v0, %v2838_v25  ;;  %v2990_v38 = vadd.f32 %v19390_v58, %v2912_v48  ;;  %v3877_v3 = vmul.f32 %v19382_v51, %v2838_v25  ;;  %v3969_v44 = vadd.f32 %v19397_v4, %v3872_v60 }
 0x45c   : > { %2810 = vst.msk [vmem:[#allocation2 + $0x90] sm:$0xff] %vm2803_vm11, %v2766_v63  ;;  %v2917_v39 = vmul.f32 %v19371_v2, %v2839_v42  ;;  %v2991_v32 = vadd.f32 %v19386_v15, %v2913_v7 }
 0x45d   : > { %v2994_v14 = vadd.f32 %v19390_v58, %v2916_v62  ;;  %vm3046_vm13 = vcmp.ge.f32.partialorder %v2990_v38, 0.0  ;;  %v3103_v6 = vmul.f32 %v18399_v19, %v2990_v38  ;;  %v3974_v49 = vadd.f32 %v19397_v4, %v3877_v3 }
 0x45e   : > { %v2995_v46 = vadd.f32 %v19386_v15, %v2917_v39  ;;  %vm3047_vm12 = vcmp.ge.f32.partialorder %v2991_v32, 0.0  ;;  %v3104_v8 = vmul.f32 %v18399_v19, %v2991_v32  ;;  %vm4040_vm14 = vcmp.ge.f32.partialorder %v3969_v44, 0.0 }
 0x45f   : > { %vm3050_vm2 = vcmp.ge.f32.partialorder %v2994_v14, 0.0  ;;  %v3107_v34 = vmul.f32 %v18399_v19, %v2994_v14  ;;  %v3159_v43 = vsel %vm3046_vm13, %v2990_v38, %v3103_v6  ;;  %vm4045_vm3 = vcmp.ge.f32.partialorder %v3974_v49, 0.0 }
 0x460   : > { %vm3051_vm0 = vcmp.ge.f32.partialorder %v2995_v46, 0.0  ;;  %v3108_v24 = vmul.f32 %v18399_v19, %v2995_v46  ;;  %v3160_v54 = vsel %vm3047_vm12, %v2991_v32, %v3104_v8  ;;  %v2768_v40 = vpop.permute.xlu0 %2767  ;;  %v2842_v57 = vld [vmem:[#allocation2 + $0x60] sm:$0xff]  ;;  %v4111_v23 = vmul.f32 %v18581_v10, %v3969_v44 }
 0x461   : > { %v2843_v1 = vld [vmem:[#allocation2 + $0x68] sm:$0xff]  ;;  %2811 = vst.msk [vmem:[#allocation2 + $0xb0] sm:$0xff] %vm2801_vm10, %v2768_v40  ;;  %v2920_v33 = vmul.f32 %v19375_v0, %v2842_v57  ;;  %v4116_v5 = vmul.f32 %v18581_v10, %v3974_v49  ;;  %v3163_v61 = vsel %vm3050_vm2, %v2994_v14, %v3107_v34  ;;  %v3882_v7 = vmul.f32 %v19382_v51, %v2842_v57 }
 0x462   : > { %2812 = vst.msk [vmem:[#allocation2 + $0xb8] sm:$0xff] %vm2803_vm11, %v2768_v40  ;;  %v3164_v28 = vsel %vm3051_vm0, %v2995_v46, %v3108_v24  ;;  %v2921_v31 = vmul.f32 %v19371_v2, %v2843_v1  ;;  %v2770_v55 = vpop.permute.xlu1 %2769  ;;  %v2846_v18 = vld [vmem:[#allocation2 + $0x88] sm:$0xff]  ;;  %v19427_v20 = vsel %vm4040_vm14, %v3969_v44, %v4111_v23  ;;  %v3215_v48 = vpack.c.bf16 %v3163_v61, %v3159_v43 }
 0x463   : > { %v3216_v45 = vpack.c.bf16 %v3164_v28, %v3160_v54  ;;  %v2847_v50 = vld [vmem:[#allocation2 + $0x90] sm:$0xff]  ;;  %2813 = vst.msk [vmem:[#allocation2 + $0xd8] sm:$0xff] %vm2801_vm10, %v2770_v55  ;;  %v2924_v42 = vmul.f32 %v19375_v0, %v2846_v18  ;;  %v2998_v25 = vadd.f32 %v19390_v58, %v2920_v33  ;;  %v19438_v39 = vsel %vm4045_vm3, %v3974_v49, %v4116_v5 }
 0x464   : > { %2814 = vst.msk [vmem:[#allocation2 + $0xe0] sm:$0xff] %vm2803_vm11, %v2770_v55  ;;  %v2925_v60 = vmul.f32 %v19371_v2, %v2847_v50  ;;  %v2999_v63 = vadd.f32 %v19386_v15, %v2921_v31  ;;  %v3887_v32 = vmul.f32 %v19382_v51, %v2846_v18  ;;  %v3979_v62 = vadd.f32 %v19397_v4, %v3882_v7 }
 0x465   : > { %13907 = vmatprep.mubr.msk.bf16.mxu0 %vm2803_vm11, %v3216_v45  ;;  %v3002_v44 = vadd.f32 %v19390_v58, %v2924_v42  ;;  %vm3054_vm5 = vcmp.ge.f32.partialorder %v2998_v25, 0.0  ;;  %v3111_v46 = vmul.f32 %v18399_v19, %v2998_v25 }
 0x466   : > { %3631 = vmatmul.mubr.bf16.vlgmr.msra.gmra.mrb[112].mxu0 %v3215_v48  ;;  %v3003_v38 = vadd.f32 %v19386_v15, %v2925_v60  ;;  %vm3055_vm4 = vcmp.ge.f32.partialorder %v2999_v63, 0.0  ;;  %v3112_v3 = vmul.f32 %v18399_v19, %v2999_v63  ;;  %v3984_v14 = vadd.f32 %v19397_v4, %v3887_v32 }
 0x467   : > { %vm3058_vm7 = vcmp.ge.f32.partialorder %v3002_v44, 0.0  ;;  %v3115_v54 = vmul.f32 %v18399_v19, %v3002_v44  ;;  %v3167_v40 = vsel %vm3054_vm5, %v2998_v25, %v3111_v46  ;;  %vm4050_vm9 = vcmp.ge.f32.partialorder %v3979_v62, 0.0 }
 0x468   : > { %vm3059_vm6 = vcmp.ge.f32.partialorder %v3003_v38, 0.0  ;;  %v3116_v6 = vmul.f32 %v18399_v19, %v3003_v38  ;;  %v3168_v49 = vsel %vm3055_vm4, %v2999_v63, %v3112_v3  ;;  %v2772_v24 = vpop.permute.xlu0 %2771  ;;  %v2850_v43 = vld [vmem:[#allocation2 + $0xb0] sm:$0xff]  ;;  %vm4055_vm12 = vcmp.ge.f32.partialorder %v3984_v14, 0.0 }
 0x469   : > { %v2851_v34 = vld [vmem:[#allocation2 + $0xb8] sm:$0xff]  ;;  %2815 = vst.msk [vmem:[#allocation2 + $0x100] sm:$0xff] %vm2801_vm10, %v2772_v24  ;;  %v2928_v23 = vmul.f32 %v19375_v0, %v2850_v43  ;;  %v4121_v28 = vmul.f32 %v18581_v10, %v3979_v62  ;;  %v3171_v5 = vsel %vm3058_vm7, %v3002_v44, %v3115_v54  ;;  %v4126_v61 = vmul.f32 %v18581_v10, %v3984_v14 }
 0x46a   : > { %2816 = vst.msk [vmem:[#allocation2 + $0x108] sm:$0xff] %vm2803_vm11, %v2772_v24  ;;  %v3172_v1 = vsel %vm3059_vm6, %v3003_v38, %v3116_v6  ;;  %v2929_v57 = vmul.f32 %v19371_v2, %v2851_v34  ;;  %v2774_v31 = vpop.permute.xlu1 %2773  ;;  %v2854_v45 = vld [vmem:[#allocation2 + $0xd8] sm:$0xff]  ;;  %v3892_v50 = vmul.f32 %v19382_v51, %v2850_v43  ;;  %v3219_v18 = vpack.c.bf16 %v3171_v5, %v3167_v40 }
 0x46b   : > { %v3220_v33 = vpack.c.bf16 %v3172_v1, %v3168_v49  ;;  %v2855_v55 = vld [vmem:[#allocation2 + $0xe0] sm:$0xff]  ;;  %2817 = vst.msk [vmem:[#allocation2 + $0x128] sm:$0xff] %vm2801_vm10, %v2774_v31  ;;  %v2932_v60 = vmul.f32 %v19375_v0, %v2854_v45  ;;  %v3006_v63 = vadd.f32 %v19390_v58, %v2928_v23  ;;  %v19467_v42 = vsel %vm4050_vm9, %v3979_v62, %v4121_v28 }
 0x46c   : > { %2818 = vst.msk [vmem:[#allocation2 + $0x130] sm:$0xff] %vm2803_vm11, %v2774_v31  ;;  %v2933_v7 = vmul.f32 %v19371_v2, %v2855_v55  ;;  %v3007_v48 = vadd.f32 %v19386_v15, %v2929_v57  ;;  %v19470_v25 = vsel %vm4055_vm12, %v3984_v14, %v4126_v61  ;;  %v3897_v32 = vmul.f32 %v19382_v51, %v2854_v45 }
 0x46d   : > { %13908 = vmatprep.mubr.msk.bf16.mxu0 %vm2803_vm11, %v3220_v33  ;;  %v3010_v44 = vadd.f32 %v19390_v58, %v2932_v60  ;;  %vm3062_vm14 = vcmp.ge.f32.partialorder %v3006_v63, 0.0  ;;  %v3119_v46 = vmul.f32 %v18399_v19, %v3006_v63  ;;  %v3989_v6 = vadd.f32 %v19397_v4, %v3892_v50 }
 0x46e   : > { %3639 = vmatmul.mubr.bf16.gmra.mrb[116].mxu0 %v3219_v18  ;;  %v3011_v38 = vadd.f32 %v19386_v15, %v2933_v7  ;;  %vm3063_vm13 = vcmp.ge.f32.partialorder %v3007_v48, 0.0  ;;  %v3120_v3 = vmul.f32 %v18399_v19, %v3007_v48  ;;  %v3994_v1 = vadd.f32 %v19397_v4, %v3897_v32 }
 0x46f   : > { %vm3066_vm2 = vcmp.ge.f32.partialorder %v3010_v44, 0.0  ;;  %v3123_v54 = vmul.f32 %v18399_v19, %v3010_v44  ;;  %v3175_v40 = vsel %vm3062_vm14, %v3006_v63, %v3119_v46  ;;  %vm4060_vm3 = vcmp.ge.f32.partialorder %v3989_v6, 0.0 }
 0x470   : > { %vm3067_vm0 = vcmp.ge.f32.partialorder %v3011_v38, 0.0  ;;  %v3124_v14 = vmul.f32 %v18399_v19, %v3011_v38  ;;  %v3176_v49 = vsel %vm3063_vm13, %v3007_v48, %v3120_v3  ;;  %v2776_v24 = vpop.permute.xlu0 %2775  ;;  %v2858_v43 = vld [vmem:[#allocation2 + $0x100] sm:$0xff]  ;;  %v4131_v31 = vmul.f32 %v18581_v10, %v3989_v6 }
 0x471   : > { %v2859_v34 = vld [vmem:[#allocation2 + $0x108] sm:$0xff]  ;;  %2819 = vst.msk [vmem:[#allocation2 + $0x150] sm:$0xff] %vm2801_vm10, %v2776_v24  ;;  %v2936_v28 = vmul.f32 %v19375_v0, %v2858_v43  ;;  %v3179_v55 = vsel %vm3066_vm2, %v3010_v44, %v3123_v54  ;;  %vm4065_vm4 = vcmp.ge.f32.partialorder %v3994_v1, 0.0  ;;  %v4136_v50 = vmul.f32 %v18581_v10, %v3994_v1 }
 0x472   : > { %2820 = vst.msk [vmem:[#allocation2 + $0x158] sm:$0xff] %vm2803_vm11, %v2776_v24  ;;  %v3180_v57 = vsel %vm3067_vm0, %v3011_v38, %v3124_v14  ;;  %v2937_v23 = vmul.f32 %v19371_v2, %v2859_v34  ;;  %v2778_v33 = vpop.permute.xlu1 %2777  ;;  %v2862_v61 = vld [vmem:[#allocation2 + $0x128] sm:$0xff]  ;;  %v3223_v18 = vpack.c.bf16 %v3179_v55, %v3175_v40  ;;  %v19498_v32 = vsel %vm4060_vm3, %v3989_v6, %v4131_v31 }
 0x473   : > { %v3224_v5 = vpack.c.bf16 %v3180_v57, %v3176_v49  ;;  %v2863_v45 = vld [vmem:[#allocation2 + $0x130] sm:$0xff]  ;;  %2821 = vst.msk [vmem:[#allocation2 + $0x178] sm:$0xff] %vm2801_vm10, %v2778_v33  ;;  %v2940_v60 = vmul.f32 %v19375_v0, %v2862_v61  ;;  %v3014_v63 = vadd.f32 %v19390_v58, %v2936_v28  ;;  %v19500_v38 = vsel %vm4065_vm4, %v3994_v1, %v4136_v50 }
 0x474   : > { %2822 = vst.msk [vmem:[#allocation2 + $0x180] sm:$0xff] %vm2803_vm11, %v2778_v33  ;;  %v2941_v7 = vmul.f32 %v19371_v2, %v2863_v45  ;;  %v3015_v48 = vadd.f32 %v19386_v15, %v2937_v23  ;;  %v3902_v3 = vmul.f32 %v19382_v51, %v2858_v43  ;;  %v3907_v6 = vmul.f32 %v19382_v51, %v2862_v61 }
 0x475   : > { %13909 = vmatprep.mubr.msk.bf16.mxu0 %vm2803_vm11, %v3224_v5  ;;  %v3018_v14 = vadd.f32 %v19390_v58, %v2940_v60  ;;  %vm3070_vm6 = vcmp.ge.f32.partialorder %v3014_v63, 0.0  ;;  %v3127_v49 = vmul.f32 %v18399_v19, %v3014_v63 }
 0x476   : > { %3647 = vmatmul.mubr.bf16.gmra.mrb[120].mxu0 %v3223_v18  ;;  %v3019_v44 = vadd.f32 %v19386_v15, %v2941_v7  ;;  %vm3071_vm5 = vcmp.ge.f32.partialorder %v3015_v48, 0.0  ;;  %v3128_v46 = vmul.f32 %v18399_v19, %v3015_v48  ;;  %v3999_v28 = vadd.f32 %v19397_v4, %v3902_v3 }
 0x477   : > { %vm3074_vm9 = vcmp.ge.f32.partialorder %v3018_v14, 0.0  ;;  %v3131_v43 = vmul.f32 %v18399_v19, %v3018_v14  ;;  %v3183_v1 = vsel %vm3070_vm6, %v3014_v63, %v3127_v49  ;;  %v4004_v31 = vadd.f32 %v19397_v4, %v3907_v6 }
 0x478   : > { %vm3075_vm7 = vcmp.ge.f32.partialorder %v3019_v44, 0.0  ;;  %v3132_v54 = vmul.f32 %v18399_v19, %v3019_v44  ;;  %v3184_v40 = vsel %vm3071_vm5, %v3015_v48, %v3128_v46  ;;  %v2780_v34 = vpop.permute.xlu0 %2779  ;;  %v2866_v23 = vld [vmem:[#allocation2 + $0x150] sm:$0xff]  ;;  %vm4070_vm12 = vcmp.ge.f32.partialorder %v3999_v28, 0.0 }
 0x479   : > { %v2867_v57 = vld [vmem:[#allocation2 + $0x158] sm:$0xff]  ;;  %2823 = vst.msk [vmem:[#allocation2 + $0x1a0] sm:$0xff] %vm2801_vm10, %v2780_v34  ;;  %v2944_v55 = vmul.f32 %v19375_v0, %v2866_v23  ;;  %v3912_v45 = vmul.f32 %v19382_v51, %v2866_v23  ;;  %v3187_v18 = vsel %vm3074_vm9, %v3018_v14, %v3131_v43  ;;  %vm4075_vm13 = vcmp.ge.f32.partialorder %v4004_v31, 0.0 }
 0x47a   : > { %2824 = vst.msk [vmem:[#allocation2 + $0x1a8] sm:$0xff] %vm2803_vm11, %v2780_v34  ;;  %v3188_v33 = vsel %vm3075_vm7, %v3019_v44, %v3132_v54  ;;  %v2945_v5 = vmul.f32 %v19371_v2, %v2867_v57  ;;  %v2782_v61 = vpop.permute.xlu1 %2781  ;;  %v2870_v48 = vld [vmem:[#allocation2 + $0x178] sm:$0xff]  ;;  %v3227_v60 = vpack.c.bf16 %v3187_v18, %v3183_v1  ;;  %v4141_v14 = vmul.f32 %v18581_v10, %v3999_v28 }
 0x47b   : > { %v3228_v50 = vpack.c.bf16 %v3188_v33, %v3184_v40  ;;  %v2871_v7 = vld [vmem:[#allocation2 + $0x180] sm:$0xff]  ;;  %2825 = vst.msk [vmem:[#allocation2 + $0x1c8] sm:$0xff] %vm2801_vm10, %v2782_v61  ;;  %v2948_v44 = vmul.f32 %v19375_v0, %v2870_v48  ;;  %v3022_v46 = vadd.f32 %v19390_v58, %v2944_v55  ;;  %v4146_v49 = vmul.f32 %v18581_v10, %v4004_v31 }
 0x47c   : > { %2826 = vst.msk [vmem:[#allocation2 + $0x1d0] sm:$0xff] %vm2803_vm11, %v2782_v61  ;;  %v2949_v63 = vmul.f32 %v19371_v2, %v2871_v7  ;;  %v3023_v3 = vadd.f32 %v19386_v15, %v2945_v5  ;;  %v3917_v6 = vmul.f32 %v19382_v51, %v2870_v48  ;;  %v19535_v1 = vsel %vm4070_vm12, %v3999_v28, %v4141_v14 }
 0x47d   : > { %13910 = vmatprep.mubr.msk.bf16.mxu0 %vm2803_vm11, %v3228_v50  ;;  %v3026_v34 = vadd.f32 %v19390_v58, %v2948_v44  ;;  %vm3078_vm0 = vcmp.ge.f32.partialorder %v3022_v46, 0.0  ;;  %v3135_v43 = vmul.f32 %v18399_v19, %v3022_v46  ;;  %v19538_v57 = vsel %vm4075_vm13, %v4004_v31, %v4146_v49 }
 0x47e   : > { %3655 = vmatmul.mubr.bf16.gmra.mrb[124].mxu0 %v3227_v60  ;;  %v3027_v54 = vadd.f32 %v19386_v15, %v2949_v63  ;;  %vm3079_vm14 = vcmp.ge.f32.partialorder %v3023_v3, 0.0  ;;  %v3136_v40 = vmul.f32 %v18399_v19, %v3023_v3  ;;  %v4009_v28 = vadd.f32 %v19397_v4, %v3912_v45 }
 0x47f   : > { %vm3082_vm3 = vcmp.ge.f32.partialorder %v3026_v34, 0.0  ;;  %v3139_v55 = vmul.f32 %v18399_v19, %v3026_v34  ;;  %v3191_v61 = vsel %vm3078_vm0, %v3022_v46, %v3135_v43  ;;  %v4014_v63 = vadd.f32 %v19397_v4, %v3917_v6 }
 0x480   : > { %vm3083_vm2 = vcmp.ge.f32.partialorder %v3027_v54, 0.0  ;;  %v3140_v23 = vmul.f32 %v18399_v19, %v3027_v54  ;;  %v3192_v33 = vsel %vm3079_vm14, %v3023_v3, %v3136_v40  ;;  %v2784_v5 = vpop.permute.xlu0 %2783  ;;  %v2874_v18 = vld [vmem:[#allocation2 + $0x1a0] sm:$0xff]  ;;  %vm4080_vm4 = vcmp.ge.f32.partialorder %v4009_v28, 0.0 }
 0x481   : > { %v2875_v50 = vld [vmem:[#allocation2 + $0x1a8] sm:$0xff]  ;;  %2827 = vst.msk [vmem:[#allocation2 + $0x1f0] sm:$0xff] %vm2801_vm10, %v2784_v5  ;;  %v2952_v60 = vmul.f32 %v19375_v0, %v2874_v18  ;;  %v3195_v46 = vsel %vm3082_vm3, %v3026_v34, %v3139_v55  ;;  %v4151_v45 = vmul.f32 %v18581_v10, %v4009_v28  ;;  %vm4085_vm5 = vcmp.ge.f32.partialorder %v4014_v63, 0.0 }
 0x482   : > { %2828 = vst.msk [vmem:[#allocation2 + $0x1f8] sm:$0xff] %vm2803_vm11, %v2784_v5  ;;  %v3196_v31 = vsel %vm3083_vm2, %v3027_v54, %v3140_v23  ;;  %v2953_v48 = vmul.f32 %v19371_v2, %v2875_v50  ;;  %v2786_v3 = vpop.permute.xlu1 %2785  ;;  %v2878_v49 = vld [vmem:[#allocation2 + $0x1c8] sm:$0xff]  ;;  %v3231_v54 = vpack.c.bf16 %v3195_v46, %v3191_v61  ;;  %v4156_v23 = vmul.f32 %v18581_v10, %v4014_v63 }
 0x483   : > { %v3232_v44 = vpack.c.bf16 %v3196_v31, %v3192_v33  ;;  %v2879_v14 = vld [vmem:[#allocation2 + $0x1d0] sm:$0xff]  ;;  %2829 = vst.msk [vmem:[#allocation2 + $0x218] sm:$0xff] %vm2801_vm10, %v2786_v3  ;;  %v2956_v6 = vmul.f32 %v19375_v0, %v2878_v49  ;;  %v3030_v34 = vadd.f32 %v19390_v58, %v2952_v60  ;;  %v19565_v50 = vsel %vm4080_vm4, %v4009_v28, %v4151_v45 }
 0x484   : > { %2830 = vst.msk [vmem:[#allocation2 + $0x220] sm:$0xff] %vm2803_vm11, %v2786_v3  ;;  %v2957_v40 = vmul.f32 %v19371_v2, %v2879_v14  ;;  %v3031_v43 = vadd.f32 %v19386_v15, %v2953_v48  ;;  %v19567_v31 = vsel %vm4085_vm5, %v4014_v63, %v4156_v23  ;;  %v3922_v48 = vmul.f32 %v19382_v51, %v2874_v18 }
 0x485   : > { %13911 = vmatprep.mubr.msk.bf16.mxu0 %vm2803_vm11, %v3232_v44  ;;  %v3034_v55 = vadd.f32 %v19390_v58, %v2956_v6  ;;  %v3143_v61 = vmul.f32 %v18399_v19, %v3030_v34  ;;  %vm3086_vm7 = vcmp.ge.f32.partialorder %v3030_v34, 0.0  ;;  %v3927_v28 = vmul.f32 %v19382_v51, %v2878_v49 }
 0x486   : > { %3663 = vmatmul.mubr.bf16.gmra.mrb[128].mxu0 %v3231_v54  ;;  %v3035_v33 = vadd.f32 %v19386_v15, %v2957_v40  ;;  %vm3087_vm10 = vcmp.ge.f32.partialorder %v3031_v43, 0.0  ;;  %v3144_v5 = vmul.f32 %v18399_v19, %v3031_v43  ;;  %v4019_v40 = vadd.f32 %v19397_v4, %v3922_v48 }
 0x487   : > { %vm3090_vm9 = vcmp.ge.f32.partialorder %v3034_v55, 0.0  ;;  %v3147_v44 = vmul.f32 %v18399_v19, %v3034_v55  ;;  %v3199_v23 = vsel %vm3086_vm7, %v3030_v34, %v3143_v61  ;;  %v4024_v24 = vadd.f32 %v19397_v4, %v3927_v28 }
 0x488   : > { %vm3091_vm6 = vcmp.ge.f32.partialorder %v3035_v33, 0.0  ;;  %v3148_v60 = vmul.f32 %v18399_v19, %v3035_v33  ;;  %v3200_v3 = vsel %vm3087_vm10, %v3031_v43, %v3144_v5  ;;  %v2882_v14 = vld [vmem:[#allocation2 + $0x1f0] sm:$0xff]  ;;  %vm4090_vm12 = vcmp.ge.f32.partialorder %v4019_v40, 0.0 }
 0x489   : > { %v2883_v46 = vld [vmem:[#allocation2 + $0x1f8] sm:$0xff]  ;;  %v2960_v18 = vmul.f32 %v19375_v0, %v2882_v14  ;;  %v3203_v7 = vsel %vm3090_vm9, %v3034_v55, %v3147_v44  ;;  %v4161_v48 = vmul.f32 %v18581_v10, %v4019_v40  ;;  %v3932_v34 = vmul.f32 %v19382_v51, %v2882_v14 }
 0x48a   : > { %v3204_v45 = vsel %vm3091_vm6, %v3035_v33, %v3148_v60  ;;  %v2961_v63 = vmul.f32 %v19371_v2, %v2883_v46  ;;  %v2886_v5 = vld [vmem:[#allocation2 + $0x218] sm:$0xff]  ;;  %v3235_v62 = vpack.c.bf16 %v3203_v7, %v3199_v23  ;;  %vm4095_vm13 = vcmp.ge.f32.partialorder %v4024_v24, 0.0  ;;  %v17446_v23 = vld [vmem:[%s22807_s6 + $0x104] ss:$8 sps:$4 sm:$0xff]  }
 0x48b   : > { %v3236_v6 = vpack.c.bf16 %v3204_v45, %v3200_v3  ;;  %v2887_v43 = vld [vmem:[#allocation2 + $0x220] sm:$0xff]  ;;  %v2964_v49 = vmul.f32 %v19375_v0, %v2886_v5  ;;  %v3038_v33 = vadd.f32 %v19390_v58, %v2960_v18  ;;  %v4166_v61 = vmul.f32 %v18581_v10, %v4024_v24  ;;  %4876 = vmatprep.subr.bf16.mxu1 %v17446_v23  ;;  %v17483_v23 = vld [vmem:[%s22807_s6 + $0x1d0] ss:$8 sps:$4 sm:$0xff]  }
 0x48c   : > { %v2965_v8 = vmul.f32 %v19371_v2, %v2887_v43  ;;  %v3039_v54 = vadd.f32 %v19386_v15, %v2961_v63  ;;  %v4029_v14 = vadd.f32 %v19397_v4, %v3932_v34  ;;  %v17449_v43 = vld [vmem:[%s22807_s6 + $0x114] ss:$8 sps:$4 sm:$0xff]   ;;  %v17453_v34 = vld [vmem:[%s22807_s6 + $0x130] ss:$8 sps:$4 sm:$0xff]   ;;  %vm3745_vm10 = vcmask 719872  }
 0x48d   : > { %13912 = vmatprep.mubr.msk.bf16.mxu0 %vm2803_vm11, %v3236_v6  ;;  %v3042_v2 = vadd.f32 %v19390_v58, %v2964_v49  ;;  %v3151_v0 = vmul.f32 %v18399_v19, %v3038_v33  ;;  %vm3094_vm2 = vcmp.ge.f32.partialorder %v3038_v33, 0.0  ;;  %v3937_v58 = vmul.f32 %v19382_v51, %v2886_v5  ;;  %v17444_v6 = vld [vmem:[%s22807_s6 + $0x100] ss:$8 sps:$4 sm:$0xff]   ;;  %v17447_v5 = vld [vmem:[%s22807_s6 + $0x110] ss:$8 sps:$4 sm:$0xff]  }
 0x48e   : > { %3671 = vmatmul.mubr.bf16.gmra.mrb[132].mxu0 %v3235_v62  ;;  %v3043_v55 = vadd.f32 %v19386_v15, %v2965_v8  ;;  %v3152_v7 = vmul.f32 %v18399_v19, %v3039_v54  ;;  %vm3095_vm14 = vcmp.ge.f32.partialorder %v3039_v54, 0.0  ;;  %v19594_v62 = vsel %vm4090_vm12, %v4019_v40, %v4161_v48  ;;  %4877 = vmatpush1.bf16.msra.mxu1 %v17444_v6  ;;  %v17452_v49 = vld [vmem:[%s22807_s6 + $0x124] ss:$8 sps:$4 sm:$0xff]   ;;  %v17455_v48 = vld [vmem:[%s22807_s6 + $0x134] ss:$8 sps:$4 sm:$0xff]  }
 0x48f   : > { %vm3098_vm3 = vcmp.ge.f32.partialorder %v3042_v2, 0.0  ;;  %v3155_v3 = vmul.f32 %v18399_v19, %v3042_v2  ;;  %v19596_v15 = vsel %vm4095_vm13, %v4024_v24, %v4166_v61  ;;  %v3207_v45 = vsel %vm3094_vm2, %v3038_v33, %v3151_v0  ;;  %4878 = vmatprep.subr.bf16.mxu1 %v17449_v43  ;;  %v17450_v33 = vld [vmem:[%s22807_s6 + $0x120] ss:$8 sps:$4 sm:$0xff]   ;;  %v17459_v0 = vld [vmem:[%s22807_s6 + $0x150] ss:$8 sps:$4 sm:$0xff]  }
 0x490   : > { %vm3099_vm0 = vcmp.ge.f32.partialorder %v3043_v55, 0.0  ;;  %v3156_v60 = vmul.f32 %v18399_v19, %v3043_v55  ;;  %v3208_v8 = vsel %vm3095_vm14, %v3039_v54, %v3152_v7  ;;  %v4276_v46 = vpack.c.bf16 %v19596_v15, %v19594_v62  ;;  %v17456_v7 = vld [vmem:[%s22807_s6 + $0x140] ss:$8 sps:$4 sm:$0xff]   ;;  %v17464_v61 = vld [vmem:[%s22807_s6 + $0x164] ss:$8 sps:$4 sm:$0xff]  }
 0x491   : > { %v3211_v19 = vsel %vm3098_vm3, %v3042_v2, %v3155_v3  ;;  %v4034_v63 = vadd.f32 %v19397_v4, %v3937_v58  ;;  %vm4100_vm4 = vcmp.ge.f32.partialorder %v4029_v14, 0.0  ;;  %v4171_v51 = vmul.f32 %v18581_v10, %v4029_v14  ;;  %v17461_v2 = vld [vmem:[%s22807_s6 + $0x154] ss:$8 sps:$4 sm:$0xff]   ;;  %v17465_v58 = vld [vmem:[%s22807_s6 + $0x170] ss:$8 sps:$4 sm:$0xff]  }
 0x492   : > { %v3212_v44 = vsel %vm3099_vm0, %v3043_v55, %v3156_v60  ;;  %v3239_v24 = vpack.c.bf16 %v3211_v19, %v3207_v45  ;;  %4879 = vmatpush1.bf16.msra.mxu1 %v17447_v5  ;;  %v17458_v55 = vld [vmem:[%s22807_s6 + $0x144] ss:$8 sps:$4 sm:$0xff]   ;;  %v17462_v60 = vld [vmem:[%s22807_s6 + $0x160] ss:$8 sps:$4 sm:$0xff]   ;;  %v17467_v3 = vld [vmem:[%s22807_s6 + $0x174] ss:$8 sps:$4 sm:$0xff]  }
 0x493   : > { %v3240_v28 = vpack.c.bf16 %v3212_v44, %v3208_v8  ;;  %vm4105_vm5 = vcmp.ge.f32.partialorder %v4034_v63, 0.0  ;;  %v4176_v54 = vmul.f32 %v18581_v10, %v4034_v63  ;;  %v19606_v18 = vsel %vm4100_vm4, %v4029_v14, %v4171_v51  ;;  %4880 = vmatprep.subr.bf16.mxu1 %v17452_v49  ;;  %v17470_v8 = vld [vmem:[%s22807_s6 + $0x184] ss:$8 sps:$4 sm:$0xff]   ;;  %v17468_v44 = vld [vmem:[%s22807_s6 + $0x180] ss:$8 sps:$4 sm:$0xff]  }
 0x494   : > { %v17473_v14 = vld [vmem:[%s22807_s6 + $0x194] ss:$8 sps:$4 sm:$0xff]   ;;  %v17476_v45 = vld [vmem:[%s22807_s6 + $0x1a4] ss:$8 sps:$4 sm:$0xff]   ;;  %v17474_v19 = vld [vmem:[%s22807_s6 + $0x1a0] ss:$8 sps:$4 sm:$0xff]  }
 0x495   : > { %13913 = vmatprep.mubr.msk.bf16.mxu0 %vm2803_vm11, %v3240_v28  ;;  %v19608_v40 = vsel %vm4105_vm5, %v4034_v63, %v4176_v54  ;;  %v17471_v28 = vld [vmem:[%s22807_s6 + $0x190] ss:$8 sps:$4 sm:$0xff]   ;;  %v17482_v51 = vld [vmem:[%s22807_s6 + $0x1c4] ss:$8 sps:$4 sm:$0xff]   ;;  %v17480_v54 = vld [vmem:[%s22807_s6 + $0x1c0] ss:$8 sps:$4 sm:$0xff]  }
 0x496   : > { %3679 = vmatmul.mubr.bf16.gmra.mrb[136].mxu0 %v3239_v24  ;;  %v4281_v4 = vpack.c.bf16 %v19608_v40, %v19606_v18  ;;  %4881 = vmatpush1.bf16.msra.mxu1 %v17450_v33  ;;  %v17477_v63 = vld [vmem:[%s22807_s6 + $0x1b0] ss:$8 sps:$4 sm:$0xff]   ;;  %v17479_v24 = vld [vmem:[%s22807_s6 + $0x1b4] ss:$8 sps:$4 sm:$0xff]   ;;  %v19639_v6 = vld [vmem:[%s22850_s11] ss:$0 sm:$0xff] }
 0x497   : > { %4882 = vmatprep.subr.bf16.mxu1 %v17455_v48  ;;  %v17485_v43 = vld [vmem:[%s22807_s6 + $0x1d4] ss:$8 sps:$4 sm:$0xff]   ;;  %v3544_v5 = vadd.f32 %v19334_v27, %v19639_v6  ;;  %v17488_v33 = vld [vmem:[%s22807_s6 + $0x1e4] ss:$8 sps:$4 sm:$0xff]   ;;  %s17849_s11 = smov 96   ;;  %vm3743_vm11 = vcmask 1048320  }
 0x498   : > { %v17489_v27 = vld [vmem:[%s22807_s6 + $0x1f0] ss:$8 sps:$4 sm:$0xff]  }
 0x49a   : > { %4883 = vmatpush1.bf16.msra.mxu1 %v17453_v34 }
 0x49b   : > { %4884 = vmatprep.subr.bf16.mxu1 %v17458_v55  ;;  %v3547_v55 = vadd.f32 %v19336_v56, %v19639_v6 }
 0x49e   : > { %4885 = vmatpush1.bf16.msra.mxu1 %v17456_v7  ;;  %v17486_v7 = vld [vmem:[%s22807_s6 + $0x1e0] ss:$8 sps:$4 sm:$0xff]  }
 0x49f   : > { %4886 = vmatprep.subr.bf16.mxu1 %v17461_v2 }
 0x4a2   : > { %4887 = vmatpush1.bf16.msra.mxu1 %v17459_v0 }
 0x4a3   : > { %4888 = vmatprep.subr.bf16.mxu1 %v17464_v61 }
 0x4a6   : > { %4889 = vmatpush1.bf16.msra.mxu1 %v17462_v60  ;;  %v17491_v60 = vld [vmem:[%s22807_s6 + $0x1f4] ss:$8 sps:$4 sm:$0xff]  }
 0x4a7   : > { %4890 = vmatprep.subr.bf16.mxu1 %v17467_v3  ;;  %v3552_v3 = vadd.f32 %v19338_v30, %v19639_v6 }
 0x4aa   : > { %4891 = vmatpush1.bf16.msra.mxu1 %v17465_v58 }
 0x4ab   : > { %4892 = vmatprep.subr.bf16.mxu1 %v17470_v8 }
 0x4ae   : > { %4893 = vmatpush1.bf16.msra.mxu1 %v17468_v44  ;;  %v3555_v44 = vadd.f32 %v19340_v17, %v19639_v6 }
 0x4af   : > { %4894 = vmatprep.subr.bf16.mxu1 %v17473_v14 }
 0x4b2   : > { %4895 = vmatpush1.bf16.msra.mxu1 %v17471_v28 }
 0x4b3   : > { %4896 = vmatprep.subr.bf16.mxu1 %v17476_v45 }
 0x4b6   : > { %4897 = vmatpush1.bf16.msra.mxu1 %v17474_v19  ;;  %v17494_v19 = vld [vmem:[%s22807_s6 + $0x204] ss:$8 sps:$4 sm:$0xff]  }
 0x4b7   : > { %4898 = vmatprep.subr.bf16.mxu1 %v17479_v24 }
 0x4ba   : > { %4899 = vmatpush1.bf16.msra.mxu1 %v17477_v63  ;;  %v3560_v63 = vadd.f32 %v19342_v21, %v19639_v6 }
 0x4bb   : > { %4900 = vmatprep.subr.bf16.mxu1 %v17482_v51 }
 0x4be   : > { %4901 = vmatpush1.bf16.msra.mxu1 %v17480_v54  ;;  %v3563_v54 = vadd.f32 %v19344_v47, %v19639_v6  ;;  %v3576_v47 = vadd.f32 %v19350_v36, %v19639_v6  ;;  %v3587_v36 = vadd.f32 %v19356_v22, %v19639_v6 }
 0x4bf   : > { %4902 = vmatprep.subr.bf16.mxu1 %v17485_v43 }
 0x4c2   : > { %4903 = vmatpush1.bf16.msra.mxu1 %v17483_v23 }
 0x4c3   : > { %4904 = vmatprep.subr.bf16.mxu1 %v17488_v33 }
 0x4c6   : > { %4905 = vmatpush1.bf16.msra.mxu1 %v17486_v7 }
 0x4c7   : > { %4906 = vmatprep.subr.bf16.mxu1 %v17491_v60 }
 0x4ca   : > { %4907 = vmatpush1.bf16.msra.mxu1 %v17489_v27 }
 0x4cb   : > { %4979 = vmatprep.subr.bf16.mxu1 %v17494_v19 }
 0x539   : > { %v3632_v49 = vpop.f32.mrb[112].mxu0 }
 0x53a   : > { %v3633_v48 = vadd.f32 %v3632_v49, %v3544_v5  ;;  %v3634_v34 = vpop.f32.mrb[113].mxu0  ;;  %v3568_v5 = vadd.f32 %v19346_v52, %v19639_v6  ;;  %v3579_v52 = vadd.f32 %v19352_v59, %v19639_v6 }
 0x53b   : > { %v3635_v2 = vpop.f32.mrb[114].mxu0 }
 0x53c   : > { %v3636_v0 = vadd.f32 %v3635_v2, %v3547_v55  ;;  %v3637_v61 = vpop.f32.mrb[115].mxu0  ;;  %3701 = vrot.lane.b32.xlu0 %v3633_v48, %s17849_s11  ;;  %v3571_v48 = vadd.f32 %v19348_v37, %v19639_v6  ;;  %v3584_v37 = vadd.f32 %v19354_v9, %v19639_v6 }
 0x53e   : > { %3703 = vrot.lane.b32.xlu1 %v3636_v0, %s17849_s11 }
 0x541   : > { %v3640_v58 = vpop.f32.mrb[116].mxu0 }
 0x542   : > { %v3641_v56 = vadd.f32 %v3640_v58, %v3552_v3  ;;  %v3642_v8 = vpop.f32.mrb[117].mxu0 }
 0x543   : > { %v3643_v14 = vpop.f32.mrb[118].mxu0 }
 0x544   : > { %v3644_v28 = vadd.f32 %v3643_v14, %v3555_v44  ;;  %v3645_v45 = vpop.f32.mrb[119].mxu0  ;;  %3705 = vrot.lane.b32.xlu0 %v3641_v56, %s17849_s11 }
 0x546   : > { %3707 = vrot.lane.b32.xlu1 %v3644_v28, %s17849_s11  ;;  %v3592_v28 = vadd.f32 %v19358_v41, %v19639_v6  ;;  %v17510_v41 = vld [vmem:[%s22851_s3 + $0x8] sm:$0xff]  }
 0x549   : > { %v3648_v30 = vpop.f32.mrb[120].mxu0 }
 0x54a   : > { %v3649_v24 = vadd.f32 %v3648_v30, %v3560_v63  ;;  %v3650_v51 = vpop.f32.mrb[121].mxu0  ;;  %v3595_v63 = vadd.f32 %v19360_v13, %v19639_v6  ;;  %v17511_v6 = vld [vmem:[%s22851_s3 + $0x10] sm:$0xff]  }
 0x54b   : > { %v3651_v17 = vpop.f32.mrb[122].mxu0  ;;  %v17509_v51 = vld [vmem:[%s22851_s3] sm:$0xff]  }
 0x54c   : > { %v3652_v23 = vadd.f32 %v3651_v17, %v3563_v54  ;;  %v3653_v43 = vpop.f32.mrb[123].mxu0  ;;  %3709 = vrot.lane.b32.xlu0 %v3649_v24, %s17849_s11  ;;  %5496 = vmatpush1.bf16.msra.mxu0 %v17509_v51  ;;  %v19701_v17 = vrot.slane %v19378_v12, %v19365_v11 }
 0x54d   : > { %5497 = vmatprep.subr.bf16.mxu0 %v22835_v35  ;;  %v17512_v43 = vld [vmem:[%s22851_s3 + $0x18] sm:$0xff]  }
 0x54e   : > { %3711 = vrot.lane.b32.xlu1 %v3652_v23, %s17849_s11  ;;  %v19705_v23 = vrot.slane %v19393_v16, %v19365_v11 }
 0x550   : > { %5498 = vmatpush1.bf16.msra.mxu0 %v17510_v41 }
 0x551   : > { %v3656_v49 = vpop.f32.mrb[124].mxu0  ;;  %5499 = vmatprep.subr.bf16.mxu0 %v22835_v35 }
 0x552   : > { %v3657_v33 = vadd.f32 %v3656_v49, %v3568_v5  ;;  %v3658_v21 = vpop.f32.mrb[125].mxu0 }
 0x553   : > { %v3659_v34 = vpop.f32.mrb[126].mxu0 }
 0x554   : > { %v3660_v55 = vadd.f32 %v3659_v34, %v3571_v48  ;;  %v3661_v7 = vpop.f32.mrb[127].mxu0  ;;  %3713 = vrot.lane.b32.xlu0 %v3657_v33, %s17849_s11  ;;  %5500 = vmatpush1.bf16.msra.mxu0 %v17511_v6  ;;  %v17513_v48 = vld [vmem:[%s22851_s3 + $0x20] sm:$0xff]  }
 0x555   : > { %5501 = vmatprep.subr.bf16.mxu0 %v22835_v35 }
 0x556   : > { %3715 = vrot.lane.b32.xlu1 %v3660_v55, %s17849_s11 }
 0x558   : > { %5502 = vmatpush1.bf16.msra.mxu0 %v17512_v43  ;;  %v17503_v43 = vld [vmem:[%s22807_s6 + $0x234] ss:$8 sps:$4 sm:$0xff]  }
 0x559   : > { %v3664_v2 = vpop.f32.mrb[128].mxu0  ;;  %5503 = vmatprep.subr.bf16.mxu0 %v22835_v35 }
 0x55a   : > { %v3665_v0 = vadd.f32 %v3664_v2, %v3576_v47  ;;  %v3666_v61 = vpop.f32.mrb[129].mxu0  ;;  %v17514_v47 = vld [vmem:[%s22851_s3 + $0x28] sm:$0xff]  }
 0x55b   : > { %v3667_v27 = vpop.f32.mrb[130].mxu0 }
 0x55c   : > { %v3668_v60 = vadd.f32 %v3667_v27, %v3579_v52  ;;  %v3669_v3 = vpop.f32.mrb[131].mxu0  ;;  %3717 = vrot.lane.b32.xlu0 %v3665_v0, %s17849_s11  ;;  %5504 = vmatpush1.bf16.msra.mxu0 %v17513_v48 }
 0x55d   : > { %5505 = vmatprep.subr.bf16.mxu0 %v22835_v35 }
 0x55e   : > { %3719 = vrot.lane.b32.xlu1 %v3668_v60, %s17849_s11 }
 0x560   : > { %5506 = vmatpush1.bf16.msra.mxu0 %v17514_v47 }
 0x561   : > { %v3672_v58 = vpop.f32.mrb[132].mxu0  ;;  %5507 = vmatprep.subr.bf16.mxu0 %v22835_v35 }
 0x562   : > { %v3673_v56 = vadd.f32 %v3672_v58, %v3584_v37  ;;  %v3674_v8 = vpop.f32.mrb[133].mxu0  ;;  %v17492_v37 = vld [vmem:[%s22807_s6 + $0x200] ss:$8 sps:$4 sm:$0xff]  }
 0x563   : > { %v3675_v44 = vpop.f32.mrb[134].mxu0 }
 0x564   : > { %v3676_v14 = vadd.f32 %v3675_v44, %v3587_v36  ;;  %v3677_v59 = vpop.f32.mrb[135].mxu0  ;;  %3721 = vrot.lane.b32.xlu0 %v3673_v56, %s17849_s11  ;;  %v17497_v36 = vld [vmem:[%s22807_s6 + $0x214] ss:$8 sps:$4 sm:$0xff]  }
 0x565   : > { %v17515_v44 = vld [vmem:[%s22851_s3 + $0x30] sm:$0xff]  }
 0x566   : > { %3723 = vrot.lane.b32.xlu1 %v3676_v14, %s17849_s11  ;;  %v22852_v14 = vpack.c.bf16 %v19438_v39, %v19427_v20  ;;  %5508 = vmatpush1.bf16.msra.mxu0 %v17515_v44 }
 0x567   : > { %5509 = vmatprep.subr.bf16.mxu0 %v22835_v35 }
 0x569   : > { %v3680_v45 = vpop.f32.mrb[136].mxu0 }
 0x56a   : > { %v3681_v9 = vadd.f32 %v3680_v45, %v3592_v28  ;;  %v3682_v19 = vpop.f32.mrb[137].mxu0  ;;  %v17495_v45 = vld [vmem:[%s22807_s6 + $0x210] ss:$8 sps:$4 sm:$0xff]  }
 0x56b   : > { %v3683_v30 = vpop.f32.mrb[138].mxu0  ;;  %v17500_v19 = vld [vmem:[%s22807_s6 + $0x224] ss:$8 sps:$4 sm:$0xff]  }
 0x56c   : > { %v3684_v22 = vadd.f32 %v3683_v30, %v3595_v63  ;;  %v3685_v24 = vpop.f32.mrb[139].mxu0  ;;  %3725 = vrot.lane.b32.xlu0 %v3681_v9, %s17849_s11 }
 0x56e   : > { %3727 = vrot.lane.b32.xlu1 %v3684_v22, %s17849_s11  ;;  %s22857_s11 = sld [smem:[#allocation23_spill]] }
 0x5ae   : > { %v3702_v54 = vpop.permute.xlu0 %3701 }
 0x5af   : > { %3744 = vst.msk [vmem:[#allocation2 + $0x18] sm:$0xff] %vm3743_vm11, %v3702_v54 }
 0x5b0   : > { %3746 = vst.msk [vmem:[#allocation2 + $0x20] sm:$0xff] %vm3745_vm10, %v3702_v54  ;;  %v3704_v13 = vpop.permute.xlu1 %3703  ;;  %v17498_v54 = vld [vmem:[%s22807_s6 + $0x220] ss:$8 sps:$4 sm:$0xff]  }
 0x5b1   : > { %3747 = vst.msk [vmem:[#allocation2 + $0x40] sm:$0xff] %vm3743_vm11, %v3704_v13 }
 0x5b2   : > { %3748 = vst.msk [vmem:[#allocation2 + $0x48] sm:$0xff] %vm3745_vm10, %v3704_v13 }
 0x5b6   : > { %v3706_v5 = vpop.permute.xlu0 %3705  ;;  %v3776_v49 = vld [vmem:[#allocation2 + $0x18] sm:$0xff] }
 0x5b7   : > { %3749 = vst.msk [vmem:[#allocation2 + $0x68] sm:$0xff] %vm3743_vm11, %v3706_v5  ;;  %v3873_v33 = vmul.f32 %v19701_v17, %v3776_v49 }
 0x5b8   : > { %3750 = vst.msk [vmem:[#allocation2 + $0x70] sm:$0xff] %vm3745_vm10, %v3706_v5  ;;  %v3708_v12 = vpop.permute.xlu1 %3707  ;;  %v3781_v21 = vld [vmem:[#allocation2 + $0x40] sm:$0xff]  ;;  %v22853_v5 = vpack.c.bf16 %v19470_v25, %v19467_v42 }
 0x5b9   : > { %3751 = vst.msk [vmem:[#allocation2 + $0x90] sm:$0xff] %vm3743_vm11, %v3708_v12  ;;  %v3878_v11 = vmul.f32 %v19701_v17, %v3781_v21  ;;  %v3970_v16 = vadd.f32 %v19705_v23, %v3873_v33 }
 0x5ba   : > { %3752 = vst.msk [vmem:[#allocation2 + $0x98] sm:$0xff] %vm3745_vm10, %v3708_v12  ;;  %v17501_v12 = vld [vmem:[%s22807_s6 + $0x230] ss:$8 sps:$4 sm:$0xff]  }
 0x5bb   : > { %v3975_v34 = vadd.f32 %v19705_v23, %v3878_v11  ;;  %v4112_v55 = vmul.f32 %v18581_v10, %v3970_v16  ;;  %vm4041_vm6 = vcmp.ge.f32.partialorder %v3970_v16, 0.0  ;;  %v17506_v11 = vld [vmem:[%s22807_s6 + $0x244] ss:$8 sps:$4 sm:$0xff]  }
 0x5bd   : > { %vm4046_vm7 = vcmp.ge.f32.partialorder %v3975_v34, 0.0  ;;  %v4117_v7 = vmul.f32 %v18581_v10, %v3975_v34  ;;  %v4182_v61 = vsel %vm4041_vm6, %v3970_v16, %v4112_v55 }
 0x5be   : > { %v3710_v2 = vpop.permute.xlu0 %3709  ;;  %v3786_v0 = vld [vmem:[#allocation2 + $0x68] sm:$0xff] }
 0x5bf   : > { %3753 = vst.msk [vmem:[#allocation2 + $0xb8] sm:$0xff] %vm3743_vm11, %v3710_v2  ;;  %v4187_v52 = vsel %vm4046_vm7, %v3975_v34, %v4117_v7  ;;  %v3883_v27 = vmul.f32 %v19701_v17, %v3786_v0  ;;  %v4358_v34 = vld [vmem:[%s22807_s6 + $0x250] sm:$0xff]  ;;  %v17504_v0 = vld [vmem:[%s22807_s6 + $0x240] ss:$8 sps:$4 sm:$0xff]   ;;  %s13999_s6 = sld [smem:[#allocation5 + $0x4]] }
 0x5c0   : > { %3754 = vst.msk [vmem:[#allocation2 + $0xc0] sm:$0xff] %vm3745_vm10, %v3710_v2  ;;  %v3712_v60 = vpop.permute.xlu1 %3711  ;;  %v4252_v3 = vpack.c.bf16 %v4187_v52, %v4182_v61  ;;  %v3791_v58 = vld [vmem:[#allocation2 + $0x90] sm:$0xff] }
 0x5c1   : > { %3755 = vst.msk [vmem:[#allocation2 + $0xe0] sm:$0xff] %vm3743_vm11, %v3712_v60  ;;  %v3888_v56 = vmul.f32 %v19701_v17, %v3791_v58  ;;  %v3980_v8 = vadd.f32 %v19705_v23, %v3883_v27  ;;  %v13990_v27 = vcombine.high %v4358_v34, %v4358_v34 }
 0x5c2   : > { %3756 = vst.msk [vmem:[#allocation2 + $0xe8] sm:$0xff] %vm3745_vm10, %v3712_v60  ;;  %4908 = vmatprep.mubr.bf16.mxu1 %v4252_v3  ;;  %v13989_v60 = vcombine.low %v4358_v34, %v4358_v34  ;;  %v22854_v3 = vpack.c.bf16 %v19500_v38, %v19498_v32 }
 0x5c3   : > { %4909 = vmatmul.mubr.bf16.vlgmr.msra.gmra.mrb[28].mxu1 %v22852_v14  ;;  %v3985_v59 = vadd.f32 %v19705_v23, %v3888_v56  ;;  %v4122_v28 = vmul.f32 %v18581_v10, %v3980_v8  ;;  %vm4051_vm9 = vcmp.ge.f32.partialorder %v3980_v8, 0.0 }
 0x5c4   : > { %4980 = vmatpush1.bf16.msra.mxu1 %v17492_v37 }
 0x5c5   : > { %vm4056_vm12 = vcmp.ge.f32.partialorder %v3985_v59, 0.0  ;;  %v4127_v9 = vmul.f32 %v18581_v10, %v3985_v59  ;;  %4981 = vmatprep.subr.bf16.mxu1 %v17497_v36  ;;  %v4192_v20 = vsel %vm4051_vm9, %v3980_v8, %v4122_v28  ;;  %v4768_v8 = vsel %vm2563_vm8, %v13989_v60, 0 }
 0x5c6   : > { %v3714_v63 = vpop.permute.xlu0 %3713  ;;  %v3796_v30 = vld [vmem:[#allocation2 + $0xb8] sm:$0xff] }
 0x5c7   : > { %3757 = vst.msk [vmem:[#allocation2 + $0x108] sm:$0xff] %vm3743_vm11, %v3714_v63  ;;  %v4197_v39 = vsel %vm4056_vm12, %v3985_v59, %v4127_v9  ;;  %v3893_v22 = vmul.f32 %v19701_v17, %v3796_v30 }
 0x5c8   : > { %3758 = vst.msk [vmem:[#allocation2 + $0x110] sm:$0xff] %vm3745_vm10, %v3714_v63  ;;  %v3716_v24 = vpop.permute.xlu1 %3715  ;;  %v4257_v51 = vpack.c.bf16 %v4197_v39, %v4192_v20  ;;  %v3801_v41 = vld [vmem:[#allocation2 + $0xe0] sm:$0xff]  ;;  %4982 = vmatpush1.bf16.msra.mxu1 %v17495_v45  ;;  %v22855_v63 = vpack.c.bf16 %v19538_v57, %v19535_v1 }
 0x5c9   : > { %3759 = vst.msk [vmem:[#allocation2 + $0x130] sm:$0xff] %vm3743_vm11, %v3716_v24  ;;  %v3898_v13 = vmul.f32 %v19701_v17, %v3801_v41  ;;  %v3990_v6 = vadd.f32 %v19705_v23, %v3893_v22  ;;  %4983 = vmatprep.subr.bf16.mxu1 %v17500_v19 }
 0x5ca   : > { %3760 = vst.msk [vmem:[#allocation2 + $0x138] sm:$0xff] %vm3745_vm10, %v3716_v24  ;;  %4918 = vmatprep.mubr.bf16.mxu1 %v4257_v51 }
 0x5cb   : > { %4919 = vmatmul.mubr.bf16.gmra.mrb[32].mxu1 %v22853_v5  ;;  %v3995_v49 = vadd.f32 %v19705_v23, %v3898_v13  ;;  %v4132_v33 = vmul.f32 %v18581_v10, %v3990_v6  ;;  %vm4061_vm13 = vcmp.ge.f32.partialorder %v3990_v6, 0.0  ;;  %v22856_v5 = vpack.c.bf16 %v19567_v31, %v19565_v50 }
 0x5cc   : > { %4984 = vmatpush1.bf16.msra.mxu1 %v17498_v54 }
 0x5cd   : > { %vm4066_vm14 = vcmp.ge.f32.partialorder %v3995_v49, 0.0  ;;  %v4137_v21 = vmul.f32 %v18581_v10, %v3995_v49  ;;  %4985 = vmatprep.subr.bf16.mxu1 %v17503_v43  ;;  %v4202_v42 = vsel %vm4061_vm13, %v3990_v6, %v4132_v33 }
 0x5ce   : > { %v3718_v16 = vpop.permute.xlu0 %3717  ;;  %v3806_v48 = vld [vmem:[#allocation2 + $0x108] sm:$0xff] }
 0x5cf   : > { %3761 = vst.msk [vmem:[#allocation2 + $0x158] sm:$0xff] %vm3743_vm11, %v3718_v16  ;;  %v4207_v25 = vsel %vm4066_vm14, %v3995_v49, %v4137_v21  ;;  %v3903_v55 = vmul.f32 %v19701_v17, %v3806_v48 }
 0x5d0   : > { %3762 = vst.msk [vmem:[#allocation2 + $0x160] sm:$0xff] %vm3745_vm10, %v3718_v16  ;;  %v3720_v7 = vpop.permute.xlu1 %3719  ;;  %v4262_v47 = vpack.c.bf16 %v4207_v25, %v4202_v42  ;;  %v3811_v2 = vld [vmem:[#allocation2 + $0x130] sm:$0xff]  ;;  %4986 = vmatpush1.bf16.msra.mxu1 %v17501_v12  ;;  %v3863_v12 = vsub.s32 4, %v18201_v26  ;;  %v3782_v42 = vld [vmem:[#allocation2 + $0x48] sm:$0xff]  ;;  %v17704_v25 = vld [vmem:[%s22823_s1] sm:$0x1f] }
 0x5d1   : > { %3763 = vst.msk [vmem:[#allocation2 + $0x180] sm:$0xff] %vm3743_vm11, %v3720_v7  ;;  %v3908_v61 = vmul.f32 %v19701_v17, %v3811_v2  ;;  %v4000_v52 = vadd.f32 %v19705_v23, %v3903_v55  ;;  %4987 = vmatprep.subr.bf16.mxu1 %v17506_v11  ;;  %s22858_s1 = sld [smem:[#allocation24_spill]] }
 0x5d2   : > { %3764 = vst.msk [vmem:[#allocation2 + $0x188] sm:$0xff] %vm3745_vm10, %v3720_v7  ;;  %4928 = vmatprep.mubr.bf16.mxu1 %v4262_v47  ;;  %v19807_v50 = vrot.slane %v17704_v25, %v3863_v12  ;;  %v3777_v47 = vld [vmem:[#allocation2 + $0x20] sm:$0xff] }
 0x5d3   : > { %4929 = vmatmul.mubr.bf16.gmra.mrb[36].mxu1 %v22854_v3  ;;  %v4005_v37 = vadd.f32 %v19705_v23, %v3908_v61  ;;  %v4142_v58 = vmul.f32 %v18581_v10, %v4000_v52  ;;  %vm4071_vm0 = vcmp.ge.f32.partialorder %v4000_v52, 0.0 }
 0x5d4   : > { %4988 = vmatpush1.bf16.msra.mxu1 %v17504_v0  ;;  %v3879_v2 = vmul.f32 %v19807_v50, %v3782_v42 }
 0x5d5   : > { %vm4076_vm2 = vcmp.ge.f32.partialorder %v4005_v37, 0.0  ;;  %v4147_v56 = vmul.f32 %v18581_v10, %v4005_v37  ;;  %13991 = vmatprep.subr.msk.bf16.mxu1 %vm2563_vm8, %v13990_v27  ;;  %v4212_v32 = vsel %vm4071_vm0, %v4000_v52, %v4142_v58  ;;  %v17705_v52 = vld [vmem:[%s22824_s28] sm:$0x1f] }
 0x5d6   : > { %v3722_v36 = vpop.permute.xlu0 %3721  ;;  %v3816_v44 = vld [vmem:[#allocation2 + $0x158] sm:$0xff]  ;;  %v19818_v27 = vrot.slane %v17705_v52, %v3863_v12 }
 0x5d7   : > { %3765 = vst.msk [vmem:[#allocation2 + $0x1a8] sm:$0xff] %vm3743_vm11, %v3722_v36  ;;  %v4217_v38 = vsel %vm4076_vm2, %v4005_v37, %v4147_v56  ;;  %v3913_v14 = vmul.f32 %v19701_v17, %v3816_v44  ;;  %v3792_v56 = vld [vmem:[#allocation2 + $0x98] sm:$0xff]  ;;  %v3817_v12 = vld [vmem:[#allocation2 + $0x160] sm:$0xff] }
 0x5d8   : > { %3766 = vst.msk [vmem:[#allocation2 + $0x1b0] sm:$0xff] %vm3745_vm10, %v3722_v36  ;;  %v3724_v59 = vpop.permute.xlu1 %3723  ;;  %v4267_v28 = vpack.c.bf16 %v4217_v38, %v4212_v32  ;;  %v3821_v45 = vld [vmem:[#allocation2 + $0x180] sm:$0xff]  ;;  %4990 = vmatpush1.bf16.msra.mxu1 %v4768_v8  ;;  %v3976_v3 = vadd.f32 %v19818_v27, %v3879_v2  ;;  %v3889_v8 = vmul.f32 %v19807_v50, %v3792_v56 }
 0x5d9   : > { %3767 = vst.msk [vmem:[#allocation2 + $0x1d0] sm:$0xff] %vm3743_vm11, %v3724_v59  ;;  %v3918_v9 = vmul.f32 %v19701_v17, %v3821_v45  ;;  %v4010_v19 = vadd.f32 %v19705_v23, %v3913_v14  ;;  %15227 = vmatprep.subr.bf16.mxu1 %v22827_v53  ;;  %v3802_v14 = vld [vmem:[#allocation2 + $0xe8] sm:$0xff] }
 0x5da   : > { %3768 = vst.msk [vmem:[#allocation2 + $0x1d8] sm:$0xff] %vm3745_vm10, %v3724_v59  ;;  %4938 = vmatprep.mubr.bf16.mxu1 %v4267_v28  ;;  %vm4047_vm9 = vcmp.ge.f32.partialorder %v3976_v3, 0.0  ;;  %v3986_v38 = vadd.f32 %v19818_v27, %v3889_v8  ;;  %v3899_v40 = vmul.f32 %v19807_v50, %v3802_v14 }
 0x5db   : > { %4939 = vmatmul.mubr.bf16.gmra.mrb[40].mxu1 %v22855_v63  ;;  %v4015_v30 = vadd.f32 %v19705_v23, %v3918_v9  ;;  %v4152_v20 = vmul.f32 %v18581_v10, %v4010_v19  ;;  %vm4081_vm3 = vcmp.ge.f32.partialorder %v4010_v19, 0.0  ;;  %v3797_v9 = vld [vmem:[#allocation2 + $0xc0] sm:$0xff] }
 0x5dc   : > { %v4128_v18 = vmul.f32 %v18581_v10, %v3986_v38  ;;  %vm4057_vm13 = vcmp.ge.f32.partialorder %v3986_v38, 0.0 }
 0x5dd   : > { %vm4086_vm4 = vcmp.ge.f32.partialorder %v4015_v30, 0.0  ;;  %v4157_v39 = vmul.f32 %v18581_v10, %v4015_v30  ;;  %v4222_v51 = vsel %vm4081_vm3, %v4010_v19, %v4152_v20  ;;  %v3894_v19 = vmul.f32 %v19807_v50, %v3797_v9  ;;  %v3812_v20 = vld [vmem:[#allocation2 + $0x138] sm:$0xff]  ;;  %v17517_v9 = vld [vmem:[%s22851_s3 + $0x40] sm:$0xff]  }
 0x5de   : > { %v3726_v22 = vpop.permute.xlu0 %3725  ;;  %v3826_v24 = vld [vmem:[#allocation2 + $0x1a8] sm:$0xff]  ;;  %v4198_v63 = vsel %vm4057_vm13, %v3986_v38, %v4128_v18  ;;  %vm1286_vm13 = vcmask 588804   ;;  %v17519_v18 = vld [vmem:[%s22851_s3 + $0x50] sm:$0xff]  }
 0x5df   : > { %3769 = vst.msk [vmem:[#allocation2 + $0x1f8] sm:$0xff] %vm3743_vm11, %v3726_v22  ;;  %v4227_v41 = vsel %vm4086_vm4, %v4015_v30, %v4157_v39  ;;  %v3923_v54 = vmul.f32 %v19701_v17, %v3826_v24  ;;  %v3996_v30 = vadd.f32 %v19818_v27, %v3899_v40  ;;  %v17520_v40 = vld [vmem:[%s22851_s3 + $0x58] sm:$0xff]  }
 0x5e0   : > { %3770 = vst.msk [vmem:[#allocation2 + $0x200] sm:$0xff] %vm3745_vm10, %v3726_v22  ;;  %v3728_v1 = vpop.permute.xlu1 %3727  ;;  %v4272_v57 = vpack.c.bf16 %v4227_v41, %v4222_v51  ;;  %v3831_v13 = vld [vmem:[#allocation2 + $0x1d0] sm:$0xff]  ;;  %v3991_v22 = vadd.f32 %v19818_v27, %v3894_v19 }
 0x5e1   : > { %3771 = vst.msk [vmem:[#allocation2 + $0x220] sm:$0xff] %vm3743_vm11, %v3728_v1  ;;  %v3928_v6 = vmul.f32 %v19701_v17, %v3831_v13  ;;  %v4020_v43 = vadd.f32 %v19705_v23, %v3923_v54  ;;  %v3807_v51 = vld [vmem:[#allocation2 + $0x110] sm:$0xff]  ;;  %v4138_v41 = vmul.f32 %v18581_v10, %v3996_v30  ;;  %v3909_v54 = vmul.f32 %v19807_v50, %v3812_v20  ;;  %v3832_v25 = vld [vmem:[#allocation2 + $0x1d8] sm:$0xff]  ;;  %v22860_v20 = vld [vmem:[#allocation43_spill] sm:$0xff] }
 0x5e2   : > { %3772 = vst.msk [vmem:[#allocation2 + $0x228] sm:$0xff] %vm3745_vm10, %v3728_v1  ;;  %4948 = vmatprep.mubr.bf16.mxu1 %v4272_v57  ;;  %vm4067_vm0 = vcmp.ge.f32.partialorder %v3996_v30, 0.0  ;;  %v4133_v1 = vmul.f32 %v18581_v10, %v3991_v22  ;;  %v3904_v57 = vmul.f32 %v19807_v50, %v3807_v51  ;;  %vm4062_vm2 = vcmp.ge.f32.partialorder %v3991_v22, 0.0 }
 0x5e3   : > { %4949 = vmatmul.mubr.bf16.gmra.mrb[44].mxu1 %v22856_v5  ;;  %v4025_v49 = vadd.f32 %v19705_v23, %v3928_v6  ;;  %v4162_v33 = vmul.f32 %v18581_v10, %v4020_v43  ;;  %vm4091_vm5 = vcmp.ge.f32.partialorder %v4020_v43, 0.0  ;;  %v4208_v13 = vsel %vm4067_vm0, %v3996_v30, %v4138_v41  ;;  %1287 = vst.msk [vmem:[#allocation4 + $0x78] sm:$0xf0] %vm1286_vm13, %v22835_v35  ;;  %v5082_v30 = vld [vmem:[%s22858_s1] sm:$0x3]  ;;  %s22863_s1 = sld [smem:[#allocation27_spill]] }
 0x5e4   : > { %v4006_v6 = vadd.f32 %v19818_v27, %v3909_v54  ;;  %v4203_v5 = vsel %vm4062_vm2, %v3991_v22, %v4133_v1  ;;  %v3929_v2 = vmul.f32 %v19807_v50, %v3832_v25  ;;  %v5122_v22 = vld [vmem:[%s22859_s5] sm:$0x3]  ;;  %v19908_v51 = vrot.slane %v5082_v30, %v22860_v20  ;;  %s22861_s5 = sld [smem:[#allocation12_spill]] }
 0x5e5   : > { %vm4096_vm11 = vcmp.ge.f32.partialorder %v4025_v49, 0.0  ;;  %v4167_v21 = vmul.f32 %v18581_v10, %v4025_v49  ;;  %v4232_v16 = vsel %vm4091_vm5, %v4020_v43, %v4162_v33  ;;  %v3822_v43 = vld [vmem:[#allocation2 + $0x188] sm:$0xff]  ;;  %v4263_v33 = vpack.c.bf16 %v4208_v13, %v4203_v5 }
 0x5e6   : > { %v3836_v11 = vld [vmem:[#allocation2 + $0x1f8] sm:$0xff]  ;;  %vm4077_vm3 = vcmp.ge.f32.partialorder %v4006_v6, 0.0  ;;  %v19911_v54 = vrot.slane %v5082_v30, %v18208_v29 }
 0x5e7   : > { %v4237_v48 = vsel %vm4096_vm11, %v4025_v49, %v4167_v21  ;;  %v3933_v34 = vmul.f32 %v19701_v17, %v3836_v11  ;;  %v4001_v49 = vadd.f32 %v19818_v27, %v3904_v57  ;;  %v4148_v21 = vmul.f32 %v18581_v10, %v4006_v6  ;;  %v3837_v56 = vld [vmem:[#allocation2 + $0x200] sm:$0xff] }
 0x5e8   : > { %v4277_v31 = vpack.c.bf16 %v4237_v48, %v4232_v16  ;;  %v3841_v55 = vld [vmem:[#allocation2 + $0x220] sm:$0xff]  ;;  %v3919_v11 = vmul.f32 %v19807_v50, %v3822_v43  ;;  %v3914_v48 = vmul.f32 %v19807_v50, %v3817_v12  ;;  %v19915_v57 = vrot.slane %v5122_v22, %v22860_v20 }
 0x5e9   : > { %v3938_v7 = vmul.f32 %v19701_v17, %v3841_v55  ;;  %v4030_v26 = vadd.f32 %v19705_v23, %v3933_v34  ;;  %v3874_v17 = vmul.f32 %v19807_v50, %v3777_v47  ;;  %v4143_v16 = vmul.f32 %v18581_v10, %v4001_v49 }
 0x5ea   : > { %4958 = vmatprep.mubr.bf16.mxu1 %v4277_v31  ;;  %vm4072_vm4 = vcmp.ge.f32.partialorder %v4001_v49, 0.0  ;;  %v4218_v34 = vsel %vm4077_vm3, %v4006_v6, %v4148_v21  ;;  %v4016_v42 = vadd.f32 %v19818_v27, %v3919_v11  ;;  %v4011_v55 = vadd.f32 %v19818_v27, %v3914_v48 }
 0x5eb   : > { %4959 = vmatmul.mubr.bf16.gmra.mrb[48].mxu1 %v4276_v46  ;;  %v4035_v0 = vadd.f32 %v19705_v23, %v3938_v7  ;;  %v4172_v61 = vmul.f32 %v18581_v10, %v4030_v26  ;;  %vm4101_vm6 = vcmp.ge.f32.partialorder %v4030_v26, 0.0  ;;  %v3971_v15 = vadd.f32 %v19818_v27, %v3874_v17  ;;  %v3787_v46 = vld [vmem:[#allocation2 + $0x70] sm:$0xff] }
 0x5ec   : > { %v4118_v23 = vmul.f32 %v18581_v10, %v3976_v3  ;;  %v3884_v44 = vmul.f32 %v19807_v50, %v3787_v46  ;;  %v4213_v31 = vsel %vm4072_vm4, %v4001_v49, %v4143_v16  ;;  %v4158_v47 = vmul.f32 %v18581_v10, %v4016_v42 }
 0x5ed   : > { %vm4106_vm7 = vcmp.ge.f32.partialorder %v4035_v0, 0.0  ;;  %v4177_v60 = vmul.f32 %v18581_v10, %v4035_v0  ;;  %v4242_v37 = vsel %vm4101_vm6, %v4030_v26, %v4172_v61  ;;  %v4113_v36 = vmul.f32 %v18581_v10, %v3971_v15  ;;  %v3827_v26 = vld [vmem:[#allocation2 + $0x1b0] sm:$0xff] }
 0x5ee   : > { %vm4042_vm12 = vcmp.ge.f32.partialorder %v3971_v15, 0.0  ;;  %v4188_v32 = vsel %vm4047_vm9, %v3976_v3, %v4118_v23  ;;  %v3981_v28 = vadd.f32 %v19818_v27, %v3884_v44  ;;  %v4268_v7 = vpack.c.bf16 %v4218_v34, %v4213_v31 }
 0x5ef   : > { %v4247_v58 = vsel %vm4106_vm7, %v4035_v0, %v4177_v60  ;;  %v4183_v59 = vsel %vm4042_vm12, %v3971_v15, %v4113_v36  ;;  %vm4087_vm5 = vcmp.ge.f32.partialorder %v4016_v42, 0.0  ;;  %v4153_v0 = vmul.f32 %v18581_v10, %v4011_v55  ;;  %v3842_v60 = vld [vmem:[#allocation2 + $0x228] sm:$0xff] }
 0x5f0   : > { %v4282_v62 = vpack.c.bf16 %v4247_v58, %v4242_v37  ;;  %v4253_v45 = vpack.c.bf16 %v4188_v32, %v4183_v59  ;;  %vm4052_vm14 = vcmp.ge.f32.partialorder %v3981_v28, 0.0  ;;  %v3924_v61 = vmul.f32 %v19807_v50, %v3827_v26 }
 0x5f1   : > { %vm4082_vm11 = vcmp.ge.f32.partialorder %v4011_v55, 0.0  ;;  %v4228_v52 = vsel %vm4087_vm5, %v4016_v42, %v4158_v47  ;;  %v4026_v17 = vadd.f32 %v19818_v27, %v3929_v2  ;;  %v3939_v15 = vmul.f32 %v19807_v50, %v3842_v60 }
 0x5f2   : > { %4968 = vmatprep.mubr.bf16.mxu1 %v4282_v62  ;;  %v4223_v3 = vsel %vm4082_vm11, %v4011_v55, %v4153_v0  ;;  %v4021_v37 = vadd.f32 %v19818_v27, %v3924_v61  ;;  %v3934_v23 = vmul.f32 %v19807_v50, %v3837_v56  ;;  %v19919_v43 = vrot.slane %v5122_v22, %v18208_v29 }
 0x5f3   : > { %4969 = vmatmul.mubr.bf16.gmra.mrb[52].mxu1 %v4281_v4  ;;  %v4123_v4 = vmul.f32 %v18581_v10, %v3981_v28  ;;  %v4273_v58 = vpack.c.bf16 %v4228_v52, %v4223_v3  ;;  %v4168_v62 = vmul.f32 %v18581_v10, %v4026_v17  ;;  %vm4097_vm6 = vcmp.ge.f32.partialorder %v4026_v17, 0.0 }
 0x5f4   : > { %5011 = vmatprep.mubr.bf16.mxu1 %v22835_v35  ;;  %v4163_v46 = vmul.f32 %v18581_v10, %v4021_v37  ;;  %vm4092_vm7 = vcmp.ge.f32.partialorder %v4021_v37, 0.0  ;;  %v4036_v36 = vadd.f32 %v19818_v27, %v3939_v15  ;;  %v4031_v32 = vadd.f32 %v19818_v27, %v3934_v23  ;;  %v17516_v27 = vld [vmem:[%s22851_s3 + $0x38] sm:$0xff]  }
 0x5f5   : > { %v4193_v39 = vsel %vm4052_vm14, %v3981_v28, %v4123_v4  ;;  %v4238_v8 = vsel %vm4097_vm6, %v4026_v17, %v4168_v62  ;;  %5510 = vmatpush1.bf16.msra.mxu0 %v17516_v27  ;;  %v17521_v4 = vld [vmem:[%s22851_s3 + $0x60] ss:$0 sps:$4 sm:$0xff]   ;;  %v19923_v21 = vstv %s13999_s6  ;;  %s22862_s6 = sld [smem:[#allocation30_spill]] }
 0x5f6   : > { %v4258_v24 = vpack.c.bf16 %v4198_v63, %v4193_v39  ;;  %v4233_v44 = vsel %vm4092_vm7, %v4021_v37, %v4163_v46  ;;  %v4178_v14 = vmul.f32 %v18581_v10, %v4036_v36  ;;  %vm4107_vm9 = vcmp.ge.f32.partialorder %v4036_v36, 0.0  ;;  %5511 = vmatprep.subr.bf16.mxu0 %v22835_v35  ;;  %v4359_v63 = vld [vmem:[%s22857_s11] sm:$0x3]  ;;  %s22864_s11 = sld [smem:[#allocation28_spill]] }
 0x5f7   : > { %v4278_v38 = vpack.c.bf16 %v4238_v8, %v4233_v44  ;;  %v4173_v50 = vmul.f32 %v18581_v10, %v4031_v32  ;;  %vm4102_vm12 = vcmp.ge.f32.partialorder %v4031_v32, 0.0  ;;  %v17518_v10 = vld [vmem:[%s22851_s3 + $0x48] sm:$0xff]   ;;  %v5493_v19 = vsel %vm2563_vm8, %v17521_v4, 0 }
 0x5f8   : > { %v4248_v59 = vsel %vm4107_vm9, %v4036_v36, %v4178_v14  ;;  %v19901_v39 = vrot.slane %v4359_v63, %v22860_v20  ;;  %vm5336_vm7 = vcmask 588800  }
 0x5f9   : > { %v4243_v28 = vsel %vm4102_vm12, %v4031_v32, %v4173_v50  ;;  %5512 = vmatpush1.bf16.msra.mxu0 %v17517_v9 }
 0x5fa   : > { %5513 = vmatprep.subr.bf16.mxu0 %v22835_v35 }
 0x5fb   : > { %13992 = vmatmul.mubr.msk.bf16.vlgmr.msra.gmra.mrb[28].mxu1 %vm3745_vm10, %v4253_v45  ;;  %v4283_v45 = vpack.c.bf16 %v4248_v59, %v4243_v28 }
 0x5fc   : > { %5021 = vmatprep.mubr.bf16.mxu1 %v22835_v35 }
 0x5fd   : > { %5514 = vmatpush1.bf16.msra.mxu0 %v17518_v10 }
 0x5fe   : > { %5515 = vmatprep.subr.bf16.mxu0 %v22835_v35 }
 0x601   : > { %5516 = vmatpush1.bf16.msra.mxu0 %v17519_v18 }
 0x602   : > { %5517 = vmatprep.subr.bf16.mxu0 %v22835_v35 }
 0x603   : > { %13993 = vmatmul.mubr.msk.bf16.gmra.mrb[32].mxu1 %vm3745_vm10, %v4258_v24  ;;  %v19905_v24 = vrot.slane %v4359_v63, %v18208_v29 }
 0x604   : > { %5031 = vmatprep.mubr.bf16.mxu1 %v22835_v35 }
 0x605   : > { %5518 = vmatpush1.bf16.msra.mxu0 %v17520_v40 }
 0x606   : > { %5519 = vmatprep.subr.bf16.mxu0 %v22835_v35 }
 0x609   : > { %5520 = vmatpush1.bf16.msra.mxu0 %v5493_v19 }
 0x60a   : > { %5867 = vmatprep.subr.bf16.mxu0 %v22835_v35 }
 0x60b   : > { %13994 = vmatmul.mubr.msk.bf16.gmra.mrb[36].mxu1 %vm3745_vm10, %v4263_v33 }
 0x60c   : > { %5041 = vmatprep.mubr.bf16.mxu1 %v22835_v35 }
 0x613   : > { %13995 = vmatmul.mubr.msk.bf16.gmra.mrb[40].mxu1 %vm3745_vm10, %v4268_v7 }
 0x614   : > { %5051 = vmatprep.mubr.bf16.mxu1 %v22835_v35 }
 0x61b   : > { %13996 = vmatmul.mubr.msk.bf16.gmra.mrb[44].mxu1 %vm3745_vm10, %v4273_v58 }
 0x61c   : > { %5061 = vmatprep.mubr.bf16.mxu1 %v22835_v35 }
 0x623   : > { %13997 = vmatmul.mubr.msk.bf16.gmra.mrb[48].mxu1 %vm3745_vm10, %v4278_v38 }
 0x624   : > { %5071 = vmatprep.mubr.bf16.mxu1 %v22835_v35 }
 0x62b   : > { %13998 = vmatmul.mubr.msk.bf16.gmra.mrb[52].mxu1 %vm3745_vm10, %v4283_v45  ;;  %vm1283_vm10 = vcmask 584704  }
 0x62c   : > { %15231 = vmatprep.mubr.msk.bf16.mxu1 %vm17847_vm15, %v22827_v53  ;;  %1284 = vst.msk [vmem:[#allocation4 + $0x8] sm:$0xf] %vm1283_vm10, %v22835_v35 }
 0x6ce   : > { %v5013_v41 = vpop.f32.mrb[28].mxu1 }
 0x6cf   : > { %v16177_v1 = vadd.f32 %v5013_v41, %v19901_v39  ;;  %v5015_v13 = vpop.f32.mrb[29].mxu1 }
 0x6d0   : > { %v16178_v6 = vadd.f32 %v5015_v13, %v19905_v24  ;;  %v5017_v5 = vpop.f32.mrb[30].mxu1 }
 0x6d1   : > { %v5094_v49 = vmul.f32 %v16177_v1, %v19908_v51  ;;  %v16179_v33 = vadd.f32 %v5017_v5, %v19901_v39  ;;  %v5019_v12 = vpop.f32.mrb[31].mxu1 }
 0x6d2   : > { %v5095_v11 = vmul.f32 %v16178_v6, %v19911_v54  ;;  %v16180_v16 = vadd.f32 %v5019_v12, %v19905_v24 }
 0x6d3   : > { %v5134_v48 = vadd.f32 %v19915_v57, %v5094_v49  ;;  %v5096_v34 = vmul.f32 %v16179_v33, %v19908_v51 }
 0x6d4   : > { %v5135_v42 = vadd.f32 %v19919_v43, %v5095_v11  ;;  %v5097_v29 = vmul.f32 %v16180_v16, %v19911_v54 }
 0x6d5   : > { %vm5163_vm14 = vcmp.ge.f32.partialorder %v5134_v48, 0.0  ;;  %v5192_v25 = vmul.f32 %v19923_v21, %v5134_v48  ;;  %v5136_v31 = vadd.f32 %v19915_v57, %v5096_v34 }
 0x6d6   : > { %vm5164_vm0 = vcmp.ge.f32.partialorder %v5135_v42, 0.0  ;;  %v5193_v55 = vmul.f32 %v19923_v21, %v5135_v42  ;;  %v5137_v7 = vadd.f32 %v19919_v43, %v5097_v29  ;;  %v5023_v26 = vpop.f32.mrb[32].mxu1 }
 0x6d7   : > { %vm5165_vm2 = vcmp.ge.f32.partialorder %v5136_v31, 0.0  ;;  %v5194_v47 = vmul.f32 %v19923_v21, %v5136_v31  ;;  %v16181_v2 = vadd.f32 %v5023_v26, %v19901_v39  ;;  %v5025_v0 = vpop.f32.mrb[33].mxu1  ;;  %v5220_v61 = vsel %vm5163_vm14, %v5134_v48, %v5192_v25 }
 0x6d8   : > { %vm5166_vm3 = vcmp.ge.f32.partialorder %v5137_v7, 0.0  ;;  %v5195_v52 = vmul.f32 %v19923_v21, %v5137_v7  ;;  %v16182_v17 = vadd.f32 %v5025_v0, %v19905_v24  ;;  %v5027_v60 = vpop.f32.mrb[34].mxu1  ;;  %v5221_v3 = vsel %vm5164_vm0, %v5135_v42, %v5193_v55 }
 0x6d9   : > { %v5222_v37 = vsel %vm5165_vm2, %v5136_v31, %v5194_v47  ;;  %v5098_v58 = vmul.f32 %v16181_v2, %v19908_v51  ;;  %v16183_v56 = vadd.f32 %v5027_v60, %v19901_v39  ;;  %v5029_v62 = vpop.f32.mrb[35].mxu1 }
 0x6da   : > { %v5262_v15 = vpack.c.bf16 %v5222_v37, %v5220_v61  ;;  %v5223_v46 = vsel %vm5166_vm3, %v5137_v7, %v5195_v52  ;;  %v5099_v23 = vmul.f32 %v16182_v17, %v19911_v54  ;;  %v16184_v8 = vadd.f32 %v5029_v62, %v19905_v24  ;;  %v17522_v7 = vld [vmem:[%s22851_s3 + $0x64] sm:$0xff]  }
 0x6db   : > { %v5263_v36 = vpack.c.bf16 %v5223_v46, %v5221_v3  ;;  %v5138_v44 = vadd.f32 %v19915_v57, %v5098_v58  ;;  %v5100_v32 = vmul.f32 %v16183_v56, %v19908_v51 }
 0x6dc   : > { %v5291_v38 = vrot.slane %v5262_v15, 4  ;;  %v5139_v14 = vadd.f32 %v19919_v43, %v5099_v23  ;;  %v5101_v50 = vmul.f32 %v16184_v8, %v19911_v54 }
 0x6dd   : > { %v5292_v59 = vrot.slane %v5263_v36, 4  ;;  %vm5167_vm4 = vcmp.ge.f32.partialorder %v5138_v44, 0.0  ;;  %v5196_v28 = vmul.f32 %v19923_v21, %v5138_v44  ;;  %v5140_v45 = vadd.f32 %v19915_v57, %v5100_v32 }
 0x6de   : > { %5333 = vst [vmem:[#allocation4] sm:$0xf0] %v5291_v38  ;;  %vm5168_vm5 = vcmp.ge.f32.partialorder %v5139_v14, 0.0  ;;  %v5197_v27 = vmul.f32 %v19923_v21, %v5139_v14  ;;  %v5141_v9 = vadd.f32 %v19919_v43, %v5101_v50  ;;  %v5033_v10 = vpop.f32.mrb[36].mxu1 }
 0x6df   : > { %5334 = vst.msk [vmem:[#allocation4 + $0x8] sm:$0xf0] %vm1286_vm13, %v5292_v59  ;;  %vm5169_vm11 = vcmp.ge.f32.partialorder %v5140_v45, 0.0  ;;  %v5198_v18 = vmul.f32 %v19923_v21, %v5140_v45  ;;  %v16185_v40 = vadd.f32 %v5033_v10, %v19901_v39  ;;  %v5035_v4 = vpop.f32.mrb[37].mxu1  ;;  %v5224_v19 = vsel %vm5167_vm4, %v5138_v44, %v5196_v28  ;;  %v17523_v44 = vld [vmem:[%s22851_s3 + $0x6c] sm:$0xff]  }
 0x6e0   : > { %vm5170_vm6 = vcmp.ge.f32.partialorder %v5141_v9, 0.0  ;;  %v5199_v63 = vmul.f32 %v19923_v21, %v5141_v9  ;;  %v16186_v30 = vadd.f32 %v5035_v4, %v19905_v24  ;;  %v5037_v20 = vpop.f32.mrb[38].mxu1  ;;  %v5225_v22 = vsel %vm5168_vm5, %v5139_v14, %v5197_v27 }
 0x6e1   : > { %v5226_v41 = vsel %vm5169_vm11, %v5140_v45, %v5198_v18  ;;  %v5102_v1 = vmul.f32 %v16185_v40, %v19908_v51  ;;  %v16187_v13 = vadd.f32 %v5037_v20, %v19901_v39  ;;  %v5039_v6 = vpop.f32.mrb[39].mxu1 }
 0x6e2   : > { %v5264_v5 = vpack.c.bf16 %v5226_v41, %v5224_v19  ;;  %v5227_v49 = vsel %vm5170_vm6, %v5141_v9, %v5199_v63  ;;  %v5103_v33 = vmul.f32 %v16186_v30, %v19911_v54  ;;  %v16188_v12 = vadd.f32 %v5039_v6, %v19905_v24 }
 0x6e3   : > { %v5265_v11 = vpack.c.bf16 %v5227_v49, %v5225_v22  ;;  %v5142_v16 = vadd.f32 %v19915_v57, %v5102_v1  ;;  %v5104_v48 = vmul.f32 %v16187_v13, %v19908_v51  ;;  %v17524_v22 = vld [vmem:[%s22851_s3 + $0x74] sm:$0xff]  }
 0x6e4   : > { %v5293_v34 = vrot.slane %v5264_v5, 4  ;;  %v5143_v42 = vadd.f32 %v19919_v43, %v5103_v33  ;;  %v5105_v29 = vmul.f32 %v16188_v12, %v19911_v54 }
 0x6e5   : > { %v5295_v25 = vrot.slane %v5265_v11, 4  ;;  %vm5171_vm9 = vcmp.ge.f32.partialorder %v5142_v16, 0.0  ;;  %v5200_v31 = vmul.f32 %v19923_v21, %v5142_v16  ;;  %v5144_v55 = vadd.f32 %v19915_v57, %v5104_v48  ;;  %v19979_v3 = vld [vmem:[#allocation4] sm:$0xff] }
 0x6e6   : > { %v19968_v26 = vsel %vm2563_vm8, %v5291_v38, %v5293_v34  ;;  %vm5172_vm12 = vcmp.ge.f32.partialorder %v5143_v42, 0.0  ;;  %v5201_v47 = vmul.f32 %v19923_v21, %v5143_v42  ;;  %v5145_v2 = vadd.f32 %v19919_v43, %v5105_v29  ;;  %v5043_v0 = vpop.f32.mrb[40].mxu1  ;;  %v19972_v61 = vld [vmem:[#allocation4 + $0x8] sm:$0xff] }
 0x6e7   : > { %5335 = vst [vmem:[#allocation4 + $0x10] sm:$0xff] %v19968_v26  ;;  %v5296_v52 = vsel %vm2563_vm8, %v5292_v59, %v5295_v25  ;;  %vm5173_vm13 = vcmp.ge.f32.partialorder %v5144_v55, 0.0  ;;  %v5202_v17 = vmul.f32 %v19923_v21, %v5144_v55  ;;  %v5045_v60 = vpop.f32.mrb[41].mxu1  ;;  %14014 = vmatprep.mubr.msk.bf16.mxu0 %vm5336_vm7, %v19972_v61  ;;  %v5228_v37 = vsel %vm5171_vm9, %v5142_v16, %v5200_v31 }
 0x6e8   : > { %5337 = vst.msk [vmem:[#allocation4 + $0x18] sm:$0xff] %vm5336_vm7, %v5296_v52  ;;  %vm5174_vm14 = vcmp.ge.f32.partialorder %v5145_v2, 0.0  ;;  %v5203_v58 = vmul.f32 %v19923_v21, %v5145_v2  ;;  %v16189_v56 = vadd.f32 %v5043_v0, %v19901_v39  ;;  %v5047_v62 = vpop.f32.mrb[42].mxu1  ;;  %5528 = vmatmul.mubr.bf16.vlgmr.msra.gmra.mrb[140].mxu0 %v19979_v3  ;;  %v5229_v15 = vsel %vm5172_vm12, %v5143_v42, %v5201_v47 }
 0x6e9   : > { %v5230_v46 = vsel %vm5173_vm13, %v5144_v55, %v5202_v17  ;;  %v16190_v23 = vadd.f32 %v5045_v60, %v19905_v24  ;;  %v16191_v8 = vadd.f32 %v5047_v62, %v19901_v39  ;;  %v5049_v36 = vpop.f32.mrb[43].mxu1  ;;  %5868 = vmatpush1.bf16.msra.mxu0 %v17522_v7  ;;  %v17525_v55 = vld [vmem:[%s22851_s3 + $0x7c] sm:$0xff]  }
 0x6ea   : > { %v5266_v32 = vpack.c.bf16 %v5230_v46, %v5228_v37  ;;  %v5231_v38 = vsel %vm5174_vm14, %v5145_v2, %v5203_v58  ;;  %v5106_v14 = vmul.f32 %v16189_v56, %v19908_v51  ;;  %v16192_v50 = vadd.f32 %v5049_v36, %v19905_v24  ;;  %5869 = vmatprep.subr.bf16.mxu0 %v22835_v35 }
 0x6eb   : > { %v5267_v59 = vpack.c.bf16 %v5231_v38, %v5229_v15  ;;  %v5107_v28 = vmul.f32 %v16190_v23, %v19911_v54  ;;  %v5108_v45 = vmul.f32 %v16191_v8, %v19908_v51  ;;  %v17526_v23 = vld [vmem:[%s22851_s3 + $0x84] sm:$0xff]  }
 0x6ec   : > { %v5297_v27 = vrot.slane %v5266_v32, 4  ;;  %v5146_v9 = vadd.f32 %v19915_v57, %v5106_v14  ;;  %v5109_v10 = vmul.f32 %v16192_v50, %v19911_v54 }
 0x6ed   : > { %v5299_v18 = vrot.slane %v5267_v59, 4  ;;  %v5147_v40 = vadd.f32 %v19919_v43, %v5107_v28  ;;  %v5148_v4 = vadd.f32 %v19915_v57, %v5108_v45  ;;  %5870 = vmatpush1.bf16.msra.mxu0 %v17523_v44 }
 0x6ee   : > { %v20000_v19 = vsel %vm2563_vm8, %v5293_v34, %v5297_v27  ;;  %vm5175_vm0 = vcmp.ge.f32.partialorder %v5146_v9, 0.0  ;;  %v5204_v63 = vmul.f32 %v19923_v21, %v5146_v9  ;;  %v5149_v30 = vadd.f32 %v19919_v43, %v5109_v10  ;;  %v5053_v20 = vpop.f32.mrb[44].mxu1  ;;  %5871 = vmatprep.subr.bf16.mxu0 %v22835_v35 }
 0x6ef   : > { %5338 = vst [vmem:[#allocation4 + $0x20] sm:$0xff] %v20000_v19  ;;  %v5300_v41 = vsel %vm2563_vm8, %v5295_v25, %v5299_v18  ;;  %vm5176_vm2 = vcmp.ge.f32.partialorder %v5147_v40, 0.0  ;;  %v5205_v1 = vmul.f32 %v19923_v21, %v5147_v40  ;;  %vm5177_vm3 = vcmp.ge.f32.partialorder %v5148_v4, 0.0  ;;  %v5055_v13 = vpop.f32.mrb[45].mxu1  ;;  %v20009_v6 = vld [vmem:[#allocation4 + $0x18] sm:$0xff] }
 0x6f0   : > { %5339 = vst.msk [vmem:[#allocation4 + $0x28] sm:$0xff] %vm5336_vm7, %v5300_v41  ;;  %v5206_v5 = vmul.f32 %v19923_v21, %v5148_v4  ;;  %vm5178_vm4 = vcmp.ge.f32.partialorder %v5149_v30, 0.0  ;;  %v5207_v49 = vmul.f32 %v19923_v21, %v5149_v30  ;;  %v5057_v33 = vpop.f32.mrb[46].mxu1  ;;  %14015 = vmatprep.mubr.msk.bf16.mxu0 %vm5336_vm7, %v20009_v6  ;;  %v5232_v12 = vsel %vm5175_vm0, %v5146_v9, %v5204_v63  ;;  %v17527_v63 = vld [vmem:[%s22851_s3 + $0x8c] sm:$0xff]  }
 0x6f1   : > { %v16193_v11 = vadd.f32 %v5053_v20, %v19901_v39  ;;  %v16194_v16 = vadd.f32 %v5055_v13, %v19905_v24  ;;  %v16195_v48 = vadd.f32 %v5057_v33, %v19901_v39  ;;  %v5059_v34 = vpop.f32.mrb[47].mxu1  ;;  %5536 = vmatmul.mubr.bf16.gmra.mrb[144].mxu0 %v19968_v26  ;;  %v5233_v42 = vsel %vm5176_vm2, %v5147_v40, %v5205_v1 }
 0x6f2   : > { %v5234_v29 = vsel %vm5177_vm3, %v5148_v4, %v5206_v5  ;;  %v5235_v25 = vsel %vm5178_vm4, %v5149_v30, %v5207_v49  ;;  %v16196_v31 = vadd.f32 %v5059_v34, %v19905_v24  ;;  %5872 = vmatpush1.bf16.msra.mxu0 %v17524_v22 }
 0x6f3   : > { %v5268_v7 = vpack.c.bf16 %v5234_v29, %v5232_v12  ;;  %v5269_v47 = vpack.c.bf16 %v5235_v25, %v5233_v42  ;;  %v5110_v2 = vmul.f32 %v16193_v11, %v19908_v51  ;;  %v5111_v0 = vmul.f32 %v16194_v16, %v19911_v54  ;;  %5873 = vmatprep.subr.bf16.mxu0 %v22835_v35  ;;  %v17528_v42 = vld [vmem:[%s22851_s3 + $0x94] sm:$0xff]  }
 0x6f4   : > { %v5112_v52 = vmul.f32 %v16195_v48, %v19908_v51  ;;  %v5113_v17 = vmul.f32 %v16196_v31, %v19911_v54 }
 0x6f5   : > { %v5301_v60 = vrot.slane %v5268_v7, 4  ;;  %v5303_v37 = vrot.slane %v5269_v47, 4  ;;  %v5150_v58 = vadd.f32 %v19915_v57, %v5110_v2  ;;  %v5151_v56 = vadd.f32 %v19919_v43, %v5111_v0 }
 0x6f6   : > { %v5152_v62 = vadd.f32 %v19915_v57, %v5112_v52  ;;  %v5153_v15 = vadd.f32 %v19919_v43, %v5113_v17  ;;  %v5063_v46 = vpop.f32.mrb[48].mxu1  ;;  %5874 = vmatpush1.bf16.msra.mxu0 %v17525_v55 }
 0x6f7   : > { %v20036_v8 = vsel %vm2563_vm8, %v5297_v27, %v5301_v60  ;;  %v5304_v36 = vsel %vm2563_vm8, %v5299_v18, %v5303_v37  ;;  %vm5179_vm5 = vcmp.ge.f32.partialorder %v5150_v58, 0.0  ;;  %v5208_v44 = vmul.f32 %v19923_v21, %v5150_v58  ;;  %v5065_v32 = vpop.f32.mrb[49].mxu1  ;;  %v20040_v38 = vld [vmem:[#allocation4 + $0x28] sm:$0xff]  ;;  %5875 = vmatprep.subr.bf16.mxu0 %v22835_v35 }
 0x6f8   : > { %5340 = vst [vmem:[#allocation4 + $0x30] sm:$0xff] %v20036_v8  ;;  %5341 = vst.msk [vmem:[#allocation4 + $0x38] sm:$0xff] %vm5336_vm7, %v5304_v36  ;;  %vm5180_vm11 = vcmp.ge.f32.partialorder %v5151_v56, 0.0  ;;  %v5209_v14 = vmul.f32 %v19923_v21, %v5151_v56  ;;  %vm5181_vm6 = vcmp.ge.f32.partialorder %v5152_v62, 0.0  ;;  %v5210_v50 = vmul.f32 %v19923_v21, %v5152_v62  ;;  %v5067_v59 = vpop.f32.mrb[50].mxu1  ;;  %14016 = vmatprep.mubr.msk.bf16.mxu0 %vm5336_vm7, %v20040_v38 }
 0x6f9   : > { %v5236_v28 = vsel %vm5179_vm5, %v5150_v58, %v5208_v44  ;;  %vm5182_vm9 = vcmp.ge.f32.partialorder %v5153_v15, 0.0  ;;  %v5211_v45 = vmul.f32 %v19923_v21, %v5153_v15  ;;  %v16197_v27 = vadd.f32 %v5063_v46, %v19901_v39  ;;  %v5069_v9 = vpop.f32.mrb[51].mxu1  ;;  %5544 = vmatmul.mubr.bf16.gmra.mrb[148].mxu0 %v20000_v19 }
 0x6fa   : > { %v5237_v10 = vsel %vm5180_vm11, %v5151_v56, %v5209_v14  ;;  %v5238_v18 = vsel %vm5181_vm6, %v5152_v62, %v5210_v50  ;;  %v16198_v40 = vadd.f32 %v5065_v32, %v19905_v24  ;;  %v16199_v4 = vadd.f32 %v5067_v59, %v19901_v39  ;;  %5876 = vmatpush1.bf16.msra.mxu0 %v17526_v23 }
 0x6fb   : > { %v5270_v30 = vpack.c.bf16 %v5238_v18, %v5236_v28  ;;  %v5239_v20 = vsel %vm5182_vm9, %v5153_v15, %v5211_v45  ;;  %v5114_v22 = vmul.f32 %v16197_v27, %v19908_v51  ;;  %v16200_v41 = vadd.f32 %v5069_v9, %v19905_v24  ;;  %5877 = vmatprep.subr.bf16.mxu0 %v22835_v35  ;;  %v17529_v15 = vld [vmem:[%s22851_s3 + $0x9c] sm:$0xff]  }
 0x6fc   : > { %v5271_v1 = vpack.c.bf16 %v5239_v20, %v5237_v10  ;;  %v5115_v13 = vmul.f32 %v16198_v40, %v19911_v54  ;;  %v5116_v5 = vmul.f32 %v16199_v4, %v19908_v51  ;;  %v17530_v40 = vld [vmem:[%s22851_s3 + $0xa4] sm:$0xff]   ;;  %vm6014_vm11 = vcmask 1046528  }
 0x6fd   : > { %v5305_v49 = vrot.slane %v5270_v30, 4  ;;  %v5154_v33 = vadd.f32 %v19915_v57, %v5114_v22  ;;  %v5117_v12 = vmul.f32 %v16200_v41, %v19911_v54  ;;  %v17531_v41 = vld [vmem:[%s22851_s3 + $0xac] sm:$0xff]   ;;  %vm6284_vm6 = vsmask.f32 4352 }
 0x6fe   : > { %v5307_v11 = vrot.slane %v5271_v1, 4  ;;  %v5155_v16 = vadd.f32 %v19919_v43, %v5115_v13  ;;  %v5156_v48 = vadd.f32 %v19915_v57, %v5116_v5  ;;  %v5073_v34 = vpop.f32.mrb[52].mxu1  ;;  %5878 = vmatpush1.bf16.msra.mxu0 %v17527_v63  ;;  %vm6875_vm9 = vsmask.f32 3328 }
 0x6ff   : > { %v20066_v29 = vsel %vm2563_vm8, %v5301_v60, %v5305_v49  ;;  %vm5183_vm12 = vcmp.ge.f32.partialorder %v5154_v33, 0.0  ;;  %v5212_v25 = vmul.f32 %v19923_v21, %v5154_v33  ;;  %v5157_v31 = vadd.f32 %v19919_v43, %v5117_v12  ;;  %v5075_v55 = vpop.f32.mrb[53].mxu1  ;;  %v20070_v7 = vld [vmem:[#allocation4 + $0x38] sm:$0xff]  ;;  %5879 = vmatprep.subr.bf16.mxu0 %v22835_v35 }
 0x700   : > { %5342 = vst [vmem:[#allocation4 + $0x40] sm:$0xff] %v20066_v29  ;;  %v5308_v47 = vsel %vm2563_vm8, %v5303_v37, %v5307_v11  ;;  %vm5184_vm13 = vcmp.ge.f32.partialorder %v5155_v16, 0.0  ;;  %v5213_v2 = vmul.f32 %v19923_v21, %v5155_v16  ;;  %vm5185_vm14 = vcmp.ge.f32.partialorder %v5156_v48, 0.0  ;;  %v5077_v0 = vpop.f32.mrb[54].mxu1  ;;  %14017 = vmatprep.mubr.msk.bf16.mxu0 %vm5336_vm7, %v20070_v7 }
 0x701   : > { %5343 = vst.msk [vmem:[#allocation4 + $0x48] sm:$0xff] %vm5336_vm7, %v5308_v47  ;;  %v5214_v52 = vmul.f32 %v19923_v21, %v5156_v48  ;;  %vm5186_vm0 = vcmp.ge.f32.partialorder %v5157_v31, 0.0  ;;  %v5215_v17 = vmul.f32 %v19923_v21, %v5157_v31  ;;  %v5079_v60 = vpop.f32.mrb[55].mxu1  ;;  %5552 = vmatmul.mubr.bf16.gmra.mrb[152].mxu0 %v20036_v8  ;;  %v5240_v37 = vsel %vm5183_vm12, %v5154_v33, %v5212_v25 }
 0x702   : > { %v16201_v58 = vadd.f32 %v5073_v34, %v19901_v39  ;;  %v16202_v56 = vadd.f32 %v5075_v55, %v19905_v24  ;;  %v16203_v62 = vadd.f32 %v5077_v0, %v19901_v39  ;;  %5880 = vmatpush1.bf16.msra.mxu0 %v17528_v42  ;;  %v5241_v46 = vsel %vm5184_vm13, %v5155_v16, %v5213_v2  ;;  %v17533_v42 = vld [vmem:[%s22851_s3 + $0xbc] sm:$0xff]   ;;  %v17534_v55 = vld [vmem:[%s22851_s3 + $0xc4] ss:$0 sps:$4 sm:$0xff]  }
 0x703   : > { %v5242_v23 = vsel %vm5185_vm14, %v5156_v48, %v5214_v52  ;;  %v5243_v36 = vsel %vm5186_vm0, %v5157_v31, %v5215_v17  ;;  %v16204_v44 = vadd.f32 %v5079_v60, %v19905_v24  ;;  %5881 = vmatprep.subr.bf16.mxu0 %v22835_v35  ;;  %v5656_v34 = vshll.u32 %v19972_v61, 16 }
 0x704   : > { %v5272_v32 = vpack.c.bf16 %v5242_v23, %v5240_v37  ;;  %v5273_v14 = vpack.c.bf16 %v5243_v36, %v5241_v46  ;;  %v5118_v50 = vmul.f32 %v16201_v58, %v19908_v51  ;;  %v5119_v59 = vmul.f32 %v16202_v56, %v19911_v54 }
 0x705   : > { %v5120_v39 = vmul.f32 %v16203_v62, %v19908_v51  ;;  %v5121_v28 = vmul.f32 %v16204_v44, %v19911_v54  ;;  %v20135_v25 = vshll.u32 %v20009_v6, 16  ;;  %v5658_v31 = vrot.slane %v5656_v34, 1  ;;  %v17535_v44 = vld [vmem:[%s22851_s3 + $0xc8] sm:$0xff]  }
 0x706   : > { %v5309_v45 = vrot.slane %v5272_v32, 4  ;;  %v5311_v27 = vrot.slane %v5273_v14, 4  ;;  %v5158_v9 = vadd.f32 %v19915_v57, %v5118_v50  ;;  %v5159_v10 = vadd.f32 %v19919_v43, %v5119_v59  ;;  %5882 = vmatpush1.bf16.msra.mxu0 %v17529_v15 }
 0x707   : > { %v5160_v24 = vadd.f32 %v19915_v57, %v5120_v39  ;;  %v5161_v18 = vadd.f32 %v19919_v43, %v5121_v28  ;;  %5883 = vmatprep.subr.bf16.mxu0 %v22835_v35  ;;  %v5644_v47 = vshll.u32 %v19979_v3, 16  ;;  %v5654_v2 = vshrl.u32 %v19972_v61, 16  ;;  %v17536_v39 = vld [vmem:[%s22851_s3 + $0xd0] sm:$0xff]  }
 0x708   : > { %v20102_v4 = vsel %vm2563_vm8, %v5305_v49, %v5309_v45  ;;  %v5312_v51 = vsel %vm2563_vm8, %v5307_v11, %v5311_v27  ;;  %vm5187_vm2 = vcmp.ge.f32.partialorder %v5158_v9, 0.0  ;;  %v5216_v54 = vmul.f32 %v19923_v21, %v5158_v9  ;;  %v20106_v63 = vld [vmem:[#allocation4 + $0x48] sm:$0xff]  ;;  %v17532_v11 = vld [vmem:[%s22851_s3 + $0xb4] sm:$0xff]  }
 0x709   : > { %5344 = vst [vmem:[#allocation4 + $0x50] sm:$0xff] %v20102_v4  ;;  %5345 = vst.msk [vmem:[#allocation4 + $0x58] sm:$0xff] %vm5336_vm7, %v5312_v51  ;;  %vm5188_vm3 = vcmp.ge.f32.partialorder %v5159_v10, 0.0  ;;  %v5217_v57 = vmul.f32 %v19923_v21, %v5159_v10  ;;  %vm5189_vm4 = vcmp.ge.f32.partialorder %v5160_v24, 0.0  ;;  %v5218_v43 = vmul.f32 %v19923_v21, %v5160_v24  ;;  %14018 = vmatprep.mubr.msk.bf16.mxu0 %vm5336_vm7, %v20106_v63 }
 0x70a   : > { %vm5190_vm5 = vcmp.ge.f32.partialorder %v5161_v18, 0.0  ;;  %v5219_v30 = vmul.f32 %v19923_v21, %v5161_v18  ;;  %5560 = vmatmul.mubr.bf16.gmra.mrb[156].mxu0 %v20066_v29  ;;  %v5244_v20 = vsel %vm5187_vm2, %v5158_v9, %v5216_v54  ;;  %v5663_v0 = vrot.slane %v20135_v25, 1 }
 0x70b   : > { %v5246_v22 = vsel %vm5189_vm4, %v5160_v24, %v5218_v43  ;;  %5884 = vmatpush1.bf16.msra.mxu0 %v17530_v40  ;;  %v5245_v1 = vsel %vm5188_vm3, %v5159_v10, %v5217_v57  ;;  %v5659_v17 = vor.u32 %v5658_v31, %v5654_v2  ;;  %v5865_v60 = vsel %vm2563_vm8, %v17534_v55, 0  ;;  %v17537_v24 = vld [vmem:[%s22851_s3 + $0xd8] sm:$0xff]   ;;  %v17538_v43 = vld [vmem:[%s22851_s3 + $0xe0] sm:$0xff]  }
 0x70c   : > { %v5274_v13 = vpack.c.bf16 %v5246_v22, %v5244_v20  ;;  %v5247_v5 = vsel %vm5190_vm5, %v5161_v18, %v5219_v30  ;;  %5885 = vmatprep.subr.bf16.mxu0 %v22835_v35  ;;  %v5646_v37 = vrot.slane %v5644_v47, 1  ;;  %v20149_v58 = vshll.u32 %v19968_v26, 16  ;;  %v17541_v2 = vld [vmem:[%s22851_s3 + $0xf8] sm:$0xff]  }
 0x70d   : > { %v5275_v49 = vpack.c.bf16 %v5247_v5, %v5245_v1  ;;  %v20154_v56 = vshll.u32 %v20040_v38, 16  ;;  %v5642_v62 = vshrl.u32 %v19979_v3, 16  ;;  %v20161_v23 = vshrl.u32 %v20009_v6, 16 }
 0x70e   : > { %v5313_v33 = vrot.slane %v5274_v13, 4  ;;  %v5651_v46 = vrot.slane %v20149_v58, 1  ;;  %v20168_v50 = vshll.u32 %v20000_v19, 16  ;;  %v20172_v59 = vshll.u32 %v20070_v7, 16  ;;  %v17539_v13 = vld [vmem:[%s22851_s3 + $0xe8] sm:$0xff]  }
 0x70f   : > { %v5315_v12 = vrot.slane %v5275_v49, 4  ;;  %5886 = vmatpush1.bf16.msra.mxu0 %v17531_v41  ;;  %v5647_v15 = vor.u32 %v5646_v37, %v5642_v62  ;;  %v5679_v36 = vrot.slane %v20154_v56, 1  ;;  %v5675_v32 = vor.u32 %v20161_v23, %v5663_v0  ;;  %v17542_v62 = vld [vmem:[%s22851_s3 + $0x100] sm:$0xff]  }
 0x710   : > { %v20120_v16 = vsel %vm2563_vm8, %v5309_v45, %v5313_v33  ;;  %5348 = vst [vmem:[#allocation4 + $0x70] sm:$0xf] %v5313_v33  ;;  %v20122_v21 = vld [vmem:[#allocation4 + $0x58] sm:$0xff]  ;;  %5887 = vmatprep.subr.bf16.mxu0 %v22835_v35  ;;  %v20178_v28 = vshrl.u32 %v19968_v26, 16  ;;  %v5671_v45 = vrot.slane %v20168_v50, 1  ;;  %v5695_v9 = vrot.slane %v20172_v59, 1 }
 0x711   : > { %5346 = vst [vmem:[#allocation4 + $0x60] sm:$0xff] %v20120_v16  ;;  %v5316_v48 = vsel %vm2563_vm8, %v5311_v27, %v5315_v12  ;;  %5349 = vst.msk [vmem:[#allocation4 + $0x78] sm:$0xf] %vm1283_vm10, %v5315_v12  ;;  %14019 = vmatprep.mubr.msk.bf16.mxu0 %vm5336_vm7, %v20122_v21  ;;  %vm5640_vm10 = vsmask.f32 7424  ;;  %v20182_v27 = vshrl.u32 %v20040_v38, 16 }
 0x712   : > { %5347 = vst.msk [vmem:[#allocation4 + $0x68] sm:$0xff] %vm5336_vm7, %v5316_v48  ;;  %5568 = vmatmul.mubr.bf16.gmra.mrb[160].mxu0 %v20102_v4  ;;  %v5664_v61 = vsel %vm5640_vm10, %v5659_v17, %v5663_v0  ;;  %v5652_v14 = vsel %vm5640_vm10, %v5647_v15, %v5651_v46  ;;  %v5680_v3 = vsel %vm5640_vm10, %v5675_v32, %v5679_v36  ;;  %v20191_v51 = vshll.u32 %v20036_v8, 16  ;;  %v17540_v48 = vld [vmem:[%s22851_s3 + $0xf0] sm:$0xff]  }
 0x713   : > { %5888 = vmatpush1.bf16.msra.mxu0 %v17532_v11  ;;  %v5667_v10 = vor.u32 %v20178_v28, %v5651_v46  ;;  %v5691_v18 = vor.u32 %v20182_v27, %v5679_v36  ;;  %v20195_v57 = vshll.u32 %v20106_v63, 16  ;;  %v20201_v30 = vshrl.u32 %v20000_v19, 16 }
 0x714   : > { %5889 = vmatprep.subr.bf16.mxu0 %v22835_v35  ;;  %v5687_v20 = vrot.slane %v20191_v51, 1  ;;  %v20205_v22 = vshrl.u32 %v20070_v7, 16  ;;  %v20214_v33 = vshll.u32 %v20066_v29, 16  ;;  %v20218_v11 = vshll.u32 %v20122_v21, 16 }
 0x715   : > { %v5672_v40 = vsel %vm5640_vm10, %v5667_v10, %v5671_v45  ;;  %v5696_v54 = vsel %vm5640_vm10, %v5691_v18, %v5695_v9  ;;  %v5711_v41 = vrot.slane %v20195_v57, 1  ;;  %v5683_v1 = vor.u32 %v20201_v30, %v5671_v45 }
 0x716   : > { %v5707_v5 = vor.u32 %v20205_v22, %v5695_v9  ;;  %v20224_v34 = vshrl.u32 %v20036_v8, 16  ;;  %v20228_v31 = vshrl.u32 %v20106_v63, 16  ;;  %v5727_v55 = vrot.slane %v20218_v11, 1 }
 0x717   : > { %5890 = vmatpush1.bf16.msra.mxu0 %v17533_v42  ;;  %v5688_v49 = vsel %vm5640_vm10, %v5683_v1, %v5687_v20  ;;  %v5703_v42 = vrot.slane %v20214_v33, 1  ;;  %v20247_v15 = vshrl.u32 %v20066_v29, 16  ;;  %v20251_v36 = vshrl.u32 %v20122_v21, 16 }
 0x718   : > { %5891 = vmatprep.subr.bf16.mxu0 %v22835_v35  ;;  %v5712_v12 = vsel %vm5640_vm10, %v5707_v5, %v5711_v41  ;;  %v5699_v47 = vor.u32 %v20224_v34, %v5687_v20  ;;  %v5723_v0 = vor.u32 %v20228_v31, %v5711_v41  ;;  %v20260_v45 = vshll.u32 %v20120_v16, 16  ;;  %v20262_v9 = vld [vmem:[#allocation4 + $0x78] sm:$0x1]  ;;  %v20277_v41 = vld [vmem:[#allocation4 + $0x70] sm:$0x1] }
 0x719   : > { %v20143_v52 = vld [vmem:[#allocation4 + $0x68] sm:$0xff]  ;;  %v5715_v32 = vor.u32 %v20247_v15, %v5703_v42  ;;  %vm7201_vm12 = vcmask 1040384   ;;  %vm7469_vm13 = vsmask.f32 256  ;;  %vm7960_vm14 = vcmask 195584  }
 0x71a   : > { %14020 = vmatprep.mubr.msk.bf16.mxu0 %vm5336_vm7, %v20143_v52  ;;  %v5704_v17 = vsel %vm5640_vm10, %v5699_v47, %v5703_v42  ;;  %v5728_v37 = vsel %vm5640_vm10, %v5723_v0, %v5727_v55  ;;  %v20269_v18 = vshrl.u32 %v20143_v52, 16  ;;  %v17546_v42 = vld [vmem:[%s22851_s3 + $0x120] sm:$0xff]   ;;  %v20290_v47 = vshrl.u32 %v20120_v16, 16  ;;  %v5971_v0 = vld [vmem:[#allocation4 + $0x8] sm:$0xfe] }
 0x71b   : > { %5576 = vmatmul.mubr.bf16.gmra.mrb[164].mxu0 %v20120_v16  ;;  %vm8194_vm3 = vcmask 195588  }
 0x71c   : > { %14059 = vmatprep.mubr.msk.bf16.mxu0 %vm5336_vm7, %v5664_v61  ;;  %5892 = vmatpush1.bf16.msra.mxu0 %v5865_v60  ;;  %v20237_v60 = vshll.u32 %v20102_v4, 16  ;;  %v20241_v61 = vshll.u32 %v20143_v52, 16 }
 0x71d   : > { %6151 = vmatprep.subr.bf16.mxu0 %v22835_v35 }
 0x71e   : > { %v5719_v46 = vrot.slane %v20237_v60, 1 }
 0x723   : > { %5900 = vmatmul.mubr.bf16.vlgmr.msra.gmra.mrb[140].mxu0 %v5652_v14  ;;  %v17543_v14 = vld [vmem:[%s22851_s3 + $0x108] sm:$0xff]  }
 0x724   : > { %14060 = vmatprep.mubr.msk.bf16.mxu0 %vm5336_vm7, %v5680_v3  ;;  %6152 = vmatpush1.bf16.msra.mxu0 %v17535_v44  ;;  %v5743_v44 = vrot.slane %v20241_v61, 1  ;;  %v5739_v3 = vor.u32 %v20251_v36, %v5727_v55  ;;  %v17547_v55 = vld [vmem:[%s22851_s3 + $0x128] ss:$0 sps:$4 sm:$0xff]  }
 0x725   : > { %6153 = vmatprep.subr.bf16.mxu0 %v22835_v35 }
 0x726   : > { %v5744_v10 = vsel %vm5640_vm10, %v5739_v3, %v5743_v44  ;;  %v5755_v20 = vor.u32 %v20269_v18, %v5743_v44  ;;  %v6016_v3 = vrot.slane %v19968_v26, 1  ;;  %v6027_v26 = vrot.slane %v20070_v7, 1 }
 0x728   : > { %6154 = vmatpush1.bf16.msra.mxu0 %v17536_v39  ;;  %v5720_v39 = vsel %vm5640_vm10, %v5715_v32, %v5719_v46 }
 0x729   : > { %6155 = vmatprep.subr.bf16.mxu0 %v22835_v35 }
 0x72b   : > { %5908 = vmatmul.mubr.bf16.gmra.mrb[144].mxu0 %v5672_v40  ;;  %v5757_v40 = vshll.u32 %v20262_v9, 16 }
 0x72c   : > { %14061 = vmatprep.mubr.msk.bf16.mxu0 %vm5336_vm7, %v5696_v54  ;;  %6156 = vmatpush1.bf16.msra.mxu0 %v17537_v24  ;;  %v17544_v24 = vld [vmem:[%s22851_s3 + $0x110] sm:$0xff]   ;;  %v20273_v54 = vshrl.u32 %v20102_v4, 16 }
 0x72d   : > { %6157 = vmatprep.subr.bf16.mxu0 %v22835_v35  ;;  %v5759_v5 = vrot.slane %v5757_v40, 1 }
 0x72e   : > { %v5731_v1 = vor.u32 %v20273_v54, %v5719_v46  ;;  %v6149_v46 = vsel %vm2563_vm8, %v17547_v55, 0 }
 0x730   : > { %6158 = vmatpush1.bf16.msra.mxu0 %v17538_v43  ;;  %v5735_v43 = vrot.slane %v20260_v45, 1 }
 0x731   : > { %6159 = vmatprep.subr.bf16.mxu0 %v22835_v35 }
 0x733   : > { %5916 = vmatmul.mubr.bf16.gmra.mrb[148].mxu0 %v5688_v49  ;;  %v5736_v49 = vsel %vm5640_vm10, %v5731_v1, %v5735_v43  ;;  %v17550_v1 = vld [vmem:[%s22851_s3 + $0x13c] sm:$0xff]  }
 0x734   : > { %14062 = vmatprep.mubr.msk.bf16.mxu0 %vm5336_vm7, %v5712_v12  ;;  %6160 = vmatpush1.bf16.msra.mxu0 %v17539_v13  ;;  %v17545_v13 = vld [vmem:[%s22851_s3 + $0x118] sm:$0xff]   ;;  %v5749_v12 = vshll.u32 %v20277_v41, 16 }
 0x735   : > { %6161 = vmatprep.subr.bf16.mxu0 %v22835_v35 }
 0x738   : > { %6162 = vmatpush1.bf16.msra.mxu0 %v17540_v48  ;;  %v5760_v48 = vsel %vm5640_vm10, %v5755_v20, %v5759_v5  ;;  %v6021_v20 = vrot.slane %v20000_v19, 1  ;;  %v6025_v19 = vrot.slane %v20036_v8, 1 }
 0x739   : > { %6163 = vmatprep.subr.bf16.mxu0 %v22835_v35 }
 0x73b   : > { %5924 = vmatmul.mubr.bf16.gmra.mrb[152].mxu0 %v5704_v17  ;;  %v6019_v17 = vrot.slane %v20009_v6, 1 }
 0x73c   : > { %14063 = vmatprep.mubr.msk.bf16.mxu0 %vm5336_vm7, %v5728_v37  ;;  %6164 = vmatpush1.bf16.msra.mxu0 %v17541_v2  ;;  %v5751_v2 = vrot.slane %v5749_v12, 1  ;;  %v5747_v37 = vor.u32 %v20290_v47, %v5735_v43  ;;  %v17549_v43 = vld [vmem:[%s22851_s3 + $0x134] sm:$0xff]   ;;  %v6031_v12 = vrot.slane %v20106_v63, 1 }
 0x73d   : > { %6165 = vmatprep.subr.bf16.mxu0 %v22835_v35 }
 0x73e   : > { %v5752_v44 = vsel %vm5640_vm10, %v5747_v37, %v5751_v2  ;;  %v6032_v55 = vsel %vm6014_vm11, %v6027_v26, %v6031_v12  ;;  %v17553_v2 = vld [vmem:[%s22851_s3 + $0x154] sm:$0xff]   ;;  %v17554_v37 = vld [vmem:[%s22851_s3 + $0x15c] sm:$0xff]  }
 0x740   : > { %6166 = vmatpush1.bf16.msra.mxu0 %v17542_v62  ;;  %v6018_v62 = vrot.slane %v5971_v0, 1  ;;  %v6029_v0 = vrot.slane %v20066_v29, 1 }
 0x741   : > { %6167 = vmatprep.subr.bf16.mxu0 %v22835_v35 }
 0x742   : > { %v6020_v32 = vsel %vm6014_vm11, %v6018_v62, %v6019_v17  ;;  %v6030_v62 = vsel %vm6014_vm11, %v6025_v19, %v6029_v0 }
 0x743   : > { %5932 = vmatmul.mubr.bf16.gmra.mrb[156].mxu0 %v5720_v39  ;;  %v6023_v39 = vrot.slane %v20040_v38, 1 }
 0x744   : > { %14064 = vmatprep.mubr.msk.bf16.mxu0 %vm5336_vm7, %v5744_v10  ;;  %6168 = vmatpush1.bf16.msra.mxu0 %v17543_v14  ;;  %v5970_v14 = vld [vmem:[#allocation4] sm:$0xfe]  ;;  %v17548_v10 = vld [vmem:[%s22851_s3 + $0x12c] sm:$0xff]  }
 0x745   : > { %6169 = vmatprep.subr.bf16.mxu0 %v22835_v35  ;;  %v6015_v6 = vrot.slane %v5970_v14, 1  ;;  %v6024_v40 = vsel %vm6014_vm11, %v6019_v17, %v6023_v39  ;;  %v6028_v5 = vsel %vm6014_vm11, %v6023_v39, %v6027_v26  ;;  %v6035_v17 = vrot.slane %v20122_v21, 1 }
 0x746   : > { %v6039_v14 = vrot.slane %v20143_v52, 1 }
 0x748   : > { %6170 = vmatpush1.bf16.msra.mxu0 %v17544_v24  ;;  %v6017_v24 = vsel %vm6014_vm11, %v6015_v6, %v6016_v3  ;;  %v17556_v6 = vld [vmem:[%s22851_s3 + $0x16c] sm:$0xff]   ;;  %v6040_v39 = vsel %vm6014_vm11, %v6035_v17, %v6039_v14 }
 0x749   : > { %6171 = vmatprep.subr.bf16.mxu0 %v22835_v35 }
 0x74b   : > { %5940 = vmatmul.mubr.bf16.gmra.mrb[160].mxu0 %v5736_v49  ;;  %v17551_v49 = vld [vmem:[%s22851_s3 + $0x144] sm:$0xff]  }
 0x74c   : > { %14065 = vmatprep.mubr.msk.bf16.mxu0 %vm5336_vm7, %v5760_v48  ;;  %6172 = vmatpush1.bf16.msra.mxu0 %v17545_v13  ;;  %v6022_v13 = vsel %vm6014_vm11, %v6016_v3, %v6021_v20  ;;  %v17552_v48 = vld [vmem:[%s22851_s3 + $0x14c] sm:$0xff]  }
 0x74d   : > { %6173 = vmatprep.subr.bf16.mxu0 %v22835_v35 }
 0x750   : > { %6174 = vmatpush1.bf16.msra.mxu0 %v17546_v42  ;;  %v6026_v42 = vsel %vm6014_vm11, %v6021_v20, %v6025_v19  ;;  %v17558_v20 = vld [vmem:[%s22851_s3 + $0x17c] sm:$0xff]   ;;  %v6306_v19 = vrot.slane %v20135_v25, 4 }
 0x751   : > { %6175 = vmatprep.subr.bf16.mxu0 %v22835_v35 }
 0x753   : > { %5948 = vmatmul.mubr.bf16.gmra.mrb[164].mxu0 %v5752_v44  ;;  %v17555_v44 = vld [vmem:[%s22851_s3 + $0x164] sm:$0xff]  }
 0x754   : > { %14104 = vmatprep.mubr.msk.bf16.mxu0 %vm5336_vm7, %v6020_v32  ;;  %6176 = vmatpush1.bf16.msra.mxu0 %v6149_v46  ;;  %v6036_v46 = vsel %vm6014_vm11, %v6031_v12, %v6035_v17  ;;  %v6033_v32 = vrot.slane %v20102_v4, 1  ;;  %v6254_v12 = vld [vmem:[#allocation4] sm:$0xf8] }
 0x755   : > { %6473 = vmatprep.subr.bf16.mxu0 %v22835_v35  ;;  %v6289_v17 = vshll.u32 %v6254_v12, 16 }
 0x756   : > { %v6034_v3 = vsel %vm6014_vm11, %v6029_v0, %v6033_v32  ;;  %v6286_v0 = vshrl.u32 %v6254_v12, 16  ;;  %v17562_v12 = vld [vmem:[%s22851_s3 + $0x198] sm:$0xff]  }
 0x75b   : > { %6184 = vmatmul.mubr.bf16.vlgmr.msra.gmra.mrb[140].mxu0 %v6017_v24  ;;  %v6037_v24 = vrot.slane %v20120_v16, 1 }
 0x75c   : > { %14105 = vmatprep.mubr.msk.bf16.mxu0 %vm5336_vm7, %v6024_v40  ;;  %6474 = vmatpush1.bf16.msra.mxu0 %v17548_v10  ;;  %v17557_v10 = vld [vmem:[%s22851_s3 + $0x174] sm:$0xff]   ;;  %v6255_v40 = vld [vmem:[#allocation4 + $0x8] sm:$0xf8] }
 0x75d   : > { %6475 = vmatprep.subr.bf16.mxu0 %v22835_v35  ;;  %v6298_v26 = vshrl.u32 %v6255_v40, 16 }
 0x760   : > { %6476 = vmatpush1.bf16.msra.mxu0 %v17549_v43  ;;  %v6043_v43 = vrot.slane %v20262_v9, 1  ;;  %v17559_v9 = vld [vmem:[%s22851_s3 + $0x184] sm:$0xff]  }
 0x761   : > { %6477 = vmatprep.subr.bf16.mxu0 %v22835_v35 }
 0x763   : > { %6192 = vmatmul.mubr.bf16.gmra.mrb[144].mxu0 %v6022_v13  ;;  %v6038_v13 = vsel %vm6014_vm11, %v6033_v32, %v6037_v24  ;;  %v6288_v32 = vrot.slane %v6286_v0, 3  ;;  %v6318_v0 = vrot.slane %v20191_v51, 4 }
 0x764   : > { %14106 = vmatprep.mubr.msk.bf16.mxu0 %vm5336_vm7, %v6028_v5  ;;  %6478 = vmatpush1.bf16.msra.mxu0 %v17550_v1  ;;  %v6301_v1 = vshll.u32 %v6255_v40, 16  ;;  %v6044_v5 = vsel %vm6014_vm11, %v6039_v14, %v6043_v43  ;;  %v6293_v14 = vrot.slane %v20178_v28, 3 }
 0x765   : > { %6479 = vmatprep.subr.bf16.mxu0 %v22835_v35 }
 0x768   : > { %6480 = vmatpush1.bf16.msra.mxu0 %v17551_v49  ;;  %v6305_v49 = vrot.slane %v20161_v23, 3 }
 0x769   : > { %6481 = vmatprep.subr.bf16.mxu0 %v22835_v35 }
 0x76b   : > { %6200 = vmatmul.mubr.bf16.gmra.mrb[148].mxu0 %v6026_v42  ;;  %v6300_v42 = vrot.slane %v6298_v26, 3 }
 0x76c   : > { %14107 = vmatprep.mubr.msk.bf16.mxu0 %vm5336_vm7, %v6032_v55  ;;  %6482 = vmatpush1.bf16.msra.mxu0 %v17552_v48  ;;  %v6041_v48 = vrot.slane %v20277_v41, 1  ;;  %v6303_v55 = vrot.slane %v6301_v1, 4  ;;  %v6291_v41 = vrot.slane %v6289_v17, 4  ;;  %v6309_v1 = vrot.slane %v20201_v30, 3 }
 0x76d   : > { %6483 = vmatprep.subr.bf16.mxu0 %v22835_v35 }
 0x770   : > { %6484 = vmatpush1.bf16.msra.mxu0 %v17553_v2  ;;  %v17560_v2 = vld [vmem:[%s22851_s3 + $0x18c] ss:$0 sps:$4 sm:$0xff]  }
 0x771   : > { %6485 = vmatprep.subr.bf16.mxu0 %v22835_v35 }
 0x773   : > { %6208 = vmatmul.mubr.bf16.gmra.mrb[152].mxu0 %v6030_v62  ;;  %v6042_v62 = vsel %vm6014_vm11, %v6037_v24, %v6041_v48  ;;  %v6292_v24 = vor.u32 %v6291_v41, %v6288_v32  ;;  %v17565_v41 = vld [vmem:[%s22851_s3 + $0x1b0] sm:$0xff]  }
 0x774   : > { %14108 = vmatprep.mubr.msk.bf16.mxu0 %vm5336_vm7, %v6036_v46  ;;  %6486 = vmatpush1.bf16.msra.mxu0 %v17554_v37  ;;  %v6307_v37 = vor.u32 %v6306_v19, %v6305_v49  ;;  %v6304_v46 = vor.u32 %v6303_v55, %v6300_v42  ;;  %v6321_v49 = vrot.slane %v20205_v22, 3  ;;  %v6322_v19 = vrot.slane %v20172_v59, 4  ;;  %v17563_v42 = vld [vmem:[%s22851_s3 + $0x1a0] sm:$0xff]  }
 0x775   : > { %6487 = vmatprep.subr.bf16.mxu0 %v22835_v35 }
 0x776   : > { %v6323_v48 = vor.u32 %v6322_v19, %v6321_v49  ;;  %v6345_v19 = vrot.slane %v20269_v18, 3 }
 0x778   : > { %6488 = vmatpush1.bf16.msra.mxu0 %v17555_v44  ;;  %v6471_v44 = vsel %vm2563_vm8, %v17560_v2, 0  ;;  %v6317_v2 = vrot.slane %v20224_v34, 3 }
 0x779   : > { %6489 = vmatprep.subr.bf16.mxu0 %v22835_v35 }
 0x77b   : > { %6216 = vmatmul.mubr.bf16.gmra.mrb[156].mxu0 %v6034_v3  ;;  %v6308_v3 = vsel %vm6284_vm6, %v6304_v46, %v6307_v37  ;;  %v17564_v46 = vld [vmem:[%s22851_s3 + $0x1a8] sm:$0xff]  }
 0x77c   : > { %14109 = vmatprep.mubr.msk.bf16.mxu0 %vm5336_vm7, %v6040_v39  ;;  %6490 = vmatpush1.bf16.msra.mxu0 %v17556_v6  ;;  %v6294_v6 = vrot.slane %v20149_v58, 4  ;;  %v6313_v39 = vrot.slane %v20182_v27, 3 }
 0x77d   : > { %6491 = vmatprep.subr.bf16.mxu0 %v22835_v35 }
 0x77e   : > { %v6295_v40 = vor.u32 %v6294_v6, %v6293_v14  ;;  %v6325_v6 = vrot.slane %v20247_v15, 3 }
 0x780   : > { %6492 = vmatpush1.bf16.msra.mxu0 %v17557_v10  ;;  %v6314_v10 = vrot.slane %v20154_v56, 4  ;;  %v6296_v26 = vsel %vm6284_vm6, %v6292_v24, %v6295_v40  ;;  %v6338_v24 = vrot.slane %v20218_v11, 4 }
 0x781   : > { %6493 = vmatprep.subr.bf16.mxu0 %v22835_v35 }
 0x782   : > { %v6315_v43 = vor.u32 %v6314_v10, %v6313_v39  ;;  %v6337_v10 = vrot.slane %v20251_v36, 3 }
 0x783   : > { %6224 = vmatmul.mubr.bf16.gmra.mrb[160].mxu0 %v6038_v13  ;;  %v6310_v13 = vrot.slane %v20168_v50, 4 }
 0x784   : > { %14110 = vmatprep.mubr.msk.bf16.mxu0 %vm5336_vm7, %v6044_v5  ;;  %6494 = vmatpush1.bf16.msra.mxu0 %v17558_v20  ;;  %v17561_v20 = vld [vmem:[%s22851_s3 + $0x190] sm:$0xff]   ;;  %v6316_v5 = vsel %vm6284_vm6, %v6307_v37, %v6315_v43  ;;  %v6324_v17 = vsel %vm6284_vm6, %v6315_v43, %v6323_v48  ;;  %v6329_v37 = vrot.slane %v20228_v31, 3 }
 0x785   : > { %6495 = vmatprep.subr.bf16.mxu0 %v22835_v35 }
 0x788   : > { %6496 = vmatpush1.bf16.msra.mxu0 %v17559_v9  ;;  %v6311_v9 = vor.u32 %v6310_v13, %v6309_v1  ;;  %v6333_v13 = vrot.slane %v20273_v54, 3 }
 0x789   : > { %6497 = vmatprep.subr.bf16.mxu0 %v22835_v35 }
 0x78a   : > { %v6312_v55 = vsel %vm6284_vm6, %v6295_v40, %v6311_v9  ;;  %v17566_v40 = vld [vmem:[%s22851_s3 + $0x1b8] sm:$0xff]  }
 0x78b   : > { %6232 = vmatmul.mubr.bf16.gmra.mrb[164].mxu0 %v6042_v62  ;;  %v6330_v62 = vrot.slane %v20195_v57, 4 }
 0x78c   : > { %14149 = vmatprep.mubr.msk.bf16.mxu0 %vm5336_vm7, %v6308_v3  ;;  %6498 = vmatpush1.bf16.msra.mxu0 %v6471_v44  ;;  %v6319_v44 = vor.u32 %v6318_v0, %v6317_v2  ;;  %v6326_v3 = vrot.slane %v20214_v33, 4 }
 0x78d   : > { %6744 = vmatprep.subr.bf16.mxu0 %v22835_v35  ;;  %v6331_v32 = vor.u32 %v6330_v62, %v6329_v37  ;;  %v6341_v62 = vrot.slane %v20290_v47, 3 }
 0x78e   : > { %v6320_v14 = vsel %vm6284_vm6, %v6311_v9, %v6319_v44  ;;  %v6327_v43 = vor.u32 %v6326_v3, %v6325_v6  ;;  %v17568_v9 = vld [vmem:[%s22851_s3 + $0x1c8] sm:$0xff]   ;;  %v17570_v6 = vld [vmem:[%s22851_s3 + $0x1d8] sm:$0xff]  }
 0x78f   : > { %v6332_v39 = vsel %vm6284_vm6, %v6323_v48, %v6331_v32  ;;  %v20409_v48 = vld [vmem:[#allocation4 + $0x78] sm:$0xf] }
 0x790   : > { %v6328_v1 = vsel %vm6284_vm6, %v6319_v44, %v6327_v43  ;;  %v6359_v2 = vshrl.u32 %v20409_v48, 16  ;;  %v6362_v0 = vshll.u32 %v20409_v48, 16 }
 0x793   : > { %6506 = vmatmul.mubr.bf16.vlgmr.msra.gmra.mrb[140].mxu0 %v6296_v26  ;;  %v17567_v26 = vld [vmem:[%s22851_s3 + $0x1c0] sm:$0xff]  }
 0x794   : > { %14150 = vmatprep.mubr.msk.bf16.mxu0 %vm5336_vm7, %v6316_v5  ;;  %6745 = vmatpush1.bf16.msra.mxu0 %v17561_v20  ;;  %v6339_v20 = vor.u32 %v6338_v24, %v6337_v10  ;;  %v6334_v5 = vrot.slane %v20237_v60, 4 }
 0x795   : > { %6746 = vmatprep.subr.bf16.mxu0 %v22835_v35 }
 0x796   : > { %v6340_v49 = vsel %vm6284_vm6, %v6331_v32, %v6339_v20  ;;  %v6361_v32 = vrot.slane %v6359_v2, 3 }
 0x798   : > { %6747 = vmatpush1.bf16.msra.mxu0 %v17562_v12  ;;  %v6346_v12 = vrot.slane %v20241_v61, 4 }
 0x799   : > { %6748 = vmatprep.subr.bf16.mxu0 %v22835_v35 }
 0x79b   : > { %6514 = vmatmul.mubr.bf16.gmra.mrb[144].mxu0 %v6312_v55  ;;  %v6347_v55 = vor.u32 %v6346_v12, %v6345_v19  ;;  %v20435_v19 = vld [vmem:[#allocation4 + $0x8] sm:$0xf0]  ;;  %v20437_v12 = vld [vmem:[#allocation4 + $0x18] sm:$0xff] }
 0x79c   : > { %14151 = vmatprep.mubr.msk.bf16.mxu0 %vm5336_vm7, %v6324_v17  ;;  %6749 = vmatpush1.bf16.msra.mxu0 %v17563_v42  ;;  %v6335_v42 = vor.u32 %v6334_v5, %v6333_v13  ;;  %v17569_v17 = vld [vmem:[%s22851_s3 + $0x1d0] sm:$0xff]   ;;  %v17572_v13 = vld [vmem:[%s22851_s3 + $0x1e8] sm:$0xff]  }
 0x79d   : > { %6750 = vmatprep.subr.bf16.mxu0 %v22835_v35  ;;  %v6348_v44 = vsel %vm6284_vm6, %v6339_v20, %v6347_v55  ;;  %v17573_v5 = vld [vmem:[%s22851_s3 + $0x1f0] ss:$0 sps:$4 sm:$0xff]  }
 0x79e   : > { %v6336_v37 = vsel %vm6284_vm6, %v6327_v43, %v6335_v42 }
 0x7a0   : > { %6751 = vmatpush1.bf16.msra.mxu0 %v17564_v46  ;;  %v6342_v46 = vrot.slane %v20260_v45, 4 }
 0x7a1   : > { %6752 = vmatprep.subr.bf16.mxu0 %v22835_v35 }
 0x7a2   : > { %v6343_v3 = vor.u32 %v6342_v46, %v6341_v62  ;;  %v20450_v62 = vld [vmem:[#allocation4 + $0x10] sm:$0xff] }
 0x7a3   : > { %6522 = vmatmul.mubr.bf16.gmra.mrb[148].mxu0 %v6320_v14  ;;  %v20420_v14 = vld [vmem:[#allocation4 + $0x70] sm:$0xf]  ;;  %v6609_v46 = vrot.slane %v20450_v62, 4 }
 0x7a4   : > { %14152 = vmatprep.mubr.msk.bf16.mxu0 %vm5336_vm7, %v6332_v39  ;;  %6753 = vmatpush1.bf16.msra.mxu0 %v17565_v41  ;;  %v6364_v41 = vrot.slane %v6362_v0, 4  ;;  %v6350_v39 = vshrl.u32 %v20420_v14, 16  ;;  %v6353_v10 = vshll.u32 %v20420_v14, 16  ;;  %v6344_v43 = vsel %vm6284_vm6, %v6335_v42, %v6343_v3 }
 0x7a5   : > { %6754 = vmatprep.subr.bf16.mxu0 %v22835_v35  ;;  %v6611_v42 = vrot.slane %v20435_v19, 4 }
 0x7a6   : > { %v6365_v24 = vor.u32 %v6364_v41, %v6361_v32  ;;  %v6352_v20 = vrot.slane %v6350_v39, 3  ;;  %v17574_v32 = vld [vmem:[%s22851_s3 + $0x1f4] sm:$0xff]   ;;  %v20460_v39 = vld [vmem:[#allocation4 + $0x20] sm:$0xff] }
 0x7a8   : > { %6755 = vmatpush1.bf16.msra.mxu0 %v17566_v40  ;;  %v17571_v40 = vld [vmem:[%s22851_s3 + $0x1e0] sm:$0xff]  }
 0x7a9   : > { %6756 = vmatprep.subr.bf16.mxu0 %v22835_v35 }
 0x7ab   : > { %6530 = vmatmul.mubr.bf16.gmra.mrb[152].mxu0 %v6328_v1  ;;  %v6366_v1 = vsel %vm6284_vm6, %v6347_v55, %v6365_v24  ;;  %v6742_v55 = vsel %vm2563_vm8, %v17573_v5, 0  ;;  %v17576_v24 = vld [vmem:[%s22851_s3 + $0x204] sm:$0xff]  }
 0x7ac   : > { %14153 = vmatprep.mubr.msk.bf16.mxu0 %vm5336_vm7, %v6340_v49  ;;  %6757 = vmatpush1.bf16.msra.mxu0 %v17567_v26  ;;  %v6355_v26 = vrot.slane %v6353_v10, 4  ;;  %v6614_v10 = vrot.slane %v20460_v39, 4 }
 0x7ad   : > { %6758 = vmatprep.subr.bf16.mxu0 %v22835_v35 }
 0x7ae   : > { %v6356_v49 = vor.u32 %v6355_v26, %v6352_v20  ;;  %v17577_v20 = vld [vmem:[%s22851_s3 + $0x20c] sm:$0xff]   ;;  %v6618_v26 = vrot.slane %v20036_v8, 4  ;;  %v6622_v8 = vrot.slane %v20066_v29, 4  ;;  %v6626_v29 = vrot.slane %v20102_v4, 4 }
 0x7af   : > { %v6630_v4 = vrot.slane %v20120_v16, 4  ;;  %v6897_v16 = vrot.slane %v20135_v25, 5 }
 0x7b0   : > { %6759 = vmatpush1.bf16.msra.mxu0 %v17568_v9  ;;  %v6612_v9 = vrot.slane %v20437_v12, 4  ;;  %v6357_v2 = vsel %vm6284_vm6, %v6343_v3, %v6356_v49  ;;  %v17575_v3 = vld [vmem:[%s22851_s3 + $0x1fc] sm:$0xff]  }
 0x7b1   : > { %6760 = vmatprep.subr.bf16.mxu0 %v22835_v35  ;;  %v17579_v49 = vld [vmem:[%s22851_s3 + $0x21c] sm:$0xff]  }
 0x7b2   : > { %v6613_v0 = vsel %vm2563_vm8, %v6611_v42, %v6612_v9  ;;  %v6623_v42 = vsel %vm2563_vm8, %v6618_v26, %v6622_v8 }
 0x7b3   : > { %6538 = vmatmul.mubr.bf16.gmra.mrb[156].mxu0 %v6336_v37 }
 0x7b4   : > { %14154 = vmatprep.mubr.msk.bf16.mxu0 %vm5336_vm7, %v6348_v44  ;;  %6761 = vmatpush1.bf16.msra.mxu0 %v17569_v17  ;;  %v20445_v17 = vld [vmem:[#allocation4] sm:$0xf0]  ;;  %v6616_v44 = vrot.slane %v20040_v38, 4  ;;  %v6620_v38 = vrot.slane %v20070_v7, 4  ;;  %v6624_v7 = vrot.slane %v20106_v63, 4  ;;  %v6628_v63 = vrot.slane %v20122_v21, 4 }
 0x7b5   : > { %6762 = vmatprep.subr.bf16.mxu0 %v22835_v35  ;;  %v6608_v37 = vrot.slane %v20445_v17, 4  ;;  %v6632_v21 = vrot.slane %v20143_v52, 4  ;;  %v6636_v52 = vrot.slane %v20409_v48, 4  ;;  %v17585_v48 = vld [vmem:[%s22851_s3 + $0x24c] sm:$0xff]  }
 0x7b6   : > { %v6625_v5 = vsel %vm2563_vm8, %v6620_v38, %v6624_v7 }
 0x7b7   : > { %v6610_v41 = vsel %vm2563_vm8, %v6608_v37, %v6609_v46  ;;  %v6627_v37 = vsel %vm2563_vm8, %v6622_v8, %v6626_v29  ;;  %v6884_v8 = vrot.slane %v20178_v28, 4 }
 0x7b8   : > { %6763 = vmatpush1.bf16.msra.mxu0 %v17570_v6  ;;  %v6617_v6 = vsel %vm2563_vm8, %v6612_v9, %v6616_v44  ;;  %v17580_v9 = vld [vmem:[%s22851_s3 + $0x224] sm:$0xff]  }
 0x7b9   : > { %6764 = vmatprep.subr.bf16.mxu0 %v22835_v35 }
 0x7bb   : > { %6546 = vmatmul.mubr.bf16.gmra.mrb[160].mxu0 %v6344_v43  ;;  %v6621_v43 = vsel %vm2563_vm8, %v6616_v44, %v6620_v38  ;;  %v17583_v44 = vld [vmem:[%s22851_s3 + $0x23c] sm:$0xff]   ;;  %v6896_v38 = vrot.slane %v20161_v23, 4 }
 0x7bc   : > { %14155 = vmatprep.mubr.msk.bf16.mxu0 %vm5336_vm7, %v6366_v1  ;;  %6765 = vmatpush1.bf16.msra.mxu0 %v17571_v40  ;;  %v6615_v40 = vsel %vm2563_vm8, %v6609_v46, %v6614_v10  ;;  %v17578_v1 = vld [vmem:[%s22851_s3 + $0x214] sm:$0xff]   ;;  %v6633_v46 = vsel %vm2563_vm8, %v6628_v63, %v6632_v21 }
 0x7bd   : > { %6766 = vmatprep.subr.bf16.mxu0 %v22835_v35 }
 0x7c0   : > { %6767 = vmatpush1.bf16.msra.mxu0 %v17572_v13  ;;  %v6619_v13 = vsel %vm2563_vm8, %v6614_v10, %v6618_v26  ;;  %v6637_v10 = vsel %vm2563_vm8, %v6632_v21, %v6636_v52  ;;  %v6880_v26 = vshll.u32 %v20445_v17, 16  ;;  %v17587_v21 = vld [vmem:[%s22851_s3 + $0x258] sm:$0xff]   ;;  %v6913_v52 = vrot.slane %v20172_v59, 5 }
 0x7c1   : > { %6768 = vmatprep.subr.bf16.mxu0 %v22835_v35 }
 0x7c3   : > { %6554 = vmatmul.mubr.bf16.gmra.mrb[164].mxu0 %v6357_v2  ;;  %v17581_v2 = vld [vmem:[%s22851_s3 + $0x22c] sm:$0xff]  }
 0x7c4   : > { %14194 = vmatprep.mubr.msk.bf16.mxu0 %vm5336_vm7, %v6613_v0  ;;  %6769 = vmatpush1.bf16.msra.mxu0 %v6742_v55  ;;  %v6629_v55 = vsel %vm2563_vm8, %v6624_v7, %v6628_v63  ;;  %v17582_v0 = vld [vmem:[%s22851_s3 + $0x234] sm:$0xff]   ;;  %v6898_v7 = vor.u32 %v6897_v16, %v6896_v38  ;;  %v6885_v63 = vrot.slane %v20149_v58, 5  ;;  %v6908_v38 = vrot.slane %v20224_v34, 4 }
 0x7c5   : > { %7064 = vmatprep.subr.bf16.mxu0 %v22835_v35  ;;  %v6909_v16 = vrot.slane %v20191_v51, 5 }
 0x7cb   : > { %6777 = vmatmul.mubr.bf16.vlgmr.msra.gmra.mrb[140].mxu0 %v6610_v41  ;;  %v6889_v41 = vshrl.u32 %v20435_v19, 16 }
 0x7cc   : > { %14195 = vmatprep.mubr.msk.bf16.mxu0 %vm5336_vm7, %v6617_v6  ;;  %7065 = vmatpush1.bf16.msra.mxu0 %v17574_v32  ;;  %v17584_v32 = vld [vmem:[%s22851_s3 + $0x244] sm:$0xff]   ;;  %v6892_v6 = vshll.u32 %v20435_v19, 16  ;;  %v17586_v19 = vld [vmem:[%s22851_s3 + $0x254] ss:$0 sps:$4 sm:$0xff]  }
 0x7cd   : > { %7066 = vmatprep.subr.bf16.mxu0 %v22835_v35 }
 0x7d0   : > { %7067 = vmatpush1.bf16.msra.mxu0 %v17575_v3  ;;  %v6631_v3 = vsel %vm2563_vm8, %v6626_v29, %v6630_v4 }
 0x7d1   : > { %7068 = vmatprep.subr.bf16.mxu0 %v22835_v35 }
 0x7d3   : > { %6785 = vmatmul.mubr.bf16.gmra.mrb[144].mxu0 %v6615_v40  ;;  %v6891_v40 = vrot.slane %v6889_v41, 4 }
 0x7d4   : > { %14196 = vmatprep.mubr.msk.bf16.mxu0 %vm5336_vm7, %v6621_v43  ;;  %7069 = vmatpush1.bf16.msra.mxu0 %v17576_v24  ;;  %v6634_v24 = vrot.slane %v20420_v14, 4  ;;  %v6894_v43 = vrot.slane %v6892_v6, 5  ;;  %v7062_v14 = vsel %vm2563_vm8, %v17586_v19, 0  ;;  %v6910_v19 = vor.u32 %v6909_v16, %v6908_v38 }
 0x7d5   : > { %7070 = vmatprep.subr.bf16.mxu0 %v22835_v35 }
 0x7d8   : > { %7071 = vmatpush1.bf16.msra.mxu0 %v17577_v20  ;;  %v6877_v20 = vshrl.u32 %v20445_v17, 16 }
 0x7d9   : > { %7072 = vmatprep.subr.bf16.mxu0 %v22835_v35 }
 0x7db   : > { %6793 = vmatmul.mubr.bf16.gmra.mrb[148].mxu0 %v6619_v13  ;;  %v6895_v13 = vor.u32 %v6894_v43, %v6891_v40  ;;  %v6921_v40 = vrot.slane %v20195_v57, 5  ;;  %v17590_v43 = vld [vmem:[%s22851_s3 + $0x270] sm:$0xff]  }
 0x7dc   : > { %14197 = vmatprep.mubr.msk.bf16.mxu0 %vm5336_vm7, %v6625_v5  ;;  %7073 = vmatpush1.bf16.msra.mxu0 %v17578_v1  ;;  %v6635_v1 = vsel %vm2563_vm8, %v6630_v4, %v6634_v24  ;;  %v6879_v5 = vrot.slane %v6877_v20, 4  ;;  %v6912_v4 = vrot.slane %v20205_v22, 4  ;;  %v6920_v24 = vrot.slane %v20228_v31, 4 }
 0x7dd   : > { %7074 = vmatprep.subr.bf16.mxu0 %v22835_v35  ;;  %v6899_v17 = vsel %vm6875_vm9, %v6895_v13, %v6898_v7  ;;  %v6917_v13 = vrot.slane %v20214_v33, 5 }
 0x7de   : > { %v6914_v6 = vor.u32 %v6913_v52, %v6912_v4  ;;  %v6922_v20 = vor.u32 %v6921_v40, %v6920_v24  ;;  %v6847_v24 = vld [vmem:[#allocation4 + $0x70] sm:$0x1f]  ;;  %v17596_v40 = vld [vmem:[%s22851_s3 + $0x2a0] sm:$0xff]  }
 0x7e0   : > { %7075 = vmatpush1.bf16.msra.mxu0 %v17579_v49  ;;  %v6882_v49 = vrot.slane %v6880_v26, 5  ;;  %v17591_v26 = vld [vmem:[%s22851_s3 + $0x278] sm:$0xff]  }
 0x7e1   : > { %7076 = vmatprep.subr.bf16.mxu0 %v22835_v35 }
 0x7e3   : > { %6801 = vmatmul.mubr.bf16.gmra.mrb[152].mxu0 %v6623_v42  ;;  %v6905_v42 = vrot.slane %v20154_v56, 5 }
 0x7e4   : > { %14198 = vmatprep.mubr.msk.bf16.mxu0 %vm5336_vm7, %v6629_v55  ;;  %7077 = vmatpush1.bf16.msra.mxu0 %v17580_v9  ;;  %v6904_v9 = vrot.slane %v20182_v27, 4  ;;  %v6883_v55 = vor.u32 %v6882_v49, %v6879_v5  ;;  %v6928_v5 = vrot.slane %v20251_v36, 4  ;;  %v6929_v49 = vrot.slane %v20218_v11, 5 }
 0x7e5   : > { %7078 = vmatprep.subr.bf16.mxu0 %v22835_v35 }
 0x7e6   : > { %v6906_v29 = vor.u32 %v6905_v42, %v6904_v9  ;;  %v17593_v9 = vld [vmem:[%s22851_s3 + $0x288] sm:$0xff]  }
 0x7e8   : > { %7079 = vmatpush1.bf16.msra.mxu0 %v17581_v2  ;;  %v6886_v2 = vor.u32 %v6885_v63, %v6884_v8  ;;  %v17592_v8 = vld [vmem:[%s22851_s3 + $0x280] sm:$0xff]  }
 0x7e9   : > { %7080 = vmatprep.subr.bf16.mxu0 %v22835_v35 }
 0x7eb   : > { %6809 = vmatmul.mubr.bf16.gmra.mrb[156].mxu0 %v6627_v37  ;;  %v6900_v37 = vrot.slane %v20201_v30, 4 }
 0x7ec   : > { %14199 = vmatprep.mubr.msk.bf16.mxu0 %vm5336_vm7, %v6633_v46  ;;  %7081 = vmatpush1.bf16.msra.mxu0 %v17582_v0  ;;  %v6887_v0 = vsel %vm6875_vm9, %v6883_v55, %v6886_v2  ;;  %v6901_v46 = vrot.slane %v20168_v50, 5  ;;  %v6924_v55 = vrot.slane %v20273_v54, 4 }
 0x7ed   : > { %7082 = vmatprep.subr.bf16.mxu0 %v22835_v35 }
 0x7ee   : > { %v6902_v41 = vor.u32 %v6901_v46, %v6900_v37  ;;  %v17594_v37 = vld [vmem:[%s22851_s3 + $0x290] sm:$0xff]   ;;  %v6848_v46 = vld [vmem:[#allocation4 + $0x78] sm:$0x1f] }
 0x7ef   : > { %v6950_v52 = vshrl.u32 %v6848_v46, 16 }
 0x7f0   : > { %7083 = vmatpush1.bf16.msra.mxu0 %v17583_v44  ;;  %v6907_v44 = vsel %vm6875_vm9, %v6898_v7, %v6906_v29  ;;  %v6911_v7 = vsel %vm6875_vm9, %v6902_v41, %v6910_v19 }
 0x7f1   : > { %7084 = vmatprep.subr.bf16.mxu0 %v22835_v35  ;;  %v6952_v16 = vrot.slane %v6950_v52, 4 }
 0x7f3   : > { %6817 = vmatmul.mubr.bf16.gmra.mrb[160].mxu0 %v6631_v3  ;;  %v17589_v3 = vld [vmem:[%s22851_s3 + $0x268] sm:$0xff]  }
 0x7f4   : > { %14200 = vmatprep.mubr.msk.bf16.mxu0 %vm5336_vm7, %v6637_v10  ;;  %7085 = vmatpush1.bf16.msra.mxu0 %v17584_v32  ;;  %v17588_v32 = vld [vmem:[%s22851_s3 + $0x260] sm:$0xff]   ;;  %v6903_v10 = vsel %vm6875_vm9, %v6886_v2, %v6902_v41  ;;  %v6925_v2 = vrot.slane %v20237_v60, 5  ;;  %v17595_v41 = vld [vmem:[%s22851_s3 + $0x298] sm:$0xff]  }
 0x7f5   : > { %7086 = vmatprep.subr.bf16.mxu0 %v22835_v35 }
 0x7f8   : > { %7087 = vmatpush1.bf16.msra.mxu0 %v17585_v48  ;;  %v6915_v48 = vsel %vm6875_vm9, %v6906_v29, %v6914_v6 }
 0x7f9   : > { %7088 = vmatprep.subr.bf16.mxu0 %v22835_v35 }
 0x7fb   : > { %6825 = vmatmul.mubr.bf16.gmra.mrb[164].mxu0 %v6635_v1  ;;  %v6916_v1 = vrot.slane %v20247_v15, 4 }
 0x7fc   : > { %14239 = vmatprep.mubr.msk.bf16.mxu0 %vm5336_vm7, %v6899_v17  ;;  %7089 = vmatpush1.bf16.msra.mxu0 %v7062_v14  ;;  %v6923_v14 = vsel %vm6875_vm9, %v6914_v6, %v6922_v20  ;;  %v6930_v17 = vor.u32 %v6929_v49, %v6928_v5  ;;  %v17598_v49 = vld [vmem:[%s22851_s3 + $0x2b0] sm:$0xff]  }
 0x7fd   : > { %7338 = vmatprep.subr.bf16.mxu0 %v22835_v35  ;;  %v6918_v63 = vor.u32 %v6917_v13, %v6916_v1 }
 0x7fe   : > { %v6931_v29 = vsel %vm6875_vm9, %v6922_v20, %v6930_v17  ;;  %v6944_v20 = vshll.u32 %v6847_v24, 16 }
 0x7ff   : > { %v6919_v42 = vsel %vm6875_vm9, %v6910_v19, %v6918_v63  ;;  %v6941_v19 = vshrl.u32 %v6847_v24, 16  ;;  %v17603_v24 = vld [vmem:[%s22851_s3 + $0x2d4] sm:$0xff]  }
 0x801   : > { %v6943_v13 = vrot.slane %v6941_v19, 4  ;;  %v20622_v19 = vld [vmem:[#allocation4 + $0x48] sm:$0xff] }
 0x803   : > { %7097 = vmatmul.mubr.bf16.vlgmr.msra.gmra.mrb[140].mxu0 %v6887_v0  ;;  %v6937_v0 = vrot.slane %v20241_v61, 5 }
 0x804   : > { %14240 = vmatprep.mubr.msk.bf16.mxu0 %vm5336_vm7, %v6907_v44  ;;  %7339 = vmatpush1.bf16.msra.mxu0 %v17587_v21  ;;  %v6936_v21 = vrot.slane %v20269_v18, 4  ;;  %v6926_v44 = vor.u32 %v6925_v2, %v6924_v55 }
 0x805   : > { %7340 = vmatprep.subr.bf16.mxu0 %v22835_v35 }
 0x806   : > { %v6938_v4 = vor.u32 %v6937_v0, %v6936_v21  ;;  %v6927_v6 = vsel %vm6875_vm9, %v6918_v63, %v6926_v44  ;;  %v20593_v21 = vld [vmem:[#allocation4] sm:$0x80] }
 0x807   : > { %v7202_v0 = vrot.slane %v20593_v21, 7 }
 0x808   : > { %7341 = vmatpush1.bf16.msra.mxu0 %v17588_v32  ;;  %v6953_v32 = vshll.u32 %v6848_v46, 16  ;;  %v6939_v38 = vsel %vm6875_vm9, %v6930_v17, %v6938_v4  ;;  %v20585_v17 = vld [vmem:[#allocation4 + $0x8] sm:$0x80] }
 0x809   : > { %7342 = vmatprep.subr.bf16.mxu0 %v22835_v35  ;;  %v20599_v46 = vld [vmem:[#allocation4 + $0x28] sm:$0xff] }
 0x80b   : > { %7105 = vmatmul.mubr.bf16.gmra.mrb[144].mxu0 %v6903_v10  ;;  %v6933_v10 = vrot.slane %v20260_v45, 5 }
 0x80c   : > { %14241 = vmatprep.mubr.msk.bf16.mxu0 %vm5336_vm7, %v6915_v48  ;;  %7343 = vmatpush1.bf16.msra.mxu0 %v17589_v3  ;;  %v6932_v3 = vrot.slane %v20290_v47, 4  ;;  %v6955_v48 = vrot.slane %v6953_v32, 5 }
 0x80d   : > { %7344 = vmatprep.subr.bf16.mxu0 %v22835_v35 }
 0x810   : > { %7345 = vmatpush1.bf16.msra.mxu0 %v17590_v43  ;;  %v6934_v43 = vor.u32 %v6933_v10, %v6932_v3  ;;  %v20609_v3 = vld [vmem:[#allocation4 + $0x38] sm:$0xff] }
 0x811   : > { %7346 = vmatprep.subr.bf16.mxu0 %v22835_v35  ;;  %v7214_v10 = vrot.slane %v20609_v3, 7 }
 0x812   : > { %v6935_v1 = vsel %vm6875_vm9, %v6926_v44, %v6934_v43  ;;  %v7210_v44 = vrot.slane %v20599_v46, 7 }
 0x813   : > { %7113 = vmatmul.mubr.bf16.gmra.mrb[148].mxu0 %v6911_v7  ;;  %v17597_v7 = vld [vmem:[%s22851_s3 + $0x2a8] sm:$0xff]  }
 0x814   : > { %14242 = vmatprep.mubr.msk.bf16.mxu0 %vm5336_vm7, %v6923_v14  ;;  %7347 = vmatpush1.bf16.msra.mxu0 %v17591_v26  ;;  %v6956_v26 = vor.u32 %v6955_v48, %v6952_v16  ;;  %v6946_v14 = vrot.slane %v6944_v20, 5  ;;  %v7215_v48 = vsel %vm7201_vm12, %v7210_v44, %v7214_v10  ;;  %v7218_v20 = vrot.slane %v20622_v19, 7 }
 0x815   : > { %7348 = vmatprep.subr.bf16.mxu0 %v22835_v35 }
 0x816   : > { %v6957_v5 = vsel %vm6875_vm9, %v6938_v4, %v6956_v26  ;;  %v6947_v63 = vor.u32 %v6946_v14, %v6943_v13  ;;  %v17600_v4 = vld [vmem:[%s22851_s3 + $0x2bc] sm:$0xff]   ;;  %v17605_v13 = vld [vmem:[%s22851_s3 + $0x2e4] sm:$0xff]  }
 0x817   : > { %v17604_v26 = vld [vmem:[%s22851_s3 + $0x2dc] sm:$0xff]  }
 0x818   : > { %7349 = vmatpush1.bf16.msra.mxu0 %v17592_v8  ;;  %v17599_v8 = vld [vmem:[%s22851_s3 + $0x2b8] ss:$0 sps:$4 sm:$0xff]   ;;  %v6948_v2 = vsel %vm6875_vm9, %v6934_v43, %v6947_v63  ;;  %v20632_v14 = vld [vmem:[#allocation4 + $0x40] sm:$0xff]  ;;  %v17606_v63 = vld [vmem:[%s22851_s3 + $0x2ec] sm:$0xff]  }
 0x819   : > { %7350 = vmatprep.subr.bf16.mxu0 %v22835_v35  ;;  %v7336_v55 = vsel %vm2563_vm8, %v17599_v8, 0 }
 0x81b   : > { %7121 = vmatmul.mubr.bf16.gmra.mrb[152].mxu0 %v6919_v42  ;;  %v7205_v42 = vrot.slane %v20585_v17, 7 }
 0x81c   : > { %14243 = vmatprep.mubr.msk.bf16.mxu0 %vm5336_vm7, %v6931_v29  ;;  %7351 = vmatpush1.bf16.msra.mxu0 %v17593_v9  ;;  %v7206_v9 = vrot.slane %v20437_v12, 7 }
 0x81d   : > { %7352 = vmatprep.subr.bf16.mxu0 %v22835_v35 }
 0x81e   : > { %v7207_v29 = vsel %vm7201_vm12, %v7205_v42, %v7206_v9  ;;  %v7211_v32 = vsel %vm7201_vm12, %v7206_v9, %v7210_v44  ;;  %v17608_v44 = vld [vmem:[%s22851_s3 + $0x2fc] sm:$0xff]  }
 0x820   : > { %7353 = vmatpush1.bf16.msra.mxu0 %v17594_v37  ;;  %v7203_v37 = vrot.slane %v20450_v62, 7 }
 0x821   : > { %7354 = vmatprep.subr.bf16.mxu0 %v22835_v35 }
 0x822   : > { %v7204_v52 = vsel %vm7201_vm12, %v7202_v0, %v7203_v37  ;;  %v20648_v0 = vld [vmem:[#allocation4 + $0x68] sm:$0xff] }
 0x823   : > { %7129 = vmatmul.mubr.bf16.gmra.mrb[156].mxu0 %v6927_v6  ;;  %v7208_v6 = vrot.slane %v20460_v39, 7 }
 0x824   : > { %14244 = vmatprep.mubr.msk.bf16.mxu0 %vm5336_vm7, %v6939_v38  ;;  %7355 = vmatpush1.bf16.msra.mxu0 %v17595_v41  ;;  %v17601_v41 = vld [vmem:[%s22851_s3 + $0x2c4] sm:$0xff]   ;;  %v17602_v38 = vld [vmem:[%s22851_s3 + $0x2cc] sm:$0xff]  }
 0x825   : > { %7356 = vmatprep.subr.bf16.mxu0 %v22835_v35  ;;  %v7209_v16 = vsel %vm7201_vm12, %v7203_v37, %v7208_v6  ;;  %v7226_v37 = vrot.slane %v20648_v0, 7 }
 0x828   : > { %7357 = vmatpush1.bf16.msra.mxu0 %v17596_v40  ;;  %v20619_v40 = vld [vmem:[#allocation4 + $0x30] sm:$0xff] }
 0x829   : > { %7358 = vmatprep.subr.bf16.mxu0 %v22835_v35  ;;  %v7212_v43 = vrot.slane %v20619_v40, 7 }
 0x82b   : > { %7137 = vmatmul.mubr.bf16.gmra.mrb[160].mxu0 %v6935_v1  ;;  %v7219_v1 = vsel %vm7201_vm12, %v7214_v10, %v7218_v20  ;;  %v17609_v10 = vld [vmem:[%s22851_s3 + $0x304] sm:$0xff]  }
 0x82c   : > { %14245 = vmatprep.mubr.msk.bf16.mxu0 %vm5336_vm7, %v6957_v5  ;;  %7359 = vmatpush1.bf16.msra.mxu0 %v17597_v7  ;;  %v7213_v7 = vsel %vm7201_vm12, %v7208_v6, %v7212_v43  ;;  %v7216_v5 = vrot.slane %v20632_v14, 7  ;;  %v7170_v6 = vld [vmem:[#allocation4 + $0x78] sm:$0x7f] }
 0x82d   : > { %7360 = vmatprep.subr.bf16.mxu0 %v22835_v35 }
 0x82e   : > { %v7217_v9 = vsel %vm7201_vm12, %v7212_v43, %v7216_v5  ;;  %v5251_v43 = vld [vmem:[%s22861_s5 + $0x18] sm:$0xff] }
 0x830   : > { %7361 = vmatpush1.bf16.msra.mxu0 %v17598_v49  ;;  %v20635_v49 = vld [vmem:[#allocation4 + $0x58] sm:$0xff] }
 0x831   : > { %7362 = vmatprep.subr.bf16.mxu0 %v22835_v35  ;;  %v7222_v8 = vrot.slane %v20635_v49, 7 }
 0x833   : > { %7145 = vmatmul.mubr.bf16.gmra.mrb[164].mxu0 %v6948_v2  ;;  %v7223_v42 = vsel %vm7201_vm12, %v7218_v20, %v7222_v8  ;;  %v20645_v2 = vld [vmem:[#allocation4 + $0x50] sm:$0xff]  ;;  %v17626_v20 = vld [vmem:[%s22862_s6] sm:$0xff]  }
 0x834   : > { %14284 = vmatprep.mubr.msk.bf16.mxu0 %vm5336_vm7, %v7207_v29  ;;  %7363 = vmatpush1.bf16.msra.mxu0 %v7336_v55  ;;  %v17607_v55 = vld [vmem:[%s22851_s3 + $0x2f4] sm:$0xff]   ;;  %v7220_v29 = vrot.slane %v20645_v2, 7 }
 0x835   : > { %7636 = vmatprep.subr.bf16.mxu0 %v22835_v35  ;;  %15228 = vmatpush3.bf16.msra.mxu1 %v17626_v20  ;;  %v17613_v20 = vld [vmem:[%s22851_s3 + $0x320] sm:$0xff]  }
 0x836   : > { %15229 = vmatprep.subr.bf16.mxu1 %v22827_v53 }
 0x83b   : > { %7371 = vmatmul.mubr.bf16.vlgmr.msra.gmra.mrb[140].mxu0 %v7204_v52  ;;  %v7227_v52 = vsel %vm7201_vm12, %v7222_v8, %v7226_v37  ;;  %v7481_v8 = vrot.slane %v20161_v23, 7 }
 0x83c   : > { %14285 = vmatprep.mubr.msk.bf16.mxu0 %vm5336_vm7, %v7211_v32  ;;  %7637 = vmatpush1.bf16.msra.mxu0 %v17600_v4  ;;  %v7221_v4 = vsel %vm7201_vm12, %v7216_v5, %v7220_v29  ;;  %v5249_v32 = vld [vmem:[%s22861_s5 + $0x8] sm:$0xff]  ;;  %v7169_v5 = vld [vmem:[#allocation4 + $0x70] sm:$0x7f] }
 0x83d   : > { %7638 = vmatprep.subr.bf16.mxu0 %v22835_v35  ;;  %8082 = vperm.xlu1 %17317, %v5249_v32   ;;  %v7482_v23 = vor.u32 %v7481_v8, %v20135_v25 }
 0x840   : > { %7639 = vmatpush1.bf16.msra.mxu0 %v17601_v41  ;;  %v5248_v41 = vld [vmem:[%s22861_s5] sm:$0xff] }
 0x841   : > { %7640 = vmatprep.subr.bf16.mxu0 %v22835_v35  ;;  %8077 = vperm.xlu0 %17316, %v5248_v41   ;;  %v5256_v41 = vld [vmem:[%s22861_s5 + $0x40] sm:$0xff] }
 0x843   : > { %7379 = vmatmul.mubr.bf16.gmra.mrb[144].mxu0 %v7209_v16 }
 0x844   : > { %14286 = vmatprep.mubr.msk.bf16.mxu0 %vm5336_vm7, %v7215_v48  ;;  %7641 = vmatpush1.bf16.msra.mxu0 %v17602_v38  ;;  %v20660_v38 = vld [vmem:[#allocation4 + $0x60] sm:$0xff]  ;;  %v5250_v48 = vld [vmem:[%s22861_s5 + $0x10] sm:$0xff] }
 0x845   : > { %7642 = vmatprep.subr.bf16.mxu0 %v22835_v35  ;;  %v7224_v16 = vrot.slane %v20660_v38, 7  ;;  %8087 = vperm.xlu1 %17317, %v5250_v48   ;;  %v5258_v48 = vld [vmem:[%s22861_s5 + $0x50] sm:$0xff] }
 0x846   : > { %8092 = vperm.xlu0 %17316, %v5251_v43   ;;  %v5259_v43 = vld [vmem:[%s22861_s5 + $0x58] sm:$0xff] }
 0x848   : > { %7643 = vmatpush1.bf16.msra.mxu0 %v17603_v24  ;;  %v7230_v24 = vrot.slane %v7170_v6, 7  ;;  %v7487_v6 = vrot.slane %v20182_v27, 7 }
 0x849   : > { %7644 = vmatprep.subr.bf16.mxu0 %v22835_v35 }
 0x84b   : > { %7387 = vmatmul.mubr.bf16.gmra.mrb[148].mxu0 %v7213_v7  ;;  %v7225_v7 = vsel %vm7201_vm12, %v7220_v29, %v7224_v16  ;;  %v7228_v29 = vrot.slane %v7169_v5, 7 }
 0x84c   : > { %14287 = vmatprep.mubr.msk.bf16.mxu0 %vm5336_vm7, %v7219_v1  ;;  %7645 = vmatpush1.bf16.msra.mxu0 %v17604_v26  ;;  %v17610_v26 = vld [vmem:[%s22851_s3 + $0x30c] sm:$0xff]   ;;  %v5252_v1 = vld [vmem:[%s22861_s5 + $0x20] sm:$0xff] }
 0x84d   : > { %7646 = vmatprep.subr.bf16.mxu0 %v22835_v35  ;;  %8097 = vperm.xlu1 %17317, %v5252_v1   ;;  %v7229_v32 = vsel %vm7201_vm12, %v7224_v16, %v7228_v29  ;;  %v7471_v16 = vshrl.u32 %v20593_v21, 16  ;;  %v5260_v21 = vld [vmem:[%s22861_s5 + $0x60] sm:$0xff] }
 0x84e   : > { %v17617_v29 = vld [vmem:[%s22851_s3 + $0x340] sm:$0xff]  }
 0x84f   : > { %v7473_v27 = vrot.slane %v7471_v16, 7 }
 0x850   : > { %7647 = vmatpush1.bf16.msra.mxu0 %v17605_v13  ;;  %v7231_v13 = vsel %vm7201_vm12, %v7226_v37, %v7230_v24  ;;  %v5254_v37 = vld [vmem:[%s22861_s5 + $0x30] sm:$0xff]  ;;  %v7488_v24 = vor.u32 %v7487_v6, %v20154_v56  ;;  %v17614_v56 = vld [vmem:[%s22851_s3 + $0x328] sm:$0xff]  }
 0x851   : > { %7648 = vmatprep.subr.bf16.mxu0 %v22835_v35  ;;  %8107 = vperm.xlu1 %17317, %v5254_v37  }
 0x852   : > { %v7489_v1 = vsel %vm7469_vm13, %v7481_v8, %v7488_v24  ;;  %v7490_v8 = vrot.slane %v20224_v34, 7 }
 0x853   : > { %7395 = vmatmul.mubr.bf16.gmra.mrb[152].mxu0 %v7217_v9  ;;  %v17611_v9 = vld [vmem:[%s22851_s3 + $0x314] sm:$0xff]  }
 0x854   : > { %14288 = vmatprep.mubr.msk.bf16.mxu0 %vm5336_vm7, %v7223_v42  ;;  %7649 = vmatpush1.bf16.msra.mxu0 %v17606_v63  ;;  %v5253_v63 = vld [vmem:[%s22861_s5 + $0x28] sm:$0xff]  ;;  %v7478_v42 = vshrl.u32 %v20585_v17, 16  ;;  %v7474_v17 = vrot.slane %v20178_v28, 7 }
 0x855   : > { %7650 = vmatprep.subr.bf16.mxu0 %v22835_v35  ;;  %8102 = vperm.xlu0 %17316, %v5253_v63   ;;  %v17615_v63 = vld [vmem:[%s22851_s3 + $0x330] sm:$0xff]  }
 0x856   : > { %8117 = vperm.xlu1 %17317, %v5256_v41   ;;  %v7475_v28 = vor.u32 %v7474_v17, %v20149_v58  ;;  %v7493_v58 = vrot.slane %v20205_v22, 7 }
 0x858   : > { %7651 = vmatpush1.bf16.msra.mxu0 %v17607_v55  ;;  %v17612_v55 = vld [vmem:[%s22851_s3 + $0x31c] ss:$0 sps:$4 sm:$0xff]  }
 0x859   : > { %7652 = vmatprep.subr.bf16.mxu0 %v22835_v35 }
 0x85a   : > { %8127 = vperm.xlu1 %17317, %v5258_v48  }
 0x85b   : > { %7403 = vmatmul.mubr.bf16.gmra.mrb[156].mxu0 %v7221_v4  ;;  %v7480_v4 = vrot.slane %v7478_v42, 7  ;;  %v7499_v42 = vrot.slane %v20228_v31, 7  ;;  %v7496_v31 = vrot.slane %v20247_v15, 7 }
 0x85c   : > { %14289 = vmatprep.mubr.msk.bf16.mxu0 %vm5336_vm7, %v7227_v52  ;;  %7653 = vmatpush1.bf16.msra.mxu0 %v17608_v44  ;;  %v5255_v44 = vld [vmem:[%s22861_s5 + $0x38] sm:$0xff]  ;;  %v7634_v52 = vsel %vm2563_vm8, %v17612_v55, 0 }
 0x85d   : > { %7654 = vmatprep.subr.bf16.mxu0 %v22835_v35  ;;  %8112 = vperm.xlu0 %17316, %v5255_v44   ;;  %v7483_v25 = vsel %vm7469_vm13, %v7480_v4, %v7482_v23  ;;  %v7500_v55 = vor.u32 %v7499_v42, %v20195_v57  ;;  %v7505_v23 = vrot.slane %v20251_v36, 7  ;;  %v7497_v57 = vor.u32 %v7496_v31, %v20214_v33  ;;  %v17619_v4 = vld [vmem:[%s22851_s3 + $0x350] sm:$0xff]   ;;  %v17620_v33 = vld [vmem:[%s22851_s3 + $0x358] sm:$0xff]  }
 0x85e   : > { %8137 = vperm.xlu1 %17317, %v5260_v21   ;;  %v7502_v36 = vrot.slane %v20273_v54, 7  ;;  %v17621_v54 = vld [vmem:[%s22851_s3 + $0x360] sm:$0xff]   ;;  %v17624_v21 = vld [vmem:[%s22851_s3 + $0x378] sm:$0xff]  }
 0x85f   : > { %v7501_v37 = vsel %vm7469_vm13, %v7493_v58, %v7500_v55  ;;  %v7506_v44 = vor.u32 %v7505_v23, %v20218_v11  ;;  %v7498_v15 = vsel %vm7469_vm13, %v7490_v8, %v7497_v57 }
 0x860   : > { %7655 = vmatpush1.bf16.msra.mxu0 %v17609_v10  ;;  %v5257_v10 = vld [vmem:[%s22861_s5 + $0x48] sm:$0xff]  ;;  %v7503_v11 = vor.u32 %v7502_v36, %v20237_v60 }
 0x861   : > { %7656 = vmatprep.subr.bf16.mxu0 %v22835_v35  ;;  %8122 = vperm.xlu0 %17316, %v5257_v10   ;;  %v17622_v60 = vld [vmem:[%s22851_s3 + $0x368] sm:$0xff]  }
 0x863   : > { %7411 = vmatmul.mubr.bf16.gmra.mrb[160].mxu0 %v7225_v7  ;;  %v7484_v7 = vrot.slane %v20201_v30, 7  ;;  %v7494_v30 = vor.u32 %v7493_v58, %v20172_v59  ;;  %v7491_v59 = vor.u32 %v7490_v8, %v20191_v51  ;;  %v17618_v51 = vld [vmem:[%s22851_s3 + $0x348] sm:$0xff]  }
 0x864   : > { %14290 = vmatprep.mubr.msk.bf16.mxu0 %vm5336_vm7, %v7231_v13  ;;  %7657 = vmatpush1.bf16.msra.mxu0 %v17610_v26  ;;  %v7476_v26 = vsel %vm7469_vm13, %v7473_v27, %v7475_v28  ;;  %v5261_v13 = vld [vmem:[%s22861_s5 + $0x68] sm:$0xff]  ;;  %v7441_v28 = vld [vmem:[#allocation4 + $0x70] sm:$0xff]  ;;  %s14381_s5 = sld [smem:[#allocation5 + $0x5]] }
 0x865   : > { %7658 = vmatprep.subr.bf16.mxu0 %v22835_v35  ;;  %8132 = vperm.xlu0 %17316, %v5259_v43   ;;  %v7485_v5 = vor.u32 %v7484_v7, %v20168_v50  ;;  %v17616_v50 = vld [vmem:[%s22851_s3 + $0x338] sm:$0xff]   ;;  %v7492_v34 = vsel %vm7469_vm13, %v7484_v7, %v7491_v59  ;;  %v7515_v24 = vshrl.u32 %v7441_v28, 16  ;;  %v7518_v7 = vshll.u32 %v7441_v28, 16 }
 0x867   : > { %v7486_v22 = vsel %vm7469_vm13, %v7474_v17, %v7485_v5  ;;  %v7442_v17 = vld [vmem:[#allocation4 + $0x78] sm:$0xff] }
 0x868   : > { %7659 = vmatpush1.bf16.msra.mxu0 %v17611_v9  ;;  %v7495_v9 = vsel %vm7469_vm13, %v7487_v6, %v7494_v30  ;;  %v7508_v6 = vrot.slane %v20290_v47, 7  ;;  %v17623_v47 = vld [vmem:[%s22851_s3 + $0x370] sm:$0xff]  }
 0x869   : > { %7660 = vmatprep.subr.bf16.mxu0 %v22835_v35  ;;  %8142 = vperm.xlu0 %17316, %v5261_v13  }
 0x86a   : > { %v7509_v48 = vor.u32 %v7508_v6, %v20260_v45  ;;  %v17625_v45 = vld [vmem:[%s22851_s3 + $0x380] ss:$0 sps:$4 sm:$0xff]   ;;  %s22865_s3 = sld [smem:[#allocation29_spill]] }
 0x86b   : > { %7419 = vmatmul.mubr.bf16.gmra.mrb[164].mxu0 %v7229_v32  ;;  %v7511_v32 = vrot.slane %v20269_v18, 7  ;;  %v7504_v18 = vsel %vm7469_vm13, %v7496_v31, %v7503_v11  ;;  %v7855_v58 = vsel %vm2563_vm8, %v17625_v45, 0 }
 0x86c   : > { %14329 = vmatprep.mubr.msk.bf16.mxu0 %vm5336_vm7, %v7483_v25  ;;  %7661 = vmatpush1.bf16.msra.mxu0 %v7634_v52  ;;  %v7507_v52 = vsel %vm7469_vm13, %v7499_v42, %v7506_v44  ;;  %v7523_v25 = vshrl.u32 %v7442_v17, 16  ;;  %v7510_v27 = vsel %vm7469_vm13, %v7502_v36, %v7509_v48 }
 0x86d   : > { %7857 = vmatprep.subr.bf16.mxu0 %v22835_v35  ;;  %v7512_v41 = vor.u32 %v7511_v32, %v20241_v61  ;;  %v7526_v61 = vshll.u32 %v7442_v17, 16 }
 0x86e   : > { %v7525_v16 = vrot.slane %v7523_v25, 7 }
 0x86f   : > { %v7513_v10 = vsel %vm7469_vm13, %v7505_v23, %v7512_v41 }
 0x870   : > { %v7528_v43 = vor.u32 %v7526_v61, %v7525_v16  ;;  %v20799_v5 = vld [vmem:[%s22865_s3] ss:$0 sm:$0xff]  ;;  %s22867_s3 = sld [smem:[#allocation34_spill]] }
 0x873   : > { %7669 = vmatmul.mubr.bf16.vlgmr.msra.gmra.mrb[140].mxu0 %v7476_v26  ;;  %v7529_v26 = vsel %vm7469_vm13, %v7511_v32, %v7528_v43 }
 0x874   : > { %14330 = vmatprep.mubr.msk.bf16.mxu0 %vm5336_vm7, %v7489_v1  ;;  %7858 = vmatpush1.bf16.msra.mxu0 %v17613_v20  ;;  %v7517_v20 = vrot.slane %v7515_v24, 7 }
 0x875   : > { %7859 = vmatprep.subr.bf16.mxu0 %v22835_v35 }
 0x876   : > { %v7520_v1 = vor.u32 %v7518_v7, %v7517_v20 }
 0x878   : > { %7860 = vmatpush1.bf16.msra.mxu0 %v17614_v56  ;;  %v7521_v13 = vsel %vm7469_vm13, %v7508_v6, %v7520_v1 }
 0x879   : > { %7861 = vmatprep.subr.bf16.mxu0 %v22835_v35 }
 0x87b   : > { %7677 = vmatmul.mubr.bf16.gmra.mrb[144].mxu0 %v7486_v22 }
 0x87c   : > { %14331 = vmatprep.mubr.msk.bf16.mxu0 %vm5336_vm7, %v7495_v9  ;;  %7862 = vmatpush1.bf16.msra.mxu0 %v17615_v63  ;;  %v20804_v9 = vstv %s14381_s5  ;;  %s22868_s5 = sld [smem:[#allocation31_spill]] }
 0x87d   : > { %7863 = vmatprep.subr.bf16.mxu0 %v22835_v35 }
 0x880   : > { %7864 = vmatpush1.bf16.msra.mxu0 %v17616_v50 }
 0x881   : > { %7865 = vmatprep.subr.bf16.mxu0 %v22835_v35 }
 0x883   : > { %7685 = vmatmul.mubr.bf16.gmra.mrb[148].mxu0 %v7492_v34 }
 0x884   : > { %14332 = vmatprep.mubr.msk.bf16.mxu0 %vm5336_vm7, %v7501_v37  ;;  %7866 = vmatpush1.bf16.msra.mxu0 %v17617_v29 }
 0x885   : > { %7867 = vmatprep.subr.bf16.mxu0 %v22835_v35 }
 0x888   : > { %7868 = vmatpush1.bf16.msra.mxu0 %v17618_v51 }
 0x889   : > { %7869 = vmatprep.subr.bf16.mxu0 %v22835_v35 }
 0x88b   : > { %7693 = vmatmul.mubr.bf16.gmra.mrb[152].mxu0 %v7498_v15 }
 0x88c   : > { %14333 = vmatprep.mubr.msk.bf16.mxu0 %vm5336_vm7, %v7507_v52  ;;  %7870 = vmatpush1.bf16.msra.mxu0 %v17619_v4 }
 0x88d   : > { %7871 = vmatprep.subr.bf16.mxu0 %v22835_v35 }
 0x890   : > { %7872 = vmatpush1.bf16.msra.mxu0 %v17620_v33 }
 0x891   : > { %7873 = vmatprep.subr.bf16.mxu0 %v22835_v35 }
 0x893   : > { %7701 = vmatmul.mubr.bf16.gmra.mrb[156].mxu0 %v7504_v18 }
 0x894   : > { %14334 = vmatprep.mubr.msk.bf16.mxu0 %vm5336_vm7, %v7513_v10  ;;  %7874 = vmatpush1.bf16.msra.mxu0 %v17621_v54 }
 0x895   : > { %7875 = vmatprep.subr.bf16.mxu0 %v22835_v35 }
 0x898   : > { %7876 = vmatpush1.bf16.msra.mxu0 %v17622_v60 }
 0x899   : > { %7877 = vmatprep.subr.bf16.mxu0 %v22835_v35 }
 0x89b   : > { %7709 = vmatmul.mubr.bf16.gmra.mrb[160].mxu0 %v7510_v27 }
 0x89c   : > { %14335 = vmatprep.mubr.msk.bf16.mxu0 %vm5336_vm7, %v7529_v26  ;;  %7878 = vmatpush1.bf16.msra.mxu0 %v17623_v47 }
 0x89d   : > { %7879 = vmatprep.subr.bf16.mxu0 %v22835_v35 }
 0x8a0   : > { %7880 = vmatpush1.bf16.msra.mxu0 %v17624_v21 }
 0x8a1   : > { %7881 = vmatprep.subr.bf16.mxu0 %v22835_v35  ;;  %v17627_v35 = vld [vmem:[%s22862_s6 + $0x8] ss:$0 sps:$4 sm:$0xff]  }
 0x8a3   : > { %7717 = vmatmul.mubr.bf16.gmra.mrb[164].mxu0 %v7521_v13 }
 0x8a4   : > { %14374 = vmatprep.mubr.msk.bf16.mxu0 %vm5336_vm7, %v20437_v12  ;;  %7882 = vmatpush1.bf16.msra.mxu0 %v7855_v58  ;;  %v8252_v12 = vsel %vm2563_vm8, %v17627_v35, 0 }
 0x8a5   : > { %15515 = vmatprep.subr.bf16.mxu0 %v22827_v53  ;;  %15230 = vmatpush3.bf16.msra.mxu1 %v8252_v12 }
 0x8a6   : > { %15259 = vmatprep.subr.bf16.mxu1 %v22827_v53 }
 0x8ab   : > { %7890 = vmatmul.mubr.bf16.vlgmr.msra.gmra.mrb[140].mxu0 %v20450_v62  ;;  %v20788_v62 = vld [vmem:[%s22863_s1] ss:$0 sm:$0xff]  ;;  %s17850_s1 = smov 24  }
 0x8ac   : > { %14375 = vmatprep.mubr.msk.bf16.mxu0 %vm5336_vm7, %v20599_v46 }
 0x8b3   : > { %7898 = vmatmul.mubr.bf16.gmra.mrb[144].mxu0 %v20460_v39 }
 0x8b4   : > { %14376 = vmatprep.mubr.msk.bf16.mxu0 %vm5336_vm7, %v20609_v3 }
 0x8bb   : > { %7906 = vmatmul.mubr.bf16.gmra.mrb[148].mxu0 %v20619_v40 }
 0x8bc   : > { %14377 = vmatprep.mubr.msk.bf16.mxu0 %vm5336_vm7, %v20622_v19  ;;  %v20813_v57 = vpop.permute.xlu1 %8082 }
 0x8c0   : > { %v20815_v15 = vpop.permute.xlu0 %8077 }
 0x8c3   : > { %7914 = vmatmul.mubr.bf16.gmra.mrb[152].mxu0 %v20632_v14 }
 0x8c4   : > { %14378 = vmatprep.mubr.msk.bf16.mxu0 %vm5336_vm7, %v20635_v49  ;;  %v20795_v49 = vld [vmem:[%s22864_s11] ss:$0 sm:$0xff]  ;;  %v20829_v43 = vpop.permute.xlu1 %8087  ;;  %s22869_s11 = sld [smem:[#allocation32_spill]] }
 0x8c5   : > { %v20831_v20 = vpop.permute.xlu0 %8092 }
 0x8cb   : > { %7922 = vmatmul.mubr.bf16.gmra.mrb[156].mxu0 %v20645_v2 }
 0x8cc   : > { %14379 = vmatprep.mubr.msk.bf16.mxu0 %vm5336_vm7, %v20648_v0 }
 0x8d3   : > { %7930 = vmatmul.mubr.bf16.gmra.mrb[160].mxu0 %v20660_v38 }
 0x8d4   : > { %14380 = vmatprep.mubr.msk.bf16.mxu0 %vm5336_vm7, %v7442_v17 }
 0x8db   : > { %7938 = vmatmul.mubr.bf16.gmra.mrb[164].mxu0 %v7441_v28 }
 0x8dc   : > { %15521 = vmatprep.mubr.msk.bf16.mxu0 %vm17847_vm15, %v22827_v53 }
 0x97e   : > { %v7891_v39 = vpop.f32.mrb[140].mxu0 }
 0x97f   : > { %v16205_v46 = vadd.f32 %v20788_v62, %v7891_v39  ;;  %v7893_v3 = vpop.f32.mrb[141].mxu0 }
 0x980   : > { %v7894_v40 = vpop.f32.mrb[142].mxu0 }
 0x981   : > { %7961 = vst.msk [vmem:[#allocation3] sm:$0xff] %vm7960_vm14, %v16205_v46  ;;  %v16206_v19 = vadd.f32 %v20788_v62, %v7894_v40  ;;  %v7896_v14 = vpop.f32.mrb[143].mxu0  ;;  %v17628_v40 = vld [vmem:[%s22862_s6 + $0xc] sm:$0xff]  }
 0x983   : > { %7962 = vst.msk [vmem:[#allocation3 + $0x8] sm:$0xff] %vm7960_vm14, %v16206_v19 }
 0x986   : > { %v7899_v2 = vpop.f32.mrb[144].mxu0 }
 0x987   : > { %v16207_v0 = vadd.f32 %v20788_v62, %v7899_v2  ;;  %v7901_v38 = vpop.f32.mrb[145].mxu0  ;;  %v17629_v2 = vld [vmem:[%s22862_s6 + $0x14] ss:$0 sps:$4 sm:$0xff]  }
 0x988   : > { %v7976_v56 = vld [vmem:[#allocation3] sm:$0xff]  ;;  %v7902_v30 = vpop.f32.mrb[146].mxu0 }
 0x989   : > { %v7997_v63 = vmul.f32 %v20795_v49, %v7976_v56  ;;  %7963 = vst.msk [vmem:[#allocation3 + $0x10] sm:$0xff] %vm7960_vm14, %v16207_v0  ;;  %v16208_v22 = vadd.f32 %v20788_v62, %v7902_v30  ;;  %v7904_v8 = vpop.f32.mrb[147].mxu0 }
 0x98a   : > { %v7977_v42 = vld [vmem:[#allocation3 + $0x8] sm:$0xff] }
 0x98b   : > { %v8018_v50 = vadd.f32 %v20799_v5, %v7997_v63  ;;  %v7998_v59 = vmul.f32 %v20795_v49, %v7977_v42  ;;  %7964 = vst.msk [vmem:[#allocation3 + $0x18] sm:$0xff] %vm7960_vm14, %v16208_v22  ;;  %v20849_v22 = vpop.permute.xlu1 %8097 }
 0x98d   : > { %vm8032_vm7 = vcmp.ge.f32.partialorder %v8018_v50, 0.0  ;;  %v8047_v55 = vmul.f32 %v20804_v9, %v8018_v50  ;;  %v8019_v29 = vadd.f32 %v20799_v5, %v7998_v59  ;;  %v20854_v59 = vpop.permute.xlu0 %8102 }
 0x98e   : > { %v7907_v34 = vpop.f32.mrb[148].mxu0 }
 0x98f   : > { %v8061_v31 = vsel %vm8032_vm7, %v8018_v50, %v8047_v55  ;;  %vm8033_vm0 = vcmp.ge.f32.partialorder %v8019_v29, 0.0  ;;  %v8048_v37 = vmul.f32 %v20804_v9, %v8019_v29  ;;  %v16209_v23 = vadd.f32 %v20788_v62, %v7907_v34  ;;  %v7909_v51 = vpop.f32.mrb[149].mxu0 }
 0x990   : > { %v7978_v44 = vld [vmem:[#allocation3 + $0x10] sm:$0xff]  ;;  %v7910_v4 = vpop.f32.mrb[150].mxu0  ;;  %v8145_v17 = vmul.f32 %v20815_v15, %v8061_v31 }
 0x991   : > { %v8062_v36 = vsel %vm8033_vm0, %v8019_v29, %v8048_v37  ;;  %v7999_v52 = vmul.f32 %v20795_v49, %v7978_v44  ;;  %7965 = vst.msk [vmem:[#allocation3 + $0x20] sm:$0xff] %vm7960_vm14, %v16209_v23  ;;  %v16210_v32 = vadd.f32 %v20788_v62, %v7910_v4  ;;  %v7912_v33 = vpop.f32.mrb[151].mxu0  ;;  %v8460_v44 = vsel %vm2563_vm8, %v17629_v2, 0 }
 0x992   : > { %v8146_v11 = vmul.f32 %v20813_v57, %v8062_v36  ;;  %v7979_v41 = vld [vmem:[#allocation3 + $0x18] sm:$0xff] }
 0x993   : > { %v8020_v25 = vadd.f32 %v20799_v5, %v7999_v52  ;;  %v8000_v54 = vmul.f32 %v20795_v49, %v7979_v41  ;;  %7966 = vst.msk [vmem:[#allocation3 + $0x28] sm:$0xff] %vm7960_vm14, %v16210_v32 }
 0x994   : > { %v8159_v18 = vpack.c.bf16 %v8146_v11, %v8145_v17 }
 0x995   : > { %vm8034_vm2 = vcmp.ge.f32.partialorder %v8020_v25, 0.0  ;;  %v8049_v6 = vmul.f32 %v20804_v9, %v8020_v25  ;;  %v8021_v10 = vadd.f32 %v20799_v5, %v8000_v54 }
 0x996   : > { %v8173_v16 = vrot.slane %v8159_v18, 4  ;;  %v7915_v28 = vpop.f32.mrb[152].mxu0 }
 0x997   : > { %v8063_v60 = vsel %vm8034_vm2, %v8020_v25, %v8049_v6  ;;  %vm8035_vm4 = vcmp.ge.f32.partialorder %v8021_v10, 0.0  ;;  %v8050_v61 = vmul.f32 %v20804_v9, %v8021_v10  ;;  %v16211_v48 = vadd.f32 %v20788_v62, %v7915_v28  ;;  %v7917_v24 = vpop.f32.mrb[153].mxu0  ;;  %v20874_v6 = vpop.permute.xlu1 %8107 }
 0x998   : > { %v7980_v47 = vld [vmem:[#allocation3 + $0x20] sm:$0xff]  ;;  %v7918_v27 = vpop.f32.mrb[154].mxu0  ;;  %8195 = vst.msk [vmem:[#allocation4] sm:$0xf0] %vm8194_vm3, %v8173_v16  ;;  %v8147_v1 = vmul.f32 %v20829_v43, %v8063_v60 }
 0x999   : > { %v8064_v26 = vsel %vm8035_vm4, %v8021_v10, %v8050_v61  ;;  %v8001_v7 = vmul.f32 %v20795_v49, %v7980_v47  ;;  %7967 = vst.msk [vmem:[#allocation3 + $0x30] sm:$0xff] %vm7960_vm14, %v16211_v48  ;;  %v16212_v21 = vadd.f32 %v20788_v62, %v7918_v27  ;;  %v7920_v45 = vpop.f32.mrb[155].mxu0  ;;  %v20879_v61 = vpop.permute.xlu0 %8112 }
 0x99a   : > { %v8148_v58 = vmul.f32 %v20831_v20, %v8064_v26  ;;  %v7981_v13 = vld [vmem:[#allocation3 + $0x28] sm:$0xff] }
 0x99b   : > { %v8022_v35 = vadd.f32 %v20799_v5, %v8001_v7  ;;  %v8002_v12 = vmul.f32 %v20795_v49, %v7981_v13  ;;  %7968 = vst.msk [vmem:[#allocation3 + $0x38] sm:$0xff] %vm7960_vm14, %v16212_v21 }
 0x99c   : > { %v8160_v39 = vpack.c.bf16 %v8148_v58, %v8147_v1 }
 0x99d   : > { %vm8036_vm5 = vcmp.ge.f32.partialorder %v8022_v35, 0.0  ;;  %v8051_v46 = vmul.f32 %v20804_v9, %v8022_v35  ;;  %v8023_v3 = vadd.f32 %v20799_v5, %v8002_v12 }
 0x99e   : > { %v8174_v19 = vrot.slane %v8160_v39, 4  ;;  %v7923_v14 = vpop.f32.mrb[156].mxu0 }
 0x99f   : > { %v8065_v0 = vsel %vm8036_vm5, %v8022_v35, %v8051_v46  ;;  %vm8037_vm7 = vcmp.ge.f32.partialorder %v8023_v3, 0.0  ;;  %v8052_v38 = vmul.f32 %v20804_v9, %v8023_v3  ;;  %v16213_v56 = vadd.f32 %v20788_v62, %v7923_v14  ;;  %v7925_v30 = vpop.f32.mrb[157].mxu0  ;;  %v20847_v63 = vld [vmem:[#allocation4] sm:$0xff] }
 0x9a0   : > { %v7982_v8 = vld [vmem:[#allocation3 + $0x30] sm:$0xff]  ;;  %v7926_v42 = vpop.f32.mrb[158].mxu0  ;;  %15232 = vmatmul.mubr.msk.bf16.vlgmr.msra.gmra.mrb[56].mxu1 %vm7960_vm14, %v20847_v63  ;;  %v8175_v50 = vsel %vm2563_vm8, %v8173_v16, %v8174_v19  ;;  %v8149_v37 = vmul.f32 %v20849_v22, %v8065_v0  ;;  %v20908_v30 = vpop.permute.xlu1 %8117 }
 0x9a1   : > { %v8066_v55 = vsel %vm8037_vm7, %v8023_v3, %v8052_v38  ;;  %v8003_v29 = vmul.f32 %v20795_v49, %v7982_v8  ;;  %7969 = vst.msk [vmem:[#allocation3 + $0x40] sm:$0xff] %vm7960_vm14, %v16213_v56  ;;  %v16214_v34 = vadd.f32 %v20788_v62, %v7926_v42  ;;  %v7928_v31 = vpop.f32.mrb[159].mxu0  ;;  %15260 = vmatpush3.bf16.msra.mxu1 %v17628_v40  ;;  %8196 = vst.msk [vmem:[#allocation4 + $0x10] sm:$0xff] %vm7960_vm14, %v8175_v50 }
 0x9a2   : > { %15235 = vmatprep.mubr.msk.bf16.mxu1 %vm17847_vm15, %v22827_v53  ;;  %v8150_v23 = vmul.f32 %v20854_v59, %v8066_v55  ;;  %v7983_v51 = vld [vmem:[#allocation3 + $0x38] sm:$0xff]  ;;  %15261 = vmatprep.subr.bf16.mxu1 %v22827_v53 }
 0x9a3   : > { %v8024_v4 = vadd.f32 %v20799_v5, %v8003_v29  ;;  %v8004_v36 = vmul.f32 %v20795_v49, %v7983_v51  ;;  %7970 = vst.msk [vmem:[#allocation3 + $0x48] sm:$0xff] %vm7960_vm14, %v16214_v34  ;;  %v20913_v29 = vpop.permute.xlu0 %8122 }
 0x9a4   : > { %v8161_v52 = vpack.c.bf16 %v8150_v23, %v8149_v37 }
 0x9a5   : > { %vm8038_vm0 = vcmp.ge.f32.partialorder %v8024_v4, 0.0  ;;  %v8053_v32 = vmul.f32 %v20804_v9, %v8024_v4  ;;  %v8025_v33 = vadd.f32 %v20799_v5, %v8004_v36  ;;  %15262 = vmatpush3.bf16.msra.mxu1 %v8460_v44 }
 0x9a6   : > { %v8176_v17 = vrot.slane %v8161_v52, 4  ;;  %v7931_v11 = vpop.f32.mrb[160].mxu0  ;;  %15291 = vmatprep.subr.bf16.mxu1 %v22827_v53 }
 0x9a7   : > { %v8067_v41 = vsel %vm8038_vm0, %v8024_v4, %v8053_v32  ;;  %vm8039_vm2 = vcmp.ge.f32.partialorder %v8025_v33, 0.0  ;;  %v8054_v25 = vmul.f32 %v20804_v9, %v8025_v33  ;;  %v16215_v54 = vadd.f32 %v20788_v62, %v7931_v11  ;;  %v7933_v18 = vpop.f32.mrb[161].mxu0 }
 0x9a8   : > { %v7984_v10 = vld [vmem:[#allocation3 + $0x40] sm:$0xff]  ;;  %v7934_v16 = vpop.f32.mrb[162].mxu0  ;;  %v8177_v60 = vsel %vm2563_vm8, %v8174_v19, %v8176_v17  ;;  %v8151_v7 = vmul.f32 %v20874_v6, %v8067_v41 }
 0x9a9   : > { %v20876_v28 = vld [vmem:[#allocation4 + $0x10] sm:$0xff]  ;;  %v8068_v48 = vsel %vm8039_vm2, %v8025_v33, %v8054_v25  ;;  %v8005_v24 = vmul.f32 %v20795_v49, %v7984_v10  ;;  %7971 = vst.msk [vmem:[#allocation3 + $0x50] sm:$0xff] %vm7960_vm14, %v16215_v54  ;;  %v16216_v47 = vadd.f32 %v20788_v62, %v7934_v16  ;;  %v7936_v27 = vpop.f32.mrb[163].mxu0  ;;  %8197 = vst.msk [vmem:[#allocation4 + $0x20] sm:$0xff] %vm7960_vm14, %v8177_v60 }
 0x9aa   : > { %15236 = vmatmul.mubr.msk.bf16.gmra.mrb[60].mxu1 %vm7960_vm14, %v20876_v28  ;;  %v20888_v26 = vshll.u32 %v20876_v28, 16  ;;  %v8152_v21 = vmul.f32 %v20879_v61, %v8068_v48  ;;  %v7985_v45 = vld [vmem:[#allocation3 + $0x48] sm:$0xff]  ;;  %v20895_v1 = vshrl.u32 %v20876_v28, 16 }
 0x9ab   : > { %15239 = vmatprep.mubr.msk.bf16.mxu1 %vm17847_vm15, %v22827_v53  ;;  %v8026_v58 = vadd.f32 %v20799_v5, %v8005_v24  ;;  %v8006_v13 = vmul.f32 %v20795_v49, %v7985_v45  ;;  %7972 = vst.msk [vmem:[#allocation3 + $0x58] sm:$0xff] %vm7960_vm14, %v16216_v47  ;;  %v20950_v45 = vpop.permute.xlu0 %8132 }
 0x9ac   : > { %v8744_v35 = vrot.slane %v20888_v26, 4  ;;  %v8162_v12 = vpack.c.bf16 %v8152_v21, %v8151_v7  ;;  %v8743_v39 = vrot.slane %v20895_v1, 3  ;;  %v9083_v10 = vrot.slane %v20895_v1, 4  ;;  %v20948_v21 = vpop.permute.xlu1 %8127 }
 0x9ad   : > { %vm8040_vm3 = vcmp.ge.f32.partialorder %v8026_v58, 0.0  ;;  %v8055_v46 = vmul.f32 %v20804_v9, %v8026_v58  ;;  %v8027_v3 = vadd.f32 %v20799_v5, %v8006_v13  ;;  %v9084_v48 = vrot.slane %v20888_v26, 5 }
 0x9ae   : > { %v8178_v40 = vrot.slane %v8162_v12, 4  ;;  %v7939_v19 = vpop.f32.mrb[164].mxu0  ;;  %v20904_v14 = vor.u32 %v8744_v35, %v8743_v39 }
 0x9af   : > { %v8069_v2 = vsel %vm8040_vm3, %v8026_v58, %v8055_v46  ;;  %vm8041_vm4 = vcmp.ge.f32.partialorder %v8027_v3, 0.0  ;;  %v8056_v0 = vmul.f32 %v20804_v9, %v8027_v3  ;;  %v16217_v38 = vadd.f32 %v20788_v62, %v7939_v19  ;;  %v7941_v56 = vpop.f32.mrb[165].mxu0 }
 0x9b0   : > { %v7986_v8 = vld [vmem:[#allocation3 + $0x50] sm:$0xff]  ;;  %v7942_v42 = vpop.f32.mrb[166].mxu0  ;;  %v8179_v55 = vsel %vm2563_vm8, %v8176_v17, %v8178_v40  ;;  %v8153_v44 = vmul.f32 %v20908_v30, %v8069_v2  ;;  %vm8202_vm3 = vcmask 191488  }
 0x9b1   : > { %v20910_v50 = vld [vmem:[#allocation4 + $0x20] sm:$0xff]  ;;  %v8070_v34 = vsel %vm8041_vm4, %v8027_v3, %v8056_v0  ;;  %v8007_v31 = vmul.f32 %v20795_v49, %v7986_v8  ;;  %7973 = vst.msk [vmem:[#allocation3 + $0x60] sm:$0xff] %vm7960_vm14, %v16217_v38  ;;  %v16218_v37 = vadd.f32 %v20788_v62, %v7942_v42  ;;  %v7944_v23 = vpop.f32.mrb[167].mxu0  ;;  %8198 = vst.msk [vmem:[#allocation4 + $0x30] sm:$0xff] %vm7960_vm14, %v8179_v55  ;;  %vm9771_vm4 = vcmask 294080  }
 0x9b2   : > { %15240 = vmatmul.mubr.msk.bf16.gmra.mrb[64].mxu1 %vm7960_vm14, %v20910_v50  ;;  %v20922_v51 = vshll.u32 %v20910_v50, 16  ;;  %v8154_v4 = vmul.f32 %v20913_v29, %v8070_v34  ;;  %v7987_v36 = vld [vmem:[#allocation3 + $0x58] sm:$0xff]  ;;  %v20929_v52 = vshrl.u32 %v20910_v50, 16 }
 0x9b3   : > { %15243 = vmatprep.mubr.msk.bf16.mxu1 %vm17847_vm15, %v22827_v53  ;;  %v8028_v62 = vadd.f32 %v20799_v5, %v8007_v31  ;;  %v8008_v32 = vmul.f32 %v20795_v49, %v7987_v36  ;;  %7974 = vst.msk [vmem:[#allocation3 + $0x68] sm:$0xff] %vm7960_vm14, %v16218_v37 }
 0x9b4   : > { %v8163_v33 = vpack.c.bf16 %v8154_v4, %v8153_v44  ;;  %v8747_v17 = vrot.slane %v20929_v52, 3  ;;  %v8748_v11 = vrot.slane %v20922_v51, 4  ;;  %v9087_v31 = vrot.slane %v20929_v52, 4 }
 0x9b5   : > { %vm8042_vm5 = vcmp.ge.f32.partialorder %v8028_v62, 0.0  ;;  %v8057_v41 = vmul.f32 %v20804_v9, %v8028_v62  ;;  %v8029_v25 = vadd.f32 %v20799_v5, %v8008_v32  ;;  %v20986_v32 = vpop.permute.xlu0 %8142 }
 0x9b6   : > { %v8180_v54 = vrot.slane %v8163_v33, 4  ;;  %v8749_v18 = vor.u32 %v8748_v11, %v8747_v17  ;;  %22866 = vst [vmem:[#allocation44_spill] sm:$0xff] %v20986_v32 }
 0x9b7   : > { %v8071_v16 = vsel %vm8042_vm5, %v8028_v62, %v8057_v41  ;;  %vm8043_vm7 = vcmp.ge.f32.partialorder %v8029_v25, 0.0  ;;  %v8058_v60 = vmul.f32 %v20804_v9, %v8029_v25 }
 0x9b8   : > { %v7988_v24 = vld [vmem:[#allocation3 + $0x60] sm:$0xff]  ;;  %v8181_v27 = vsel %vm2563_vm8, %v8178_v40, %v8180_v54  ;;  %v20946_v7 = vsel %vm6284_vm6, %v20904_v14, %v8749_v18  ;;  %v8155_v39 = vmul.f32 %v20948_v21, %v8071_v16  ;;  %v20966_v40 = vor.u32 %v9084_v48, %v9083_v10 }
 0x9b9   : > { %v20941_v47 = vld [vmem:[#allocation4 + $0x30] sm:$0xff]  ;;  %v8072_v58 = vsel %vm8043_vm7, %v8029_v25, %v8058_v60  ;;  %v8009_v13 = vmul.f32 %v20795_v49, %v7988_v24  ;;  %8199 = vst.msk [vmem:[#allocation4 + $0x40] sm:$0xff] %vm7960_vm14, %v8181_v27 }
 0x9ba   : > { %15244 = vmatmul.mubr.msk.bf16.gmra.mrb[68].mxu1 %vm7960_vm14, %v20941_v47  ;;  %v20957_v35 = vshll.u32 %v20941_v47, 16  ;;  %v20960_v12 = vshrl.u32 %v20941_v47, 16  ;;  %v8156_v46 = vmul.f32 %v20950_v45, %v8072_v58  ;;  %v7989_v3 = vld [vmem:[#allocation3 + $0x68] sm:$0xff] }
 0x9bb   : > { %15247 = vmatprep.mubr.msk.bf16.mxu1 %vm17847_vm15, %v22827_v53  ;;  %v8030_v19 = vadd.f32 %v20799_v5, %v8009_v13  ;;  %v8010_v2 = vmul.f32 %v20795_v49, %v7989_v3  ;;  %v9088_v49 = vrot.slane %v20922_v51, 5 }
 0x9bc   : > { %v8751_v0 = vrot.slane %v20960_v12, 3  ;;  %v8164_v38 = vpack.c.bf16 %v8156_v46, %v8155_v39  ;;  %v8752_v56 = vrot.slane %v20957_v35, 4  ;;  %v9091_v62 = vrot.slane %v20960_v12, 4 }
 0x9bd   : > { %vm8044_vm0 = vcmp.ge.f32.partialorder %v8030_v19, 0.0  ;;  %v8059_v8 = vmul.f32 %v20804_v9, %v8030_v19  ;;  %v8031_v42 = vadd.f32 %v20799_v5, %v8010_v2  ;;  %v20984_v5 = vpop.permute.xlu1 %8137  ;;  %v9089_v25 = vor.u32 %v9088_v49, %v9087_v31 }
 0x9be   : > { %v8182_v55 = vrot.slane %v8164_v38, 4  ;;  %v8753_v34 = vor.u32 %v8752_v56, %v8751_v0 }
 0x9bf   : > { %v8073_v37 = vsel %vm8044_vm0, %v8030_v19, %v8059_v8  ;;  %vm8045_vm2 = vcmp.ge.f32.partialorder %v8031_v42, 0.0  ;;  %v8060_v23 = vmul.f32 %v20804_v9, %v8031_v42  ;;  %v21006_v60 = vsel %vm6875_vm9, %v20966_v40, %v9089_v25 }
 0x9c0   : > { %v20977_v44 = vld [vmem:[#allocation4 + $0x40] sm:$0xff]  ;;  %v8183_v4 = vsel %vm2563_vm8, %v8180_v54, %v8182_v55  ;;  %v20981_v36 = vsel %vm6284_vm6, %v8749_v18, %v8753_v34  ;;  %v8157_v11 = vmul.f32 %v20984_v5, %v8073_v37  ;;  %v9092_v54 = vrot.slane %v20957_v35, 5 }
 0x9c1   : > { %v8074_v33 = vsel %vm8045_vm2, %v8031_v42, %v8060_v23  ;;  %8200 = vst.msk [vmem:[#allocation4 + $0x50] sm:$0xff] %vm7960_vm14, %v8183_v4  ;;  %v20992_v9 = vshll.u32 %v20977_v44, 16  ;;  %v20995_v17 = vshrl.u32 %v20977_v44, 16  ;;  %v9420_v37 = vrot.slane %v20895_v1, 7 }
 0x9c2   : > { %15248 = vmatmul.mubr.msk.bf16.gmra.mrb[72].mxu1 %vm7960_vm14, %v20977_v44  ;;  %v8158_v41 = vmul.f32 %v20986_v32, %v8074_v33  ;;  %v9093_v48 = vor.u32 %v9092_v54, %v9091_v62  ;;  %v8372_v23 = vshll.u32 %v20847_v63, 16  ;;  %vm9935_vm2 = vcmask 293892  }
 0x9c3   : > { %15251 = vmatprep.mubr.msk.bf16.mxu1 %vm17847_vm15, %v22827_v53  ;;  %v8755_v18 = vrot.slane %v20995_v17, 3  ;;  %v8756_v10 = vrot.slane %v20992_v9, 4  ;;  %v9095_v27 = vrot.slane %v20995_v17, 4  ;;  %v9096_v39 = vrot.slane %v20992_v9, 5 }
 0x9c4   : > { %v8165_v16 = vpack.c.bf16 %v8158_v41, %v8157_v11  ;;  %v21010_v13 = vsel %vm6875_vm9, %v9089_v25, %v9093_v48  ;;  %v21043_v62 = vor.u32 %v9420_v37, %v20888_v26  ;;  %v8374_v25 = vrot.slane %v8372_v23, 1 }
 0x9c5   : > { %v8757_v24 = vor.u32 %v8756_v10, %v8755_v18  ;;  %v9097_v2 = vor.u32 %v9096_v39, %v9095_v27  ;;  %v8370_v18 = vshrl.u32 %v20847_v63, 16  ;;  %v8379_v10 = vrot.slane %v20888_v26, 1  ;;  %v17630_v39 = vld [vmem:[%s22862_s6 + $0x18] sm:$0xff]   ;;  %v17631_v63 = vld [vmem:[%s22862_s6 + $0x20] ss:$0 sps:$4 sm:$0xff]  }
 0x9c6   : > { %v8184_v58 = vrot.slane %v8165_v16, 4  ;;  %v9423_v27 = vrot.slane %v20929_v52, 7 }
 0x9c7   : > { %v21014_v46 = vsel %vm6284_vm6, %v8753_v34, %v8757_v24  ;;  %v21031_v56 = vsel %vm6875_vm9, %v9093_v48, %v9097_v2 }
 0x9c8   : > { %v21016_v3 = vld [vmem:[#allocation4 + $0x50] sm:$0xff]  ;;  %v8185_v19 = vsel %vm2563_vm8, %v8182_v55, %v8184_v58  ;;  %8203 = vst.msk [vmem:[#allocation4 + $0x70] sm:$0xf] %vm8202_vm3, %v8184_v58  ;;  %v8375_v58 = vor.u32 %v8374_v25, %v8370_v18  ;;  %v8624_v18 = vsel %vm2563_vm8, %v17631_v63, 0  ;;  %v8383_v63 = vor.u32 %v20895_v1, %v8379_v10 }
 0x9c9   : > { %8201 = vst.msk [vmem:[#allocation4 + $0x60] sm:$0xff] %vm7960_vm14, %v8185_v19  ;;  %v21023_v0 = vshll.u32 %v21016_v3, 16  ;;  %v21026_v38 = vshrl.u32 %v21016_v3, 16  ;;  %v8395_v1 = vrot.slane %v20957_v35, 1 }
 0x9ca   : > { %15252 = vmatmul.mubr.msk.bf16.gmra.mrb[76].mxu1 %vm7960_vm14, %v21016_v3  ;;  %v8380_v26 = vsel %vm5640_vm10, %v8375_v58, %v8379_v10  ;;  %v8387_v58 = vrot.slane %v20922_v51, 1 }
 0x9cb   : > { %15255 = vmatprep.mubr.msk.bf16.mxu1 %vm17847_vm15, %v22827_v53  ;;  %v8759_v8 = vrot.slane %v21026_v38, 3  ;;  %v8760_v42 = vrot.slane %v21023_v0, 4  ;;  %v9099_v55 = vrot.slane %v21026_v38, 4  ;;  %v9100_v34 = vrot.slane %v21023_v0, 5 }
 0x9cc   : > { %v8391_v10 = vor.u32 %v20929_v52, %v8387_v58  ;;  %v8411_v52 = vrot.slane %v21023_v0, 1 }
 0x9cd   : > { %v8761_v31 = vor.u32 %v8760_v42, %v8759_v8  ;;  %v9101_v49 = vor.u32 %v9100_v34, %v9099_v55  ;;  %v9426_v42 = vrot.slane %v20960_v12, 7  ;;  %v9424_v34 = vor.u32 %v9423_v27, %v20922_v51 }
 0x9cf   : > { %v21040_v4 = vsel %vm6284_vm6, %v8757_v24, %v8761_v31  ;;  %v21062_v48 = vsel %vm6875_vm9, %v9097_v2, %v9101_v49  ;;  %v9427_v25 = vor.u32 %v9426_v42, %v20957_v35 }
 0x9d0   : > { %v21045_v33 = vld [vmem:[#allocation4 + $0x60] sm:$0xff] }
 0x9d1   : > { %v21050_v11 = vshll.u32 %v21045_v33, 16  ;;  %v21053_v41 = vshrl.u32 %v21045_v33, 16 }
 0x9d2   : > { %15256 = vmatmul.mubr.msk.bf16.gmra.mrb[80].mxu1 %vm7960_vm14, %v21045_v33 }
 0x9d3   : > { %15263 = vmatprep.mubr.msk.bf16.mxu1 %vm17847_vm15, %v22827_v53  ;;  %v8763_v54 = vrot.slane %v21053_v41, 3  ;;  %v8764_v16 = vrot.slane %v21050_v11, 4  ;;  %v9103_v24 = vrot.slane %v21053_v41, 4  ;;  %v9104_v8 = vrot.slane %v21050_v11, 5 }
 0x9d5   : > { %v21067_v19 = vor.u32 %v8764_v16, %v8763_v54  ;;  %v21077_v2 = vor.u32 %v9104_v8, %v9103_v24  ;;  %v9429_v54 = vrot.slane %v20995_v17, 7  ;;  %v21093_v16 = vsel %vm7469_vm13, %v9420_v37, %v9424_v34 }
 0x9d6   : > { %v9435_v24 = vrot.slane %v21053_v41, 7 }
 0x9d7   : > { %v21075_v55 = vsel %vm6284_vm6, %v8761_v31, %v21067_v19  ;;  %v21085_v23 = vsel %vm6875_vm9, %v9101_v49, %v21077_v2  ;;  %v9432_v31 = vrot.slane %v21026_v38, 7  ;;  %v21098_v49 = vsel %vm7469_vm13, %v9423_v27, %v9427_v25 }
 0x9d8   : > { %v8388_v27 = vsel %vm5640_vm10, %v8383_v63, %v8387_v58  ;;  %v8403_v25 = vrot.slane %v20992_v9, 1  ;;  %v8364_v58 = vld [vmem:[#allocation4 + $0x70] sm:$0x1] }
 0x9d9   : > { %v9433_v8 = vor.u32 %v9432_v31, %v21023_v0 }
 0x9da   : > { %15264 = vmatmul.mubr.msk.bf16.vlgmr.msra.gmra.mrb[56].mxu1 %vm7960_vm14, %v8380_v26  ;;  %v9436_v26 = vor.u32 %v9435_v24, %v21050_v11  ;;  %v8407_v35 = vor.u32 %v20995_v17, %v8403_v25  ;;  %v8425_v17 = vshll.u32 %v8364_v58, 16 }
 0x9db   : > { %15292 = vmatpush3.bf16.msra.mxu1 %v17630_v39  ;;  %15267 = vmatprep.mubr.msk.bf16.mxu1 %vm17847_vm15, %v22827_v53  ;;  %v9430_v39 = vor.u32 %v9429_v54, %v20992_v9  ;;  %v21110_v34 = vsel %vm7469_vm13, %v9429_v54, %v9433_v8  ;;  %v8399_v54 = vor.u32 %v20960_v12, %v8395_v1  ;;  %v8419_v12 = vrot.slane %v21050_v11, 1 }
 0x9dc   : > { %15293 = vmatprep.subr.bf16.mxu1 %v22827_v53  ;;  %v21114_v51 = vsel %vm7469_vm13, %v9432_v31, %v9436_v26  ;;  %v8415_v9 = vor.u32 %v21026_v38, %v8411_v52  ;;  %v8427_v8 = vrot.slane %v8425_v17, 1  ;;  %v8565_v38 = vld [vmem:[#allocation4] sm:$0xfe]  ;;  %v8579_v11 = vrot.slane %v20876_v28, 1 }
 0x9dd   : > { %v21107_v37 = vsel %vm7469_vm13, %v9426_v42, %v9430_v39  ;;  %v8396_v42 = vsel %vm5640_vm10, %v8391_v10, %v8395_v1  ;;  %v8404_v31 = vsel %vm5640_vm10, %v8399_v54, %v8403_v25  ;;  %v8423_v0 = vor.u32 %v21053_v41, %v8419_v12  ;;  %v17633_v1 = vld [vmem:[%s22862_s6 + $0x2c] ss:$0 sps:$4 sm:$0xff]  }
 0x9de   : > { %v8420_v39 = vsel %vm5640_vm10, %v8415_v9, %v8419_v12  ;;  %v8578_v63 = vrot.slane %v8565_v38, 1  ;;  %v8581_v25 = vrot.slane %v20910_v50, 1  ;;  %v8587_v12 = vrot.slane %v21016_v3, 1 }
 0x9df   : > { %15294 = vmatpush3.bf16.msra.mxu1 %v8624_v18  ;;  %v8412_v18 = vsel %vm5640_vm10, %v8407_v35, %v8411_v52  ;;  %v8428_v26 = vsel %vm5640_vm10, %v8423_v0, %v8427_v8  ;;  %v8585_v35 = vrot.slane %v20977_v44, 1  ;;  %v8729_v0 = vld [vmem:[#allocation4] sm:$0xf8]  ;;  %v8591_v8 = vrot.slane %v8364_v58, 1 }
 0x9e0   : > { %15323 = vmatprep.subr.bf16.mxu1 %v22827_v53  ;;  %v8580_v10 = vsel %vm6014_vm11, %v8578_v63, %v8579_v11  ;;  %v8582_v54 = vsel %vm6014_vm11, %v8579_v11, %v8581_v25  ;;  %v8739_v38 = vshll.u32 %v8729_v0, 16 }
 0x9e1   : > { %v8588_v9 = vsel %vm6014_vm11, %v8585_v35, %v8587_v12 }
 0x9e2   : > { %15268 = vmatmul.mubr.msk.bf16.gmra.mrb[60].mxu1 %vm7960_vm14, %v8388_v27  ;;  %v17632_v27 = vld [vmem:[%s22862_s6 + $0x24] sm:$0xff]  }
 0x9e3   : > { %15271 = vmatprep.mubr.msk.bf16.mxu1 %vm17847_vm15, %v22827_v53 }
 0x9ea   : > { %15272 = vmatmul.mubr.msk.bf16.gmra.mrb[64].mxu1 %vm7960_vm14, %v8396_v42  ;;  %v8807_v42 = vsel %vm2563_vm8, %v17633_v1, 0 }
 0x9eb   : > { %15275 = vmatprep.mubr.msk.bf16.mxu1 %vm17847_vm15, %v22827_v53 }
 0x9f2   : > { %15276 = vmatmul.mubr.msk.bf16.gmra.mrb[68].mxu1 %vm7960_vm14, %v8404_v31  ;;  %v8583_v31 = vrot.slane %v20941_v47, 1 }
 0x9f3   : > { %15279 = vmatprep.mubr.msk.bf16.mxu1 %vm17847_vm15, %v22827_v53 }
 0x9f4   : > { %v8584_v52 = vsel %vm6014_vm11, %v8581_v25, %v8583_v31 }
 0x9fa   : > { %15280 = vmatmul.mubr.msk.bf16.gmra.mrb[72].mxu1 %vm7960_vm14, %v8412_v18  ;;  %v8586_v18 = vsel %vm6014_vm11, %v8583_v31, %v8585_v35  ;;  %v8920_v35 = vrot.slane %v20876_v28, 4 }
 0x9fb   : > { %15283 = vmatprep.mubr.msk.bf16.mxu1 %vm17847_vm15, %v22827_v53 }
 0xa02   : > { %15284 = vmatmul.mubr.msk.bf16.gmra.mrb[76].mxu1 %vm7960_vm14, %v8420_v39  ;;  %v8589_v39 = vrot.slane %v21045_v33, 1 }
 0xa03   : > { %15287 = vmatprep.mubr.msk.bf16.mxu1 %vm17847_vm15, %v22827_v53 }
 0xa04   : > { %v8590_v17 = vsel %vm6014_vm11, %v8587_v12, %v8589_v39  ;;  %v8592_v11 = vsel %vm6014_vm11, %v8589_v39, %v8591_v8  ;;  %v17636_v12 = vld [vmem:[%s22862_s6 + $0x3c] sm:$0xff]   ;;  %v8922_v39 = vrot.slane %v20910_v50, 4 }
 0xa0a   : > { %15288 = vmatmul.mubr.msk.bf16.gmra.mrb[80].mxu1 %vm7960_vm14, %v8428_v26  ;;  %v8736_v26 = vshrl.u32 %v8729_v0, 16  ;;  %v8924_v0 = vrot.slane %v20941_v47, 4 }
 0xa0b   : > { %15295 = vmatprep.mubr.msk.bf16.mxu1 %vm17847_vm15, %v22827_v53 }
 0xa0c   : > { %v8738_v63 = vrot.slane %v8736_v26, 3  ;;  %v8925_v8 = vsel %vm2563_vm8, %v8922_v39, %v8924_v0  ;;  %v8926_v26 = vrot.slane %v20977_v44, 4 }
 0xa12   : > { %15296 = vmatmul.mubr.msk.bf16.vlgmr.msra.gmra.mrb[56].mxu1 %vm7960_vm14, %v8580_v10  ;;  %v17634_v10 = vld [vmem:[%s22862_s6 + $0x30] sm:$0xff]  }
 0xa13   : > { %15324 = vmatpush3.bf16.msra.mxu1 %v17632_v27  ;;  %15299 = vmatprep.mubr.msk.bf16.mxu1 %vm17847_vm15, %v22827_v53  ;;  %v8741_v27 = vrot.slane %v8739_v38, 4  ;;  %v8927_v38 = vsel %vm2563_vm8, %v8924_v0, %v8926_v26  ;;  %v9265_v0 = vrot.slane %v20941_v47, 7 }
 0xa14   : > { %15325 = vmatprep.subr.bf16.mxu1 %v22827_v53 }
 0xa15   : > { %v8742_v1 = vor.u32 %v8741_v27, %v8738_v63  ;;  %v8930_v27 = vrot.slane %v21045_v33, 4 }
 0xa17   : > { %15326 = vmatpush3.bf16.msra.mxu1 %v8807_v42  ;;  %v17635_v42 = vld [vmem:[%s22862_s6 + $0x38] ss:$0 sps:$4 sm:$0xff]   ;;  %v8746_v25 = vsel %vm6284_vm6, %v8742_v1, %v20904_v14  ;;  %v8730_v14 = vld [vmem:[#allocation4 + $0x70] sm:$0xf] }
 0xa18   : > { %15355 = vmatprep.subr.bf16.mxu1 %v22827_v53  ;;  %v8965_v58 = vsel %vm2563_vm8, %v17635_v42, 0 }
 0xa1a   : > { %15300 = vmatmul.mubr.msk.bf16.gmra.mrb[60].mxu1 %vm7960_vm14, %v8582_v54 }
 0xa1b   : > { %15303 = vmatprep.mubr.msk.bf16.mxu1 %vm17847_vm15, %v22827_v53 }
 0xa22   : > { %15304 = vmatmul.mubr.msk.bf16.gmra.mrb[64].mxu1 %vm7960_vm14, %v8584_v52  ;;  %v8912_v52 = vld [vmem:[#allocation4] sm:$0xf0] }
 0xa23   : > { %15307 = vmatprep.mubr.msk.bf16.mxu1 %vm17847_vm15, %v22827_v53  ;;  %v9076_v42 = vshrl.u32 %v8912_v52, 16 }
 0xa2a   : > { %15308 = vmatmul.mubr.msk.bf16.gmra.mrb[68].mxu1 %vm7960_vm14, %v8586_v18  ;;  %v8919_v18 = vrot.slane %v8912_v52, 4 }
 0xa2b   : > { %15311 = vmatprep.mubr.msk.bf16.mxu1 %vm17847_vm15, %v22827_v53 }
 0xa32   : > { %15312 = vmatmul.mubr.msk.bf16.gmra.mrb[72].mxu1 %vm7960_vm14, %v8588_v9  ;;  %v17637_v9 = vld [vmem:[%s22862_s6 + $0x44] ss:$0 sps:$4 sm:$0xff]  }
 0xa33   : > { %15315 = vmatprep.mubr.msk.bf16.mxu1 %vm17847_vm15, %v22827_v53 }
 0xa3a   : > { %15316 = vmatmul.mubr.msk.bf16.gmra.mrb[76].mxu1 %vm7960_vm14, %v8590_v17  ;;  %v8923_v17 = vsel %vm2563_vm8, %v8920_v35, %v8922_v39  ;;  %v9263_v39 = vrot.slane %v20910_v50, 7 }
 0xa3b   : > { %15319 = vmatprep.mubr.msk.bf16.mxu1 %vm17847_vm15, %v22827_v53 }
 0xa42   : > { %15320 = vmatmul.mubr.msk.bf16.gmra.mrb[80].mxu1 %vm7960_vm14, %v8592_v11  ;;  %v8928_v11 = vrot.slane %v21016_v3, 4 }
 0xa43   : > { %15327 = vmatprep.mubr.msk.bf16.mxu1 %vm17847_vm15, %v22827_v53 }
 0xa44   : > { %v8929_v63 = vsel %vm2563_vm8, %v8926_v26, %v8928_v11  ;;  %v8931_v1 = vsel %vm2563_vm8, %v8928_v11, %v8930_v27  ;;  %v9267_v26 = vrot.slane %v20977_v44, 7  ;;  %v9269_v11 = vrot.slane %v21016_v3, 7 }
 0xa4a   : > { %15328 = vmatmul.mubr.msk.bf16.vlgmr.msra.gmra.mrb[56].mxu1 %vm7960_vm14, %v8746_v25  ;;  %v9079_v25 = vshll.u32 %v8912_v52, 16 }
 0xa4b   : > { %15356 = vmatpush3.bf16.msra.mxu1 %v17634_v10  ;;  %15331 = vmatprep.mubr.msk.bf16.mxu1 %vm17847_vm15, %v22827_v53  ;;  %v8932_v10 = vrot.slane %v8730_v14, 4 }
 0xa4c   : > { %15357 = vmatprep.subr.bf16.mxu1 %v22827_v53 }
 0xa4f   : > { %15358 = vmatpush3.bf16.msra.mxu1 %v8965_v58  ;;  %v8933_v58 = vsel %vm2563_vm8, %v8930_v27, %v8932_v10  ;;  %v9271_v27 = vrot.slane %v21045_v33, 7  ;;  %v9253_v10 = vld [vmem:[#allocation4 + $0x70] sm:$0x7f] }
 0xa50   : > { %15387 = vmatprep.subr.bf16.mxu1 %v22827_v53 }
 0xa52   : > { %15332 = vmatmul.mubr.msk.bf16.gmra.mrb[60].mxu1 %vm7960_vm14, %v20946_v7  ;;  %v8768_v7 = vshrl.u32 %v8730_v14, 16 }
 0xa53   : > { %15335 = vmatprep.mubr.msk.bf16.mxu1 %vm17847_vm15, %v22827_v53 }
 0xa54   : > { %v8770_v54 = vrot.slane %v8768_v7, 3  ;;  %v9078_v7 = vrot.slane %v9076_v42, 4  ;;  %v9273_v42 = vrot.slane %v9253_v10, 7 }
 0xa5a   : > { %15336 = vmatmul.mubr.msk.bf16.gmra.mrb[64].mxu1 %vm7960_vm14, %v20981_v36  ;;  %v8771_v36 = vshll.u32 %v8730_v14, 16 }
 0xa5b   : > { %15339 = vmatprep.mubr.msk.bf16.mxu1 %vm17847_vm15, %v22827_v53 }
 0xa5c   : > { %v8773_v31 = vrot.slane %v8771_v36, 4  ;;  %v9081_v36 = vrot.slane %v9079_v25, 5  ;;  %v9274_v25 = vsel %vm7201_vm12, %v9271_v27, %v9273_v42 }
 0xa62   : > { %15340 = vmatmul.mubr.msk.bf16.gmra.mrb[68].mxu1 %vm7960_vm14, %v21014_v46  ;;  %v8774_v46 = vor.u32 %v8773_v31, %v8770_v54  ;;  %v9082_v54 = vor.u32 %v9081_v36, %v9078_v7  ;;  %v17638_v31 = vld [vmem:[%s22862_s6 + $0x48] sm:$0xff]   ;;  %v17642_v36 = vld [vmem:[%s22862_s6 + $0x60] sm:$0xff]  }
 0xa63   : > { %15343 = vmatprep.mubr.msk.bf16.mxu1 %vm17847_vm15, %v22827_v53 }
 0xa6a   : > { %15344 = vmatmul.mubr.msk.bf16.gmra.mrb[72].mxu1 %vm7960_vm14, %v21040_v4  ;;  %v8775_v4 = vsel %vm6284_vm6, %v21067_v19, %v8774_v46  ;;  %v9147_v19 = vsel %vm2563_vm8, %v17637_v9, 0  ;;  %v17639_v46 = vld [vmem:[%s22862_s6 + $0x50] ss:$0 sps:$4 sm:$0xff]  }
 0xa6b   : > { %15347 = vmatprep.mubr.msk.bf16.mxu1 %vm17847_vm15, %v22827_v53  ;;  %v9306_v14 = vsel %vm2563_vm8, %v17639_v46, 0 }
 0xa72   : > { %15348 = vmatmul.mubr.msk.bf16.gmra.mrb[76].mxu1 %vm7960_vm14, %v21075_v55  ;;  %v8921_v55 = vsel %vm2563_vm8, %v8919_v18, %v8920_v35  ;;  %v9252_v18 = vld [vmem:[#allocation4] sm:$0x80] }
 0xa73   : > { %15351 = vmatprep.mubr.msk.bf16.mxu1 %vm17847_vm15, %v22827_v53  ;;  %v9260_v9 = vrot.slane %v9252_v18, 7 }
 0xa7a   : > { %15352 = vmatmul.mubr.msk.bf16.gmra.mrb[80].mxu1 %vm7960_vm14, %v8775_v4  ;;  %v9086_v4 = vsel %vm6875_vm9, %v9082_v54, %v20966_v40  ;;  %v9070_v40 = vld [vmem:[#allocation4 + $0x70] sm:$0x1f]  ;;  %v17643_v54 = vld [vmem:[%s22862_s6 + $0x68] ss:$0 sps:$4 sm:$0xff]  }
 0xa7b   : > { %15359 = vmatprep.mubr.msk.bf16.mxu1 %vm17847_vm15, %v22827_v53  ;;  %v9610_v46 = vsel %vm2563_vm8, %v17643_v54, 0 }
 0xa82   : > { %15360 = vmatmul.mubr.msk.bf16.vlgmr.msra.gmra.mrb[56].mxu1 %vm7960_vm14, %v8921_v55  ;;  %v17640_v55 = vld [vmem:[%s22862_s6 + $0x54] sm:$0xff]  }
 0xa83   : > { %15388 = vmatpush3.bf16.msra.mxu1 %v17636_v12  ;;  %15363 = vmatprep.mubr.msk.bf16.mxu1 %vm17847_vm15, %v22827_v53  ;;  %v9261_v12 = vrot.slane %v20876_v28, 7 }
 0xa84   : > { %15389 = vmatprep.subr.bf16.mxu1 %v22827_v53 }
 0xa87   : > { %15390 = vmatpush3.bf16.msra.mxu1 %v9147_v19  ;;  %v17641_v19 = vld [vmem:[%s22862_s6 + $0x5c] ss:$0 sps:$4 sm:$0xff]   ;;  %s14490_s6 = sld [smem:[#allocation5 + $0x6]] }
 0xa88   : > { %15419 = vmatprep.subr.bf16.mxu1 %v22827_v53 }
 0xa8a   : > { %15364 = vmatmul.mubr.msk.bf16.gmra.mrb[60].mxu1 %vm7960_vm14, %v8923_v17  ;;  %v9264_v17 = vsel %vm7201_vm12, %v9261_v12, %v9263_v39 }
 0xa8b   : > { %15367 = vmatprep.mubr.msk.bf16.mxu1 %vm17847_vm15, %v22827_v53 }
 0xa92   : > { %15368 = vmatmul.mubr.msk.bf16.gmra.mrb[64].mxu1 %vm7960_vm14, %v8925_v8  ;;  %v9266_v8 = vsel %vm7201_vm12, %v9263_v39, %v9265_v0  ;;  %v17646_v39 = vld [vmem:[%s22867_s3 + $0x10] ss:$0 sps:$4 sm:$0x33]  }
 0xa93   : > { %15371 = vmatprep.mubr.msk.bf16.mxu1 %vm17847_vm15, %v22827_v53 }
 0xa9a   : > { %15372 = vmatmul.mubr.msk.bf16.gmra.mrb[68].mxu1 %vm7960_vm14, %v8927_v38  ;;  %v9268_v38 = vsel %vm7201_vm12, %v9265_v0, %v9267_v26 }
 0xa9b   : > { %15375 = vmatprep.mubr.msk.bf16.mxu1 %vm17847_vm15, %v22827_v53 }
 0xaa2   : > { %15376 = vmatmul.mubr.msk.bf16.gmra.mrb[72].mxu1 %vm7960_vm14, %v8929_v63  ;;  %v9270_v63 = vsel %vm7201_vm12, %v9267_v26, %v9269_v11 }
 0xaa3   : > { %15379 = vmatprep.mubr.msk.bf16.mxu1 %vm17847_vm15, %v22827_v53 }
 0xaaa   : > { %15380 = vmatmul.mubr.msk.bf16.gmra.mrb[76].mxu1 %vm7960_vm14, %v8931_v1  ;;  %v9272_v1 = vsel %vm7201_vm12, %v9269_v11, %v9271_v27 }
 0xaab   : > { %15383 = vmatprep.mubr.msk.bf16.mxu1 %vm17847_vm15, %v22827_v53 }
 0xab2   : > { %15384 = vmatmul.mubr.msk.bf16.gmra.mrb[80].mxu1 %vm7960_vm14, %v8933_v58  ;;  %v9417_v58 = vshrl.u32 %v9252_v18, 16 }
 0xab3   : > { %15391 = vmatprep.mubr.msk.bf16.mxu1 %vm17847_vm15, %v22827_v53 }
 0xab4   : > { %v9419_v7 = vrot.slane %v9417_v58, 7 }
 0xaba   : > { %15392 = vmatmul.mubr.msk.bf16.vlgmr.msra.gmra.mrb[56].mxu1 %vm7960_vm14, %v9086_v4 }
 0xabb   : > { %15420 = vmatpush3.bf16.msra.mxu1 %v17638_v31  ;;  %15395 = vmatprep.mubr.msk.bf16.mxu1 %vm17847_vm15, %v22827_v53  ;;  %v9422_v31 = vsel %vm7469_vm13, %v9419_v7, %v21043_v62  ;;  %v9411_v62 = vld [vmem:[#allocation4 + $0x70] sm:$0xff] }
 0xabc   : > { %15421 = vmatprep.subr.bf16.mxu1 %v22827_v53 }
 0xabf   : > { %15422 = vmatpush3.bf16.msra.mxu1 %v9306_v14 }
 0xac0   : > { %15451 = vmatprep.subr.bf16.mxu1 %v22827_v53 }
 0xac2   : > { %15396 = vmatmul.mubr.msk.bf16.gmra.mrb[60].mxu1 %vm7960_vm14, %v21006_v60  ;;  %v9108_v60 = vshrl.u32 %v9070_v40, 16 }
 0xac3   : > { %15399 = vmatprep.mubr.msk.bf16.mxu1 %vm17847_vm15, %v22827_v53 }
 0xac4   : > { %v9110_v52 = vrot.slane %v9108_v60, 4 }
 0xaca   : > { %15400 = vmatmul.mubr.msk.bf16.gmra.mrb[64].mxu1 %vm7960_vm14, %v21010_v13  ;;  %v9111_v13 = vshll.u32 %v9070_v40, 16 }
 0xacb   : > { %15403 = vmatprep.mubr.msk.bf16.mxu1 %vm17847_vm15, %v22827_v53 }
 0xacc   : > { %v9113_v35 = vrot.slane %v9111_v13, 5 }
 0xad2   : > { %15404 = vmatmul.mubr.msk.bf16.gmra.mrb[68].mxu1 %vm7960_vm14, %v21031_v56  ;;  %v9114_v56 = vor.u32 %v9113_v35, %v9110_v52 }
 0xad3   : > { %15407 = vmatprep.mubr.msk.bf16.mxu1 %vm17847_vm15, %v22827_v53 }
 0xada   : > { %15408 = vmatmul.mubr.msk.bf16.gmra.mrb[72].mxu1 %vm7960_vm14, %v21062_v48  ;;  %v9115_v48 = vsel %vm6875_vm9, %v21077_v2, %v9114_v56  ;;  %v9477_v2 = vsel %vm2563_vm8, %v17641_v19, 0 }
 0xadb   : > { %15411 = vmatprep.mubr.msk.bf16.mxu1 %vm17847_vm15, %v22827_v53 }
 0xae2   : > { %15412 = vmatmul.mubr.msk.bf16.gmra.mrb[76].mxu1 %vm7960_vm14, %v21085_v23  ;;  %v9262_v23 = vsel %vm7201_vm12, %v9260_v9, %v9261_v12 }
 0xae3   : > { %15415 = vmatprep.mubr.msk.bf16.mxu1 %vm17847_vm15, %v22827_v53 }
 0xaea   : > { %15416 = vmatmul.mubr.msk.bf16.gmra.mrb[80].mxu1 %vm7960_vm14, %v9115_v48 }
 0xaeb   : > { %15423 = vmatprep.mubr.msk.bf16.mxu1 %vm17847_vm15, %v22827_v53 }
 0xaf2   : > { %15424 = vmatmul.mubr.msk.bf16.vlgmr.msra.gmra.mrb[56].mxu1 %vm7960_vm14, %v9262_v23 }
 0xaf3   : > { %15452 = vmatpush3.bf16.msra.mxu1 %v17640_v55  ;;  %15427 = vmatprep.mubr.msk.bf16.mxu1 %vm17847_vm15, %v22827_v53 }
 0xaf4   : > { %15453 = vmatprep.subr.bf16.mxu1 %v22827_v53 }
 0xaf7   : > { %15454 = vmatpush3.bf16.msra.mxu1 %v9477_v2 }
 0xaf8   : > { %15483 = vmatprep.subr.bf16.mxu1 %v22827_v53 }
 0xafa   : > { %15428 = vmatmul.mubr.msk.bf16.gmra.mrb[60].mxu1 %vm7960_vm14, %v9264_v17 }
 0xafb   : > { %15431 = vmatprep.mubr.msk.bf16.mxu1 %vm17847_vm15, %v22827_v53 }
 0xb02   : > { %15432 = vmatmul.mubr.msk.bf16.gmra.mrb[64].mxu1 %vm7960_vm14, %v9266_v8 }
 0xb03   : > { %15435 = vmatprep.mubr.msk.bf16.mxu1 %vm17847_vm15, %v22827_v53 }
 0xb0a   : > { %15436 = vmatmul.mubr.msk.bf16.gmra.mrb[68].mxu1 %vm7960_vm14, %v9268_v38 }
 0xb0b   : > { %15439 = vmatprep.mubr.msk.bf16.mxu1 %vm17847_vm15, %v22827_v53 }
 0xb12   : > { %15440 = vmatmul.mubr.msk.bf16.gmra.mrb[72].mxu1 %vm7960_vm14, %v9270_v63 }
 0xb13   : > { %15443 = vmatprep.mubr.msk.bf16.mxu1 %vm17847_vm15, %v22827_v53 }
 0xb1a   : > { %15444 = vmatmul.mubr.msk.bf16.gmra.mrb[76].mxu1 %vm7960_vm14, %v9272_v1 }
 0xb1b   : > { %15447 = vmatprep.mubr.msk.bf16.mxu1 %vm17847_vm15, %v22827_v53 }
 0xb22   : > { %15448 = vmatmul.mubr.msk.bf16.gmra.mrb[80].mxu1 %vm7960_vm14, %v9274_v25 }
 0xb23   : > { %15455 = vmatprep.mubr.msk.bf16.mxu1 %vm17847_vm15, %v22827_v53 }
 0xb2a   : > { %15456 = vmatmul.mubr.msk.bf16.vlgmr.msra.gmra.mrb[56].mxu1 %vm7960_vm14, %v9422_v31 }
 0xb2b   : > { %15484 = vmatpush3.bf16.msra.mxu1 %v17642_v36  ;;  %15459 = vmatprep.mubr.msk.bf16.mxu1 %vm17847_vm15, %v22827_v53 }
 0xb2c   : > { %15485 = vmatprep.subr.bf16.mxu1 %v22827_v53 }
 0xb2f   : > { %15486 = vmatpush3.bf16.msra.mxu1 %v9610_v46 }
 0xb30   : > { %15821 = vmatprep.subr.bf16.mxu1 %v22827_v53 }
 0xb32   : > { %15460 = vmatmul.mubr.msk.bf16.gmra.mrb[60].mxu1 %vm7960_vm14, %v21093_v16  ;;  %v9439_v16 = vshrl.u32 %v9411_v62, 16 }
 0xb33   : > { %15463 = vmatprep.mubr.msk.bf16.mxu1 %vm17847_vm15, %v22827_v53 }
 0xb34   : > { %v9441_v4 = vrot.slane %v9439_v16, 7 }
 0xb3a   : > { %15464 = vmatmul.mubr.msk.bf16.gmra.mrb[64].mxu1 %vm7960_vm14, %v21098_v49  ;;  %v9442_v49 = vshll.u32 %v9411_v62, 16 }
 0xb3b   : > { %15467 = vmatprep.mubr.msk.bf16.mxu1 %vm17847_vm15, %v22827_v53 }
 0xb42   : > { %15468 = vmatmul.mubr.msk.bf16.gmra.mrb[68].mxu1 %vm7960_vm14, %v21107_v37  ;;  %v9444_v37 = vor.u32 %v9442_v49, %v9441_v4 }
 0xb43   : > { %15471 = vmatprep.mubr.msk.bf16.mxu1 %vm17847_vm15, %v22827_v53 }
 0xb44   : > { %v9445_v14 = vsel %vm7469_vm13, %v9435_v24, %v9444_v37 }
 0xb4a   : > { %15472 = vmatmul.mubr.msk.bf16.gmra.mrb[72].mxu1 %vm7960_vm14, %v21110_v34  ;;  %v17645_v34 = vld [vmem:[%s22867_s3 + $0x8] sm:$0xff]  }
 0xb4b   : > { %15475 = vmatprep.mubr.msk.bf16.mxu1 %vm17847_vm15, %v22827_v53 }
 0xb52   : > { %15476 = vmatmul.mubr.msk.bf16.gmra.mrb[76].mxu1 %vm7960_vm14, %v21114_v51 }
 0xb53   : > { %15479 = vmatprep.mubr.msk.bf16.mxu1 %vm17847_vm15, %v22827_v53 }
 0xb5a   : > { %15480 = vmatmul.mubr.msk.bf16.gmra.mrb[80].mxu1 %vm7960_vm14, %v9445_v14 }
 0xb5b   : > { %15487 = vmatprep.mubr.msk.bf16.mxu1 %vm17847_vm15, %v22827_v53 }
 0xb62   : > { %15488 = vmatmul.mubr.msk.bf16.vlgmr.msra.gmra.mrb[56].mxu1 %vm7960_vm14, %v20876_v28  ;;  %v17644_v28 = vld [vmem:[%s22867_s3] sm:$0xff]  }
 0xb63   : > { %15491 = vmatprep.mubr.msk.bf16.mxu1 %vm17847_vm15, %v22827_v53  ;;  %15516 = vmatpush3.bf16.msra.mxu0 %v17644_v28  ;;  %v21424_v28 = vld [vmem:[%s22869_s11] ss:$0 sm:$0xff]  ;;  %s17851_s11 = smov 36  }
 0xb64   : > { %15517 = vmatprep.subr.bf16.mxu0 %v22827_v53 }
 0xb67   : > { %15518 = vmatpush3.bf16.msra.mxu0 %v17645_v34 }
 0xb68   : > { %15519 = vmatprep.subr.bf16.mxu0 %v22827_v53 }
 0xb6a   : > { %15492 = vmatmul.mubr.msk.bf16.gmra.mrb[60].mxu1 %vm7960_vm14, %v20910_v50  ;;  %v14384_v50 = vld [vmem:[%s22868_s5] ss:$0 sm:$0xff]  ;;  %s22870_s5 = sld [smem:[#allocation33_spill]] }
 0xb6b   : > { %15495 = vmatprep.mubr.msk.bf16.mxu1 %vm17847_vm15, %v22827_v53 }
 0xb72   : > { %15496 = vmatmul.mubr.msk.bf16.gmra.mrb[64].mxu1 %vm7960_vm14, %v20941_v47 }
 0xb73   : > { %15499 = vmatprep.mubr.msk.bf16.mxu1 %vm17847_vm15, %v22827_v53 }
 0xb7a   : > { %15500 = vmatmul.mubr.msk.bf16.gmra.mrb[68].mxu1 %vm7960_vm14, %v20977_v44 }
 0xb7b   : > { %15503 = vmatprep.mubr.msk.bf16.mxu1 %vm17847_vm15, %v22827_v53 }
 0xb82   : > { %15504 = vmatmul.mubr.msk.bf16.gmra.mrb[72].mxu1 %vm7960_vm14, %v21016_v3 }
 0xb83   : > { %15507 = vmatprep.mubr.msk.bf16.mxu1 %vm17847_vm15, %v22827_v53 }
 0xb8a   : > { %15508 = vmatmul.mubr.msk.bf16.gmra.mrb[76].mxu1 %vm7960_vm14, %v21045_v33 }
 0xb8b   : > { %15511 = vmatprep.mubr.msk.bf16.mxu1 %vm17847_vm15, %v22827_v53 }
 0xb92   : > { %15512 = vmatmul.mubr.msk.bf16.gmra.mrb[80].mxu1 %vm7960_vm14, %v9411_v62  ;;  %vm10001_vm14 = vcmask 1041408  }
 0xb93   : > { %15827 = vmatprep.mubr.msk.bf16.mxu1 %vm17847_vm15, %v22827_v53  ;;  %v10003_v26 = vsel %vm10001_vm14, %v17646_v39, 0 }
 0xb94   : > { %15520 = vmatpush3.bf16.msra.mxu0 %v10003_v26 }
 0xb95   : > { %15549 = vmatprep.subr.bf16.mxu0 %v22827_v53 }
 0xc35   : > { %v9646_v47 = vpop.f32.mrb[56].mxu1 }
 0xc36   : > { %v16219_v44 = vadd.f32 %v14384_v50, %v9646_v47  ;;  %v15489_v3 = vpop.f32.mrb[57].mxu1  ;;  %v21427_v47 = vld [vmem:[%s22870_s5] ss:$0 sm:$0xff]  ;;  %s22873_s5 = sld [smem:[#allocation36_spill]] }
 0xc37   : > { %v9649_v41 = vpop.f32.mrb[58].mxu1 }
 0xc38   : > { %v16220_v24 = vadd.f32 %v14384_v50, %v9649_v41  ;;  %9729 = vrot.lane.b32.xlu1 %v16219_v44, %s17850_s1  ;;  %v15490_v33 = vpop.f32.mrb[59].mxu1  ;;  %v21431_v41 = vstv %s14490_s6  ;;  %s22871_s6 = sld [smem:[#allocation38_spill]] }
 0xc3a   : > { %9731 = vrot.lane.b32.xlu0 %v16220_v24, %s17850_s1 }
 0xc3d   : > { %v9654_v51 = vpop.f32.mrb[60].mxu1 }
 0xc3e   : > { %v16221_v40 = vadd.f32 %v14384_v50, %v9654_v51  ;;  %v15493_v60 = vpop.f32.mrb[61].mxu1 }
 0xc3f   : > { %v9657_v13 = vpop.f32.mrb[62].mxu1 }
 0xc40   : > { %v16222_v52 = vadd.f32 %v14384_v50, %v9657_v13  ;;  %9733 = vrot.lane.b32.xlu1 %v16221_v40, %s17850_s1  ;;  %v15494_v35 = vpop.f32.mrb[63].mxu1 }
 0xc42   : > { %9735 = vrot.lane.b32.xlu0 %v16222_v52, %s17850_s1 }
 0xc45   : > { %v9662_v56 = vpop.f32.mrb[64].mxu1 }
 0xc46   : > { %v16223_v48 = vadd.f32 %v14384_v50, %v9662_v56  ;;  %v15497_v18 = vpop.f32.mrb[65].mxu1 }
 0xc47   : > { %v9665_v12 = vpop.f32.mrb[66].mxu1 }
 0xc48   : > { %v16224_v9 = vadd.f32 %v14384_v50, %v9665_v12  ;;  %9737 = vrot.lane.b32.xlu1 %v16223_v48, %s17850_s1  ;;  %v15498_v55 = vpop.f32.mrb[67].mxu1 }
 0xc4a   : > { %9739 = vrot.lane.b32.xlu0 %v16224_v9, %s17850_s1 }
 0xc4d   : > { %v9670_v19 = vpop.f32.mrb[68].mxu1 }
 0xc4e   : > { %v16225_v23 = vadd.f32 %v14384_v50, %v9670_v19  ;;  %v15501_v2 = vpop.f32.mrb[69].mxu1 }
 0xc4f   : > { %v9673_v17 = vpop.f32.mrb[70].mxu1 }
 0xc50   : > { %v16226_v0 = vadd.f32 %v14384_v50, %v9673_v17  ;;  %9741 = vrot.lane.b32.xlu1 %v16225_v23, %s17850_s1  ;;  %v15502_v8 = vpop.f32.mrb[71].mxu1 }
 0xc52   : > { %9743 = vrot.lane.b32.xlu0 %v16226_v0, %s17850_s1 }
 0xc55   : > { %v9678_v38 = vpop.f32.mrb[72].mxu1 }
 0xc56   : > { %v16227_v11 = vadd.f32 %v14384_v50, %v9678_v38  ;;  %v15505_v63 = vpop.f32.mrb[73].mxu1 }
 0xc57   : > { %v9681_v27 = vpop.f32.mrb[74].mxu1 }
 0xc58   : > { %v16228_v1 = vadd.f32 %v14384_v50, %v9681_v27  ;;  %9745 = vrot.lane.b32.xlu1 %v16227_v11, %s17850_s1  ;;  %v15506_v10 = vpop.f32.mrb[75].mxu1 }
 0xc5a   : > { %9747 = vrot.lane.b32.xlu0 %v16228_v1, %s17850_s1 }
 0xc5d   : > { %v9686_v42 = vpop.f32.mrb[76].mxu1 }
 0xc5e   : > { %v16229_v25 = vadd.f32 %v14384_v50, %v9686_v42  ;;  %v15509_v58 = vpop.f32.mrb[77].mxu1 }
 0xc5f   : > { %v9689_v7 = vpop.f32.mrb[78].mxu1 }
 0xc60   : > { %v16230_v36 = vadd.f32 %v14384_v50, %v9689_v7  ;;  %9749 = vrot.lane.b32.xlu1 %v16229_v25, %s17850_s1  ;;  %v15510_v54 = vpop.f32.mrb[79].mxu1 }
 0xc62   : > { %9751 = vrot.lane.b32.xlu0 %v16230_v36, %s17850_s1 }
 0xc65   : > { %v9694_v31 = vpop.f32.mrb[80].mxu1 }
 0xc66   : > { %v16231_v46 = vadd.f32 %v14384_v50, %v9694_v31  ;;  %v15513_v62 = vpop.f32.mrb[81].mxu1 }
 0xc67   : > { %v9697_v16 = vpop.f32.mrb[82].mxu1  ;;  %v17647_v62 = vld [vmem:[%s22867_s3 + $0x14] sm:$0xff]  }
 0xc68   : > { %v16232_v4 = vadd.f32 %v14384_v50, %v9697_v16  ;;  %9753 = vrot.lane.b32.xlu1 %v16231_v46, %s17850_s1  ;;  %v15514_v49 = vpop.f32.mrb[83].mxu1 }
 0xc6a   : > { %9755 = vrot.lane.b32.xlu0 %v16232_v4, %s17850_s1  ;;  %s22872_s1 = sld [smem:[#allocation35_spill]] }
 0xcaa   : > { %v9730_v37 = vpop.permute.xlu1 %9729 }
 0xcab   : > { %9772 = vst.msk [vmem:[#allocation3] sm:$0xff] %vm9771_vm4, %v9730_v37 }
 0xcac   : > { %v9732_v14 = vpop.permute.xlu0 %9731 }
 0xcad   : > { %9773 = vst.msk [vmem:[#allocation3 + $0x8] sm:$0xff] %vm9771_vm4, %v9732_v14 }
 0xcb2   : > { %v9787_v44 = vld [vmem:[#allocation3] sm:$0xff]  ;;  %v9734_v3 = vpop.permute.xlu1 %9733 }
 0xcb3   : > { %v9808_v50 = vmul.f32 %v21424_v28, %v9787_v44  ;;  %9774 = vst.msk [vmem:[#allocation3 + $0x10] sm:$0xff] %vm9771_vm4, %v9734_v3 }
 0xcb4   : > { %v9788_v24 = vld [vmem:[#allocation3 + $0x8] sm:$0xff]  ;;  %v9736_v33 = vpop.permute.xlu0 %9735 }
 0xcb5   : > { %v9829_v34 = vadd.f32 %v21427_v47, %v9808_v50  ;;  %v9809_v51 = vmul.f32 %v21424_v28, %v9788_v24  ;;  %9775 = vst.msk [vmem:[#allocation3 + $0x18] sm:$0xff] %vm9771_vm4, %v9736_v33  ;;  %v17648_v33 = vld [vmem:[%s22867_s3 + $0x1c] sm:$0xff]  }
 0xcb7   : > { %vm9843_vm5 = vcmp.ge.f32.partialorder %v9829_v34, 0.0  ;;  %v9858_v40 = vmul.f32 %v21431_v41, %v9829_v34  ;;  %v9830_v60 = vadd.f32 %v21427_v47, %v9809_v51 }
 0xcb9   : > { %v9872_v13 = vsel %vm9843_vm5, %v9829_v34, %v9858_v40  ;;  %vm9844_vm7 = vcmp.ge.f32.partialorder %v9830_v60, 0.0  ;;  %v9859_v52 = vmul.f32 %v21431_v41, %v9830_v60 }
 0xcba   : > { %v9789_v35 = vld [vmem:[#allocation3 + $0x10] sm:$0xff]  ;;  %v9738_v56 = vpop.permute.xlu1 %9737  ;;  %v9886_v12 = vmul.f32 %v9872_v13, %v20815_v15 }
 0xcbb   : > { %v9873_v48 = vsel %vm9844_vm7, %v9830_v60, %v9859_v52  ;;  %v9810_v18 = vmul.f32 %v21424_v28, %v9789_v35  ;;  %9776 = vst.msk [vmem:[#allocation3 + $0x20] sm:$0xff] %vm9771_vm4, %v9738_v56  ;;  %vm9937_vm7 = vcmask 293888   ;;  %v17649_v35 = vld [vmem:[%s22867_s3 + $0x24] ss:$0 sps:$4 sm:$0x33]  }
 0xcbc   : > { %v9887_v9 = vmul.f32 %v9873_v48, %v20813_v57  ;;  %v9790_v55 = vld [vmem:[#allocation3 + $0x18] sm:$0xff]  ;;  %v9740_v19 = vpop.permute.xlu0 %9739 }
 0xcbd   : > { %v9831_v23 = vadd.f32 %v21427_v47, %v9810_v18  ;;  %v9811_v2 = vmul.f32 %v21424_v28, %v9790_v55  ;;  %9777 = vst.msk [vmem:[#allocation3 + $0x28] sm:$0xff] %vm9771_vm4, %v9740_v19  ;;  %v10219_v19 = vsel %vm10001_vm14, %v17649_v35, 0 }
 0xcbe   : > { %v9900_v39 = vpack.c.bf16 %v9887_v9, %v9886_v12 }
 0xcbf   : > { %vm9845_vm0 = vcmp.ge.f32.partialorder %v9831_v23, 0.0  ;;  %v9860_v17 = vmul.f32 %v21431_v41, %v9831_v23  ;;  %v9832_v0 = vadd.f32 %v21427_v47, %v9811_v2 }
 0xcc0   : > { %v9914_v8 = vrot.slane %v9900_v39, 4 }
 0xcc1   : > { %v9874_v26 = vsel %vm9845_vm0, %v9831_v23, %v9860_v17  ;;  %vm9846_vm3 = vcmp.ge.f32.partialorder %v9832_v0, 0.0  ;;  %v9861_v38 = vmul.f32 %v21431_v41, %v9832_v0 }
 0xcc2   : > { %v9791_v11 = vld [vmem:[#allocation3 + $0x20] sm:$0xff]  ;;  %v9742_v63 = vpop.permute.xlu1 %9741  ;;  %9936 = vst.msk [vmem:[#allocation4] sm:$0xf0] %vm9935_vm2, %v9914_v8  ;;  %v9888_v10 = vmul.f32 %v9874_v26, %v20829_v43 }
 0xcc3   : > { %v9875_v27 = vsel %vm9846_vm3, %v9832_v0, %v9861_v38  ;;  %v9812_v1 = vmul.f32 %v21424_v28, %v9791_v11  ;;  %9778 = vst.msk [vmem:[#allocation3 + $0x30] sm:$0xff] %vm9771_vm4, %v9742_v63 }
 0xcc4   : > { %v9889_v42 = vmul.f32 %v9875_v27, %v20831_v20  ;;  %v9792_v25 = vld [vmem:[#allocation3 + $0x28] sm:$0xff]  ;;  %v9744_v58 = vpop.permute.xlu0 %9743 }
 0xcc5   : > { %v9833_v7 = vadd.f32 %v21427_v47, %v9812_v1  ;;  %v9813_v36 = vmul.f32 %v21424_v28, %v9792_v25  ;;  %9779 = vst.msk [vmem:[#allocation3 + $0x38] sm:$0xff] %vm9771_vm4, %v9744_v58 }
 0xcc6   : > { %v9901_v54 = vpack.c.bf16 %v9889_v42, %v9888_v10 }
 0xcc7   : > { %vm9847_vm5 = vcmp.ge.f32.partialorder %v9833_v7, 0.0  ;;  %v9862_v31 = vmul.f32 %v21431_v41, %v9833_v7  ;;  %v9834_v46 = vadd.f32 %v21427_v47, %v9813_v36 }
 0xcc8   : > { %v9915_v16 = vrot.slane %v9901_v54, 4 }
 0xcc9   : > { %v9876_v4 = vsel %vm9847_vm5, %v9833_v7, %v9862_v31  ;;  %vm9848_vm0 = vcmp.ge.f32.partialorder %v9834_v46, 0.0  ;;  %v9863_v49 = vmul.f32 %v21431_v41, %v9834_v46  ;;  %v21460_v37 = vld [vmem:[#allocation4] sm:$0xff] }
 0xcca   : > { %v9793_v14 = vld [vmem:[#allocation3 + $0x30] sm:$0xff]  ;;  %15522 = vmatmul.mubr.msk.bf16.vlgmr.msra.gmra.mrb[168].mxu0 %vm9937_vm7, %v21460_v37  ;;  %v9746_v44 = vpop.permute.xlu1 %9745  ;;  %v9916_v3 = vsel %vm2563_vm8, %v9914_v8, %v9915_v16  ;;  %v9890_v34 = vmul.f32 %v9876_v4, %v20849_v22 }
 0xccb   : > { %v9877_v50 = vsel %vm9848_vm0, %v9834_v46, %v9863_v49  ;;  %v9814_v24 = vmul.f32 %v21424_v28, %v9793_v14  ;;  %9780 = vst.msk [vmem:[#allocation3 + $0x40] sm:$0xff] %vm9771_vm4, %v9746_v44  ;;  %15550 = vmatpush3.bf16.msra.mxu0 %v17647_v62  ;;  %15525 = vmatprep.mubr.msk.bf16.mxu0 %vm17847_vm15, %v22827_v53 }
 0xccc   : > { %9938 = vst.msk [vmem:[#allocation4 + $0x10] sm:$0xff] %vm9937_vm7, %v9916_v3  ;;  %v9891_v51 = vmul.f32 %v9877_v50, %v20854_v59  ;;  %v9794_v40 = vld [vmem:[#allocation3 + $0x38] sm:$0xff]  ;;  %v9748_v60 = vpop.permute.xlu0 %9747  ;;  %15551 = vmatprep.subr.bf16.mxu0 %v22827_v53 }
 0xccd   : > { %v9835_v13 = vadd.f32 %v21427_v47, %v9814_v24  ;;  %v9815_v52 = vmul.f32 %v21424_v28, %v9794_v40  ;;  %9781 = vst.msk [vmem:[#allocation3 + $0x48] sm:$0xff] %vm9771_vm4, %v9748_v60 }
 0xcce   : > { %v9902_v56 = vpack.c.bf16 %v9891_v51, %v9890_v34 }
 0xccf   : > { %vm9849_vm2 = vcmp.ge.f32.partialorder %v9835_v13, 0.0  ;;  %v9864_v48 = vmul.f32 %v21431_v41, %v9835_v13  ;;  %v9836_v18 = vadd.f32 %v21427_v47, %v9815_v52  ;;  %15552 = vmatpush3.bf16.msra.mxu0 %v17648_v33 }
 0xcd0   : > { %v9917_v12 = vrot.slane %v9902_v56, 4  ;;  %15553 = vmatprep.subr.bf16.mxu0 %v22827_v53 }
 0xcd1   : > { %v9878_v9 = vsel %vm9849_vm2, %v9835_v13, %v9864_v48  ;;  %vm9850_vm3 = vcmp.ge.f32.partialorder %v9836_v18, 0.0  ;;  %v9865_v55 = vmul.f32 %v21431_v41, %v9836_v18 }
 0xcd2   : > { %v9795_v23 = vld [vmem:[#allocation3 + $0x40] sm:$0xff]  ;;  %v9750_v2 = vpop.permute.xlu1 %9749  ;;  %v9918_v17 = vsel %vm2563_vm8, %v9915_v16, %v9917_v12  ;;  %v9892_v11 = vmul.f32 %v9878_v9, %v20874_v6 }
 0xcd3   : > { %v21483_v39 = vld [vmem:[#allocation4 + $0x10] sm:$0xff]  ;;  %v9879_v0 = vsel %vm9850_vm3, %v9836_v18, %v9865_v55  ;;  %v9816_v8 = vmul.f32 %v21424_v28, %v9795_v23  ;;  %9782 = vst.msk [vmem:[#allocation3 + $0x50] sm:$0xff] %vm9771_vm4, %v9750_v2  ;;  %15554 = vmatpush3.bf16.msra.mxu0 %v10219_v19 }
 0xcd4   : > { %15526 = vmatmul.mubr.msk.bf16.gmra.mrb[172].mxu0 %vm9937_vm7, %v21483_v39  ;;  %9939 = vst.msk [vmem:[#allocation4 + $0x20] sm:$0xff] %vm9937_vm7, %v9918_v17  ;;  %v21492_v26 = vshll.u32 %v21483_v39, 16  ;;  %v21495_v38 = vshrl.u32 %v21483_v39, 16  ;;  %v9893_v63 = vmul.f32 %v9879_v0, %v20879_v61  ;;  %v9796_v27 = vld [vmem:[#allocation3 + $0x48] sm:$0xff]  ;;  %v9752_v1 = vpop.permute.xlu0 %9751  ;;  %15583 = vmatprep.subr.bf16.mxu0 %v22827_v53 }
 0xcd5   : > { %15529 = vmatprep.mubr.msk.bf16.mxu0 %vm17847_vm15, %v22827_v53  ;;  %v9837_v10 = vadd.f32 %v21427_v47, %v9816_v8  ;;  %v9817_v42 = vmul.f32 %v21424_v28, %v9796_v27  ;;  %9783 = vst.msk [vmem:[#allocation3 + $0x58] sm:$0xff] %vm9771_vm4, %v9752_v1 }
 0xcd6   : > { %v10512_v25 = vrot.slane %v21495_v38, 3  ;;  %v9903_v58 = vpack.c.bf16 %v9893_v63, %v9892_v11  ;;  %v10513_v7 = vrot.slane %v21492_v26, 4  ;;  %v10868_v62 = vrot.slane %v21495_v38, 4 }
 0xcd7   : > { %vm9851_vm5 = vcmp.ge.f32.partialorder %v9837_v10, 0.0  ;;  %v9866_v36 = vmul.f32 %v21431_v41, %v9837_v10  ;;  %v9838_v54 = vadd.f32 %v21427_v47, %v9817_v42  ;;  %v10869_v49 = vrot.slane %v21492_v26, 5 }
 0xcd8   : > { %v9919_v31 = vrot.slane %v9903_v58, 4  ;;  %v21509_v46 = vor.u32 %v10513_v7, %v10512_v25 }
 0xcd9   : > { %v9880_v16 = vsel %vm9851_vm5, %v9837_v10, %v9866_v36  ;;  %vm9852_vm0 = vcmp.ge.f32.partialorder %v9838_v54, 0.0  ;;  %v9867_v4 = vmul.f32 %v21431_v41, %v9838_v54  ;;  %v21532_v35 = vor.u32 %v10869_v49, %v10868_v62 }
 0xcda   : > { %v9797_v14 = vld [vmem:[#allocation3 + $0x50] sm:$0xff]  ;;  %v9754_v44 = vpop.permute.xlu1 %9753  ;;  %v9920_v50 = vsel %vm2563_vm8, %v9917_v12, %v9919_v31  ;;  %v9894_v40 = vmul.f32 %v9880_v16, %v20908_v30 }
 0xcdb   : > { %v21514_v3 = vld [vmem:[#allocation4 + $0x20] sm:$0xff]  ;;  %v9881_v24 = vsel %vm9852_vm0, %v9838_v54, %v9867_v4  ;;  %v9818_v33 = vmul.f32 %v21424_v28, %v9797_v14  ;;  %9784 = vst.msk [vmem:[#allocation3 + $0x60] sm:$0xff] %vm9771_vm4, %v9754_v44  ;;  %vm9944_vm0 = vcmask 289792  }
 0xcdc   : > { %15530 = vmatmul.mubr.msk.bf16.gmra.mrb[176].mxu0 %vm9937_vm7, %v21514_v3  ;;  %9940 = vst.msk [vmem:[#allocation4 + $0x30] sm:$0xff] %vm9937_vm7, %v9920_v50  ;;  %v21523_v34 = vshll.u32 %v21514_v3, 16  ;;  %v21526_v51 = vshrl.u32 %v21514_v3, 16  ;;  %v9895_v60 = vmul.f32 %v9881_v24, %v20913_v29  ;;  %v9798_v13 = vld [vmem:[#allocation3 + $0x58] sm:$0xff]  ;;  %v9756_v52 = vpop.permute.xlu0 %9755 }
 0xcdd   : > { %15533 = vmatprep.mubr.msk.bf16.mxu0 %vm17847_vm15, %v22827_v53  ;;  %v9839_v56 = vadd.f32 %v21427_v47, %v9818_v33  ;;  %v9819_v48 = vmul.f32 %v21424_v28, %v9798_v13  ;;  %9785 = vst.msk [vmem:[#allocation3 + $0x68] sm:$0xff] %vm9771_vm4, %v9756_v52 }
 0xcde   : > { %v10516_v18 = vrot.slane %v21526_v51, 3  ;;  %v9904_v12 = vpack.c.bf16 %v9895_v60, %v9894_v40  ;;  %v10517_v9 = vrot.slane %v21523_v34, 4  ;;  %v10872_v8 = vrot.slane %v21526_v51, 4 }
 0xcdf   : > { %vm9853_vm2 = vcmp.ge.f32.partialorder %v9839_v56, 0.0  ;;  %v9868_v55 = vmul.f32 %v21431_v41, %v9839_v56  ;;  %v9840_v19 = vadd.f32 %v21427_v47, %v9819_v48  ;;  %v10873_v10 = vrot.slane %v21523_v34, 5 }
 0xce0   : > { %v9921_v23 = vrot.slane %v9904_v12, 4  ;;  %v10518_v2 = vor.u32 %v10517_v9, %v10516_v18 }
 0xce1   : > { %v9882_v17 = vsel %vm9853_vm2, %v9839_v56, %v9868_v55  ;;  %vm9854_vm3 = vcmp.ge.f32.partialorder %v9840_v19, 0.0  ;;  %v9869_v0 = vmul.f32 %v21431_v41, %v9840_v19  ;;  %v10874_v62 = vor.u32 %v10873_v10, %v10872_v8 }
 0xce2   : > { %v9799_v11 = vld [vmem:[#allocation3 + $0x60] sm:$0xff]  ;;  %v9922_v27 = vsel %vm2563_vm8, %v9919_v31, %v9921_v23  ;;  %v21548_v1 = vsel %vm6284_vm6, %v21509_v46, %v10518_v2  ;;  %v9896_v36 = vmul.f32 %v9882_v17, %v20948_v21 }
 0xce3   : > { %v21543_v63 = vld [vmem:[#allocation4 + $0x30] sm:$0xff]  ;;  %v9883_v42 = vsel %vm9854_vm3, %v9840_v19, %v9869_v0  ;;  %v9820_v25 = vmul.f32 %v21424_v28, %v9799_v11  ;;  %9941 = vst.msk [vmem:[#allocation4 + $0x40] sm:$0xff] %vm9937_vm7, %v9922_v27  ;;  %v21574_v52 = vsel %vm6875_vm9, %v21532_v35, %v10874_v62 }
 0xce4   : > { %15534 = vmatmul.mubr.msk.bf16.gmra.mrb[180].mxu0 %vm9937_vm7, %v21543_v63  ;;  %v21556_v58 = vshll.u32 %v21543_v63, 16  ;;  %v21559_v7 = vshrl.u32 %v21543_v63, 16  ;;  %v9897_v54 = vmul.f32 %v9883_v42, %v20950_v45  ;;  %v9800_v31 = vld [vmem:[#allocation3 + $0x68] sm:$0xff] }
 0xce5   : > { %15537 = vmatprep.mubr.msk.bf16.mxu0 %vm17847_vm15, %v22827_v53  ;;  %v9841_v16 = vadd.f32 %v21427_v47, %v9820_v25  ;;  %v9821_v4 = vmul.f32 %v21424_v28, %v9800_v31 }
 0xce6   : > { %v9905_v49 = vpack.c.bf16 %v9897_v54, %v9896_v36  ;;  %v10520_v14 = vrot.slane %v21559_v7, 3  ;;  %v10521_v44 = vrot.slane %v21556_v58, 4  ;;  %v10876_v18 = vrot.slane %v21559_v7, 4 }
 0xce7   : > { %vm9855_vm4 = vcmp.ge.f32.partialorder %v9841_v16, 0.0  ;;  %v9870_v50 = vmul.f32 %v21431_v41, %v9841_v16  ;;  %v9842_v24 = vadd.f32 %v21427_v47, %v9821_v4  ;;  %v10877_v19 = vrot.slane %v21556_v58, 5 }
 0xce8   : > { %v9923_v33 = vrot.slane %v9905_v49, 4  ;;  %v10522_v40 = vor.u32 %v10521_v44, %v10520_v14  ;;  %v11224_v44 = vrot.slane %v21526_v51, 7 }
 0xce9   : > { %v9884_v60 = vsel %vm9855_vm4, %v9841_v16, %v9870_v50  ;;  %vm9856_vm5 = vcmp.ge.f32.partialorder %v9842_v24, 0.0  ;;  %v9871_v13 = vmul.f32 %v21431_v41, %v9842_v24  ;;  %v10878_v0 = vor.u32 %v10877_v19, %v10876_v18 }
 0xcea   : > { %v21576_v28 = vld [vmem:[#allocation4 + $0x40] sm:$0xff]  ;;  %v9924_v56 = vsel %vm2563_vm8, %v9921_v23, %v9923_v33  ;;  %v21580_v48 = vsel %vm6284_vm6, %v10518_v2, %v10522_v40  ;;  %v9898_v9 = vmul.f32 %v9884_v60, %v20984_v5  ;;  %v11221_v16 = vrot.slane %v21495_v38, 7 }
 0xceb   : > { %v9885_v47 = vsel %vm9856_vm5, %v9842_v24, %v9871_v13  ;;  %9942 = vst.msk [vmem:[#allocation4 + $0x50] sm:$0xff] %vm9937_vm7, %v9924_v56  ;;  %v21587_v41 = vshll.u32 %v21576_v28, 16  ;;  %v21590_v12 = vshrl.u32 %v21576_v28, 16  ;;  %v21602_v42 = vsel %vm6875_vm9, %v10874_v62, %v10878_v0 }
 0xcec   : > { %15538 = vmatmul.mubr.msk.bf16.gmra.mrb[184].mxu0 %vm9937_vm7, %v21576_v28  ;;  %v9899_v55 = vmul.f32 %v9885_v47, %v20986_v32  ;;  %v21626_v14 = vor.u32 %v11221_v16, %v21492_v26  ;;  %v10125_v13 = vshll.u32 %v21460_v37, 16  ;;  %v11225_v18 = vor.u32 %v11224_v44, %v21523_v34 }
 0xced   : > { %15541 = vmatprep.mubr.msk.bf16.mxu0 %vm17847_vm15, %v22827_v53  ;;  %v10524_v23 = vrot.slane %v21590_v12, 3  ;;  %v10525_v2 = vrot.slane %v21587_v41, 4  ;;  %v10880_v8 = vrot.slane %v21590_v12, 4  ;;  %v10881_v27 = vrot.slane %v21587_v41, 5 }
 0xcee   : > { %v9906_v17 = vpack.c.bf16 %v9899_v55, %v9898_v9  ;;  %vm11750_vm4 = vcmask 392196  }
 0xcef   : > { %v10526_v11 = vor.u32 %v10525_v2, %v10524_v23  ;;  %v10882_v36 = vor.u32 %v10881_v27, %v10880_v8  ;;  %v10127_v23 = vrot.slane %v10125_v13, 1 }
 0xcf0   : > { %v9925_v10 = vrot.slane %v9906_v17, 4  ;;  %v10123_v17 = vshrl.u32 %v21460_v37, 16  ;;  %v11230_v37 = vrot.slane %v21590_v12, 7 }
 0xcf1   : > { %v21605_v25 = vsel %vm6284_vm6, %v10522_v40, %v10526_v11  ;;  %v21623_v49 = vsel %vm6875_vm9, %v10878_v0, %v10882_v36  ;;  %v10132_v0 = vrot.slane %v21492_v26, 1  ;;  %v21665_v26 = vsel %vm7469_vm13, %v11221_v16, %v11225_v18 }
 0xcf2   : > { %v21607_v54 = vld [vmem:[#allocation4 + $0x50] sm:$0xff]  ;;  %v9926_v31 = vsel %vm2563_vm8, %v9923_v33, %v9925_v10  ;;  %9945 = vst.msk [vmem:[#allocation4 + $0x70] sm:$0xf] %vm9944_vm0, %v9925_v10  ;;  %v11227_v10 = vrot.slane %v21559_v7, 7  ;;  %v11231_v18 = vor.u32 %v11230_v37, %v21587_v41 }
 0xcf3   : > { %9943 = vst.msk [vmem:[#allocation4 + $0x60] sm:$0xff] %vm9937_vm7, %v9926_v31  ;;  %v21615_v4 = vshll.u32 %v21607_v54, 16  ;;  %v21618_v62 = vshrl.u32 %v21607_v54, 16  ;;  %v10128_v31 = vor.u32 %v10127_v23, %v10123_v17 }
 0xcf4   : > { %15542 = vmatmul.mubr.msk.bf16.gmra.mrb[188].mxu0 %vm9937_vm7, %v21607_v54  ;;  %v11228_v23 = vor.u32 %v11227_v10, %v21556_v58 }
 0xcf5   : > { %15545 = vmatprep.mubr.msk.bf16.mxu0 %vm17847_vm15, %v22827_v53  ;;  %v10528_v50 = vrot.slane %v21618_v62, 3  ;;  %v10529_v24 = vrot.slane %v21615_v4, 4  ;;  %v10884_v33 = vrot.slane %v21618_v62, 4  ;;  %v10885_v40 = vrot.slane %v21615_v4, 5 }
 0xcf7   : > { %v10530_v60 = vor.u32 %v10529_v24, %v10528_v50  ;;  %v10886_v56 = vor.u32 %v10885_v40, %v10884_v33  ;;  %v17650_v50 = vld [vmem:[%s22867_s3 + $0x28] sm:$0xff]  }
 0xcf9   : > { %v21636_v47 = vsel %vm6284_vm6, %v10526_v11, %v10530_v60  ;;  %v21655_v11 = vsel %vm6875_vm9, %v10882_v36, %v10886_v56  ;;  %v10133_v36 = vsel %vm5640_vm10, %v10128_v31, %v10132_v0  ;;  %v10140_v31 = vrot.slane %v21523_v34, 1 }
 0xcfa   : > { %v21638_v9 = vld [vmem:[#allocation4 + $0x60] sm:$0xff] }
 0xcfb   : > { %v21643_v55 = vshll.u32 %v21638_v9, 16  ;;  %v21646_v19 = vshrl.u32 %v21638_v9, 16 }
 0xcfc   : > { %15546 = vmatmul.mubr.msk.bf16.gmra.mrb[192].mxu0 %vm9937_vm7, %v21638_v9 }
 0xcfd   : > { %15555 = vmatprep.mubr.msk.bf16.mxu0 %vm17847_vm15, %v22827_v53  ;;  %v10532_v2 = vrot.slane %v21646_v19, 3  ;;  %v10533_v8 = vrot.slane %v21643_v55, 4  ;;  %v10888_v27 = vrot.slane %v21646_v19, 4  ;;  %v10889_v33 = vrot.slane %v21643_v55, 5 }
 0xcfe   : > { %v11236_v17 = vrot.slane %v21646_v19, 7 }
 0xcff   : > { %v21660_v24 = vor.u32 %v10533_v8, %v10532_v2  ;;  %v21672_v13 = vor.u32 %v10889_v33, %v10888_v27  ;;  %v17651_v2 = vld [vmem:[%s22867_s3 + $0x30] sm:$0xff]   ;;  %v17652_v8 = vld [vmem:[%s22867_s3 + $0x38] ss:$0 sps:$4 sm:$0x33]   ;;  %v21689_v27 = vsel %vm7469_vm13, %v11224_v44, %v11228_v23  ;;  %v10156_v23 = vrot.slane %v21587_v41, 1 }
 0xd00   : > { %v11237_v33 = vor.u32 %v11236_v17, %v21643_v55  ;;  %v10391_v34 = vsel %vm10001_vm14, %v17652_v8, 0  ;;  %v10115_v8 = vld [vmem:[#allocation4 + $0x70] sm:$0x1] }
 0xd01   : > { %v21670_v40 = vsel %vm6284_vm6, %v10530_v60, %v21660_v24  ;;  %v21681_v16 = vsel %vm6875_vm9, %v10886_v56, %v21672_v13  ;;  %v11233_v60 = vrot.slane %v21618_v62, 7 }
 0xd03   : > { %v11234_v56 = vor.u32 %v11233_v60, %v21615_v4  ;;  %v21704_v44 = vsel %vm7469_vm13, %v11233_v60, %v11237_v33 }
 0xd04   : > { %15556 = vmatmul.mubr.msk.bf16.vlgmr.msra.gmra.mrb[168].mxu0 %vm9937_vm7, %v10133_v36  ;;  %v10136_v36 = vor.u32 %v21495_v38, %v10132_v0  ;;  %v10148_v38 = vrot.slane %v21556_v58, 1  ;;  %v10144_v0 = vor.u32 %v21526_v51, %v10140_v31  ;;  %v10164_v51 = vrot.slane %v21615_v4, 1 }
 0xd05   : > { %15584 = vmatpush3.bf16.msra.mxu0 %v17650_v50  ;;  %15559 = vmatprep.mubr.msk.bf16.mxu0 %vm17847_vm15, %v22827_v53  ;;  %v21693_v50 = vsel %vm7469_vm13, %v11227_v10, %v11231_v18  ;;  %v21701_v32 = vsel %vm7469_vm13, %v11230_v37, %v11234_v56  ;;  %v10160_v58 = vor.u32 %v21590_v12, %v10156_v23  ;;  %v10178_v12 = vshll.u32 %v10115_v8, 16 }
 0xd06   : > { %15585 = vmatprep.subr.bf16.mxu0 %v22827_v53  ;;  %v10141_v10 = vsel %vm5640_vm10, %v10136_v36, %v10140_v31  ;;  %v10149_v37 = vsel %vm5640_vm10, %v10144_v0, %v10148_v38  ;;  %v10168_v41 = vor.u32 %v21618_v62, %v10164_v51  ;;  %v10324_v62 = vld [vmem:[#allocation4] sm:$0xfe]  ;;  %v17655_v0 = vld [vmem:[%s22867_s3 + $0x4c] ss:$0 sps:$4 sm:$0x33]  }
 0xd07   : > { %v10165_v60 = vsel %vm5640_vm10, %v10160_v58, %v10164_v51  ;;  %v10180_v56 = vrot.slane %v10178_v12, 1  ;;  %v10339_v36 = vrot.slane %v10324_v62, 1  ;;  %v10346_v58 = vrot.slane %v21576_v28, 1 }
 0xd09   : > { %15586 = vmatpush3.bf16.msra.mxu0 %v17651_v2  ;;  %v10152_v2 = vor.u32 %v21559_v7, %v10148_v38  ;;  %v10172_v7 = vrot.slane %v21643_v55, 1  ;;  %v10340_v55 = vrot.slane %v21483_v39, 1  ;;  %v17654_v38 = vld [vmem:[%s22867_s3 + $0x44] sm:$0xff]  }
 0xd0a   : > { %15587 = vmatprep.subr.bf16.mxu0 %v22827_v53 }
 0xd0b   : > { %v10157_v18 = vsel %vm5640_vm10, %v10152_v2, %v10156_v23  ;;  %v10173_v31 = vsel %vm5640_vm10, %v10168_v41, %v10172_v7  ;;  %v10176_v4 = vor.u32 %v21646_v19, %v10172_v7  ;;  %v10582_v23 = vsel %vm10001_vm14, %v17655_v0, 0 }
 0xd0c   : > { %15560 = vmatmul.mubr.msk.bf16.gmra.mrb[172].mxu0 %vm9937_vm7, %v10141_v10  ;;  %v10341_v10 = vsel %vm6014_vm11, %v10339_v36, %v10340_v55  ;;  %v10348_v7 = vrot.slane %v21607_v54, 1 }
 0xd0d   : > { %15563 = vmatprep.mubr.msk.bf16.mxu0 %vm17847_vm15, %v22827_v53  ;;  %15588 = vmatpush3.bf16.msra.mxu0 %v10391_v34  ;;  %v10181_v33 = vsel %vm5640_vm10, %v10176_v4, %v10180_v56  ;;  %v17653_v34 = vld [vmem:[%s22867_s3 + $0x3c] sm:$0xff]   ;;  %v10352_v56 = vrot.slane %v10115_v8, 1 }
 0xd0e   : > { %15617 = vmatprep.subr.bf16.mxu0 %v22827_v53  ;;  %v10349_v41 = vsel %vm6014_vm11, %v10346_v58, %v10348_v7  ;;  %v10496_v4 = vld [vmem:[#allocation4] sm:$0xf8]  ;;  %v17657_v8 = vld [vmem:[%s22867_s3 + $0x58] sm:$0xff]  }
 0xd0f   : > { %v10508_v62 = vshll.u32 %v10496_v4, 16 }
 0xd14   : > { %15564 = vmatmul.mubr.msk.bf16.gmra.mrb[176].mxu0 %vm9937_vm7, %v10149_v37  ;;  %v10342_v37 = vrot.slane %v21514_v3, 1 }
 0xd15   : > { %15567 = vmatprep.mubr.msk.bf16.mxu0 %vm17847_vm15, %v22827_v53 }
 0xd16   : > { %v10343_v2 = vsel %vm6014_vm11, %v10340_v55, %v10342_v37 }
 0xd1c   : > { %15568 = vmatmul.mubr.msk.bf16.gmra.mrb[180].mxu0 %vm9937_vm7, %v10157_v18  ;;  %v10344_v18 = vrot.slane %v21543_v63, 1 }
 0xd1d   : > { %15571 = vmatprep.mubr.msk.bf16.mxu0 %vm17847_vm15, %v22827_v53 }
 0xd1e   : > { %v10345_v51 = vsel %vm6014_vm11, %v10342_v37, %v10344_v18  ;;  %v17658_v37 = vld [vmem:[%s22867_s3 + $0x60] ss:$0 sps:$4 sm:$0x33]  }
 0xd24   : > { %15572 = vmatmul.mubr.msk.bf16.gmra.mrb[184].mxu0 %vm9937_vm7, %v10165_v60  ;;  %v10347_v60 = vsel %vm6014_vm11, %v10344_v18, %v10346_v58  ;;  %v10697_v58 = vrot.slane %v21483_v39, 4 }
 0xd25   : > { %15575 = vmatprep.mubr.msk.bf16.mxu0 %vm17847_vm15, %v22827_v53 }
 0xd2c   : > { %15576 = vmatmul.mubr.msk.bf16.gmra.mrb[188].mxu0 %vm9937_vm7, %v10173_v31  ;;  %v10350_v31 = vrot.slane %v21638_v9, 1 }
 0xd2d   : > { %15579 = vmatprep.mubr.msk.bf16.mxu0 %vm17847_vm15, %v22827_v53 }
 0xd2e   : > { %v10351_v12 = vsel %vm6014_vm11, %v10348_v7, %v10350_v31  ;;  %v10353_v55 = vsel %vm6014_vm11, %v10350_v31, %v10352_v56  ;;  %v17659_v7 = vld [vmem:[%s22867_s3 + $0x64] sm:$0xff]   ;;  %v10699_v31 = vrot.slane %v21514_v3, 4  ;;  %v10701_v56 = vrot.slane %v21543_v63, 4 }
 0xd34   : > { %15580 = vmatmul.mubr.msk.bf16.gmra.mrb[192].mxu0 %vm9937_vm7, %v10181_v33  ;;  %v10505_v33 = vshrl.u32 %v10496_v4, 16  ;;  %v10700_v4 = vsel %vm2563_vm8, %v10697_v58, %v10699_v31 }
 0xd35   : > { %15589 = vmatprep.mubr.msk.bf16.mxu0 %vm17847_vm15, %v22827_v53 }
 0xd36   : > { %v10507_v36 = vrot.slane %v10505_v33, 3  ;;  %v10702_v33 = vsel %vm2563_vm8, %v10699_v31, %v10701_v56  ;;  %v17666_v31 = vld [vmem:[%s22867_s3 + $0x94] sm:$0xff]  }
 0xd3c   : > { %15590 = vmatmul.mubr.msk.bf16.vlgmr.msra.gmra.mrb[168].mxu0 %vm9937_vm7, %v10341_v10 }
 0xd3d   : > { %15618 = vmatpush3.bf16.msra.mxu0 %v17653_v34  ;;  %15593 = vmatprep.mubr.msk.bf16.mxu0 %vm17847_vm15, %v22827_v53  ;;  %v10510_v34 = vrot.slane %v10508_v62, 4  ;;  %v10703_v62 = vrot.slane %v21576_v28, 4 }
 0xd3e   : > { %15619 = vmatprep.subr.bf16.mxu0 %v22827_v53 }
 0xd3f   : > { %v10511_v10 = vor.u32 %v10510_v34, %v10507_v36  ;;  %v10705_v36 = vrot.slane %v21607_v54, 4 }
 0xd41   : > { %15620 = vmatpush3.bf16.msra.mxu0 %v17654_v38  ;;  %v17656_v38 = vld [vmem:[%s22867_s3 + $0x50] sm:$0xff]   ;;  %v10515_v0 = vsel %vm6284_vm6, %v10511_v10, %v21509_v46  ;;  %v10706_v34 = vsel %vm2563_vm8, %v10703_v62, %v10705_v36  ;;  %v10707_v10 = vrot.slane %v21638_v9, 4 }
 0xd42   : > { %15621 = vmatprep.subr.bf16.mxu0 %v22827_v53  ;;  %v10497_v46 = vld [vmem:[#allocation4 + $0x70] sm:$0xf] }
 0xd44   : > { %15594 = vmatmul.mubr.msk.bf16.gmra.mrb[172].mxu0 %vm9937_vm7, %v10343_v2  ;;  %v10540_v2 = vshll.u32 %v10497_v46, 16 }
 0xd45   : > { %15597 = vmatprep.mubr.msk.bf16.mxu0 %vm17847_vm15, %v22827_v53  ;;  %15622 = vmatpush3.bf16.msra.mxu0 %v10582_v23  ;;  %v10748_v23 = vsel %vm10001_vm14, %v17658_v37, 0 }
 0xd46   : > { %15651 = vmatprep.subr.bf16.mxu0 %v22827_v53  ;;  %v10542_v18 = vrot.slane %v10540_v2, 4 }
 0xd4c   : > { %15598 = vmatmul.mubr.msk.bf16.gmra.mrb[176].mxu0 %vm9937_vm7, %v10345_v51  ;;  %v10687_v51 = vld [vmem:[#allocation4] sm:$0xf0] }
 0xd4d   : > { %15601 = vmatprep.mubr.msk.bf16.mxu0 %vm17847_vm15, %v22827_v53  ;;  %v10864_v37 = vshll.u32 %v10687_v51, 16 }
 0xd4f   : > { %v10866_v2 = vrot.slane %v10864_v37, 5 }
 0xd54   : > { %15602 = vmatmul.mubr.msk.bf16.gmra.mrb[180].mxu0 %vm9937_vm7, %v10347_v60  ;;  %v10696_v60 = vrot.slane %v10687_v51, 4 }
 0xd55   : > { %15605 = vmatprep.mubr.msk.bf16.mxu0 %vm17847_vm15, %v22827_v53 }
 0xd5c   : > { %15606 = vmatmul.mubr.msk.bf16.gmra.mrb[184].mxu0 %vm9937_vm7, %v10349_v41  ;;  %v17660_v41 = vld [vmem:[%s22867_s3 + $0x6c] sm:$0xff]  }
 0xd5d   : > { %15609 = vmatprep.mubr.msk.bf16.mxu0 %vm17847_vm15, %v22827_v53 }
 0xd64   : > { %15610 = vmatmul.mubr.msk.bf16.gmra.mrb[188].mxu0 %vm9937_vm7, %v10351_v12 }
 0xd65   : > { %15613 = vmatprep.mubr.msk.bf16.mxu0 %vm17847_vm15, %v22827_v53 }
 0xd6c   : > { %15614 = vmatmul.mubr.msk.bf16.gmra.mrb[192].mxu0 %vm9937_vm7, %v10353_v55  ;;  %v10704_v55 = vsel %vm2563_vm8, %v10701_v56, %v10703_v62 }
 0xd6d   : > { %15623 = vmatprep.mubr.msk.bf16.mxu0 %vm17847_vm15, %v22827_v53 }
 0xd74   : > { %15624 = vmatmul.mubr.msk.bf16.vlgmr.msra.gmra.mrb[168].mxu0 %vm9937_vm7, %v10515_v0  ;;  %v10709_v0 = vrot.slane %v10497_v46, 4 }
 0xd75   : > { %15652 = vmatpush3.bf16.msra.mxu0 %v17656_v38  ;;  %15627 = vmatprep.mubr.msk.bf16.mxu0 %vm17847_vm15, %v22827_v53  ;;  %v10708_v38 = vsel %vm2563_vm8, %v10705_v36, %v10707_v10 }
 0xd76   : > { %15653 = vmatprep.subr.bf16.mxu0 %v22827_v53 }
 0xd79   : > { %15654 = vmatpush3.bf16.msra.mxu0 %v17657_v8  ;;  %v10861_v8 = vshrl.u32 %v10687_v51, 16 }
 0xd7a   : > { %15655 = vmatprep.subr.bf16.mxu0 %v22827_v53 }
 0xd7c   : > { %15628 = vmatmul.mubr.msk.bf16.gmra.mrb[172].mxu0 %vm9937_vm7, %v21548_v1  ;;  %v10537_v1 = vshrl.u32 %v10497_v46, 16  ;;  %v17663_v46 = vld [vmem:[%s22867_s3 + $0x80] sm:$0xff]  }
 0xd7d   : > { %15631 = vmatprep.mubr.msk.bf16.mxu0 %vm17847_vm15, %v22827_v53  ;;  %15656 = vmatpush3.bf16.msra.mxu0 %v10748_v23  ;;  %v10710_v23 = vsel %vm2563_vm8, %v10707_v10, %v10709_v0 }
 0xd7e   : > { %15685 = vmatprep.subr.bf16.mxu0 %v22827_v53 }
 0xd84   : > { %15632 = vmatmul.mubr.msk.bf16.gmra.mrb[176].mxu0 %vm9937_vm7, %v21580_v48  ;;  %v10539_v48 = vrot.slane %v10537_v1, 3  ;;  %v10863_v1 = vrot.slane %v10861_v8, 4  ;;  %v11044_v8 = vld [vmem:[#allocation4 + $0x70] sm:$0x7f] }
 0xd85   : > { %15635 = vmatprep.mubr.msk.bf16.mxu0 %vm17847_vm15, %v22827_v53  ;;  %v11066_v37 = vrot.slane %v11044_v8, 7 }
 0xd8c   : > { %15636 = vmatmul.mubr.msk.bf16.gmra.mrb[180].mxu0 %vm9937_vm7, %v21605_v25  ;;  %v10543_v25 = vor.u32 %v10542_v18, %v10539_v48  ;;  %v10867_v48 = vor.u32 %v10866_v2, %v10863_v1  ;;  %v17662_v18 = vld [vmem:[%s22867_s3 + $0x78] sm:$0xff]  }
 0xd8d   : > { %15639 = vmatprep.mubr.msk.bf16.mxu0 %vm17847_vm15, %v22827_v53 }
 0xd94   : > { %15640 = vmatmul.mubr.msk.bf16.gmra.mrb[184].mxu0 %vm9937_vm7, %v21636_v47  ;;  %v10544_v47 = vsel %vm6284_vm6, %v21660_v24, %v10543_v25  ;;  %v17661_v24 = vld [vmem:[%s22867_s3 + $0x74] ss:$0 sps:$4 sm:$0x33]   ;;  %v10871_v25 = vsel %vm6875_vm9, %v10867_v48, %v21532_v35  ;;  %v17668_v48 = vld [vmem:[%s22867_s3 + $0xa0] sm:$0xff]  }
 0xd95   : > { %15643 = vmatprep.mubr.msk.bf16.mxu0 %vm17847_vm15, %v22827_v53  ;;  %v10938_v12 = vsel %vm10001_vm14, %v17661_v24, 0  ;;  %v10853_v35 = vld [vmem:[#allocation4 + $0x70] sm:$0x1f] }
 0xd96   : > { %v17665_v24 = vld [vmem:[%s22867_s3 + $0x8c] sm:$0xff]  }
 0xd9c   : > { %15644 = vmatmul.mubr.msk.bf16.gmra.mrb[188].mxu0 %vm9937_vm7, %v21670_v40  ;;  %v10698_v40 = vsel %vm2563_vm8, %v10696_v60, %v10697_v58  ;;  %v10896_v58 = vshll.u32 %v10853_v35, 16 }
 0xd9d   : > { %15647 = vmatprep.mubr.msk.bf16.mxu0 %vm17847_vm15, %v22827_v53 }
 0xd9e   : > { %v10898_v60 = vrot.slane %v10896_v58, 5 }
 0xda4   : > { %15648 = vmatmul.mubr.msk.bf16.gmra.mrb[192].mxu0 %vm9937_vm7, %v10544_v47  ;;  %v17664_v47 = vld [vmem:[%s22867_s3 + $0x88] ss:$0 sps:$4 sm:$0x33]  }
 0xda5   : > { %15657 = vmatprep.mubr.msk.bf16.mxu0 %vm17847_vm15, %v22827_v53  ;;  %v11105_v51 = vsel %vm10001_vm14, %v17664_v47, 0 }
 0xdac   : > { %15658 = vmatmul.mubr.msk.bf16.vlgmr.msra.gmra.mrb[168].mxu0 %vm9937_vm7, %v10698_v40  ;;  %v11054_v40 = vrot.slane %v21483_v39, 7 }
 0xdad   : > { %15686 = vmatpush3.bf16.msra.mxu0 %v17659_v7  ;;  %15661 = vmatprep.mubr.msk.bf16.mxu0 %vm17847_vm15, %v22827_v53  ;;  %v11043_v7 = vld [vmem:[#allocation4] sm:$0x80] }
 0xdae   : > { %15687 = vmatprep.subr.bf16.mxu0 %v22827_v53  ;;  %v11218_v1 = vshrl.u32 %v11043_v7, 16 }
 0xdb0   : > { %v11220_v2 = vrot.slane %v11218_v1, 7 }
 0xdb1   : > { %15688 = vmatpush3.bf16.msra.mxu0 %v17660_v41  ;;  %v11053_v41 = vrot.slane %v11043_v7, 7 }
 0xdb2   : > { %15689 = vmatprep.subr.bf16.mxu0 %v22827_v53 }
 0xdb4   : > { %15662 = vmatmul.mubr.msk.bf16.gmra.mrb[172].mxu0 %vm9937_vm7, %v10700_v4 }
 0xdb5   : > { %15665 = vmatprep.mubr.msk.bf16.mxu0 %vm17847_vm15, %v22827_v53  ;;  %15690 = vmatpush3.bf16.msra.mxu0 %v10938_v12  ;;  %v11056_v12 = vrot.slane %v21514_v3, 7 }
 0xdb6   : > { %15719 = vmatprep.subr.bf16.mxu0 %v22827_v53 }
 0xdb7   : > { %v11057_v56 = vsel %vm7201_vm12, %v11054_v40, %v11056_v12 }
 0xdbc   : > { %15666 = vmatmul.mubr.msk.bf16.gmra.mrb[176].mxu0 %vm9937_vm7, %v10702_v33  ;;  %v11058_v33 = vrot.slane %v21543_v63, 7 }
 0xdbd   : > { %15669 = vmatprep.mubr.msk.bf16.mxu0 %vm17847_vm15, %v22827_v53 }
 0xdbe   : > { %v11059_v62 = vsel %vm7201_vm12, %v11056_v12, %v11058_v33 }
 0xdc4   : > { %15670 = vmatmul.mubr.msk.bf16.gmra.mrb[180].mxu0 %vm9937_vm7, %v10704_v55  ;;  %v11060_v55 = vrot.slane %v21576_v28, 7 }
 0xdc5   : > { %15673 = vmatprep.mubr.msk.bf16.mxu0 %vm17847_vm15, %v22827_v53 }
 0xdc6   : > { %v11061_v36 = vsel %vm7201_vm12, %v11058_v33, %v11060_v55 }
 0xdcc   : > { %15674 = vmatmul.mubr.msk.bf16.gmra.mrb[184].mxu0 %vm9937_vm7, %v10706_v34  ;;  %v11062_v34 = vrot.slane %v21607_v54, 7 }
 0xdcd   : > { %15677 = vmatprep.mubr.msk.bf16.mxu0 %vm17847_vm15, %v22827_v53 }
 0xdce   : > { %v11063_v10 = vsel %vm7201_vm12, %v11060_v55, %v11062_v34 }
 0xdd4   : > { %15678 = vmatmul.mubr.msk.bf16.gmra.mrb[188].mxu0 %vm9937_vm7, %v10708_v38  ;;  %v11064_v38 = vrot.slane %v21638_v9, 7 }
 0xdd5   : > { %15681 = vmatprep.mubr.msk.bf16.mxu0 %vm17847_vm15, %v22827_v53 }
 0xdd6   : > { %v11065_v0 = vsel %vm7201_vm12, %v11062_v34, %v11064_v38 }
 0xddc   : > { %15682 = vmatmul.mubr.msk.bf16.gmra.mrb[192].mxu0 %vm9937_vm7, %v10710_v23  ;;  %v11067_v23 = vsel %vm7201_vm12, %v11064_v38, %v11066_v37 }
 0xddd   : > { %15691 = vmatprep.mubr.msk.bf16.mxu0 %vm17847_vm15, %v22827_v53 }
 0xde4   : > { %15692 = vmatmul.mubr.msk.bf16.vlgmr.msra.gmra.mrb[168].mxu0 %vm9937_vm7, %v10871_v25  ;;  %v17669_v25 = vld [vmem:[%s22867_s3 + $0xa8] sm:$0xff]  }
 0xde5   : > { %15720 = vmatpush3.bf16.msra.mxu0 %v17662_v18  ;;  %15695 = vmatprep.mubr.msk.bf16.mxu0 %vm17847_vm15, %v22827_v53  ;;  %v11223_v18 = vsel %vm7469_vm13, %v11220_v2, %v21626_v14  ;;  %v11210_v14 = vld [vmem:[#allocation4 + $0x70] sm:$0xff] }
 0xde6   : > { %15721 = vmatprep.subr.bf16.mxu0 %v22827_v53 }
 0xde9   : > { %15722 = vmatpush3.bf16.msra.mxu0 %v17663_v46  ;;  %v17670_v46 = vld [vmem:[%s22867_s3 + $0xb0] ss:$0 sps:$4 sm:$0x33]  }
 0xdea   : > { %15723 = vmatprep.subr.bf16.mxu0 %v22827_v53  ;;  %v11425_v47 = vsel %vm10001_vm14, %v17670_v46, 0 }
 0xdec   : > { %15696 = vmatmul.mubr.msk.bf16.gmra.mrb[172].mxu0 %vm9937_vm7, %v21574_v52  ;;  %v10893_v52 = vshrl.u32 %v10853_v35, 16 }
 0xded   : > { %15699 = vmatprep.mubr.msk.bf16.mxu0 %vm17847_vm15, %v22827_v53  ;;  %15724 = vmatpush3.bf16.msra.mxu0 %v11105_v51 }
 0xdee   : > { %15753 = vmatprep.subr.bf16.mxu0 %v22827_v53 }
 0xdf4   : > { %15700 = vmatmul.mubr.msk.bf16.gmra.mrb[176].mxu0 %vm9937_vm7, %v21602_v42  ;;  %v10895_v42 = vrot.slane %v10893_v52, 4 }
 0xdf5   : > { %15703 = vmatprep.mubr.msk.bf16.mxu0 %vm17847_vm15, %v22827_v53 }
 0xdfc   : > { %15704 = vmatmul.mubr.msk.bf16.gmra.mrb[180].mxu0 %vm9937_vm7, %v21623_v49  ;;  %v10899_v49 = vor.u32 %v10898_v60, %v10895_v42 }
 0xdfd   : > { %15707 = vmatprep.mubr.msk.bf16.mxu0 %vm17847_vm15, %v22827_v53 }
 0xe04   : > { %15708 = vmatmul.mubr.msk.bf16.gmra.mrb[184].mxu0 %vm9937_vm7, %v21655_v11  ;;  %v10900_v11 = vsel %vm6875_vm9, %v21672_v13, %v10899_v49  ;;  %v17667_v13 = vld [vmem:[%s22867_s3 + $0x9c] ss:$0 sps:$4 sm:$0x33]   ;;  %s14624_s3 = sld [smem:[#allocation5 + $0x7]] }
 0xe05   : > { %15711 = vmatprep.mubr.msk.bf16.mxu0 %vm17847_vm15, %v22827_v53  ;;  %v11284_v4 = vsel %vm10001_vm14, %v17667_v13, 0  ;;  %vm11586_vm14 = vcmask 392480  }
 0xe0c   : > { %15712 = vmatmul.mubr.msk.bf16.gmra.mrb[188].mxu0 %vm9937_vm7, %v21681_v16  ;;  %v11055_v16 = vsel %vm7201_vm12, %v11053_v41, %v11054_v40 }
 0xe0d   : > { %15715 = vmatprep.mubr.msk.bf16.mxu0 %vm17847_vm15, %v22827_v53 }
 0xe14   : > { %15716 = vmatmul.mubr.msk.bf16.gmra.mrb[192].mxu0 %vm9937_vm7, %v10900_v11 }
 0xe15   : > { %15725 = vmatprep.mubr.msk.bf16.mxu0 %vm17847_vm15, %v22827_v53 }
 0xe1c   : > { %15726 = vmatmul.mubr.msk.bf16.vlgmr.msra.gmra.mrb[168].mxu0 %vm9937_vm7, %v11055_v16 }
 0xe1d   : > { %15754 = vmatpush3.bf16.msra.mxu0 %v17665_v24  ;;  %15729 = vmatprep.mubr.msk.bf16.mxu0 %vm17847_vm15, %v22827_v53 }
 0xe1e   : > { %15755 = vmatprep.subr.bf16.mxu0 %v22827_v53 }
 0xe21   : > { %15756 = vmatpush3.bf16.msra.mxu0 %v17666_v31 }
 0xe22   : > { %15757 = vmatprep.subr.bf16.mxu0 %v22827_v53 }
 0xe24   : > { %15730 = vmatmul.mubr.msk.bf16.gmra.mrb[172].mxu0 %vm9937_vm7, %v11057_v56 }
 0xe25   : > { %15733 = vmatprep.mubr.msk.bf16.mxu0 %vm17847_vm15, %v22827_v53  ;;  %15758 = vmatpush3.bf16.msra.mxu0 %v11284_v4  ;;  %v17673_v4 = vld [vmem:[%s22871_s6 + $0x10] sm:$0xff]  }
 0xe26   : > { %15787 = vmatprep.subr.bf16.mxu0 %v22827_v53 }
 0xe2c   : > { %15734 = vmatmul.mubr.msk.bf16.gmra.mrb[176].mxu0 %vm9937_vm7, %v11059_v62 }
 0xe2d   : > { %15737 = vmatprep.mubr.msk.bf16.mxu0 %vm17847_vm15, %v22827_v53 }
 0xe34   : > { %15738 = vmatmul.mubr.msk.bf16.gmra.mrb[180].mxu0 %vm9937_vm7, %v11061_v36 }
 0xe35   : > { %15741 = vmatprep.mubr.msk.bf16.mxu0 %vm17847_vm15, %v22827_v53 }
 0xe3c   : > { %15742 = vmatmul.mubr.msk.bf16.gmra.mrb[184].mxu0 %vm9937_vm7, %v11063_v10 }
 0xe3d   : > { %15745 = vmatprep.mubr.msk.bf16.mxu0 %vm17847_vm15, %v22827_v53 }
 0xe44   : > { %15746 = vmatmul.mubr.msk.bf16.gmra.mrb[188].mxu0 %vm9937_vm7, %v11065_v0 }
 0xe45   : > { %15749 = vmatprep.mubr.msk.bf16.mxu0 %vm17847_vm15, %v22827_v53 }
 0xe4c   : > { %15750 = vmatmul.mubr.msk.bf16.gmra.mrb[192].mxu0 %vm9937_vm7, %v11067_v23 }
 0xe4d   : > { %15759 = vmatprep.mubr.msk.bf16.mxu0 %vm17847_vm15, %v22827_v53 }
 0xe54   : > { %15760 = vmatmul.mubr.msk.bf16.vlgmr.msra.gmra.mrb[168].mxu0 %vm9937_vm7, %v11223_v18 }
 0xe55   : > { %15788 = vmatpush3.bf16.msra.mxu0 %v17668_v48  ;;  %15763 = vmatprep.mubr.msk.bf16.mxu0 %vm17847_vm15, %v22827_v53 }
 0xe56   : > { %15789 = vmatprep.subr.bf16.mxu0 %v22827_v53 }
 0xe59   : > { %15790 = vmatpush3.bf16.msra.mxu0 %v17669_v25 }
 0xe5a   : > { %15791 = vmatprep.subr.bf16.mxu0 %v22827_v53 }
 0xe5c   : > { %15764 = vmatmul.mubr.msk.bf16.gmra.mrb[172].mxu0 %vm9937_vm7, %v21665_v26  ;;  %v11240_v26 = vshrl.u32 %v11210_v14, 16 }
 0xe5d   : > { %15767 = vmatprep.mubr.msk.bf16.mxu0 %vm17847_vm15, %v22827_v53  ;;  %15792 = vmatpush3.bf16.msra.mxu0 %v11425_v47 }
 0xe5e   : > { %16127 = vmatprep.subr.bf16.mxu0 %v22827_v53  ;;  %v11242_v51 = vrot.slane %v11240_v26, 7 }
 0xe64   : > { %15768 = vmatmul.mubr.msk.bf16.gmra.mrb[176].mxu0 %vm9937_vm7, %v21689_v27  ;;  %v11243_v27 = vshll.u32 %v11210_v14, 16 }
 0xe65   : > { %15771 = vmatprep.mubr.msk.bf16.mxu0 %vm17847_vm15, %v22827_v53 }
 0xe6c   : > { %15772 = vmatmul.mubr.msk.bf16.gmra.mrb[180].mxu0 %vm9937_vm7, %v21693_v50  ;;  %v11245_v50 = vor.u32 %v11243_v27, %v11242_v51 }
 0xe6d   : > { %15775 = vmatprep.mubr.msk.bf16.mxu0 %vm17847_vm15, %v22827_v53 }
 0xe6e   : > { %v11246_v35 = vsel %vm7469_vm13, %v11236_v17, %v11245_v50  ;;  %v17672_v17 = vld [vmem:[%s22871_s6 + $0x8] sm:$0xff]   ;;  %v22028_v50 = vld [vmem:[%s22873_s5] ss:$0 sm:$0xff]  ;;  %s22877_s5 = sld [smem:[#allocation40_spill]] }
 0xe74   : > { %15776 = vmatmul.mubr.msk.bf16.gmra.mrb[184].mxu0 %vm9937_vm7, %v21701_v32  ;;  %v17671_v32 = vld [vmem:[%s22871_s6] sm:$0xff]  }
 0xe75   : > { %15779 = vmatprep.mubr.msk.bf16.mxu0 %vm17847_vm15, %v22827_v53  ;;  %15822 = vmatpush3.bf16.msra.mxu1 %v17671_v32 }
 0xe76   : > { %15823 = vmatprep.subr.bf16.mxu1 %v22827_v53 }
 0xe79   : > { %15824 = vmatpush3.bf16.msra.mxu1 %v17672_v17 }
 0xe7a   : > { %15825 = vmatprep.subr.bf16.mxu1 %v22827_v53 }
 0xe7c   : > { %15780 = vmatmul.mubr.msk.bf16.gmra.mrb[188].mxu0 %vm9937_vm7, %v21704_v44 }
 0xe7d   : > { %15783 = vmatprep.mubr.msk.bf16.mxu0 %vm17847_vm15, %v22827_v53  ;;  %15826 = vmatpush3.bf16.msra.mxu1 %v17673_v4 }
 0xe7e   : > { %15855 = vmatprep.subr.bf16.mxu1 %v22827_v53 }
 0xe84   : > { %15784 = vmatmul.mubr.msk.bf16.gmra.mrb[192].mxu0 %vm9937_vm7, %v11246_v35 }
 0xe85   : > { %15793 = vmatprep.mubr.msk.bf16.mxu0 %vm17847_vm15, %v22827_v53 }
 0xe8c   : > { %15794 = vmatmul.mubr.msk.bf16.vlgmr.msra.gmra.mrb[168].mxu0 %vm9937_vm7, %v21483_v39  ;;  %v14493_v39 = vld [vmem:[%s22872_s1] ss:$0 sm:$0xff]  ;;  %s22874_s1 = sld [smem:[#allocation37_spill]] }
 0xe8d   : > { %15797 = vmatprep.mubr.msk.bf16.mxu0 %vm17847_vm15, %v22827_v53 }
 0xe92   : > { %v22031_v35 = vld [vmem:[%s22874_s1] ss:$0 sm:$0xff]  ;;  %s14768_s1 = sld [smem:[#allocation5 + $0x8]] }
 0xe94   : > { %15798 = vmatmul.mubr.msk.bf16.gmra.mrb[172].mxu0 %vm9937_vm7, %v21514_v3 }
 0xe95   : > { %15801 = vmatprep.mubr.msk.bf16.mxu0 %vm17847_vm15, %v22827_v53 }
 0xe9c   : > { %15802 = vmatmul.mubr.msk.bf16.gmra.mrb[176].mxu0 %vm9937_vm7, %v21543_v63 }
 0xe9d   : > { %15805 = vmatprep.mubr.msk.bf16.mxu0 %vm17847_vm15, %v22827_v53 }
 0xea4   : > { %15806 = vmatmul.mubr.msk.bf16.gmra.mrb[180].mxu0 %vm9937_vm7, %v21576_v28 }
 0xea5   : > { %15809 = vmatprep.mubr.msk.bf16.mxu0 %vm17847_vm15, %v22827_v53 }
 0xeac   : > { %15810 = vmatmul.mubr.msk.bf16.gmra.mrb[184].mxu0 %vm9937_vm7, %v21607_v54 }
 0xead   : > { %15813 = vmatprep.mubr.msk.bf16.mxu0 %vm17847_vm15, %v22827_v53 }
 0xeb4   : > { %15814 = vmatmul.mubr.msk.bf16.gmra.mrb[188].mxu0 %vm9937_vm7, %v21638_v9 }
 0xeb5   : > { %15817 = vmatprep.mubr.msk.bf16.mxu0 %vm17847_vm15, %v22827_v53 }
 0xebc   : > { %15818 = vmatmul.mubr.msk.bf16.gmra.mrb[192].mxu0 %vm9937_vm7, %v11210_v14 }
 0xebd   : > { %16141 = vmatprep.mubr.msk.bf16.mxu0 %vm17847_vm15, %v22827_v53 }
 0xf5f   : > { %v11461_v3 = vpop.f32.mrb[168].mxu0 }
 0xf60   : > { %v16233_v63 = vadd.f32 %v14493_v39, %v11461_v3  ;;  %v15795_v28 = vpop.f32.mrb[169].mxu0 }
 0xf61   : > { %v11464_v54 = vpop.f32.mrb[170].mxu0 }
 0xf62   : > { %v16234_v19 = vadd.f32 %v14493_v39, %v11464_v54  ;;  %11544 = vrot.lane.b32.xlu1 %v16233_v63, %s17851_s11  ;;  %v15796_v9 = vpop.f32.mrb[171].mxu0  ;;  %v22035_v63 = vstv %s14624_s3  ;;  %s22876_s3 = sld [smem:[#allocation39_spill]] }
 0xf64   : > { %11546 = vrot.lane.b32.xlu0 %v16234_v19, %s17851_s11 }
 0xf67   : > { %v11469_v44 = vpop.f32.mrb[172].mxu0 }
 0xf68   : > { %v16235_v52 = vadd.f32 %v14493_v39, %v11469_v44  ;;  %v15799_v58 = vpop.f32.mrb[173].mxu0 }
 0xf69   : > { %v11472_v42 = vpop.f32.mrb[174].mxu0 }
 0xf6a   : > { %v16236_v60 = vadd.f32 %v14493_v39, %v11472_v42  ;;  %11548 = vrot.lane.b32.xlu1 %v16235_v52, %s17851_s11  ;;  %v15800_v49 = vpop.f32.mrb[175].mxu0 }
 0xf6c   : > { %11550 = vrot.lane.b32.xlu0 %v16236_v60, %s17851_s11 }
 0xf6f   : > { %v11477_v11 = vpop.f32.mrb[176].mxu0 }
 0xf70   : > { %v16237_v7 = vadd.f32 %v14493_v39, %v11477_v11  ;;  %v15803_v40 = vpop.f32.mrb[177].mxu0 }
 0xf71   : > { %v11480_v41 = vpop.f32.mrb[178].mxu0 }
 0xf72   : > { %v16238_v24 = vadd.f32 %v14493_v39, %v11480_v41  ;;  %11552 = vrot.lane.b32.xlu1 %v16237_v7, %s17851_s11  ;;  %v15804_v16 = vpop.f32.mrb[179].mxu0 }
 0xf74   : > { %11554 = vrot.lane.b32.xlu0 %v16238_v24, %s17851_s11 }
 0xf77   : > { %v11485_v31 = vpop.f32.mrb[180].mxu0 }
 0xf78   : > { %v16239_v13 = vadd.f32 %v14493_v39, %v11485_v31  ;;  %v15807_v12 = vpop.f32.mrb[181].mxu0 }
 0xf79   : > { %v11488_v56 = vpop.f32.mrb[182].mxu0 }
 0xf7a   : > { %v16240_v33 = vadd.f32 %v14493_v39, %v11488_v56  ;;  %11556 = vrot.lane.b32.xlu1 %v16239_v13, %s17851_s11  ;;  %v15808_v62 = vpop.f32.mrb[183].mxu0 }
 0xf7c   : > { %11558 = vrot.lane.b32.xlu0 %v16240_v33, %s17851_s11 }
 0xf7f   : > { %v11493_v55 = vpop.f32.mrb[184].mxu0 }
 0xf80   : > { %v16241_v36 = vadd.f32 %v14493_v39, %v11493_v55  ;;  %v15811_v34 = vpop.f32.mrb[185].mxu0 }
 0xf81   : > { %v11496_v10 = vpop.f32.mrb[186].mxu0 }
 0xf82   : > { %v16242_v38 = vadd.f32 %v14493_v39, %v11496_v10  ;;  %11560 = vrot.lane.b32.xlu1 %v16241_v36, %s17851_s11  ;;  %v15812_v0 = vpop.f32.mrb[187].mxu0 }
 0xf84   : > { %11562 = vrot.lane.b32.xlu0 %v16242_v38, %s17851_s11 }
 0xf87   : > { %v11501_v8 = vpop.f32.mrb[188].mxu0 }
 0xf88   : > { %v16243_v37 = vadd.f32 %v14493_v39, %v11501_v8  ;;  %v15815_v23 = vpop.f32.mrb[189].mxu0 }
 0xf89   : > { %v11504_v1 = vpop.f32.mrb[190].mxu0 }
 0xf8a   : > { %v16244_v2 = vadd.f32 %v14493_v39, %v11504_v1  ;;  %11564 = vrot.lane.b32.xlu1 %v16243_v37, %s17851_s11  ;;  %v15816_v48 = vpop.f32.mrb[191].mxu0 }
 0xf8b   : > { %v17674_v48 = vld [vmem:[%s22871_s6 + $0x18] sm:$0xff]  }
 0xf8c   : > { %11566 = vrot.lane.b32.xlu0 %v16244_v2, %s17851_s11 }
 0xf8f   : > { %v11509_v18 = vpop.f32.mrb[192].mxu0 }
 0xf90   : > { %v16245_v25 = vadd.f32 %v14493_v39, %v11509_v18  ;;  %v15819_v46 = vpop.f32.mrb[193].mxu0 }
 0xf91   : > { %v11512_v47 = vpop.f32.mrb[194].mxu0 }
 0xf92   : > { %v16246_v14 = vadd.f32 %v14493_v39, %v11512_v47  ;;  %11568 = vrot.lane.b32.xlu1 %v16245_v25, %s17851_s11  ;;  %v15820_v26 = vpop.f32.mrb[195].mxu0 }
 0xf94   : > { %11570 = vrot.lane.b32.xlu0 %v16246_v14, %s17851_s11  ;;  %s17852_s11 = smov 48  }
 0xfd4   : > { %v11545_v51 = vpop.permute.xlu1 %11544 }
 0xfd5   : > { %11587 = vst.msk [vmem:[#allocation3] sm:$0xff] %vm11586_vm14, %v11545_v51 }
 0xfd6   : > { %v11547_v27 = vpop.permute.xlu0 %11546 }
 0xfd7   : > { %11588 = vst.msk [vmem:[#allocation3 + $0x8] sm:$0xff] %vm11586_vm14, %v11547_v27  ;;  %v17675_v27 = vld [vmem:[%s22871_s6 + $0x20] sm:$0xff]  }
 0xfdc   : > { %v11602_v32 = vld [vmem:[#allocation3] sm:$0xff]  ;;  %v11549_v3 = vpop.permute.xlu1 %11548 }
 0xfdd   : > { %v11623_v39 = vmul.f32 %v22028_v50, %v11602_v32  ;;  %11589 = vst.msk [vmem:[#allocation3 + $0x10] sm:$0xff] %vm11586_vm14, %v11549_v3 }
 0xfde   : > { %v11603_v28 = vld [vmem:[#allocation3 + $0x8] sm:$0xff]  ;;  %v11551_v54 = vpop.permute.xlu0 %11550 }
 0xfdf   : > { %v11644_v19 = vadd.f32 %v22031_v35, %v11623_v39  ;;  %v11624_v9 = vmul.f32 %v22028_v50, %v11603_v28  ;;  %11590 = vst.msk [vmem:[#allocation3 + $0x18] sm:$0xff] %vm11586_vm14, %v11551_v54 }
 0xfe1   : > { %vm11658_vm7 = vcmp.ge.f32.partialorder %v11644_v19, 0.0  ;;  %v11673_v17 = vmul.f32 %v22035_v63, %v11644_v19  ;;  %v11645_v44 = vadd.f32 %v22031_v35, %v11624_v9 }
 0xfe3   : > { %v11687_v52 = vsel %vm11658_vm7, %v11644_v19, %v11673_v17  ;;  %vm11659_vm2 = vcmp.ge.f32.partialorder %v11645_v44, 0.0  ;;  %v11674_v58 = vmul.f32 %v22035_v63, %v11645_v44  ;;  %vm11752_vm7 = vcmask 392192  }
 0xfe4   : > { %v11604_v42 = vld [vmem:[#allocation3 + $0x10] sm:$0xff]  ;;  %v11553_v60 = vpop.permute.xlu1 %11552  ;;  %v11701_v7 = vmul.f32 %v11687_v52, %v20815_v15 }
 0xfe5   : > { %v11688_v49 = vsel %vm11659_vm2, %v11645_v44, %v11674_v58  ;;  %v11625_v11 = vmul.f32 %v22028_v50, %v11604_v42  ;;  %11591 = vst.msk [vmem:[#allocation3 + $0x20] sm:$0xff] %vm11586_vm14, %v11553_v60 }
 0xfe6   : > { %v11702_v40 = vmul.f32 %v11688_v49, %v20813_v57  ;;  %v11605_v41 = vld [vmem:[#allocation3 + $0x18] sm:$0xff]  ;;  %v11555_v24 = vpop.permute.xlu0 %11554 }
 0xfe7   : > { %v11646_v16 = vadd.f32 %v22031_v35, %v11625_v11  ;;  %v11626_v31 = vmul.f32 %v22028_v50, %v11605_v41  ;;  %11592 = vst.msk [vmem:[#allocation3 + $0x28] sm:$0xff] %vm11586_vm14, %v11555_v24 }
 0xfe8   : > { %v11715_v13 = vpack.c.bf16 %v11702_v40, %v11701_v7 }
 0xfe9   : > { %vm11660_vm3 = vcmp.ge.f32.partialorder %v11646_v16, 0.0  ;;  %v11675_v12 = vmul.f32 %v22035_v63, %v11646_v16  ;;  %v11647_v4 = vadd.f32 %v22031_v35, %v11626_v31 }
 0xfea   : > { %v11729_v56 = vrot.slane %v11715_v13, 4 }
 0xfeb   : > { %v11689_v33 = vsel %vm11660_vm3, %v11646_v16, %v11675_v12  ;;  %vm11661_vm5 = vcmp.ge.f32.partialorder %v11647_v4, 0.0  ;;  %v11676_v57 = vmul.f32 %v22035_v63, %v11647_v4 }
 0xfec   : > { %v11606_v15 = vld [vmem:[#allocation3 + $0x20] sm:$0xff]  ;;  %v11557_v62 = vpop.permute.xlu1 %11556  ;;  %11751 = vst.msk [vmem:[#allocation4] sm:$0xf0] %vm11750_vm4, %v11729_v56  ;;  %v11703_v34 = vmul.f32 %v11689_v33, %v20829_v43 }
 0xfed   : > { %v11690_v55 = vsel %vm11661_vm5, %v11647_v4, %v11676_v57  ;;  %v11627_v36 = vmul.f32 %v22028_v50, %v11606_v15  ;;  %11593 = vst.msk [vmem:[#allocation3 + $0x30] sm:$0xff] %vm11586_vm14, %v11557_v62 }
 0xfee   : > { %v11704_v10 = vmul.f32 %v11690_v55, %v20831_v20  ;;  %v11607_v38 = vld [vmem:[#allocation3 + $0x28] sm:$0xff]  ;;  %v11559_v0 = vpop.permute.xlu0 %11558 }
 0xfef   : > { %v11648_v8 = vadd.f32 %v22031_v35, %v11627_v36  ;;  %v11628_v37 = vmul.f32 %v22028_v50, %v11607_v38  ;;  %11594 = vst.msk [vmem:[#allocation3 + $0x38] sm:$0xff] %vm11586_vm14, %v11559_v0 }
 0xff0   : > { %v11716_v23 = vpack.c.bf16 %v11704_v10, %v11703_v34 }
 0xff1   : > { %vm11662_vm0 = vcmp.ge.f32.partialorder %v11648_v8, 0.0  ;;  %v11677_v1 = vmul.f32 %v22035_v63, %v11648_v8  ;;  %v11649_v2 = vadd.f32 %v22031_v35, %v11628_v37 }
 0xff2   : > { %v11730_v43 = vrot.slane %v11716_v23, 4 }
 0xff3   : > { %v11691_v18 = vsel %vm11662_vm0, %v11648_v8, %v11677_v1  ;;  %vm11663_vm2 = vcmp.ge.f32.partialorder %v11649_v2, 0.0  ;;  %v11678_v20 = vmul.f32 %v22035_v63, %v11649_v2  ;;  %v22064_v25 = vld [vmem:[#allocation4] sm:$0xff] }
 0xff4   : > { %v11608_v46 = vld [vmem:[#allocation3 + $0x30] sm:$0xff]  ;;  %15828 = vmatmul.mubr.msk.bf16.vlgmr.msra.gmra.mrb[84].mxu1 %vm11752_vm7, %v22064_v25  ;;  %v11561_v47 = vpop.permute.xlu1 %11560  ;;  %v11731_v14 = vsel %vm2563_vm8, %v11729_v56, %v11730_v43  ;;  %v11705_v32 = vmul.f32 %v11691_v18, %v20849_v22 }
 0xff5   : > { %v11692_v26 = vsel %vm11663_vm2, %v11649_v2, %v11678_v20  ;;  %v11629_v51 = vmul.f32 %v22028_v50, %v11608_v46  ;;  %11595 = vst.msk [vmem:[#allocation3 + $0x40] sm:$0xff] %vm11586_vm14, %v11561_v47  ;;  %15856 = vmatpush3.bf16.msra.mxu1 %v17674_v48  ;;  %15831 = vmatprep.mubr.msk.bf16.mxu1 %vm17847_vm15, %v22827_v53 }
 0xff6   : > { %11753 = vst.msk [vmem:[#allocation4 + $0x10] sm:$0xff] %vm11752_vm7, %v11731_v14  ;;  %v11706_v3 = vmul.f32 %v11692_v26, %v20854_v59  ;;  %v11609_v39 = vld [vmem:[#allocation3 + $0x38] sm:$0xff]  ;;  %v11563_v28 = vpop.permute.xlu0 %11562  ;;  %15857 = vmatprep.subr.bf16.mxu1 %v22827_v53 }
 0xff7   : > { %v11650_v54 = vadd.f32 %v22031_v35, %v11629_v51  ;;  %v11630_v19 = vmul.f32 %v22028_v50, %v11609_v39  ;;  %11596 = vst.msk [vmem:[#allocation3 + $0x48] sm:$0xff] %vm11586_vm14, %v11563_v28  ;;  %v17676_v59 = vld [vmem:[%s22871_s6 + $0x28] sm:$0xff]  }
 0xff8   : > { %v11717_v9 = vpack.c.bf16 %v11706_v3, %v11705_v32 }
 0xff9   : > { %vm11664_vm3 = vcmp.ge.f32.partialorder %v11650_v54, 0.0  ;;  %v11679_v17 = vmul.f32 %v22035_v63, %v11650_v54  ;;  %v11651_v44 = vadd.f32 %v22031_v35, %v11630_v19  ;;  %15858 = vmatpush3.bf16.msra.mxu1 %v17675_v27 }
 0xffa   : > { %v11732_v22 = vrot.slane %v11717_v9, 4  ;;  %15859 = vmatprep.subr.bf16.mxu1 %v22827_v53 }
 0xffb   : > { %v11693_v52 = vsel %vm11664_vm3, %v11650_v54, %v11679_v17  ;;  %vm11665_vm4 = vcmp.ge.f32.partialorder %v11651_v44, 0.0  ;;  %v11680_v58 = vmul.f32 %v22035_v63, %v11651_v44 }
 0xffc   : > { %v11610_v42 = vld [vmem:[#allocation3 + $0x40] sm:$0xff]  ;;  %v11565_v60 = vpop.permute.xlu1 %11564  ;;  %v11733_v11 = vsel %vm2563_vm8, %v11730_v43, %v11732_v22  ;;  %v11707_v16 = vmul.f32 %v11693_v52, %v20874_v6 }
 0xffd   : > { %v22086_v49 = vld [vmem:[#allocation4 + $0x10] sm:$0xff]  ;;  %v11694_v7 = vsel %vm11665_vm4, %v11651_v44, %v11680_v58  ;;  %v11631_v40 = vmul.f32 %v22028_v50, %v11610_v42  ;;  %11597 = vst.msk [vmem:[#allocation3 + $0x50] sm:$0xff] %vm11586_vm14, %v11565_v60  ;;  %15860 = vmatpush3.bf16.msra.mxu1 %v17676_v59 }
 0xffe   : > { %15832 = vmatmul.mubr.msk.bf16.gmra.mrb[88].mxu1 %vm11752_vm7, %v22086_v49  ;;  %11754 = vst.msk [vmem:[#allocation4 + $0x20] sm:$0xff] %vm11752_vm7, %v11733_v11  ;;  %v22095_v41 = vshll.u32 %v22086_v49, 16  ;;  %v22098_v24 = vshrl.u32 %v22086_v49, 16  ;;  %v11708_v31 = vmul.f32 %v11694_v7, %v20879_v61  ;;  %v11611_v13 = vld [vmem:[#allocation3 + $0x48] sm:$0xff]  ;;  %v11567_v12 = vpop.permute.xlu0 %11566  ;;  %15889 = vmatprep.subr.bf16.mxu1 %v22827_v53 }
 0xfff   : > { %15835 = vmatprep.mubr.msk.bf16.mxu1 %vm17847_vm15, %v22827_v53  ;;  %v11652_v4 = vadd.f32 %v22031_v35, %v11631_v40  ;;  %v11632_v56 = vmul.f32 %v22028_v50, %v11611_v13  ;;  %11598 = vst.msk [vmem:[#allocation3 + $0x58] sm:$0xff] %vm11586_vm14, %v11567_v12 }
0x1000   : > { %v12330_v33 = vrot.slane %v22098_v24, 3  ;;  %v11718_v57 = vpack.c.bf16 %v11708_v31, %v11707_v16  ;;  %v12331_v6 = vrot.slane %v22095_v41, 4  ;;  %v12688_v36 = vrot.slane %v22098_v24, 4 }
0x1001   : > { %vm11666_vm5 = vcmp.ge.f32.partialorder %v11652_v4, 0.0  ;;  %v11681_v61 = vmul.f32 %v22035_v63, %v11652_v4  ;;  %v11653_v15 = vadd.f32 %v22031_v35, %v11632_v56  ;;  %v12689_v38 = vrot.slane %v22095_v41, 5 }
0x1002   : > { %v11734_v62 = vrot.slane %v11718_v57, 4  ;;  %v22112_v55 = vor.u32 %v12331_v6, %v12330_v33 }
0x1003   : > { %v11695_v34 = vsel %vm11666_vm5, %v11652_v4, %v11681_v61  ;;  %vm11667_vm0 = vcmp.ge.f32.partialorder %v11653_v15, 0.0  ;;  %v11682_v10 = vmul.f32 %v22035_v63, %v11653_v15  ;;  %v22135_v14 = vor.u32 %v12689_v38, %v12688_v36 }
0x1004   : > { %v11612_v0 = vld [vmem:[#allocation3 + $0x50] sm:$0xff]  ;;  %v11569_v8 = vpop.permute.xlu1 %11568  ;;  %v11735_v23 = vsel %vm2563_vm8, %v11732_v22, %v11734_v62  ;;  %v11709_v18 = vmul.f32 %v11695_v34, %v20908_v30  ;;  %vm11759_vm5 = vcmask 388096  }
0x1005   : > { %v22117_v37 = vld [vmem:[#allocation4 + $0x20] sm:$0xff]  ;;  %v11696_v1 = vsel %vm11667_vm0, %v11653_v15, %v11682_v10  ;;  %v11633_v2 = vmul.f32 %v22028_v50, %v11612_v0  ;;  %11599 = vst.msk [vmem:[#allocation3 + $0x60] sm:$0xff] %vm11586_vm14, %v11569_v8 }
0x1006   : > { %15836 = vmatmul.mubr.msk.bf16.gmra.mrb[92].mxu1 %vm11752_vm7, %v22117_v37  ;;  %11755 = vst.msk [vmem:[#allocation4 + $0x30] sm:$0xff] %vm11752_vm7, %v11735_v23  ;;  %v22126_v48 = vshll.u32 %v22117_v37, 16  ;;  %v22129_v43 = vshrl.u32 %v22117_v37, 16  ;;  %v11710_v20 = vmul.f32 %v11696_v1, %v20913_v29  ;;  %v11613_v46 = vld [vmem:[#allocation3 + $0x58] sm:$0xff]  ;;  %v11571_v47 = vpop.permute.xlu0 %11570 }
0x1007   : > { %15839 = vmatprep.mubr.msk.bf16.mxu1 %vm17847_vm15, %v22827_v53  ;;  %v11654_v26 = vadd.f32 %v22031_v35, %v11633_v2  ;;  %v11634_v51 = vmul.f32 %v22028_v50, %v11613_v46  ;;  %11600 = vst.msk [vmem:[#allocation3 + $0x68] sm:$0xff] %vm11586_vm14, %v11571_v47  ;;  %v22875_v23 = vld [vmem:[#allocation44_spill] sm:$0xff] }
0x1008   : > { %v12334_v27 = vrot.slane %v22129_v43, 3  ;;  %v11719_v32 = vpack.c.bf16 %v11710_v20, %v11709_v18  ;;  %v12335_v30 = vrot.slane %v22126_v48, 4  ;;  %v12692_v9 = vrot.slane %v22129_v43, 4 }
0x1009   : > { %vm11668_vm2 = vcmp.ge.f32.partialorder %v11654_v26, 0.0  ;;  %v11683_v29 = vmul.f32 %v22035_v63, %v11654_v26  ;;  %v11655_v3 = vadd.f32 %v22031_v35, %v11634_v51  ;;  %v12693_v52 = vrot.slane %v22126_v48, 5 }
0x100a   : > { %v11736_v39 = vrot.slane %v11719_v32, 4  ;;  %v12336_v28 = vor.u32 %v12335_v30, %v12334_v27 }
0x100b   : > { %v11697_v54 = vsel %vm11668_vm2, %v11654_v26, %v11683_v29  ;;  %vm11669_vm3 = vcmp.ge.f32.partialorder %v11655_v3, 0.0  ;;  %v11684_v19 = vmul.f32 %v22035_v63, %v11655_v3  ;;  %v12694_v31 = vor.u32 %v12693_v52, %v12692_v9 }
0x100c   : > { %v11614_v17 = vld [vmem:[#allocation3 + $0x60] sm:$0xff]  ;;  %v11737_v22 = vsel %vm2563_vm8, %v11734_v62, %v11736_v39  ;;  %v22151_v59 = vsel %vm6284_vm6, %v22112_v55, %v12336_v28  ;;  %v11711_v7 = vmul.f32 %v11697_v54, %v20948_v21  ;;  %v13043_v29 = vrot.slane %v22098_v24, 7 }
0x100d   : > { %v22146_v44 = vld [vmem:[#allocation4 + $0x30] sm:$0xff]  ;;  %v11698_v58 = vsel %vm11669_vm3, %v11655_v3, %v11684_v19  ;;  %v11635_v42 = vmul.f32 %v22028_v50, %v11614_v17  ;;  %11756 = vst.msk [vmem:[#allocation4 + $0x40] sm:$0xff] %vm11752_vm7, %v11737_v22  ;;  %v22176_v61 = vsel %vm6875_vm9, %v22135_v14, %v12694_v31 }
0x100e   : > { %15840 = vmatmul.mubr.msk.bf16.gmra.mrb[96].mxu1 %vm11752_vm7, %v22146_v44  ;;  %v22159_v60 = vshll.u32 %v22146_v44, 16  ;;  %v22162_v11 = vshrl.u32 %v22146_v44, 16  ;;  %v11712_v40 = vmul.f32 %v11698_v58, %v20950_v45  ;;  %v11615_v16 = vld [vmem:[#allocation3 + $0x68] sm:$0xff]  ;;  %v22230_v17 = vor.u32 %v13043_v29, %v22095_v41 }
0x100f   : > { %15843 = vmatprep.mubr.msk.bf16.mxu1 %vm17847_vm15, %v22827_v53  ;;  %v11656_v13 = vadd.f32 %v22031_v35, %v11635_v42  ;;  %v11636_v12 = vmul.f32 %v22028_v50, %v11615_v16  ;;  %v11941_v16 = vshll.u32 %v22064_v25, 16 }
0x1010   : > { %v12338_v4 = vrot.slane %v22162_v11, 3  ;;  %v11720_v56 = vpack.c.bf16 %v11712_v40, %v11711_v7  ;;  %v12339_v33 = vrot.slane %v22159_v60, 4  ;;  %v12696_v62 = vrot.slane %v22162_v11, 4 }
0x1011   : > { %vm11670_vm14 = vcmp.ge.f32.partialorder %v11656_v13, 0.0  ;;  %v11685_v57 = vmul.f32 %v22035_v63, %v11656_v13  ;;  %v11657_v21 = vadd.f32 %v22031_v35, %v11636_v12  ;;  %v12697_v35 = vrot.slane %v22159_v60, 5 }
0x1012   : > { %v11738_v45 = vrot.slane %v11720_v56, 4  ;;  %v12340_v6 = vor.u32 %v12339_v33, %v12338_v4 }
0x1013   : > { %v11699_v15 = vsel %vm11670_vm14, %v11656_v13, %v11685_v57  ;;  %vm11671_vm4 = vcmp.ge.f32.partialorder %v11657_v21, 0.0  ;;  %v11686_v50 = vmul.f32 %v22035_v63, %v11657_v21  ;;  %v12698_v2 = vor.u32 %v12697_v35, %v12696_v62 }
0x1014   : > { %v22180_v36 = vld [vmem:[#allocation4 + $0x40] sm:$0xff]  ;;  %v11739_v34 = vsel %vm2563_vm8, %v11736_v39, %v11738_v45  ;;  %v22184_v10 = vsel %vm6284_vm6, %v12336_v28, %v12340_v6  ;;  %v11713_v8 = vmul.f32 %v11699_v15, %v20984_v5  ;;  %v13046_v28 = vrot.slane %v22129_v43, 7 }
0x1015   : > { %v11700_v38 = vsel %vm11671_vm4, %v11657_v21, %v11686_v50  ;;  %11757 = vst.msk [vmem:[#allocation4 + $0x50] sm:$0xff] %vm11752_vm7, %v11739_v34  ;;  %v22191_v0 = vshll.u32 %v22180_v36, 16  ;;  %v22194_v63 = vshrl.u32 %v22180_v36, 16  ;;  %v22203_v47 = vsel %vm6875_vm9, %v12694_v31, %v12698_v2 }
0x1016   : > { %15844 = vmatmul.mubr.msk.bf16.gmra.mrb[100].mxu1 %vm11752_vm7, %v22180_v36  ;;  %v11714_v1 = vmul.f32 %v11700_v38, %v22875_v23  ;;  %v13047_v22 = vor.u32 %v13046_v28, %v22126_v48  ;;  %v11943_v57 = vrot.slane %v11941_v16, 1  ;;  %v11948_v15 = vrot.slane %v22095_v41, 1  ;;  %v17677_v38 = vld [vmem:[%s22871_s6 + $0x30] sm:$0xff]  }
0x1017   : > { %15847 = vmatprep.mubr.msk.bf16.mxu1 %vm17847_vm15, %v22827_v53  ;;  %v12342_v18 = vrot.slane %v22194_v63, 3  ;;  %v12343_v20 = vrot.slane %v22191_v0, 4  ;;  %v12700_v26 = vrot.slane %v22194_v63, 4  ;;  %v12701_v5 = vrot.slane %v22191_v0, 5 }
0x1018   : > { %v11721_v46 = vpack.c.bf16 %v11714_v1, %v11713_v8  ;;  %v22239_v13 = vsel %vm7469_vm13, %v13043_v29, %v13047_v22  ;;  %v13052_v1 = vrot.slane %v22194_v63, 7  ;;  %v11952_v22 = vor.u32 %v22098_v24, %v11948_v15 }
0x1019   : > { %v12344_v51 = vor.u32 %v12343_v20, %v12342_v18  ;;  %v12702_v30 = vor.u32 %v12701_v5, %v12700_v26  ;;  %v11964_v24 = vrot.slane %v22159_v60, 1  ;;  %v11972_v16 = vrot.slane %v22191_v0, 1 }
0x101a   : > { %v11740_v27 = vrot.slane %v11721_v46, 4  ;;  %v17678_v46 = vld [vmem:[%s22871_s6 + $0x38] sm:$0xff]  }
0x101b   : > { %v22208_v32 = vsel %vm6284_vm6, %v12340_v6, %v12344_v51  ;;  %v22227_v9 = vsel %vm6875_vm9, %v12698_v2, %v12702_v30  ;;  %v11939_v6 = vshrl.u32 %v22064_v25, 16 }
0x101c   : > { %v22211_v3 = vld [vmem:[#allocation4 + $0x50] sm:$0xff]  ;;  %v11741_v39 = vsel %vm2563_vm8, %v11738_v45, %v11740_v27  ;;  %11760 = vst.msk [vmem:[#allocation4 + $0x70] sm:$0xf] %vm11759_vm5, %v11740_v27  ;;  %v13049_v45 = vrot.slane %v22162_v11, 7 }
0x101d   : > { %11758 = vst.msk [vmem:[#allocation4 + $0x60] sm:$0xff] %vm11752_vm7, %v11741_v39  ;;  %v22219_v54 = vshll.u32 %v22211_v3, 16  ;;  %v22222_v19 = vshrl.u32 %v22211_v3, 16  ;;  %v11944_v35 = vor.u32 %v11943_v57, %v11939_v6 }
0x101e   : > { %15848 = vmatmul.mubr.msk.bf16.gmra.mrb[104].mxu1 %vm11752_vm7, %v22211_v3  ;;  %v13050_v25 = vor.u32 %v13049_v45, %v22159_v60  ;;  %v11976_v60 = vor.u32 %v22194_v63, %v11972_v16 }
0x101f   : > { %15851 = vmatprep.mubr.msk.bf16.mxu1 %vm17847_vm15, %v22827_v53  ;;  %v12346_v52 = vrot.slane %v22222_v19, 3  ;;  %v12347_v58 = vrot.slane %v22219_v54, 4  ;;  %v12704_v42 = vrot.slane %v22222_v19, 4  ;;  %v12705_v7 = vrot.slane %v22219_v54, 5 }
0x1020   : > { %v11949_v41 = vsel %vm5640_vm10, %v11944_v35, %v11948_v15  ;;  %v22280_v20 = vsel %vm7469_vm13, %v13046_v28, %v13050_v25  ;;  %v13055_v5 = vrot.slane %v22222_v19, 7  ;;  %v17680_v35 = vld [vmem:[%s22871_s6 + $0x48] sm:$0xff]   ;;  %v17682_v25 = vld [vmem:[%s22871_s6 + $0x58] sm:$0xff]  }
0x1021   : > { %v12348_v40 = vor.u32 %v12347_v58, %v12346_v52  ;;  %v12706_v31 = vor.u32 %v12705_v7, %v12704_v42  ;;  %v17679_v52 = vld [vmem:[%s22871_s6 + $0x40] sm:$0xff]  }
0x1022   : > { %v13056_v39 = vor.u32 %v13055_v5, %v22219_v54 }
0x1023   : > { %v22242_v12 = vsel %vm6284_vm6, %v12344_v51, %v12348_v40  ;;  %v22262_v62 = vsel %vm6875_vm9, %v12702_v30, %v12706_v31  ;;  %v13053_v51 = vor.u32 %v13052_v1, %v22191_v0  ;;  %v11956_v30 = vrot.slane %v22126_v48, 1 }
0x1024   : > { %v22244_v4 = vld [vmem:[#allocation4 + $0x60] sm:$0xff]  ;;  %v22304_v58 = vsel %vm7469_vm13, %v13052_v1, %v13056_v39  ;;  %v12159_v1 = vrot.slane %v22117_v37, 1  ;;  %v12165_v39 = vrot.slane %v22211_v3, 1 }
0x1025   : > { %v22249_v56 = vshll.u32 %v22244_v4, 16  ;;  %v22252_v33 = vshrl.u32 %v22244_v4, 16  ;;  %v22295_v29 = vsel %vm7469_vm13, %v13049_v45, %v13053_v51  ;;  %v11957_v48 = vsel %vm5640_vm10, %v11952_v22, %v11956_v30  ;;  %v11930_v45 = vld [vmem:[#allocation4 + $0x70] sm:$0x1] }
0x1026   : > { %15852 = vmatmul.mubr.msk.bf16.gmra.mrb[108].mxu1 %vm11752_vm7, %v22244_v4  ;;  %v11960_v7 = vor.u32 %v22129_v43, %v11956_v30  ;;  %v11980_v43 = vrot.slane %v22219_v54, 1  ;;  %v11994_v63 = vshll.u32 %v11930_v45, 16  ;;  %v12167_v22 = vrot.slane %v22244_v4, 1 }
0x1027   : > { %15861 = vmatprep.mubr.msk.bf16.mxu1 %vm17847_vm15, %v22827_v53  ;;  %v12350_v21 = vrot.slane %v22252_v33, 3  ;;  %v12351_v50 = vrot.slane %v22249_v56, 4  ;;  %v12708_v34 = vrot.slane %v22252_v33, 4  ;;  %v12709_v23 = vrot.slane %v22249_v56, 5 }
0x1028   : > { %v13058_v27 = vrot.slane %v22252_v33, 7  ;;  %v11984_v0 = vor.u32 %v22222_v19, %v11980_v43  ;;  %v11996_v15 = vrot.slane %v11994_v63, 1  ;;  %v12140_v19 = vld [vmem:[#allocation4] sm:$0xfe] }
0x1029   : > { %v22266_v8 = vor.u32 %v12351_v50, %v12350_v21  ;;  %v22276_v18 = vor.u32 %v12709_v23, %v12708_v34  ;;  %v11981_v21 = vsel %vm5640_vm10, %v11976_v60, %v11980_v43  ;;  %v12156_v34 = vrot.slane %v12140_v19, 1  ;;  %v17681_v23 = vld [vmem:[%s22871_s6 + $0x50] sm:$0xff]   ;;  %v17683_v60 = vld [vmem:[%s22871_s6 + $0x60] sm:$0xff]  }
0x102a   : > { %v13059_v28 = vor.u32 %v13058_v27, %v22249_v56  ;;  %v12505_v63 = vld [vmem:[#allocation4] sm:$0xf0] }
0x102b   : > { %v22274_v2 = vsel %vm6284_vm6, %v12348_v40, %v22266_v8  ;;  %v22287_v26 = vsel %vm6875_vm9, %v12706_v31, %v22276_v18  ;;  %v11965_v40 = vsel %vm5640_vm10, %v11960_v7, %v11964_v24  ;;  %v11968_v31 = vor.u32 %v22162_v11, %v11964_v24  ;;  %v17687_v19 = vld [vmem:[%s22871_s6 + $0x80] sm:$0xff]  }
0x102c   : > { %v22307_v42 = vsel %vm7469_vm13, %v13055_v5, %v13059_v28  ;;  %v11988_v11 = vrot.slane %v22249_v56, 1  ;;  %v12157_v56 = vrot.slane %v22086_v49, 1  ;;  %v12163_v5 = vrot.slane %v22180_v36, 1 }
0x102d   : > { %v11973_v57 = vsel %vm5640_vm10, %v11968_v31, %v11972_v16  ;;  %v12169_v24 = vrot.slane %v11930_v45, 1 }
0x102e   : > { %15862 = vmatmul.mubr.msk.bf16.vlgmr.msra.gmra.mrb[84].mxu1 %vm11752_vm7, %v11949_v41  ;;  %v11989_v6 = vsel %vm5640_vm10, %v11984_v0, %v11988_v11  ;;  %v11992_v54 = vor.u32 %v22252_v33, %v11988_v11  ;;  %v12160_v41 = vsel %vm6014_vm11, %v12157_v56, %v12159_v1  ;;  %v12166_v28 = vsel %vm6014_vm11, %v12163_v5, %v12165_v39  ;;  %v17684_v11 = vld [vmem:[%s22871_s6 + $0x68] sm:$0xff]   ;;  %v17685_v0 = vld [vmem:[%s22871_s6 + $0x70] sm:$0xff]  }
0x102f   : > { %15890 = vmatpush3.bf16.msra.mxu1 %v17677_v38  ;;  %15865 = vmatprep.mubr.msk.bf16.mxu1 %vm17847_vm15, %v22827_v53  ;;  %v12158_v38 = vsel %vm6014_vm11, %v12156_v34, %v12157_v56  ;;  %v12170_v16 = vsel %vm6014_vm11, %v12167_v22, %v12169_v24  ;;  %v17688_v56 = vld [vmem:[%s22871_s6 + $0x88] sm:$0xff]   ;;  %v17689_v24 = vld [vmem:[%s22871_s6 + $0x90] sm:$0xff]  }
0x1030   : > { %15891 = vmatprep.subr.bf16.mxu1 %v22827_v53  ;;  %v11997_v50 = vsel %vm5640_vm10, %v11992_v54, %v11996_v15  ;;  %v12516_v54 = vrot.slane %v22086_v49, 4  ;;  %v12515_v15 = vrot.slane %v12505_v63, 4  ;;  %vm13409_vm10 = vcmask 490880  }
0x1033   : > { %15892 = vmatpush3.bf16.msra.mxu1 %v17678_v46  ;;  %v12161_v46 = vrot.slane %v22146_v44, 1 }
0x1034   : > { %15893 = vmatprep.subr.bf16.mxu1 %v22827_v53 }
0x1035   : > { %v12162_v51 = vsel %vm6014_vm11, %v12159_v1, %v12161_v46  ;;  %v12164_v30 = vsel %vm6014_vm11, %v12161_v46, %v12163_v5  ;;  %v12526_v46 = vrot.slane %v22244_v4, 4 }
0x1036   : > { %15866 = vmatmul.mubr.msk.bf16.gmra.mrb[88].mxu1 %vm11752_vm7, %v11957_v48  ;;  %v12313_v48 = vld [vmem:[#allocation4] sm:$0xf8] }
0x1037   : > { %15869 = vmatprep.mubr.msk.bf16.mxu1 %vm17847_vm15, %v22827_v53  ;;  %15894 = vmatpush3.bf16.msra.mxu1 %v17679_v52  ;;  %v12168_v52 = vsel %vm6014_vm11, %v12165_v39, %v12167_v22  ;;  %v12323_v7 = vshrl.u32 %v12313_v48, 16  ;;  %v12684_v39 = vshll.u32 %v12505_v63, 16 }
0x1038   : > { %15923 = vmatprep.subr.bf16.mxu1 %v22827_v53 }
0x1039   : > { %v12325_v31 = vrot.slane %v12323_v7, 3 }
0x103e   : > { %15870 = vmatmul.mubr.msk.bf16.gmra.mrb[92].mxu1 %vm11752_vm7, %v11965_v40  ;;  %v12326_v40 = vshll.u32 %v12313_v48, 16 }
0x103f   : > { %15873 = vmatprep.mubr.msk.bf16.mxu1 %vm17847_vm15, %v22827_v53 }
0x1046   : > { %15874 = vmatmul.mubr.msk.bf16.gmra.mrb[96].mxu1 %vm11752_vm7, %v11973_v57  ;;  %v12328_v57 = vrot.slane %v12326_v40, 4  ;;  %v17690_v40 = vld [vmem:[%s22871_s6 + $0x98] sm:$0xff]  }
0x1047   : > { %15877 = vmatprep.mubr.msk.bf16.mxu1 %vm17847_vm15, %v22827_v53 }
0x1048   : > { %v12329_v43 = vor.u32 %v12328_v57, %v12325_v31 }
0x104e   : > { %15878 = vmatmul.mubr.msk.bf16.gmra.mrb[100].mxu1 %vm11752_vm7, %v11981_v21  ;;  %v12333_v21 = vsel %vm6284_vm6, %v12329_v43, %v22112_v55  ;;  %v12314_v55 = vld [vmem:[#allocation4 + $0x70] sm:$0xf]  ;;  %v12863_v43 = vld [vmem:[#allocation4] sm:$0x80] }
0x104f   : > { %15881 = vmatprep.mubr.msk.bf16.mxu1 %vm17847_vm15, %v22827_v53  ;;  %v12358_v45 = vshll.u32 %v12314_v55, 16  ;;  %v12528_v5 = vrot.slane %v12314_v55, 4 }
0x1056   : > { %15882 = vmatmul.mubr.msk.bf16.gmra.mrb[104].mxu1 %vm11752_vm7, %v11989_v6  ;;  %v12360_v6 = vrot.slane %v12358_v45, 4  ;;  %v12879_v45 = vrot.slane %v22146_v44, 7 }
0x1057   : > { %15885 = vmatprep.mubr.msk.bf16.mxu1 %vm17847_vm15, %v22827_v53 }
0x105e   : > { %15886 = vmatmul.mubr.msk.bf16.gmra.mrb[108].mxu1 %vm11752_vm7, %v11997_v50  ;;  %v17686_v50 = vld [vmem:[%s22871_s6 + $0x78] sm:$0xff]  }
0x105f   : > { %15895 = vmatprep.mubr.msk.bf16.mxu1 %vm17847_vm15, %v22827_v53 }
0x1066   : > { %15896 = vmatmul.mubr.msk.bf16.vlgmr.msra.gmra.mrb[84].mxu1 %vm11752_vm7, %v12158_v38 }
0x1067   : > { %15924 = vmatpush3.bf16.msra.mxu1 %v17680_v35  ;;  %15899 = vmatprep.mubr.msk.bf16.mxu1 %vm17847_vm15, %v22827_v53  ;;  %v12520_v35 = vrot.slane %v22146_v44, 4 }
0x1068   : > { %15925 = vmatprep.subr.bf16.mxu1 %v22827_v53 }
0x106b   : > { %15926 = vmatpush3.bf16.msra.mxu1 %v17681_v23  ;;  %v12522_v23 = vrot.slane %v22180_v36, 4 }
0x106c   : > { %15927 = vmatprep.subr.bf16.mxu1 %v22827_v53 }
0x106d   : > { %v12523_v1 = vsel %vm2563_vm8, %v12520_v35, %v12522_v23 }
0x106e   : > { %15900 = vmatmul.mubr.msk.bf16.gmra.mrb[88].mxu1 %vm11752_vm7, %v12160_v41 }
0x106f   : > { %15903 = vmatprep.mubr.msk.bf16.mxu1 %vm17847_vm15, %v22827_v53  ;;  %15928 = vmatpush3.bf16.msra.mxu1 %v17682_v25  ;;  %v12524_v25 = vrot.slane %v22211_v3, 4 }
0x1070   : > { %15957 = vmatprep.subr.bf16.mxu1 %v22827_v53 }
0x1071   : > { %v12525_v41 = vsel %vm2563_vm8, %v12522_v23, %v12524_v25  ;;  %v17697_v23 = vld [vmem:[%s22871_s6 + $0xd0] sm:$0xff]  }
0x1076   : > { %15904 = vmatmul.mubr.msk.bf16.gmra.mrb[92].mxu1 %vm11752_vm7, %v12162_v51  ;;  %v12527_v51 = vsel %vm2563_vm8, %v12524_v25, %v12526_v46 }
0x1077   : > { %15907 = vmatprep.mubr.msk.bf16.mxu1 %vm17847_vm15, %v22827_v53 }
0x107e   : > { %15908 = vmatmul.mubr.msk.bf16.gmra.mrb[96].mxu1 %vm11752_vm7, %v12164_v30  ;;  %v12681_v30 = vshrl.u32 %v12505_v63, 16 }
0x107f   : > { %15911 = vmatprep.mubr.msk.bf16.mxu1 %vm17847_vm15, %v22827_v53 }
0x1080   : > { %v12683_v22 = vrot.slane %v12681_v30, 4 }
0x1086   : > { %15912 = vmatmul.mubr.msk.bf16.gmra.mrb[100].mxu1 %vm11752_vm7, %v12166_v28  ;;  %v12529_v28 = vsel %vm2563_vm8, %v12526_v46, %v12528_v5 }
0x1087   : > { %15915 = vmatprep.mubr.msk.bf16.mxu1 %vm17847_vm15, %v22827_v53 }
0x108e   : > { %15916 = vmatmul.mubr.msk.bf16.gmra.mrb[104].mxu1 %vm11752_vm7, %v12168_v52  ;;  %v12686_v52 = vrot.slane %v12684_v39, 5 }
0x108f   : > { %15919 = vmatprep.mubr.msk.bf16.mxu1 %vm17847_vm15, %v22827_v53 }
0x1090   : > { %v12687_v48 = vor.u32 %v12686_v52, %v12683_v22 }
0x1092   : > { %v12691_v7 = vsel %vm6875_vm9, %v12687_v48, %v22135_v14  ;;  %v12672_v14 = vld [vmem:[#allocation4 + $0x70] sm:$0x1f] }
0x1093   : > { %v12716_v31 = vshll.u32 %v12672_v14, 16 }
0x1095   : > { %v12718_v57 = vrot.slane %v12716_v31, 5 }
0x1096   : > { %15920 = vmatmul.mubr.msk.bf16.gmra.mrb[108].mxu1 %vm11752_vm7, %v12170_v16  ;;  %v17691_v16 = vld [vmem:[%s22871_s6 + $0xa0] sm:$0xff]  }
0x1097   : > { %15929 = vmatprep.mubr.msk.bf16.mxu1 %vm17847_vm15, %v22827_v53 }
0x109e   : > { %15930 = vmatmul.mubr.msk.bf16.vlgmr.msra.gmra.mrb[84].mxu1 %vm11752_vm7, %v12333_v21  ;;  %v12874_v21 = vrot.slane %v12863_v43, 7 }
0x109f   : > { %15958 = vmatpush3.bf16.msra.mxu1 %v17683_v60  ;;  %15933 = vmatprep.mubr.msk.bf16.mxu1 %vm17847_vm15, %v22827_v53  ;;  %v12875_v60 = vrot.slane %v22086_v49, 7 }
0x10a0   : > { %15959 = vmatprep.subr.bf16.mxu1 %v22827_v53 }
0x10a3   : > { %15960 = vmatpush3.bf16.msra.mxu1 %v17684_v11  ;;  %v17692_v11 = vld [vmem:[%s22871_s6 + $0xa8] sm:$0xff]  }
0x10a4   : > { %15961 = vmatprep.subr.bf16.mxu1 %v22827_v53 }
0x10a6   : > { %15934 = vmatmul.mubr.msk.bf16.gmra.mrb[88].mxu1 %vm11752_vm7, %v22151_v59  ;;  %v12355_v59 = vshrl.u32 %v12314_v55, 16  ;;  %v17694_v55 = vld [vmem:[%s22871_s6 + $0xb8] sm:$0xff]  }
0x10a7   : > { %15937 = vmatprep.mubr.msk.bf16.mxu1 %vm17847_vm15, %v22827_v53  ;;  %15962 = vmatpush3.bf16.msra.mxu1 %v17685_v0  ;;  %v17693_v0 = vld [vmem:[%s22871_s6 + $0xb0] sm:$0xff]  }
0x10a8   : > { %15991 = vmatprep.subr.bf16.mxu1 %v22827_v53 }
0x10ae   : > { %15938 = vmatmul.mubr.msk.bf16.gmra.mrb[92].mxu1 %vm11752_vm7, %v22184_v10  ;;  %v12357_v10 = vrot.slane %v12355_v59, 3 }
0x10af   : > { %15941 = vmatprep.mubr.msk.bf16.mxu1 %vm17847_vm15, %v22827_v53 }
0x10b6   : > { %15942 = vmatmul.mubr.msk.bf16.gmra.mrb[96].mxu1 %vm11752_vm7, %v22208_v32  ;;  %v12361_v32 = vor.u32 %v12360_v6, %v12357_v10  ;;  %v12881_v6 = vrot.slane %v22180_v36, 7 }
0x10b7   : > { %15945 = vmatprep.mubr.msk.bf16.mxu1 %vm17847_vm15, %v22827_v53 }
0x10be   : > { %15946 = vmatmul.mubr.msk.bf16.gmra.mrb[100].mxu1 %vm11752_vm7, %v22242_v12  ;;  %v12362_v12 = vsel %vm6284_vm6, %v22266_v8, %v12361_v32  ;;  %v12518_v8 = vrot.slane %v22117_v37, 4  ;;  %v12882_v32 = vsel %vm7201_vm12, %v12879_v45, %v12881_v6 }
0x10bf   : > { %15949 = vmatprep.mubr.msk.bf16.mxu1 %vm17847_vm15, %v22827_v53 }
0x10c0   : > { %v12519_v34 = vsel %vm2563_vm8, %v12516_v54, %v12518_v8  ;;  %v12521_v38 = vsel %vm2563_vm8, %v12518_v8, %v12520_v35  ;;  %v13040_v8 = vshrl.u32 %v12863_v43, 16 }
0x10c6   : > { %15950 = vmatmul.mubr.msk.bf16.gmra.mrb[104].mxu1 %vm11752_vm7, %v22274_v2  ;;  %v12517_v2 = vsel %vm2563_vm8, %v12515_v15, %v12516_v54  ;;  %v12885_v54 = vrot.slane %v22244_v4, 7 }
0x10c7   : > { %15953 = vmatprep.mubr.msk.bf16.mxu1 %vm17847_vm15, %v22827_v53 }
0x10ce   : > { %15954 = vmatmul.mubr.msk.bf16.gmra.mrb[108].mxu1 %vm11752_vm7, %v12362_v12  ;;  %v12883_v12 = vrot.slane %v22211_v3, 7 }
0x10cf   : > { %15963 = vmatprep.mubr.msk.bf16.mxu1 %vm17847_vm15, %v22827_v53 }
0x10d0   : > { %v12884_v63 = vsel %vm7201_vm12, %v12881_v6, %v12883_v12  ;;  %v12886_v15 = vsel %vm7201_vm12, %v12883_v12, %v12885_v54 }
0x10d6   : > { %15964 = vmatmul.mubr.msk.bf16.vlgmr.msra.gmra.mrb[84].mxu1 %vm11752_vm7, %v12517_v2 }
0x10d7   : > { %15992 = vmatpush3.bf16.msra.mxu1 %v17686_v50  ;;  %15967 = vmatprep.mubr.msk.bf16.mxu1 %vm17847_vm15, %v22827_v53  ;;  %v12864_v50 = vld [vmem:[#allocation4 + $0x70] sm:$0x7f] }
0x10d8   : > { %15993 = vmatprep.subr.bf16.mxu1 %v22827_v53  ;;  %v12887_v2 = vrot.slane %v12864_v50, 7  ;;  %v22618_v50 = vld [vmem:[%s22878_s9] ss:$0 sm:$0xff] }
0x10db   : > { %15994 = vmatpush3.bf16.msra.mxu1 %v17687_v19  ;;  %v12888_v19 = vsel %vm7201_vm12, %v12885_v54, %v12887_v2 }
0x10dc   : > { %15995 = vmatprep.subr.bf16.mxu1 %v22827_v53 }
0x10de   : > { %15968 = vmatmul.mubr.msk.bf16.gmra.mrb[88].mxu1 %vm11752_vm7, %v12519_v34  ;;  %v17695_v34 = vld [vmem:[%s22871_s6 + $0xc0] sm:$0xff]  }
0x10df   : > { %15971 = vmatprep.mubr.msk.bf16.mxu1 %vm17847_vm15, %v22827_v53  ;;  %15996 = vmatpush3.bf16.msra.mxu1 %v17688_v56  ;;  %v13042_v56 = vrot.slane %v13040_v8, 7 }
0x10e0   : > { %16025 = vmatprep.subr.bf16.mxu1 %v22827_v53 }
0x10e1   : > { %v13045_v35 = vsel %vm7469_vm13, %v13042_v56, %v22230_v17  ;;  %v13031_v17 = vld [vmem:[#allocation4 + $0x70] sm:$0xff]  ;;  %v22622_v56 = vstv %s14768_s1  ;;  %s14774_s1 = sshll.u32 %s18097_s0, 5  ;;  %s17855_s0 = smov [#allocation8]  }
0x10e2   : > { %s22699_s8 = scalar_lea.hbm %s18074_s27, %s14774_s1 }
0x10e6   : > { %15972 = vmatmul.mubr.msk.bf16.gmra.mrb[92].mxu1 %vm11752_vm7, %v12521_v38  ;;  %v17696_v38 = vld [vmem:[%s22871_s6 + $0xc8] sm:$0xff]  }
0x10e7   : > { %15975 = vmatprep.mubr.msk.bf16.mxu1 %vm17847_vm15, %v22827_v53 }
0x10ee   : > { %15976 = vmatmul.mubr.msk.bf16.gmra.mrb[96].mxu1 %vm11752_vm7, %v12523_v1 }
0x10ef   : > { %15979 = vmatprep.mubr.msk.bf16.mxu1 %vm17847_vm15, %v22827_v53 }
0x10f6   : > { %15980 = vmatmul.mubr.msk.bf16.gmra.mrb[100].mxu1 %vm11752_vm7, %v12525_v41 }
0x10f7   : > { %15983 = vmatprep.mubr.msk.bf16.mxu1 %vm17847_vm15, %v22827_v53 }
0x10fe   : > { %15984 = vmatmul.mubr.msk.bf16.gmra.mrb[104].mxu1 %vm11752_vm7, %v12527_v51 }
0x10ff   : > { %15987 = vmatprep.mubr.msk.bf16.mxu1 %vm17847_vm15, %v22827_v53 }
0x1106   : > { %15988 = vmatmul.mubr.msk.bf16.gmra.mrb[108].mxu1 %vm11752_vm7, %v12529_v28 }
0x1107   : > { %15997 = vmatprep.mubr.msk.bf16.mxu1 %vm17847_vm15, %v22827_v53 }
0x110e   : > { %15998 = vmatmul.mubr.msk.bf16.vlgmr.msra.gmra.mrb[84].mxu1 %vm11752_vm7, %v12691_v7 }
0x110f   : > { %16026 = vmatpush3.bf16.msra.mxu1 %v17689_v24  ;;  %16001 = vmatprep.mubr.msk.bf16.mxu1 %vm17847_vm15, %v22827_v53 }
0x1110   : > { %16027 = vmatprep.subr.bf16.mxu1 %v22827_v53 }
0x1113   : > { %16028 = vmatpush3.bf16.msra.mxu1 %v17690_v40 }
0x1114   : > { %16029 = vmatprep.subr.bf16.mxu1 %v22827_v53 }
0x1116   : > { %16002 = vmatmul.mubr.msk.bf16.gmra.mrb[88].mxu1 %vm11752_vm7, %v22176_v61  ;;  %v12713_v61 = vshrl.u32 %v12672_v14, 16 }
0x1117   : > { %16005 = vmatprep.mubr.msk.bf16.mxu1 %vm17847_vm15, %v22827_v53  ;;  %16030 = vmatpush3.bf16.msra.mxu1 %v17691_v16 }
0x1118   : > { %16059 = vmatprep.subr.bf16.mxu1 %v22827_v53 }
0x111e   : > { %16006 = vmatmul.mubr.msk.bf16.gmra.mrb[92].mxu1 %vm11752_vm7, %v22203_v47  ;;  %v12715_v47 = vrot.slane %v12713_v61, 4 }
0x111f   : > { %16009 = vmatprep.mubr.msk.bf16.mxu1 %vm17847_vm15, %v22827_v53 }
0x1126   : > { %16010 = vmatmul.mubr.msk.bf16.gmra.mrb[96].mxu1 %vm11752_vm7, %v22227_v9  ;;  %v12719_v9 = vor.u32 %v12718_v57, %v12715_v47 }
0x1127   : > { %16013 = vmatprep.mubr.msk.bf16.mxu1 %vm17847_vm15, %v22827_v53 }
0x112e   : > { %16014 = vmatmul.mubr.msk.bf16.gmra.mrb[100].mxu1 %vm11752_vm7, %v22262_v62  ;;  %v12720_v62 = vsel %vm6875_vm9, %v22276_v18, %v12719_v9  ;;  %v12877_v18 = vrot.slane %v22117_v37, 7 }
0x112f   : > { %16017 = vmatprep.mubr.msk.bf16.mxu1 %vm17847_vm15, %v22827_v53 }
0x1130   : > { %v12878_v59 = vsel %vm7201_vm12, %v12875_v60, %v12877_v18  ;;  %v12880_v10 = vsel %vm7201_vm12, %v12877_v18, %v12879_v45 }
0x1136   : > { %16018 = vmatmul.mubr.msk.bf16.gmra.mrb[104].mxu1 %vm11752_vm7, %v22287_v26  ;;  %v12876_v26 = vsel %vm7201_vm12, %v12874_v21, %v12875_v60 }
0x1137   : > { %16021 = vmatprep.mubr.msk.bf16.mxu1 %vm17847_vm15, %v22827_v53 }
0x113e   : > { %16022 = vmatmul.mubr.msk.bf16.gmra.mrb[108].mxu1 %vm11752_vm7, %v12720_v62 }
0x113f   : > { %16031 = vmatprep.mubr.msk.bf16.mxu1 %vm17847_vm15, %v22827_v53 }
0x1146   : > { %16032 = vmatmul.mubr.msk.bf16.vlgmr.msra.gmra.mrb[84].mxu1 %vm11752_vm7, %v12876_v26 }
0x1147   : > { %16060 = vmatpush3.bf16.msra.mxu1 %v17692_v11  ;;  %16035 = vmatprep.mubr.msk.bf16.mxu1 %vm17847_vm15, %v22827_v53 }
0x1148   : > { %16061 = vmatprep.subr.bf16.mxu1 %v22827_v53 }
0x114b   : > { %16062 = vmatpush3.bf16.msra.mxu1 %v17693_v0 }
0x114c   : > { %16063 = vmatprep.subr.bf16.mxu1 %v22827_v53 }
0x114e   : > { %16036 = vmatmul.mubr.msk.bf16.gmra.mrb[88].mxu1 %vm11752_vm7, %v12878_v59 }
0x114f   : > { %16039 = vmatprep.mubr.msk.bf16.mxu1 %vm17847_vm15, %v22827_v53  ;;  %16064 = vmatpush3.bf16.msra.mxu1 %v17694_v55 }
0x1150   : > { %16093 = vmatprep.subr.bf16.mxu1 %v22827_v53 }
0x1156   : > { %16040 = vmatmul.mubr.msk.bf16.gmra.mrb[92].mxu1 %vm11752_vm7, %v12880_v10 }
0x1157   : > { %16043 = vmatprep.mubr.msk.bf16.mxu1 %vm17847_vm15, %v22827_v53 }
0x115e   : > { %16044 = vmatmul.mubr.msk.bf16.gmra.mrb[96].mxu1 %vm11752_vm7, %v12882_v32 }
0x115f   : > { %16047 = vmatprep.mubr.msk.bf16.mxu1 %vm17847_vm15, %v22827_v53 }
0x1166   : > { %16048 = vmatmul.mubr.msk.bf16.gmra.mrb[100].mxu1 %vm11752_vm7, %v12884_v63  ;;  %v22615_v63 = vld [vmem:[%s22877_s5] ss:$0 sm:$0xff] }
0x1167   : > { %16051 = vmatprep.mubr.msk.bf16.mxu1 %vm17847_vm15, %v22827_v53 }
0x116e   : > { %16052 = vmatmul.mubr.msk.bf16.gmra.mrb[104].mxu1 %vm11752_vm7, %v12886_v15 }
0x116f   : > { %16055 = vmatprep.mubr.msk.bf16.mxu1 %vm17847_vm15, %v22827_v53 }
0x1176   : > { %16056 = vmatmul.mubr.msk.bf16.gmra.mrb[108].mxu1 %vm11752_vm7, %v12888_v19 }
0x1177   : > { %16065 = vmatprep.mubr.msk.bf16.mxu1 %vm17847_vm15, %v22827_v53 }
0x117e   : > { %16066 = vmatmul.mubr.msk.bf16.vlgmr.msra.gmra.mrb[84].mxu1 %vm11752_vm7, %v13045_v35 }
0x117f   : > { %16094 = vmatpush3.bf16.msra.mxu1 %v17695_v34  ;;  %16069 = vmatprep.mubr.msk.bf16.mxu1 %vm17847_vm15, %v22827_v53 }
0x1180   : > { %16095 = vmatprep.subr.bf16.mxu1 %v22827_v53 }
0x1183   : > { %16096 = vmatpush3.bf16.msra.mxu1 %v17696_v38 }
0x1184   : > { %16097 = vmatprep.subr.bf16.mxu1 %v22827_v53 }
0x1186   : > { %16070 = vmatmul.mubr.msk.bf16.gmra.mrb[88].mxu1 %vm11752_vm7, %v22239_v13  ;;  %v13062_v13 = vshrl.u32 %v13031_v17, 16 }
0x1187   : > { %16073 = vmatprep.mubr.msk.bf16.mxu1 %vm17847_vm15, %v22827_v53  ;;  %16098 = vmatpush3.bf16.msra.mxu1 %v17697_v23 }
0x1188   : > { %v13064_v1 = vrot.slane %v13062_v13, 7 }
0x118e   : > { %16074 = vmatmul.mubr.msk.bf16.gmra.mrb[92].mxu1 %vm11752_vm7, %v22280_v20  ;;  %v13065_v20 = vshll.u32 %v13031_v17, 16 }
0x118f   : > { %16077 = vmatprep.mubr.msk.bf16.mxu1 %vm17847_vm15, %v22827_v53 }
0x1196   : > { %16078 = vmatmul.mubr.msk.bf16.gmra.mrb[96].mxu1 %vm11752_vm7, %v22295_v29  ;;  %v13067_v29 = vor.u32 %v13065_v20, %v13064_v1 }
0x1197   : > { %16081 = vmatprep.mubr.msk.bf16.mxu1 %vm17847_vm15, %v22827_v53 }
0x1198   : > { %v13068_v25 = vsel %vm7469_vm13, %v13058_v27, %v13067_v29 }
0x119e   : > { %16082 = vmatmul.mubr.msk.bf16.gmra.mrb[100].mxu1 %vm11752_vm7, %v22304_v58 }
0x119f   : > { %16085 = vmatprep.mubr.msk.bf16.mxu1 %vm17847_vm15, %v22827_v53 }
0x11a6   : > { %16086 = vmatmul.mubr.msk.bf16.gmra.mrb[104].mxu1 %vm11752_vm7, %v22307_v42 }
0x11a7   : > { %16089 = vmatprep.mubr.msk.bf16.mxu1 %vm17847_vm15, %v22827_v53 }
0x11ae   : > { %16090 = vmatmul.mubr.msk.bf16.gmra.mrb[108].mxu1 %vm11752_vm7, %v13068_v25 }
0x11af   : > { %16099 = vmatprep.mubr.msk.bf16.mxu1 %vm17847_vm15, %v22827_v53 }
0x11b6   : > { %16100 = vmatmul.mubr.msk.bf16.vlgmr.msra.gmra.mrb[84].mxu1 %vm11752_vm7, %v22086_v49  ;;  %v14627_v49 = vld [vmem:[%s22876_s3] ss:$0 sm:$0xff]  ;;  %s22879_s3 = sld [smem:[#allocation13_spill]] }
0x11b7   : > { %16103 = vmatprep.mubr.msk.bf16.mxu1 %vm17847_vm15, %v22827_v53 }
0x11be   : > { %16104 = vmatmul.mubr.msk.bf16.gmra.mrb[88].mxu1 %vm11752_vm7, %v22117_v37 }
0x11bf   : > { %16107 = vmatprep.mubr.msk.bf16.mxu1 %vm17847_vm15, %v22827_v53 }
0x11c6   : > { %16108 = vmatmul.mubr.msk.bf16.gmra.mrb[92].mxu1 %vm11752_vm7, %v22146_v44 }
0x11c7   : > { %16111 = vmatprep.mubr.msk.bf16.mxu1 %vm17847_vm15, %v22827_v53 }
0x11ce   : > { %16112 = vmatmul.mubr.msk.bf16.gmra.mrb[96].mxu1 %vm11752_vm7, %v22180_v36 }
0x11cf   : > { %16115 = vmatprep.mubr.msk.bf16.mxu1 %vm17847_vm15, %v22827_v53 }
0x11d6   : > { %16116 = vmatmul.mubr.msk.bf16.gmra.mrb[100].mxu1 %vm11752_vm7, %v22211_v3 }
0x11d7   : > { %16119 = vmatprep.mubr.msk.bf16.mxu1 %vm17847_vm15, %v22827_v53 }
0x11de   : > { %16120 = vmatmul.mubr.msk.bf16.gmra.mrb[104].mxu1 %vm11752_vm7, %v22244_v4 }
0x11df   : > { %16123 = vmatprep.mubr.msk.bf16.mxu1 %vm17847_vm15, %v22827_v53 }
0x11e6   : > { %16124 = vmatmul.mubr.msk.bf16.gmra.mrb[108].mxu1 %vm11752_vm7, %v13031_v17 }
0x1289   : > { %v13284_v37 = vpop.f32.mrb[84].mxu1 }
0x128a   : > { %v16247_v44 = vadd.f32 %v14627_v49, %v13284_v37  ;;  %v16101_v36 = vpop.f32.mrb[85].mxu1 }
0x128b   : > { %v13287_v33 = vpop.f32.mrb[86].mxu1 }
0x128c   : > { %v16248_v27 = vadd.f32 %v14627_v49, %v13287_v33  ;;  %13367 = vrot.lane.b32.xlu1 %v16247_v44, %s17852_s11  ;;  %v16102_v3 = vpop.f32.mrb[87].mxu1 }
0x128e   : > { %13369 = vrot.lane.b32.xlu0 %v16248_v27, %s17852_s11 }
0x1291   : > { %v13292_v58 = vpop.f32.mrb[88].mxu1 }
0x1292   : > { %v16249_v42 = vadd.f32 %v14627_v49, %v13292_v58  ;;  %v16105_v4 = vpop.f32.mrb[89].mxu1 }
0x1293   : > { %v13295_v41 = vpop.f32.mrb[90].mxu1 }
0x1294   : > { %v16250_v46 = vadd.f32 %v14627_v49, %v13295_v41  ;;  %13371 = vrot.lane.b32.xlu1 %v16249_v42, %s17852_s11  ;;  %v16106_v51 = vpop.f32.mrb[91].mxu1 }
0x1296   : > { %13373 = vrot.lane.b32.xlu0 %v16250_v46, %s17852_s11 }
0x1299   : > { %v13300_v5 = vpop.f32.mrb[92].mxu1 }
0x129a   : > { %v16251_v30 = vadd.f32 %v14627_v49, %v13300_v5  ;;  %v16109_v39 = vpop.f32.mrb[93].mxu1 }
0x129b   : > { %v13303_v28 = vpop.f32.mrb[94].mxu1 }
0x129c   : > { %v16252_v22 = vadd.f32 %v14627_v49, %v13303_v28  ;;  %13375 = vrot.lane.b32.xlu1 %v16251_v30, %s17852_s11  ;;  %v16110_v52 = vpop.f32.mrb[95].mxu1 }
0x129e   : > { %13377 = vrot.lane.b32.xlu0 %v16252_v22, %s17852_s11 }
0x12a1   : > { %v13308_v48 = vpop.f32.mrb[96].mxu1 }
0x12a2   : > { %v16253_v24 = vadd.f32 %v14627_v49, %v13308_v48  ;;  %v16113_v7 = vpop.f32.mrb[97].mxu1 }
0x12a3   : > { %v13311_v40 = vpop.f32.mrb[98].mxu1 }
0x12a4   : > { %v16254_v16 = vadd.f32 %v14627_v49, %v13311_v40  ;;  %13379 = vrot.lane.b32.xlu1 %v16253_v24, %s17852_s11  ;;  %v16114_v14 = vpop.f32.mrb[99].mxu1 }
0x12a6   : > { %13381 = vrot.lane.b32.xlu0 %v16254_v16, %s17852_s11 }
0x12a9   : > { %v13316_v61 = vpop.f32.mrb[100].mxu1 }
0x12aa   : > { %v16255_v31 = vadd.f32 %v14627_v49, %v13316_v61  ;;  %v16117_v47 = vpop.f32.mrb[101].mxu1 }
0x12ab   : > { %v13319_v57 = vpop.f32.mrb[102].mxu1 }
0x12ac   : > { %v16256_v9 = vadd.f32 %v14627_v49, %v13319_v57  ;;  %13383 = vrot.lane.b32.xlu1 %v16255_v31, %s17852_s11  ;;  %v16118_v62 = vpop.f32.mrb[103].mxu1 }
0x12ae   : > { %13385 = vrot.lane.b32.xlu0 %v16256_v9, %s17852_s11 }
0x12b1   : > { %v13324_v43 = vpop.f32.mrb[104].mxu1 }
0x12b2   : > { %v16257_v60 = vadd.f32 %v14627_v49, %v13324_v43  ;;  %v16121_v21 = vpop.f32.mrb[105].mxu1 }
0x12b3   : > { %v13327_v11 = vpop.f32.mrb[106].mxu1 }
0x12b4   : > { %v16258_v26 = vadd.f32 %v14627_v49, %v13327_v11  ;;  %13387 = vrot.lane.b32.xlu1 %v16257_v60, %s17852_s11  ;;  %v16122_v0 = vpop.f32.mrb[107].mxu1 }
0x12b6   : > { %13389 = vrot.lane.b32.xlu0 %v16258_v26, %s17852_s11 }
0x12b9   : > { %v13332_v18 = vpop.f32.mrb[108].mxu1 }
0x12ba   : > { %v16259_v55 = vadd.f32 %v14627_v49, %v13332_v18  ;;  %v16125_v59 = vpop.f32.mrb[109].mxu1 }
0x12bb   : > { %v13335_v45 = vpop.f32.mrb[110].mxu1 }
0x12bc   : > { %v16260_v10 = vadd.f32 %v14627_v49, %v13335_v45  ;;  %13391 = vrot.lane.b32.xlu1 %v16259_v55, %s17852_s11  ;;  %v16126_v6 = vpop.f32.mrb[111].mxu1 }
0x12be   : > { %13393 = vrot.lane.b32.xlu0 %v16260_v10, %s17852_s11  ;;  %s1272_s11 = sand.u32 1, %s17791_s16  }
0x12bf   : > { %s13802_s5 = sshll.u32 %s1272_s11, 1  ;;  %s13670_s9 = scalar_lea.sflag [#allocation6], %s1272_s11 }
0x12fe   : > { %v13368_v32 = vpop.permute.xlu1 %13367 }
0x12ff   : > { %13410 = vst.msk [vmem:[#allocation3] sm:$0xff] %vm13409_vm10, %v13368_v32 }
0x1300   : > { %v13370_v12 = vpop.permute.xlu0 %13369 }
0x1301   : > { %13411 = vst.msk [vmem:[#allocation3 + $0x8] sm:$0xff] %vm13409_vm10, %v13370_v12 }
0x1306   : > { %v13372_v54 = vpop.permute.xlu1 %13371  ;;  %v13424_v15 = vld [vmem:[#allocation3] sm:$0xff] }
0x1307   : > { %13412 = vst.msk [vmem:[#allocation3 + $0x10] sm:$0xff] %vm13409_vm10, %v13372_v54  ;;  %v13445_v2 = vmul.f32 %v22615_v63, %v13424_v15 }
0x1308   : > { %v13374_v19 = vpop.permute.xlu0 %13373  ;;  %v13425_v8 = vld [vmem:[#allocation3 + $0x8] sm:$0xff] }
0x1309   : > { %13413 = vst.msk [vmem:[#allocation3 + $0x18] sm:$0xff] %vm13409_vm10, %v13374_v19  ;;  %v13446_v34 = vmul.f32 %v22615_v63, %v13425_v8  ;;  %v13466_v35 = vadd.f32 %v22618_v50, %v13445_v2 }
0x130b   : > { %v13467_v38 = vadd.f32 %v22618_v50, %v13446_v34  ;;  %v13496_v23 = vmul.f32 %v22622_v56, %v13466_v35  ;;  %vm13481_vm11 = vcmp.ge.f32.partialorder %v13466_v35, 0.0 }
0x130d   : > { %vm13482_vm6 = vcmp.ge.f32.partialorder %v13467_v38, 0.0  ;;  %v13497_v17 = vmul.f32 %v22622_v56, %v13467_v38  ;;  %v13510_v20 = vsel %vm13481_vm11, %v13466_v35, %v13496_v23 }
0x130e   : > { %v13376_v13 = vpop.permute.xlu1 %13375  ;;  %v13426_v1 = vld [vmem:[#allocation3 + $0x10] sm:$0xff] }
0x130f   : > { %13414 = vst.msk [vmem:[#allocation3 + $0x20] sm:$0xff] %vm13409_vm10, %v13376_v13  ;;  %v13511_v29 = vsel %vm13482_vm6, %v13467_v38, %v13497_v17  ;;  %v13447_v25 = vmul.f32 %v22615_v63, %v13426_v1 }
0x1310   : > { %v13378_v49 = vpop.permute.xlu0 %13377  ;;  %v13525_v37 = vpack.c.bf16 %v13511_v29, %v13510_v20  ;;  %v13427_v44 = vld [vmem:[#allocation3 + $0x18] sm:$0xff] }
0x1311   : > { %13415 = vst.msk [vmem:[#allocation3 + $0x28] sm:$0xff] %vm13409_vm10, %v13378_v49  ;;  %v13448_v36 = vmul.f32 %v22615_v63, %v13427_v44  ;;  %v13468_v33 = vadd.f32 %v22618_v50, %v13447_v25 }
0x1312   : > { %16128 = vmatpush3.bf16.msra.mxu0 %v13525_v37 }
0x1313   : > { %16129 = vmatprep.subr.bf16.mxu0 %v22827_v53  ;;  %v13469_v27 = vadd.f32 %v22618_v50, %v13448_v36  ;;  %v13498_v3 = vmul.f32 %v22622_v56, %v13468_v33  ;;  %vm13483_vm9 = vcmp.ge.f32.partialorder %v13468_v33, 0.0 }
0x1315   : > { %vm13484_vm12 = vcmp.ge.f32.partialorder %v13469_v27, 0.0  ;;  %v13499_v58 = vmul.f32 %v22622_v56, %v13469_v27  ;;  %v13512_v41 = vsel %vm13483_vm9, %v13468_v33, %v13498_v3  ;;  %vm13590_vm9 = vcmask 490496  }
0x1316   : > { %v13380_v42 = vpop.permute.xlu1 %13379  ;;  %v13428_v4 = vld [vmem:[#allocation3 + $0x20] sm:$0xff] }
0x1317   : > { %13416 = vst.msk [vmem:[#allocation3 + $0x30] sm:$0xff] %vm13409_vm10, %v13380_v42  ;;  %v13513_v46 = vsel %vm13484_vm12, %v13469_v27, %v13499_v58  ;;  %v13449_v51 = vmul.f32 %v22615_v63, %v13428_v4 }
0x1318   : > { %v13382_v5 = vpop.permute.xlu0 %13381  ;;  %v13526_v30 = vpack.c.bf16 %v13513_v46, %v13512_v41  ;;  %v13429_v39 = vld [vmem:[#allocation3 + $0x28] sm:$0xff] }
0x1319   : > { %13417 = vst.msk [vmem:[#allocation3 + $0x38] sm:$0xff] %vm13409_vm10, %v13382_v5  ;;  %v13450_v28 = vmul.f32 %v22615_v63, %v13429_v39  ;;  %v13470_v22 = vadd.f32 %v22618_v50, %v13449_v51  ;;  %v13575_v5 = vld [vmem:[%s18064_s13] sm:$0xff] }
0x131a   : > { %16130 = vmatpush3.bf16.msra.mxu0 %v13526_v30  ;;  %v13524_v39 = vld [vmem:[%s22879_s3] sm:$0x1]  ;;  %s1274_s3 = scalar_lea.vmem [#allocation8], %s13802_s5  ;;  %s17737_s5 = sshll.u32 %s17855_s0, 4  ;;  %s17738_s5 = int_to_ptr.vmem [resolvable:$false] %s17737_s5 }
0x131b   : > { %16131 = vmatprep.subr.bf16.mxu0 %v22827_v53  ;;  %v13471_v52 = vadd.f32 %v22618_v50, %v13450_v28  ;;  %v13500_v48 = vmul.f32 %v22622_v56, %v13470_v22  ;;  %vm13485_vm13 = vcmp.ge.f32.partialorder %v13470_v22, 0.0  ;;  %s13683_s6 = sshll.u32 %s1274_s3, 4  ;;  %s22701_s6 = int_to_ptr.vmem [resolvable:$true] %s13683_s6 }
0x131c   : > { %s17733_s12 = scalar_lea.vmem %s22701_s6, 32  ;;  %p17740_p10 = scmp.lt.s32.totalorder %s22701_s6, %s17738_s5 }
0x131d   : > { %vm13486_vm7 = vcmp.ge.f32.partialorder %v13471_v52, 0.0  ;;  %v13501_v24 = vmul.f32 %v22622_v56, %v13471_v52  ;;  %v13514_v16 = vsel %vm13485_vm13, %v13470_v22, %v13500_v48  ;;  %v17853_v22 = vmov 0.0|0.0   ;;  %v13579_v48 = vld [vmem:[%s18064_s13 + $0x20] sm:$0xff]  ;;  %p17734_p6 = scmp.ne.s32.totalorder %s22701_s6, %s17733_s12 }
0x131e   : > { %v13384_v7 = vpop.permute.xlu1 %13383  ;;  %v13430_v40 = vld [vmem:[#allocation3 + $0x30] sm:$0xff] }
0x131f   : > { %13418 = vst.msk [vmem:[#allocation3 + $0x40] sm:$0xff] %vm13409_vm10, %v13384_v7  ;;  %v13515_v14 = vsel %vm13486_vm7, %v13471_v52, %v13501_v24  ;;  %v13451_v61 = vmul.f32 %v22615_v63, %v13430_v40  ;;  %v13578_v52 = vld [vmem:[%s18064_s13 + $0x18] sm:$0xff]  ;;  %v13580_v24 = vld [vmem:[%s18064_s13 + $0x28] sm:$0xff]  ;;  %v13581_v40 = vld [vmem:[%s18064_s13 + $0x30] sm:$0xff]  ;;  %p17735_p8 = pnand %p17734_p6, %p22881_p7 }
0x1320   : > { %v13386_v31 = vpop.permute.xlu0 %13385  ;;  %v13527_v47 = vpack.c.bf16 %v13515_v14, %v13514_v16  ;;  %v13431_v57 = vld [vmem:[#allocation3 + $0x38] sm:$0xff]  ;;  %v16171_v7 = vpack.c.bf16 %v13580_v24, %v13579_v48  ;;  %v13582_v16 = vld [vmem:[%s18064_s13 + $0x38] sm:$0xf] }
0x1321   : > { %13419 = vst.msk [vmem:[#allocation3 + $0x48] sm:$0xff] %vm13409_vm10, %v13386_v31  ;;  %v13452_v9 = vmul.f32 %v22615_v63, %v13431_v57  ;;  %v13472_v62 = vadd.f32 %v22618_v50, %v13451_v61  ;;  %v16174_v14 = vpack.c.bf16 %v13582_v16, %v13581_v40  ;;  %v14770_v57 = vld [vmem:[%s22880_s4] ss:$0 sm:$0xff]  ;;  %p17736_p9 = pneg %p17735_p8  ;;  %s17739_s4 = scalar_lea.vmem %s17738_s5, 64 }
0x1322   : > { %16132 = vmatpush3.bf16.msra.mxu0 %v13527_v47  ;;  %p17741_p11 = scmp.lt.s32.totalorder %s17739_s4, %s17733_s12 }
0x1323   : > { %16133 = vmatprep.subr.bf16.mxu0 %v22827_v53  ;;  %v13473_v43 = vadd.f32 %v22618_v50, %v13452_v9  ;;  %v13502_v60 = vmul.f32 %v22622_v56, %v13472_v62  ;;  %vm13487_vm0 = vcmp.ge.f32.partialorder %v13472_v62, 0.0 }
0x1324   : > { %p17742_p12 = por %p17741_p11, %p17740_p10 }
0x1325   : > { %vm13488_vm2 = vcmp.ge.f32.partialorder %v13473_v43, 0.0  ;;  %v13503_v21 = vmul.f32 %v22622_v56, %v13473_v43  ;;  %v13516_v0 = vsel %vm13487_vm0, %v13472_v62, %v13502_v60 }
0x1326   : > { %v13388_v11 = vpop.permute.xlu1 %13387  ;;  %v13432_v26 = vld [vmem:[#allocation3 + $0x40] sm:$0xff]  ;;  %p17743_p13 = pnand %p17742_p12, %p17736_p9 }
0x1327   : > { %13420 = vst.msk [vmem:[#allocation3 + $0x50] sm:$0xff] %vm13409_vm10, %v13388_v11  ;;  %v13517_v18 = vsel %vm13488_vm2, %v13473_v43, %v13503_v21  ;;  %v13453_v55 = vmul.f32 %v22615_v63, %v13432_v26 }
0x1328   : > { %v13390_v59 = vpop.permute.xlu0 %13389  ;;  %v13528_v45 = vpack.c.bf16 %v13517_v18, %v13516_v0  ;;  %v13433_v10 = vld [vmem:[#allocation3 + $0x48] sm:$0xff] }
0x1329   : > { %13421 = vst.msk [vmem:[#allocation3 + $0x58] sm:$0xff] %vm13409_vm10, %v13390_v59  ;;  %v13454_v6 = vmul.f32 %v22615_v63, %v13433_v10  ;;  %v13474_v32 = vadd.f32 %v22618_v50, %v13453_v55 }
0x132a   : > { %16134 = vmatpush3.bf16.msra.mxu0 %v13528_v45 }
0x132b   : > { %16135 = vmatprep.subr.bf16.mxu0 %v22827_v53  ;;  %v13475_v12 = vadd.f32 %v22618_v50, %v13454_v6  ;;  %v13504_v54 = vmul.f32 %v22622_v56, %v13474_v32  ;;  %vm13489_vm3 = vcmp.ge.f32.partialorder %v13474_v32, 0.0 }
0x132d   : > { %vm13490_vm14 = vcmp.ge.f32.partialorder %v13475_v12, 0.0  ;;  %v13505_v15 = vmul.f32 %v22622_v56, %v13475_v12  ;;  %v13518_v8 = vsel %vm13489_vm3, %v13474_v32, %v13504_v54 }
0x132e   : > { %v13392_v2 = vpop.permute.xlu1 %13391  ;;  %v13434_v19 = vld [vmem:[#allocation3 + $0x50] sm:$0xff] }
0x132f   : > { %13422 = vst.msk [vmem:[#allocation3 + $0x60] sm:$0xff] %vm13409_vm10, %v13392_v2  ;;  %v13519_v34 = vsel %vm13490_vm14, %v13475_v12, %v13505_v15  ;;  %v13455_v35 = vmul.f32 %v22615_v63, %v13434_v19 }
0x1330   : > { %v13394_v38 = vpop.permute.xlu0 %13393  ;;  %v13529_v23 = vpack.c.bf16 %v13519_v34, %v13518_v8  ;;  %v13435_v17 = vld [vmem:[#allocation3 + $0x58] sm:$0xff] }
0x1331   : > { %13423 = vst.msk [vmem:[#allocation3 + $0x68] sm:$0xff] %vm13409_vm10, %v13394_v38  ;;  %v13456_v13 = vmul.f32 %v22615_v63, %v13435_v17  ;;  %v13476_v1 = vadd.f32 %v22618_v50, %v13455_v35 }
0x1332   : > { %16136 = vmatpush3.bf16.msra.mxu0 %v13529_v23 }
0x1333   : > { %16137 = vmatprep.subr.bf16.mxu0 %v22827_v53  ;;  %v13477_v20 = vadd.f32 %v22618_v50, %v13456_v13  ;;  %v13506_v29 = vmul.f32 %v22622_v56, %v13476_v1  ;;  %vm13491_vm4 = vcmp.ge.f32.partialorder %v13476_v1, 0.0 }
0x1335   : > { %vm13492_vm5 = vcmp.ge.f32.partialorder %v13477_v20, 0.0  ;;  %v13507_v25 = vmul.f32 %v22622_v56, %v13477_v20  ;;  %v13520_v37 = vsel %vm13491_vm4, %v13476_v1, %v13506_v29 }
0x1336   : > { %v13436_v49 = vld [vmem:[#allocation3 + $0x60] sm:$0xff] }
0x1337   : > { %v13521_v44 = vsel %vm13492_vm5, %v13477_v20, %v13507_v25  ;;  %v13457_v36 = vmul.f32 %v22615_v63, %v13436_v49 }
0x1338   : > { %v13530_v33 = vpack.c.bf16 %v13521_v44, %v13520_v37  ;;  %v13437_v27 = vld [vmem:[#allocation3 + $0x68] sm:$0xff] }
0x1339   : > { %v13458_v3 = vmul.f32 %v22615_v63, %v13437_v27  ;;  %v13478_v58 = vadd.f32 %v22618_v50, %v13457_v36  ;;  %v13576_v63 = vld [vmem:[%s18064_s13 + $0x8] sm:$0xff] }
0x133a   : > { %16138 = vmatpush3.bf16.msra.mxu0 %v13530_v33  ;;  %v16165_v28 = vpack.c.bf16 %v13576_v63, %v13575_v5 }
0x133b   : > { %16139 = vmatprep.subr.bf16.mxu0 %v22827_v53  ;;  %v13479_v42 = vadd.f32 %v22618_v50, %v13458_v3  ;;  %v13508_v4 = vmul.f32 %v22622_v56, %v13478_v58  ;;  %vm13493_vm10 = vcmp.ge.f32.partialorder %v13478_v58, 0.0  ;;  %v13577_v50 = vld [vmem:[%s18064_s13 + $0x10] sm:$0xff] }
0x133d   : > { %vm13494_vm11 = vcmp.ge.f32.partialorder %v13479_v42, 0.0  ;;  %v13509_v41 = vmul.f32 %v22622_v56, %v13479_v42  ;;  %v13522_v46 = vsel %vm13493_vm10, %v13478_v58, %v13508_v4  ;;  %v16168_v56 = vpack.c.bf16 %v13578_v52, %v13577_v50 }
0x133f   : > { %v13523_v51 = vsel %vm13494_vm11, %v13479_v42, %v13509_v41 }
0x1340   : > { %v13531_v30 = vpack.c.bf16 %v13523_v51, %v13522_v46 }
0x1342   : > { %16140 = vmatpush3.bf16.msra.mxu0 %v13531_v30 }
0x1343   : > { %16164 = vmatprep.subr.bf16.mxu0 %v17853_v22 }
0x1345   : > { %16142 = vmatmul.mubr.msk.bf16.vlgmr.msra.gmra.mrb[196].mxu0 %vm1487_vm1, %v13524_v39  ;;  %vm17854_vm1 = vmmov 1  }
0x1346   : > { %16166 = vmatpush3.bf16.msra.mxu0 %v16165_v28  ;;  %16161 = vmatprep.mubr.msk.f32.mxu0 %vm17847_vm15, %v22827_v53  ;;  %vm16175_vm6 = vmpackc.low %vm2563_vm8, %vm17854_vm1  ;;  %vm13667_vm15 = vcmask 66560  }
0x1347   : > { %16167 = vmatprep.subr.bf16.mxu0 %v17853_v22 }
0x134a   : > { %16169 = vmatpush3.bf16.msra.mxu0 %v16168_v56 }
0x134b   : > { %16170 = vmatprep.subr.bf16.mxu0 %v17853_v22 }
0x134e   : > { %16172 = vmatpush3.bf16.msra.mxu0 %v16171_v7 }
0x134f   : > { %16173 = vmatprep.subr.bf16.mxu0 %v17853_v22 }
0x1352   : > { %16176 = vmatpush3.bf16.msk.msra.mxu0 %vm16175_vm6, %v16174_v14 }
0x1418   : > { %v13569_v53 = vpop.f32.mrb[196].mxu0 }
0x1419   : > { %v16143_v61 = vpop.f32.mrb[197].mxu0  ;;  %16162 = vmatmul.mubr.msk.f32.vlgmr.msra.gmra.mrb[200].mxu0 %vm13590_vm9, %v13569_v53 }
0x141a   : > { %v13572_v31 = vpop.f32.mrb[198].mxu0 }
0x141b   : > { %v16144_v47 = vpop.f32.mrb[199].mxu0 }
0x14ec   : > { %v13663_v9 = vpop.f32.mrb[200].mxu0 }
0x14ed   : > { %v13664_v62 = vadd.f32 %v14770_v57, %v13663_v9  ;;  %v16163_v43 = vpop.f32.mrb[201].mxu0 }
0x14ef   : > { %13668 = vst.msk [vmem:[%s1274_s3] sm:$0x3] %vm13667_vm15, %v13664_v62 }
0x14f0   : > { %17746 = shalt.err (!%p17743_p13)
}
0x14f1   : > { %s17747_s11 = scalar_lea.hbm %s22699_s8, 32  ;;  %s17751_s1 = scalar_lea.hbm %s18074_s27, 64 }
0x14f2   : > { %p17748_p0 = scmp.ne.s32.totalorder %s22699_s8, %s17747_s11  ;;  %p17752_p3 = scmp.lt.u32.totalorder %s22699_s8, %s18074_s27 }
0x14f3   : > { %p17753_p4 = scmp.lt.u32.totalorder %s17751_s1, %s17747_s11  ;;  %p17755_p6 = scmp.lt.u32.totalorder %s17747_s11, %s22699_s8 }
0x14f4   : > { %p17749_p1 = pnand %p17748_p0, %p22881_p7 }
0x14f5   : > { %p17754_p5 = por %p17753_p4, %p17752_p3 }
0x14f6   : > { %p17750_p2 = pneg %p17749_p1 }
0x14f7   : > { %p17756_p8 = por %p17755_p6, %p17754_p5 }
0x14f9   : > { %p17757_p9 = pnand %p17756_p8, %p17750_p2 }
0x14fb   : > { %17760 = shalt.err (!%p17757_p9)
}
0x14fc   : > { %17217 = dma.vmem_to_hbm [thread:$0]  (%p22881_p7), %s22701_s6, 32, %s22699_s8, %s13670_s9  }
0x14fd PF: > { %p17229_p10 = scmp.ge.s32.totalorder %s17799_s22, 2  ;;  %s13695_s12 = sand.u32 1, %s17787_s15  }
0x14fe   : > { %p22882_p11 = scmp.ne.s32.totalorder %s22809_s10, 0  ;;  %s13696_s4 = scalar_lea.sflag [#allocation6], %s13695_s12 }
0x1500   : > { %p17224_p12 = pnand %p17229_p10, %p22882_p11 }
0x1502   : > { %17782 = dma.done.wait (!%p17224_p12), %s13696_s4, 32  }
0x1503   : > { %17784 = vsyncadd (!%p17224_p12), %s13696_s4, 4294967264  ;;  %p96_p13 = scmp.ge.s32.totalorder %s18101_s26, 4   ;;  %s22883_s15 = smov %s17791_s16 }
0x1504   : > { %s22884_s16 = smov %s17795_s18  ;;  %s22885_s18 = smov %s18112_s2 }
0x1505   : > { %s22886_s22 = smov %s18101_s26  ;;  %98 = sbr.rel (!%p96_p13) target bundleno = 86 (0x56), region = 302 }
0x150c   :  { %13701 = vsyncpa [#allocation6], 1 }
0x150d   :  { %13703 = vsyncpa [#allocation6 + $0x1], 1 }
0x150e   :  { %13704 = vsyncpa [#allocation7], 1 }
0x150f   :  { %13706 = vsyncpa [#allocation7 + $0x1], 1 }

</bundles_post_ra>
